<compile_context>
chip_gen: v7x
topology: tpu7x:2x2x1
jax: 0.10.0
libtpu: 0.0.40
codegen_flags: <defaults>
</compile_context>

<pallas_src>
import functools

import jax
import jax.numpy as jnp
import numpy as np
from jax.experimental import pallas as pl
from jax.experimental.pallas import tpu as pltpu


def _se_bottleneck_kernel(H, W, Cin, Cmid, Cout,
                          x_ref, w1_ref, b1_ref, w2_ref, b2_ref,
                          w3_ref, b3_ref, wf1_ref, wf2_ref,
                          o_ref,
                          pad_ref, col_ref):
    """One grid step = one image (NHWC). BN is pre-folded into weights/biases."""
    x2d = x_ref[0].reshape(H * W, Cin)                    # conv1 input AND residual

    # ---- conv1 (1x1) + bn1 + relu : single MXU matmul -------------------------
    h1 = jnp.dot(x2d, w1_ref[...], preferred_element_type=jnp.float32)
    h1 = jnp.maximum(h1 + b1_ref[...], 0.0)               # (H*W, Cmid)

    # ---- zero halo for the 3x3 conv --------------------------------------------
    # Only the border strips are (re)zeroed each step.  (A one-time init under
    # pl.when(pid == 0) is unsafe with "parallel" grid sharding on v7x: each core
    # has its own scratch and only one of them would see pid == 0.)
    zrow = jnp.zeros((1, W + 2, Cmid), jnp.float32)
    zcol = jnp.zeros((H + 2, 1, Cmid), jnp.float32)
    pad_ref[0:1, :, :] = zrow
    pad_ref[H + 1:H + 2, :, :] = zrow
    pad_ref[:, 0:1, :] = zcol
    pad_ref[:, W + 1:W + 2, :] = zcol
    pad_ref[1:H + 1, 1:W + 1, :] = h1.reshape(H, W, Cmid)  # interior only

    # ---- im2col: 9 lane-aligned (Cmid = 128) copies into the col buffer ---------
    for dy in range(3):
        for dx in range(3):
            t = dy * 3 + dx
            col_ref[:, t * Cmid:(t + 1) * Cmid] = (
                pad_ref[dy:dy + H, dx:dx + W, :].reshape(H * W, Cmid))

    # ---- conv2 (3x3, stride 1, pad 1) + bn2 + relu : ONE matmul, K = 9*Cmid -----
    h2 = jnp.dot(col_ref[...], w2_ref[...], preferred_element_type=jnp.float32)
    h2 = jnp.maximum(h2 + b2_ref[...], 0.0)               # (H*W, Cmid)

    # ---- conv3 (1x1) + bn3 ------------------------------------------------------
    h3 = jnp.dot(h2, w3_ref[...], preferred_element_type=jnp.float32) + b3_ref[...]

    # ---- SE: global-avg-pool -> fc1 -> relu -> fc2 -> sigmoid -> channel gate ---
    y = jnp.mean(h3, axis=0, keepdims=True)                                    # (1, Cout)
    z = jnp.maximum(jnp.dot(y, wf1_ref[...], preferred_element_type=jnp.float32), 0.0)
    g = jax.nn.sigmoid(jnp.dot(z, wf2_ref[...], preferred_element_type=jnp.float32))

    # ---- residual add + final relu (lane-dense Cout = 512 store) ----------------
    o_ref[0] = jnp.maximum(h3 * g + x2d, 0.0).reshape(H, W, Cout)


def se_bottleneck(x_nchw, w1m, w2_hwio, w3m, bn1, bn2, bn3, wf1, wf2, eps=1e-5):
    """SEBottleneck forward (inference-mode BN, stride=1, downsample=None).

    x_nchw  : (B, Cin, H, W) with Cin == planes*4
    w1m     : (Cin, Cmid)        conv1 1x1 weight as a matrix
    w2_hwio : (3, 3, Cmid, Cmid) conv2 3x3 weight (HWIO layout)
    w3m     : (Cmid, Cout)       conv3 1x1 weight as a matrix (Cout == planes*4)
    bn*     : (gamma, beta, running_mean, running_var)
    wf1     : (Cout, R), wf2: (R, Cout)  SE Linear weights (in, out), no bias
    """
    x = jnp.transpose(x_nchw, (0, 2, 3, 1))                      # NHWC
    B, H, W, Cin = x.shape
    Cmid = w1m.shape[1]
    Cout = w3m.shape[1]
    R = wf1.shape[1]

    # Fold BN (inference) into conv weights: y = conv(x, w)*s + b
    def fold(w, bn):
        g, be, m, v = bn
        s = g * jax.lax.rsqrt(v + eps)
        return w * s, (be - m * s).reshape(1, -1)

    w1f, b1 = fold(w1m, bn1)
    w2f, b2 = fold(w2_hwio, bn2)
    w3f, b3 = fold(w3m, bn3)
    w2r = w2f.reshape(9 * Cmid, Cmid)        # (ky,kx,ci) flattened == im2col order

    kernel = functools.partial(_se_bottleneck_kernel, H, W, Cin, Cmid, Cout)

    flops = (2 * B * H * W * (Cin * Cmid + 9 * Cmid * Cmid + Cmid * Cout)
             + 4 * B * Cout * R)
    bytes_accessed = 4 * (2 * B * H * W * Cin
                          + int(w1f.size) + int(w2r.size) + int(w3f.size)
                          + int(wf1.size) + int(wf2.size))
    cost = pl.CostEstimate(flops=flops, transcendentals=B * Cout,
                           bytes_accessed=bytes_accessed)

    out_nhwc = pl.pallas_call(
        kernel,
        out_shape=jax.ShapeDtypeStruct((B, H, W, Cout), jnp.float32),
        grid_spec=pltpu.PrefetchScalarGridSpec(
            num_scalar_prefetch=0,
            grid=(B,),
            in_specs=[
                pl.BlockSpec((1, H, W, Cin),   lambda b: (b, 0, 0, 0)),  # x (also residual)
                pl.BlockSpec((Cin, Cmid),      lambda b: (0, 0)),        # conv1 w (BN folded)
                pl.BlockSpec((1, Cmid),        lambda b: (0, 0)),        # bn1 bias
                pl.BlockSpec((9 * Cmid, Cmid), lambda b: (0, 0)),        # conv2 im2col weight
                pl.BlockSpec((1, Cmid),        lambda b: (0, 0)),        # bn2 bias
                pl.BlockSpec((Cmid, Cout),     lambda b: (0, 0)),        # conv3 w (BN folded)
                pl.BlockSpec((1, Cout),        lambda b: (0, 0)),        # bn3 bias
                pl.BlockSpec((Cout, R),        lambda b: (0, 0)),        # SE fc1
                pl.BlockSpec((R, Cout),        lambda b: (0, 0)),        # SE fc2
            ],
            out_specs=pl.BlockSpec((1, H, W, Cout), lambda b: (b, 0, 0, 0)),
            scratch_shapes=[
                pltpu.VMEM((H + 2, W + 2, Cmid), jnp.float32),  # padded conv2 input
                pltpu.VMEM((H * W, 9 * Cmid), jnp.float32),     # im2col buffer
            ],
        ),
        compiler_params=pltpu.CompilerParams(
            dimension_semantics=("parallel",)),
        cost_estimate=cost,
    )(x, w1f, b1, w2r, b2, w3f, b3, wf1, wf2)

    return jnp.transpose(out_nhwc, (0, 3, 1, 2))                 # back to NCHW


# ------------------------- plain-JAX reference (for checking) -------------------
def _reference_nhwc(x, w1m, w2_hwio, w3m, bn1, bn2, bn3, wf1, wf2, eps=1e-5):
    def bn(o, p):
        g, be, m, v = p
        return (o - m) / jnp.sqrt(v + eps) * g + be

    out = jnp.einsum("bhwc,cd->bhwd", x, w1m)
    out = jnp.maximum(bn(out, bn1), 0.0)
    out = jax.lax.conv_general_dilated(
        out, w2_hwio, window_strides=(1, 1), padding="SAME",
        dimension_numbers=("NHWC", "HWIO", "NHWC"))
    out = jnp.maximum(bn(out, bn2), 0.0)
    out = jnp.einsum("bhwc,cd->bhwd", out, w3m)
    out = bn(out, bn3)
    y = out.mean(axis=(1, 2))                  # (B, Cout)
    y = jnp.maximum(y @ wf1, 0.0)
    y = jax.nn.sigmoid(y @ wf2)
    out = out * y[:, None, None, :]
    return jnp.maximum(out + x, 0.0)


if __name__ == "__main__":
    # Real SE-ResNet bottleneck sizes (lane-aligned), tiny spatial extent:
    # planes=128 -> conv channels 512 -> 128 -> 128 -> 512, reduction=16 -> R=32.
    B, planes, H, W = 2, 128, 16, 16
    reduction = 16
    Cmid = planes
    Cin = Cout = planes * 4          # expansion = 4; downsample=None => inplanes == planes*4
    R = Cout // reduction
    eps = 1e-5

    key = jax.random.PRNGKey(0)
    ks = jax.random.split(key, 9)

    x_nchw = jax.random.normal(ks[0], (B, Cin, H, W), jnp.float32)

    # Conv weights (equivalent parametrization to PyTorch's OIHW weights):
    w1m = jax.random.normal(ks[1], (Cin, Cmid), jnp.float32) * (Cin ** -0.5)
    w2 = jax.random.normal(ks[2], (3, 3, Cmid, Cmid), jnp.float32) * ((9 * Cmid) ** -0.5)
    w3m = jax.random.normal(ks[3], (Cmid, Cout), jnp.float32) * (Cmid ** -0.5)

    def bn_params(k, C):
        k1, k2, k3, k4 = jax.random.split(k, 4)
        g = 1.0 + 0.1 * jax.random.normal(k1, (C,), jnp.float32)
        be = 0.1 * jax.random.normal(k2, (C,), jnp.float32)
        m = 0.1 * jax.random.normal(k3, (C,), jnp.float32)
        v = jnp.abs(jax.random.normal(k4, (C,), jnp.float32)) + 0.5
        return g, be, m, v

    bn1 = bn_params(ks[4], Cmid)
    bn2 = bn_params(ks[5], Cmid)
    bn3 = bn_params(ks[6], Cout)

    # SE fully-connected weights stored as (in, out) so `y @ W` matches nn.Linear.
    wf1 = jax.random.normal(ks[7], (Cout, R), jnp.float32) * (Cout ** -0.5)
    wf2 = jax.random.normal(ks[8], (R, Cout), jnp.float32) * (R ** -0.5)

    out = se_bottleneck(x_nchw, w1m, w2, w3m, bn1, bn2, bn3, wf1, wf2, eps)
    out = jax.block_until_ready(out)

    # Correctness check against the plain-JAX reference.
    x_nhwc = jnp.transpose(x_nchw, (0, 2, 3, 1))
    ref = _reference_nhwc(x_nhwc, w1m, w2, w3m, bn1, bn2, bn3, wf1, wf2, eps)
    ref_nchw = jnp.transpose(ref, (0, 3, 1, 2))

    np.testing.assert_allclose(np.asarray(out), np.asarray(ref_nchw),
                               rtol=2e-4, atol=2e-4)
    print("KERNEL_OK")
</pallas_src>

<mosaic_0001>
module attributes {stable_mosaic.version = 11 : i64} {
  func.func @_se_bottleneck_kernel(%arg0: i32, %arg1: memref<1x16x16x512xf32, #tpu.memory_space<vmem>>, %arg2: memref<512x128xf32, #tpu.memory_space<vmem>>, %arg3: memref<1x128xf32, #tpu.memory_space<vmem>>, %arg4: memref<1152x128xf32, #tpu.memory_space<vmem>>, %arg5: memref<1x128xf32, #tpu.memory_space<vmem>>, %arg6: memref<128x512xf32, #tpu.memory_space<vmem>>, %arg7: memref<1x512xf32, #tpu.memory_space<vmem>>, %arg8: memref<512x32xf32, #tpu.memory_space<vmem>>, %arg9: memref<32x512xf32, #tpu.memory_space<vmem>>, %arg10: memref<1x16x16x512xf32, #tpu.memory_space<vmem>>, %arg11: memref<18x18x128xf32, #tpu.memory_space<vmem>>, %arg12: memref<256x1152xf32, #tpu.memory_space<vmem>>) attributes {dimension_semantics = [#tpu.dimension_semantics<parallel>], iteration_bounds = array<i64: 2>, scalar_prefetch = 0 : i64, scratch_operands = 2 : i64, tpu.core_type = #tpu.core_type<tc>, window_params = [{transform_indices = @transform_0, window_bounds = array<i64: 1, 16, 16, 512>}, {pipeline_mode = #tpu.pipeline_mode<synchronous>, transform_indices = @transform_1, window_bounds = array<i64: 512, 128>}, {pipeline_mode = #tpu.pipeline_mode<synchronous>, transform_indices = @transform_2, window_bounds = array<i64: 1, 128>}, {pipeline_mode = #tpu.pipeline_mode<synchronous>, transform_indices = @transform_3, window_bounds = array<i64: 1152, 128>}, {pipeline_mode = #tpu.pipeline_mode<synchronous>, transform_indices = @transform_4, window_bounds = array<i64: 1, 128>}, {pipeline_mode = #tpu.pipeline_mode<synchronous>, transform_indices = @transform_5, window_bounds = array<i64: 128, 512>}, {pipeline_mode = #tpu.pipeline_mode<synchronous>, transform_indices = @transform_6, window_bounds = array<i64: 1, 512>}, {pipeline_mode = #tpu.pipeline_mode<synchronous>, transform_indices = @transform_7, window_bounds = array<i64: 512, 32>}, {pipeline_mode = #tpu.pipeline_mode<synchronous>, transform_indices = @transform_8, window_bounds = array<i64: 32, 512>}, {transform_indices = @transform_9, window_bounds = array<i64: 1, 16, 16, 512>}]} {
    %c0 = arith.constant 0 : index
    %c0_0 = arith.constant 0 : index
    %c0_1 = arith.constant 0 : index
    %c0_2 = arith.constant 0 : index
    %0 = vector.load %arg1[%c0, %c0_0, %c0_1, %c0_2] : memref<1x16x16x512xf32, #tpu.memory_space<vmem>>, vector<1x16x16x512xf32>
    %1 = vector.shape_cast %0 : vector<1x16x16x512xf32> to vector<16x16x512xf32>
    %2 = vector.shape_cast %1 : vector<16x16x512xf32> to vector<256x512xf32>
    %c0_3 = arith.constant 0 : index
    %c0_4 = arith.constant 0 : index
    %3 = vector.load %arg2[%c0_3, %c0_4] : memref<512x128xf32, #tpu.memory_space<vmem>>, vector<512x128xf32>
    %cst = arith.constant dense<0.000000e+00> : vector<256x128xf32>
    %4 = tpu.matmul %2, %3, %cst {dimension_numbers = #tpu.dot_dimension_numbers<[1], [0], [0], [1], [0, 0, 1, 1], [], []>} : vector<256x512xf32>, vector<512x128xf32>, vector<256x128xf32> -> vector<256x128xf32>
    %c0_5 = arith.constant 0 : index
    %c0_6 = arith.constant 0 : index
    %5 = vector.load %arg3[%c0_5, %c0_6] : memref<1x128xf32, #tpu.memory_space<vmem>>, vector<1x128xf32>
    %6 = vector.broadcast %5 : vector<1x128xf32> to vector<256x128xf32>
    %7 = arith.addf %4, %6 : vector<256x128xf32>
    %cst_7 = arith.constant 0.000000e+00 : f32
    %8 = vector.broadcast %cst_7 : f32 to vector<256x128xf32>
    %9 = arith.maximumf %7, %8 : vector<256x128xf32>
    %cst_8 = arith.constant 0.000000e+00 : f32
    %10 = vector.broadcast %cst_8 : f32 to vector<1x18x128xf32>
    %cst_9 = arith.constant 0.000000e+00 : f32
    %11 = vector.broadcast %cst_9 : f32 to vector<18x1x128xf32>
    %c0_10 = arith.constant 0 : index
    %c0_11 = arith.constant 0 : index
    %c0_12 = arith.constant 0 : index
    %12 = vector.load %arg11[%c0_10, %c0_11, %c0_12] : memref<18x18x128xf32, #tpu.memory_space<vmem>>, vector<1x18x128xf32>
    tpu.vector_store %arg11[%c0_10, %c0_11, %c0_12], %10 {strides = array<i32>} : memref<18x18x128xf32, #tpu.memory_space<vmem>>, vector<1x18x128xf32>,
    %c17 = arith.constant 17 : index
    %c0_13 = arith.constant 0 : index
    %c0_14 = arith.constant 0 : index
    %13 = vector.load %arg11[%c17, %c0_13, %c0_14] : memref<18x18x128xf32, #tpu.memory_space<vmem>>, vector<1x18x128xf32>
    tpu.vector_store %arg11[%c17, %c0_13, %c0_14], %10 {strides = array<i32>} : memref<18x18x128xf32, #tpu.memory_space<vmem>>, vector<1x18x128xf32>,
    %c0_15 = arith.constant 0 : index
    %c0_16 = arith.constant 0 : index
    %c0_17 = arith.constant 0 : index
    %14 = vector.load %arg11[%c0_15, %c0_16, %c0_17] : memref<18x18x128xf32, #tpu.memory_space<vmem>>, vector<18x1x128xf32>
    tpu.vector_store %arg11[%c0_15, %c0_16, %c0_17], %11 {strides = array<i32>} : memref<18x18x128xf32, #tpu.memory_space<vmem>>, vector<18x1x128xf32>,
    %c0_18 = arith.constant 0 : index
    %c17_19 = arith.constant 17 : index
    %c0_20 = arith.constant 0 : index
    %15 = vector.load %arg11[%c0_18, %c17_19, %c0_20] : memref<18x18x128xf32, #tpu.memory_space<vmem>>, vector<18x1x128xf32>
    tpu.vector_store %arg11[%c0_18, %c17_19, %c0_20], %11 {strides = array<i32>} : memref<18x18x128xf32, #tpu.memory_space<vmem>>, vector<18x1x128xf32>,
    %16 = vector.shape_cast %9 : vector<256x128xf32> to vector<16x16x128xf32>
    %c1 = arith.constant 1 : index
    %c1_21 = arith.constant 1 : index
    %c0_22 = arith.constant 0 : index
    %17 = vector.load %arg11[%c1, %c1_21, %c0_22] : memref<18x18x128xf32, #tpu.memory_space<vmem>>, vector<16x16x128xf32>
    tpu.vector_store %arg11[%c1, %c1_21, %c0_22], %16 {strides = array<i32>} : memref<18x18x128xf32, #tpu.memory_space<vmem>>, vector<16x16x128xf32>,
    %c0_23 = arith.constant 0 : index
    %c0_24 = arith.constant 0 : index
    %c0_25 = arith.constant 0 : index
    %18 = vector.load %arg11[%c0_23, %c0_24, %c0_25] : memref<18x18x128xf32, #tpu.memory_space<vmem>>, vector<16x16x128xf32>
    %19 = vector.shape_cast %18 : vector<16x16x128xf32> to vector<256x128xf32>
    %c0_26 = arith.constant 0 : index
    %c0_27 = arith.constant 0 : index
    %20 = vector.load %arg12[%c0_26, %c0_27] : memref<256x1152xf32, #tpu.memory_space<vmem>>, vector<256x128xf32>
    tpu.vector_store %arg12[%c0_26, %c0_27], %19 {strides = array<i32>} : memref<256x1152xf32, #tpu.memory_space<vmem>>, vector<256x128xf32>,
    %c0_28 = arith.constant 0 : index
    %c1_29 = arith.constant 1 : index
    %c0_30 = arith.constant 0 : index
    %21 = vector.load %arg11[%c0_28, %c1_29, %c0_30] : memref<18x18x128xf32, #tpu.memory_space<vmem>>, vector<16x16x128xf32>
    %22 = vector.shape_cast %21 : vector<16x16x128xf32> to vector<256x128xf32>
    %c0_31 = arith.constant 0 : index
    %c128 = arith.constant 128 : index
    %23 = vector.load %arg12[%c0_31, %c128] : memref<256x1152xf32, #tpu.memory_space<vmem>>, vector<256x128xf32>
    tpu.vector_store %arg12[%c0_31, %c128], %22 {strides = array<i32>} : memref<256x1152xf32, #tpu.memory_space<vmem>>, vector<256x128xf32>,
    %c0_32 = arith.constant 0 : index
    %c2 = arith.constant 2 : index
    %c0_33 = arith.constant 0 : index
    %24 = vector.load %arg11[%c0_32, %c2, %c0_33] : memref<18x18x128xf32, #tpu.memory_space<vmem>>, vector<16x16x128xf32>
    %25 = vector.shape_cast %24 : vector<16x16x128xf32> to vector<256x128xf32>
    %c0_34 = arith.constant 0 : index
    %c256 = arith.constant 256 : index
    %26 = vector.load %arg12[%c0_34, %c256] : memref<256x1152xf32, #tpu.memory_space<vmem>>, vector<256x128xf32>
    tpu.vector_store %arg12[%c0_34, %c256], %25 {strides = array<i32>} : memref<256x1152xf32, #tpu.memory_space<vmem>>, vector<256x128xf32>,
    %c1_35 = arith.constant 1 : index
    %c0_36 = arith.constant 0 : index
    %c0_37 = arith.constant 0 : index
    %27 = vector.load %arg11[%c1_35, %c0_36, %c0_37] : memref<18x18x128xf32, #tpu.memory_space<vmem>>, vector<16x16x128xf32>
    %28 = vector.shape_cast %27 : vector<16x16x128xf32> to vector<256x128xf32>
    %c0_38 = arith.constant 0 : index
    %c384 = arith.constant 384 : index
    %29 = vector.load %arg12[%c0_38, %c384] : memref<256x1152xf32, #tpu.memory_space<vmem>>, vector<256x128xf32>
    tpu.vector_store %arg12[%c0_38, %c384], %28 {strides = array<i32>} : memref<256x1152xf32, #tpu.memory_space<vmem>>, vector<256x128xf32>,
    %c1_39 = arith.constant 1 : index
    %c1_40 = arith.constant 1 : index
    %c0_41 = arith.constant 0 : index
    %30 = vector.load %arg11[%c1_39, %c1_40, %c0_41] : memref<18x18x128xf32, #tpu.memory_space<vmem>>, vector<16x16x128xf32>
    %31 = vector.shape_cast %30 : vector<16x16x128xf32> to vector<256x128xf32>
    %c0_42 = arith.constant 0 : index
    %c512 = arith.constant 512 : index
    %32 = vector.load %arg12[%c0_42, %c512] : memref<256x1152xf32, #tpu.memory_space<vmem>>, vector<256x128xf32>
    tpu.vector_store %arg12[%c0_42, %c512], %31 {strides = array<i32>} : memref<256x1152xf32, #tpu.memory_space<vmem>>, vector<256x128xf32>,
    %c1_43 = arith.constant 1 : index
    %c2_44 = arith.constant 2 : index
    %c0_45 = arith.constant 0 : index
    %33 = vector.load %arg11[%c1_43, %c2_44, %c0_45] : memref<18x18x128xf32, #tpu.memory_space<vmem>>, vector<16x16x128xf32>
    %34 = vector.shape_cast %33 : vector<16x16x128xf32> to vector<256x128xf32>
    %c0_46 = arith.constant 0 : index
    %c640 = arith.constant 640 : index
    %35 = vector.load %arg12[%c0_46, %c640] : memref<256x1152xf32, #tpu.memory_space<vmem>>, vector<256x128xf32>
    tpu.vector_store %arg12[%c0_46, %c640], %34 {strides = array<i32>} : memref<256x1152xf32, #tpu.memory_space<vmem>>, vector<256x128xf32>,
    %c2_47 = arith.constant 2 : index
    %c0_48 = arith.constant 0 : index
    %c0_49 = arith.constant 0 : index
    %36 = vector.load %arg11[%c2_47, %c0_48, %c0_49] : memref<18x18x128xf32, #tpu.memory_space<vmem>>, vector<16x16x128xf32>
    %37 = vector.shape_cast %36 : vector<16x16x128xf32> to vector<256x128xf32>
    %c0_50 = arith.constant 0 : index
    %c768 = arith.constant 768 : index
    %38 = vector.load %arg12[%c0_50, %c768] : memref<256x1152xf32, #tpu.memory_space<vmem>>, vector<256x128xf32>
    tpu.vector_store %arg12[%c0_50, %c768], %37 {strides = array<i32>} : memref<256x1152xf32, #tpu.memory_space<vmem>>, vector<256x128xf32>,
    %c2_51 = arith.constant 2 : index
    %c1_52 = arith.constant 1 : index
    %c0_53 = arith.constant 0 : index
    %39 = vector.load %arg11[%c2_51, %c1_52, %c0_53] : memref<18x18x128xf32, #tpu.memory_space<vmem>>, vector<16x16x128xf32>
    %40 = vector.shape_cast %39 : vector<16x16x128xf32> to vector<256x128xf32>
    %c0_54 = arith.constant 0 : index
    %c896 = arith.constant 896 : index
    %41 = vector.load %arg12[%c0_54, %c896] : memref<256x1152xf32, #tpu.memory_space<vmem>>, vector<256x128xf32>
    tpu.vector_store %arg12[%c0_54, %c896], %40 {strides = array<i32>} : memref<256x1152xf32, #tpu.memory_space<vmem>>, vector<256x128xf32>,
    %c2_55 = arith.constant 2 : index
    %c2_56 = arith.constant 2 : index
    %c0_57 = arith.constant 0 : index
    %42 = vector.load %arg11[%c2_55, %c2_56, %c0_57] : memref<18x18x128xf32, #tpu.memory_space<vmem>>, vector<16x16x128xf32>
    %43 = vector.shape_cast %42 : vector<16x16x128xf32> to vector<256x128xf32>
    %c0_58 = arith.constant 0 : index
    %c1024 = arith.constant 1024 : index
    %44 = vector.load %arg12[%c0_58, %c1024] : memref<256x1152xf32, #tpu.memory_space<vmem>>, vector<256x128xf32>
    tpu.vector_store %arg12[%c0_58, %c1024], %43 {strides = array<i32>} : memref<256x1152xf32, #tpu.memory_space<vmem>>, vector<256x128xf32>,
    %c0_59 = arith.constant 0 : index
    %c0_60 = arith.constant 0 : index
    %45 = vector.load %arg12[%c0_59, %c0_60] : memref<256x1152xf32, #tpu.memory_space<vmem>>, vector<256x1152xf32>
    %c0_61 = arith.constant 0 : index
    %c0_62 = arith.constant 0 : index
    %46 = vector.load %arg4[%c0_61, %c0_62] : memref<1152x128xf32, #tpu.memory_space<vmem>>, vector<1152x128xf32>
    %cst_63 = arith.constant dense<0.000000e+00> : vector<256x128xf32>
    %47 = tpu.matmul %45, %46, %cst_63 {dimension_numbers = #tpu.dot_dimension_numbers<[1], [0], [0], [1], [0, 0, 1, 1], [], []>} : vector<256x1152xf32>, vector<1152x128xf32>, vector<256x128xf32> -> vector<256x128xf32>
    %c0_64 = arith.constant 0 : index
    %c0_65 = arith.constant 0 : index
    %48 = vector.load %arg5[%c0_64, %c0_65] : memref<1x128xf32, #tpu.memory_space<vmem>>, vector<1x128xf32>
    %49 = vector.broadcast %48 : vector<1x128xf32> to vector<256x128xf32>
    %50 = arith.addf %47, %49 : vector<256x128xf32>
    %cst_66 = arith.constant 0.000000e+00 : f32
    %51 = vector.broadcast %cst_66 : f32 to vector<256x128xf32>
    %52 = arith.maximumf %50, %51 : vector<256x128xf32>
    %c0_67 = arith.constant 0 : index
    %c0_68 = arith.constant 0 : index
    %53 = vector.load %arg6[%c0_67, %c0_68] : memref<128x512xf32, #tpu.memory_space<vmem>>, vector<128x512xf32>
    %cst_69 = arith.constant dense<0.000000e+00> : vector<256x512xf32>
    %54 = tpu.matmul %52, %53, %cst_69 {dimension_numbers = #tpu.dot_dimension_numbers<[1], [0], [0], [1], [0, 0, 1, 1], [], []>} : vector<256x128xf32>, vector<128x512xf32>, vector<256x512xf32> -> vector<256x512xf32>
    %c0_70 = arith.constant 0 : index
    %c0_71 = arith.constant 0 : index
    %55 = vector.load %arg7[%c0_70, %c0_71] : memref<1x512xf32, #tpu.memory_space<vmem>>, vector<1x512xf32>
    %56 = vector.broadcast %55 : vector<1x512xf32> to vector<256x512xf32>
    %57 = arith.addf %54, %56 : vector<256x512xf32>
    %cst_72 = arith.constant dense<0.000000e+00> : vector<512xf32>
    %58 = vector.multi_reduction <add>, %57, %cst_72 [0] : vector<256x512xf32> to vector<512xf32>
    %59 = vector.shape_cast %58 : vector<512xf32> to vector<1x512xf32>
    %cst_73 = arith.constant 2.560000e+02 : f32
    %60 = vector.broadcast %cst_73 : f32 to vector<1x512xf32>
    %61 = arith.divf %59, %60 : vector<1x512xf32>
    %c0_74 = arith.constant 0 : index
    %c0_75 = arith.constant 0 : index
    %62 = vector.load %arg8[%c0_74, %c0_75] : memref<512x32xf32, #tpu.memory_space<vmem>>, vector<512x32xf32>
    %cst_76 = arith.constant dense<0.000000e+00> : vector<1x32xf32>
    %63 = tpu.matmul %61, %62, %cst_76 {dimension_numbers = #tpu.dot_dimension_numbers<[1], [0], [0], [1], [0, 0, 1, 1], [], []>} : vector<1x512xf32>, vector<512x32xf32>, vector<1x32xf32> -> vector<1x32xf32>
    %cst_77 = arith.constant 0.000000e+00 : f32
    %64 = vector.broadcast %cst_77 : f32 to vector<1x32xf32>
    %65 = arith.maximumf %63, %64 : vector<1x32xf32>
    %c0_78 = arith.constant 0 : index
    %c0_79 = arith.constant 0 : index
    %66 = vector.load %arg9[%c0_78, %c0_79] : memref<32x512xf32, #tpu.memory_space<vmem>>, vector<32x512xf32>
    %cst_80 = arith.constant dense<0.000000e+00> : vector<1x512xf32>
    %67 = tpu.matmul %65, %66, %cst_80 {dimension_numbers = #tpu.dot_dimension_numbers<[1], [0], [0], [1], [0, 0, 1, 1], [], []>} : vector<1x32xf32>, vector<32x512xf32>, vector<1x512xf32> -> vector<1x512xf32>
    %68 = arith.negf %67 : vector<1x512xf32>
    %69 = math.exp %68 : vector<1x512xf32>
    %cst_81 = arith.constant 1.000000e+00 : f32
    %70 = vector.broadcast %cst_81 : f32 to vector<1x512xf32>
    %71 = arith.addf %70, %69 : vector<1x512xf32>
    %72 = arith.divf %70, %71 : vector<1x512xf32>
    %73 = vector.broadcast %72 : vector<1x512xf32> to vector<256x512xf32>
    %74 = arith.mulf %57, %73 : vector<256x512xf32>
    %75 = arith.addf %74, %2 : vector<256x512xf32>
    %cst_82 = arith.constant 0.000000e+00 : f32
    %76 = vector.broadcast %cst_82 : f32 to vector<256x512xf32>
    %77 = arith.maximumf %75, %76 : vector<256x512xf32>
    %78 = vector.shape_cast %77 : vector<256x512xf32> to vector<16x16x512xf32>
    %c0_83 = arith.constant 0 : index
    %c0_84 = arith.constant 0 : index
    %c0_85 = arith.constant 0 : index
    %c0_86 = arith.constant 0 : index
    %79 = vector.load %arg10[%c0_83, %c0_84, %c0_85, %c0_86] : memref<1x16x16x512xf32, #tpu.memory_space<vmem>>, vector<1x16x16x512xf32>
    %80 = vector.shape_cast %79 : vector<1x16x16x512xf32> to vector<16x16x512xf32>
    %81 = vector.shape_cast %78 : vector<16x16x512xf32> to vector<1x16x16x512xf32>
    tpu.vector_store %arg10[%c0_83, %c0_84, %c0_85, %c0_86], %81 {strides = array<i32>} : memref<1x16x16x512xf32, #tpu.memory_space<vmem>>, vector<1x16x16x512xf32>,
    return
  }
  func.func @transform_0(%arg0: i32) -> (i32, i32, i32, i32) {
    %c0_i32 = arith.constant 0 : i32
    %c0_i32_0 = arith.constant 0 : i32
    %c0_i32_1 = arith.constant 0 : i32
    %c0_i32_2 = arith.constant 0 : i32
    return %arg0, %c0_i32, %c0_i32_0, %c0_i32_1 : i32, i32, i32, i32
  }
  func.func @transform_1(%arg0: i32) -> (i32, i32) {
    %c0_i32 = arith.constant 0 : i32
    %c0_i32_0 = arith.constant 0 : i32
    %c0_i32_1 = arith.constant 0 : i32
    return %c0_i32, %c0_i32_0 : i32, i32
  }
  func.func @transform_2(%arg0: i32) -> (i32, i32) {
    %c0_i32 = arith.constant 0 : i32
    %c0_i32_0 = arith.constant 0 : i32
    %c0_i32_1 = arith.constant 0 : i32
    return %c0_i32, %c0_i32_0 : i32, i32
  }
  func.func @transform_3(%arg0: i32) -> (i32, i32) {
    %c0_i32 = arith.constant 0 : i32
    %c0_i32_0 = arith.constant 0 : i32
    %c0_i32_1 = arith.constant 0 : i32
    return %c0_i32, %c0_i32_0 : i32, i32
  }
  func.func @transform_4(%arg0: i32) -> (i32, i32) {
    %c0_i32 = arith.constant 0 : i32
    %c0_i32_0 = arith.constant 0 : i32
    %c0_i32_1 = arith.constant 0 : i32
    return %c0_i32, %c0_i32_0 : i32, i32
  }
  func.func @transform_5(%arg0: i32) -> (i32, i32) {
    %c0_i32 = arith.constant 0 : i32
    %c0_i32_0 = arith.constant 0 : i32
    %c0_i32_1 = arith.constant 0 : i32
    return %c0_i32, %c0_i32_0 : i32, i32
  }
  func.func @transform_6(%arg0: i32) -> (i32, i32) {
    %c0_i32 = arith.constant 0 : i32
    %c0_i32_0 = arith.constant 0 : i32
    %c0_i32_1 = arith.constant 0 : i32
    return %c0_i32, %c0_i32_0 : i32, i32
  }
  func.func @transform_7(%arg0: i32) -> (i32, i32) {
    %c0_i32 = arith.constant 0 : i32
    %c0_i32_0 = arith.constant 0 : i32
    %c0_i32_1 = arith.constant 0 : i32
    return %c0_i32, %c0_i32_0 : i32, i32
  }
  func.func @transform_8(%arg0: i32) -> (i32, i32) {
    %c0_i32 = arith.constant 0 : i32
    %c0_i32_0 = arith.constant 0 : i32
    %c0_i32_1 = arith.constant 0 : i32
    return %c0_i32, %c0_i32_0 : i32, i32
  }
  func.func @transform_9(%arg0: i32) -> (i32, i32, i32, i32) {
    %c0_i32 = arith.constant 0 : i32
    %c0_i32_0 = arith.constant 0 : i32
    %c0_i32_1 = arith.constant 0 : i32
    %c0_i32_2 = arith.constant 0 : i32
    return %arg0, %c0_i32, %c0_i32_0, %c0_i32_1 : i32, i32, i32, i32
  }
}

</mosaic_0001>

<bundles_post_ra>
// kernel: tpu_custom_call.1
= control target key start
LH: loop header
LB: loop body
LE: loop exit
PB: predicated region body
PF: predicated region fallthrough
CT: control target
= control target key end

     0   :  { %14 = vsyncpa [#allocation5], 0  ;;  %s10275_s0 = inlined_call_operand.hbm [shape: f32[2,16,16,512], index: 0, kind: input, shape index: {}]   ;;  %s10276_s1 = inlined_call_operand.vmem [shape: f32[512,128], index: 1, kind: input, shape index: {}]   ;;  %s10277_s2 = inlined_call_operand.vmem [shape: f32[1,128], index: 2, kind: input, shape index: {}]   ;;  %s10278_s3 = inlined_call_operand.hbm [shape: f32[1152,128], index: 3, kind: input, shape index: {}]   ;;  %s10279_s4 = inlined_call_operand.vmem [shape: f32[1,128], index: 4, kind: input, shape index: {}]   ;;  %s10280_s5 = inlined_call_operand.hbm [shape: f32[128,512], index: 5, kind: input, shape index: {}]   ;;  %s10281_s6 = inlined_call_operand.vmem [shape: f32[1,512], index: 6, kind: input, shape index: {}]   ;;  %s10282_s7 = inlined_call_operand.vmem [shape: f32[512,32], index: 7, kind: input, shape index: {}]   ;;  %s10283_s8 = inlined_call_operand.vmem [shape: f32[32,512], index: 8, kind: input, shape index: {}]   ;;  %s10284_s9 = inlined_call_operand.hbm [shape: f32[2,16,16,512], index: 9, kind: output, shape index: {}]  }
   0x1   :  { %16 = vsyncpa [#allocation5 + $0x1], 0 }
   0x2   :  { %17 = vsyncpa [#allocation8], 0 }
   0x3   :  { %18 = vsyncpa [#allocation6], 0 }
   0x4   :  { %20 = vsyncpa [#allocation6 + $0x1], 0  ;;  %s6540_s30 = smov 0   ;;  %s6542_s10 = smov 0  }
   0x5   :  { %s6544_s11 = smov 0   ;;  %s6546_s12 = smov 0  }
   0x6 LB: > { %s6561_s13 = sadd.s32 4294967295, %s6476_s12   ;;  %s5088_s14 = sadd.s32 4294967294, %s6476_s12   ;;  %s6476_s12 = sphi %s6546_s12, %s10888_s12   ;;  %s6472_s11 = sphi %s6544_s11, %s10887_s11   ;;  %s6468_s10 = sphi %s6542_s10, %s10886_s10   ;;  %s6464_s30 = sphi %s6540_s30, %s10885_s30  }
   0x7   : > { %p46_p0 = scmp.ne.s32.totalorder %s6468_s10, %s6464_s30  ;;  %p10285_p1 = scmp.eq.s32.totalorder %s6561_s13, 0 }
   0x8   : > { %p244_p3 = scmp.eq.s32.totalorder %s5088_s14, 1  ;;  %p5089_p5 = scmp.ge.s32.totalorder %s6476_s12, 1 }
   0x9   : > { %p6570_p4 = por %p10285_p1, %p46_p0  ;;  %p251_p7 = scmp.lt.s32.totalorder %s6476_s12, 3 }
   0xa   : > { %p6575_p6 = por %p244_p3, %p46_p0  ;;  %s6478_s18 = smov [#allocation7]  }
   0xb   : > { %s10420_s15 = scalar_select %p6570_p4, 1, 0 }
   0xc   : > { %s10421_s16 = scalar_select %p6575_p6, 1, 0 }
   0xd   : > { %p6580_p8 = pnand %p5089_p5, %p251_p7  ;;  %s269_s19 = sshll.u32 %s6478_s18, 4  ;;  %s6584_s19 = int_to_ptr.vmem [resolvable:$true] %s269_s19 }
   0xe   : > { %10422 = sst [smem:[#allocation14_spill]] %s10421_s16  ;;  %s6479_s21 = smov [#allocation9]  }
   0xf   : > { %p6110_p9 = pneg %p6580_p8  ;;  %s285_s22 = sshll.u32 %s6479_s21, 4  ;;  %s6595_s22 = int_to_ptr.vmem [resolvable:$true] %s285_s22 }
  0x10   : > { %s6320_s25 = scalar_lea.hbm %s10278_s3, 18432 }
  0x11   : > { %p6591_p11 = pnand %p6110_p9, %p10285_p1  ;;  %p6321_p12 = scmp.ne.s32.totalorder %s10278_s3, %s6320_s25 }
  0x12   : > { %p6327_p5 = scmp.lt.u32.totalorder %s6320_s25, %s10278_s3 }
  0x13   : > { %p6322_p13 = pneg %p6591_p11 }
  0x15   : > { %p6323_p0 = pnand %p6322_p13, %p6321_p12 }
  0x17   : > { %p6324_p3 = pneg %p6323_p0 }
  0x19   : > { %p6329_p7 = pnand %p6327_p5, %p6324_p3 }
  0x1b   : > { %6332 = shalt.err (!%p6329_p7)
}
  0x1c   : > { %s6333_s14 = scalar_lea.vmem %s6584_s19, 18432  ;;  %p6341_p2 = scmp.lt.s32.totalorder %s6584_s19, %s6584_s19 }
  0x1d   : > { %p6334_p9 = scmp.ne.s32.totalorder %s6584_s19, %s6333_s14  ;;  %p6342_p12 = scmp.lt.s32.totalorder %s6333_s14, %s6333_s14 }
  0x1f   : > { %p6336_p10 = pnand %p6334_p9, %p6322_p13  ;;  %p6343_p0 = por %p6342_p12, %p6341_p2 }
  0x21   : > { %p6337_p1 = pneg %p6336_p10 }
  0x23   : > { %p6344_p6 = pnand %p6343_p0, %p6337_p1 }
  0x25   : > { %6347 = shalt.err (!%p6344_p6)
}
  0x26   : > { %s6480_s18 = smov 128   ;;  %s6481_s21 = smov 8  }
  0x27   : > { %6113 = dma.hbm_to_vmem [thread:$0]  (!%p6591_p11), %s10278_s3, 18432, %s6584_s19, [#allocation8], %s6480_s18, %s6480_s18, %s6481_s21  }
  0x28   : > { %s6348_s27 = scalar_lea.hbm %s10280_s5, 8192 }
  0x29   : > { %p6349_p2 = scmp.ne.s32.totalorder %s10280_s5, %s6348_s27  ;;  %p6355_p10 = scmp.lt.u32.totalorder %s6348_s27, %s10280_s5 }
  0x2b   : > { %p6351_p1 = pnand %p6349_p2, %p6322_p13 }
  0x2d   : > { %p6352_p6 = pneg %p6351_p1 }
  0x2f   : > { %p6357_p3 = pnand %p6355_p10, %p6352_p6 }
  0x31   : > { %6360 = shalt.err (!%p6357_p3)
}
  0x32   : > { %s6361_s19 = scalar_lea.vmem %s6595_s22, 8192  ;;  %p6369_p12 = scmp.lt.s32.totalorder %s6595_s22, %s6595_s22 }
  0x33   : > { %p6362_p5 = scmp.ne.s32.totalorder %s6595_s22, %s6361_s19  ;;  %p6370_p0 = scmp.lt.s32.totalorder %s6361_s19, %s6361_s19 }
  0x35   : > { %p6364_p7 = pnand %p6362_p5, %p6322_p13  ;;  %p6371_p2 = por %p6370_p0, %p6369_p12 }
  0x37   : > { %p6365_p9 = pneg %p6364_p7 }
  0x39   : > { %p6372_p1 = pnand %p6371_p2, %p6365_p9 }
  0x3b   : > { %6375 = shalt.err (!%p6372_p1)
}
  0x3c   : > { %s10287_s16 = smov 512   ;;  %s10288_s18 = smov 32  }
  0x3d   : > { %6116 = dma.hbm_to_vmem [thread:$0]  (!%p6591_p11), %s10280_s5, 8192, %s6595_s22, [#allocation8], %s10287_s16, %s10287_s16, %s10288_s18  }
  0x3e   : > { %s6653_s24 = sadd.s32 1, %s6476_s12   ;;  %s33_s26 = sadd.s32 1, %s6472_s11 }
  0x3f   : > { %s30_s25 = ssub.s32 %s6476_s12, %s6653_s24  ;;  %p40_p6 = scmp.ne.s32.totalorder %s6472_s11, %s6468_s10 }
  0x40   : > { %p31_p13 = scmp.eq.s32.totalorder %s30_s25, 0  ;;  %p41_p10 = scmp.eq.s32.totalorder %s6476_s12, 0 }
  0x41   : > { %p10425_p5 = scmp.eq.s32.totalorder %s6561_s13, 1  ;;  %p6127_p9 = scmp.lt.s32.totalorder %s6476_s12, 2 }
  0x42   : > { %s6662_s27 = scalar_select %p31_p13, %s6472_s11, %s33_s26  }
  0x43   : > { %p42_p3 = por %p41_p10, %p40_p6  ;;  %p6666_p7 = por %p10425_p5, %p40_p6 }
  0x44   : > { %s308_s28 = sand.u32 1, %s6472_s11   ;;  %s5114_s22 = sshll.u32 %s6476_s12, 14 }
  0x45   : > { %s10426_s20 = scalar_select %p6666_p7, 1, 0 }
  0x46   : > { %s5093_s29 = sshll.u32 %s308_s28, 10  ;;  %s6676_s21 = scalar_lea.hbm %s10275_s0, %s5114_s22 }
  0x47   : > { %s312_s23 = scalar_lea.vmem [#allocation4], %s5093_s29  ;;  %p6680_p11 = pnand %p6127_p9, %p42_p3 }
  0x48   : > { %s319_s25 = sshll.u32 %s312_s23, 4  ;;  %s6684_s16 = scalar_lea.sflag [#allocation5], %s308_s28  ;;  %s6678_s25 = int_to_ptr.vmem [resolvable:$true] %s319_s25 }
  0x49   : > { %s6376_s18 = scalar_lea.hbm %s6676_s21, 16384  ;;  %p6378_p0 = pneg %p6680_p11 }
  0x4a   : > { %p6377_p12 = scmp.ne.s32.totalorder %s6676_s21, %s6376_s18  ;;  %s6381_s14 = scalar_lea.hbm %s10275_s0, 32768 }
  0x4b   : > { %p6382_p13 = scmp.lt.u32.totalorder %s6676_s21, %s10275_s0  ;;  %p6383_p6 = scmp.lt.u32.totalorder %s6381_s14, %s6376_s18 }
  0x4c   : > { %p6379_p2 = pnand %p6378_p0, %p6377_p12  ;;  %p6385_p3 = scmp.lt.u32.totalorder %s6376_s18, %s6676_s21 }
  0x4d   : > { %p6384_p10 = por %p6383_p6, %p6382_p13 }
  0x4e   : > { %p6380_p1 = pneg %p6379_p2 }
  0x4f   : > { %p6386_p5 = por %p6385_p3, %p6384_p10 }
  0x51   : > { %p6387_p9 = pnand %p6386_p5, %p6380_p1 }
  0x53   : > { %6390 = shalt.err (!%p6387_p9)
}
  0x54   : > { %s6391_s28 = scalar_lea.vmem %s6678_s25, 16384  ;;  %s6484_s29 = smov [#allocation4]  }
  0x55   : > { %p6392_p12 = scmp.ne.s32.totalorder %s6678_s25, %s6391_s28  ;;  %s6396_s22 = sshll.u32 %s6484_s29, 4  ;;  %s6397_s22 = int_to_ptr.vmem [resolvable:$false] %s6396_s22 }
  0x56   : > { %s6398_s19 = scalar_lea.vmem %s6397_s22, 32768  ;;  %p6399_p4 = scmp.lt.s32.totalorder %s6678_s25, %s6397_s22 }
  0x57   : > { %p6394_p2 = pnand %p6392_p12, %p6378_p0  ;;  %p6400_p13 = scmp.lt.s32.totalorder %s6398_s19, %s6391_s28 }
  0x59   : > { %p6395_p7 = pneg %p6394_p2  ;;  %p6401_p6 = por %p6400_p13, %p6399_p4 }
  0x5b   : > { %p6402_p10 = pnand %p6401_p6, %p6395_p7 }
  0x5d   : > { %6405 = shalt.err (!%p6402_p10)
}
  0x5e   : > { %s10428_s18 = smov 32   ;;  %s10429_s14 = smov 512  }
  0x5f   : > { %6120 = dma.hbm_to_vmem [thread:$0]  (!%p6680_p11), %s6676_s21, 16384, %s6678_s25, %s6684_s16, %s10429_s14, %s10429_s14, %s10428_s18  }
  0x60   : > { %331 = sbr.rel (%p6580_p8) target bundleno = 2286 (0x8ee), region = 56 }
  0x67   : > { %s6718_s23 = sand.u32 1, %s6468_s10   ;;  %p10430_p4 = scmp.ne.s32.totalorder %s10420_s15, 0 }
  0x68   : > { %s5097_s28 = sshll.u32 %s6718_s23, 10  ;;  %s334_s29 = scalar_lea.sflag [#allocation5], %s6718_s23 }
  0x69   : > { %s6724_s26 = scalar_lea.vmem [#allocation4], %s5097_s28 }
  0x6a   : > { %6451 = dma.done.wait (%p10430_p4), %s334_s29, 16384  }
  0x6b   : > { %6453 = vsyncadd (%p10430_p4), %s334_s29, 4294950912  ;;  %p10431_p7 = scmp.eq.s32.totalorder %s6561_s13, 0 }
  0x6d   : > { %6455 = dma.done.wait (%p10431_p7), [#allocation8], 26624   ;;  %p10432_p8 = pmov %p10431_p7 }
  0x6e   : > { %v10291_v0 = vmov 0.0|0.0   ;;  %v508_v1 = vld [vmem:[%s10276_s1] sm:$0xff]  ;;  %v509_v2 = vld [vmem:[%s10276_s1 + $0x8] sm:$0xff]  ;;  %v510_v3 = vld [vmem:[%s10276_s1 + $0x10] sm:$0xff]  ;;  %vm4284_vm0 = vcmask 261120   ;;  %s9623_s15 = scalar_lea.vmem [#allocation10], %s5097_s28 }
  0x6f   : > { %6457 = vsyncadd (%p10432_p8), [#allocation8], 4294940672  ;;  %5314 = vmatprep.subr.bf16.mxu0 %v10291_v0  ;;  %5410 = vmatprep.subr.bf16.mxu1 %v10291_v0  ;;  %v5315_v4 = vpack.c.bf16 %v509_v2, %v508_v1  ;;  %v511_v5 = vld [vmem:[%s10276_s1 + $0x18] sm:$0xff]  ;;  %v512_v7 = vld [vmem:[%s10276_s1 + $0x20] sm:$0xff]  ;;  %s5115_s28 = sshll.u32 %s6561_s13, 14  ;;  %s4983_s18 = scalar_lea.sflag [#allocation6], %s6718_s23 }
  0x70   : > { %v5318_v6 = vpack.c.bf16 %v511_v5, %v510_v3  ;;  %v513_v8 = vld [vmem:[%s10276_s1 + $0x28] sm:$0xff]  ;;  %v514_v10 = vld [vmem:[%s10276_s1 + $0x30] sm:$0xff]  ;;  %v515_v11 = vld [vmem:[%s10276_s1 + $0x38] sm:$0xff]  ;;  %s10217_s19 = scalar_lea.hbm %s10284_s9, %s5115_s28  ;;  %p10881_p0 = scmp.ne.s32.totalorder %s10426_s20, 0 }
  0x71   : > { %5316 = vmatpush1.bf16.msra.mxu0 %v5315_v4  ;;  %v5321_v9 = vpack.c.bf16 %v513_v8, %v512_v7  ;;  %v381_v12 = vld [vmem:[%s6724_s26 + $0x8] sm:$0xff]  ;;  %v5324_v13 = vpack.c.bf16 %v515_v11, %v514_v10  ;;  %v516_v14 = vld [vmem:[%s10276_s1 + $0x40] sm:$0xff]  ;;  %v517_v15 = vld [vmem:[%s10276_s1 + $0x48] sm:$0xff]  ;;  %s6487_s29 = smov [#allocation10]  }
  0x72   : > { %5317 = vmatprep.subr.bf16.mxu0 %v10291_v0  ;;  %643 = vmatprep.mubr.f32.mxu0 %v381_v12  ;;  %v5327_v16 = vpack.c.bf16 %v517_v15, %v516_v14  ;;  %v518_v17 = vld [vmem:[%s10276_s1 + $0x50] sm:$0xff]  ;;  %v519_v18 = vld [vmem:[%s10276_s1 + $0x58] sm:$0xff]  ;;  %v520_v20 = vld [vmem:[%s10276_s1 + $0x60] sm:$0xff]  ;;  %s6410_s17 = sshll.u32 %s6487_s29, 4  ;;  %s6411_s17 = int_to_ptr.vmem [resolvable:$false] %s6410_s17 }
  0x73   : > { %v5330_v19 = vpack.c.bf16 %v519_v18, %v518_v17  ;;  %v521_v21 = vld [vmem:[%s10276_s1 + $0x68] sm:$0xff]  ;;  %v522_v23 = vld [vmem:[%s10276_s1 + $0x70] sm:$0xff]  ;;  %v523_v24 = vld [vmem:[%s10276_s1 + $0x78] sm:$0xff]  ;;  %s6412_s16 = scalar_lea.vmem %s6411_s17, 32768 }
  0x74   : > { %v5333_v22 = vpack.c.bf16 %v521_v21, %v520_v20  ;;  %v5336_v25 = vpack.c.bf16 %v523_v24, %v522_v23  ;;  %v524_v26 = vld [vmem:[%s10276_s1 + $0x80] sm:$0xff]  ;;  %v525_v27 = vld [vmem:[%s10276_s1 + $0x88] sm:$0xff]  ;;  %v526_v29 = vld [vmem:[%s10276_s1 + $0x90] sm:$0xff] }
  0x75   : > { %5319 = vmatpush1.bf16.msra.mxu0 %v5318_v6  ;;  %v5339_v28 = vpack.c.bf16 %v525_v27, %v524_v26  ;;  %v527_v30 = vld [vmem:[%s10276_s1 + $0x98] sm:$0xff]  ;;  %v528_v32 = vld [vmem:[%s10276_s1 + $0xa0] sm:$0xff]  ;;  %v529_v33 = vld [vmem:[%s10276_s1 + $0xa8] sm:$0xff] }
  0x76   : > { %5320 = vmatprep.subr.bf16.mxu0 %v10291_v0  ;;  %v5342_v31 = vpack.c.bf16 %v527_v30, %v526_v29  ;;  %v5345_v34 = vpack.c.bf16 %v529_v33, %v528_v32  ;;  %v530_v35 = vld [vmem:[%s10276_s1 + $0xb0] sm:$0xff]  ;;  %v531_v36 = vld [vmem:[%s10276_s1 + $0xb8] sm:$0xff]  ;;  %v532_v38 = vld [vmem:[%s10276_s1 + $0xc0] sm:$0xff] }
  0x77   : > { %v5348_v37 = vpack.c.bf16 %v531_v36, %v530_v35  ;;  %v533_v39 = vld [vmem:[%s10276_s1 + $0xc8] sm:$0xff]  ;;  %v534_v41 = vld [vmem:[%s10276_s1 + $0xd0] sm:$0xff]  ;;  %v535_v42 = vld [vmem:[%s10276_s1 + $0xd8] sm:$0xff] }
  0x78   : > { %v5351_v40 = vpack.c.bf16 %v533_v39, %v532_v38  ;;  %v5354_v43 = vpack.c.bf16 %v535_v42, %v534_v41  ;;  %v536_v44 = vld [vmem:[%s10276_s1 + $0xe0] sm:$0xff]  ;;  %v537_v45 = vld [vmem:[%s10276_s1 + $0xe8] sm:$0xff]  ;;  %v538_v47 = vld [vmem:[%s10276_s1 + $0xf0] sm:$0xff] }
  0x79   : > { %5322 = vmatpush1.bf16.msra.mxu0 %v5321_v9  ;;  %v5357_v46 = vpack.c.bf16 %v537_v45, %v536_v44  ;;  %v539_v48 = vld [vmem:[%s10276_s1 + $0xf8] sm:$0xff]  ;;  %v540_v50 = vld [vmem:[%s10276_s1 + $0x100] sm:$0xff]  ;;  %v541_v51 = vld [vmem:[%s10276_s1 + $0x108] sm:$0xff] }
  0x7a   : > { %5323 = vmatprep.subr.bf16.mxu0 %v10291_v0  ;;  %v5360_v49 = vpack.c.bf16 %v539_v48, %v538_v47  ;;  %v380_v52 = vld [vmem:[%s6724_s26] sm:$0xff]  ;;  %v5363_v53 = vpack.c.bf16 %v541_v51, %v540_v50  ;;  %v385_v54 = vld [vmem:[%s6724_s26 + $0x28] sm:$0xff]  ;;  %v544_v60 = vld [vmem:[%s10276_s1 + $0x120] sm:$0xff] }
  0x7b   : > { %v542_v55 = vld [vmem:[%s10276_s1 + $0x110] sm:$0xff]  ;;  %v543_v56 = vld [vmem:[%s10276_s1 + $0x118] sm:$0xff]  ;;  %v545_v61 = vld [vmem:[%s10276_s1 + $0x128] sm:$0xff] }
  0x7c   : > { %v384_v57 = vld [vmem:[%s6724_s26 + $0x20] sm:$0xff]  ;;  %v5366_v58 = vpack.c.bf16 %v543_v56, %v542_v55  ;;  %v389_v59 = vld [vmem:[%s6724_s26 + $0x48] sm:$0xff]  ;;  %v5369_v63 = vpack.c.bf16 %v545_v61, %v544_v60  ;;  %v548_v7 = vld [vmem:[%s10276_s1 + $0x140] sm:$0xff] }
  0x7d   : > { %5325 = vmatpush1.bf16.msra.mxu0 %v5324_v13  ;;  %v388_v62 = vld [vmem:[%s6724_s26 + $0x40] sm:$0xff]  ;;  %v393_v1 = vld [vmem:[%s6724_s26 + $0x68] sm:$0xff]  ;;  %v549_v8 = vld [vmem:[%s10276_s1 + $0x148] sm:$0xff] }
  0x7e   : > { %5326 = vmatprep.subr.bf16.mxu0 %v10291_v0  ;;  %v546_v2 = vld [vmem:[%s10276_s1 + $0x130] sm:$0xff]  ;;  %v547_v3 = vld [vmem:[%s10276_s1 + $0x138] sm:$0xff]  ;;  %v5375_v10 = vpack.c.bf16 %v549_v8, %v548_v7  ;;  %v552_v17 = vld [vmem:[%s10276_s1 + $0x160] sm:$0xff] }
  0x7f   : > { %v392_v4 = vld [vmem:[%s6724_s26 + $0x60] sm:$0xff]  ;;  %v5372_v5 = vpack.c.bf16 %v547_v3, %v546_v2  ;;  %v397_v6 = vld [vmem:[%s6724_s26 + $0x88] sm:$0xff]  ;;  %v553_v18 = vld [vmem:[%s10276_s1 + $0x168] sm:$0xff] }
  0x80   : > { %v396_v9 = vld [vmem:[%s6724_s26 + $0x80] sm:$0xff]  ;;  %v401_v11 = vld [vmem:[%s6724_s26 + $0xa8] sm:$0xff]  ;;  %v5381_v20 = vpack.c.bf16 %v553_v18, %v552_v17  ;;  %v556_v27 = vld [vmem:[%s10276_s1 + $0x180] sm:$0xff] }
  0x81   : > { %5328 = vmatpush1.bf16.msra.mxu0 %v5327_v16  ;;  %v550_v12 = vld [vmem:[%s10276_s1 + $0x150] sm:$0xff]  ;;  %v551_v13 = vld [vmem:[%s10276_s1 + $0x158] sm:$0xff]  ;;  %v561_v38 = vld [vmem:[%s10276_s1 + $0x1a8] sm:$0xff] }
  0x82   : > { %5329 = vmatprep.subr.bf16.mxu0 %v10291_v0  ;;  %v400_v14 = vld [vmem:[%s6724_s26 + $0xa0] sm:$0xff]  ;;  %v5378_v15 = vpack.c.bf16 %v551_v13, %v550_v12  ;;  %v405_v16 = vld [vmem:[%s6724_s26 + $0xc8] sm:$0xff]  ;;  %v564_v47 = vld [vmem:[%s10276_s1 + $0x1c0] sm:$0xff] }
  0x83   : > { %v409_v21 = vld [vmem:[%s6724_s26 + $0xe8] sm:$0xff]  ;;  %v408_v24 = vld [vmem:[%s6724_s26 + $0xe0] sm:$0xff]  ;;  %v565_v48 = vld [vmem:[%s10276_s1 + $0x1c8] sm:$0xff] }
  0x84   : > { %v555_v23 = vld [vmem:[%s10276_s1 + $0x178] sm:$0xff]  ;;  %v412_v29 = vld [vmem:[%s6724_s26 + $0x100] sm:$0xff]  ;;  %v5399_v50 = vpack.c.bf16 %v565_v48, %v564_v47  ;;  %v391_v47 = vld [vmem:[%s6724_s26 + $0x58] sm:$0xff] }
  0x85   : > { %5331 = vmatpush1.bf16.msra.mxu0 %v5330_v19  ;;  %v404_v19 = vld [vmem:[%s6724_s26 + $0xc0] sm:$0xff]  ;;  %v413_v26 = vld [vmem:[%s6724_s26 + $0x108] sm:$0xff] }
  0x86   : > { %5332 = vmatprep.subr.bf16.mxu0 %v10291_v0  ;;  %v558_v32 = vld [vmem:[%s10276_s1 + $0x190] sm:$0xff]  ;;  %v559_v33 = vld [vmem:[%s10276_s1 + $0x198] sm:$0xff] }
  0x87   : > { %v5390_v35 = vpack.c.bf16 %v559_v33, %v558_v32  ;;  %v421_v36 = vld [vmem:[%s6724_s26 + $0x148] sm:$0xff]  ;;  %v420_v39 = vld [vmem:[%s6724_s26 + $0x140] sm:$0xff] }
  0x88   : > { %v425_v41 = vld [vmem:[%s6724_s26 + $0x168] sm:$0xff]  ;;  %v562_v42 = vld [vmem:[%s10276_s1 + $0x1b0] sm:$0xff] }
  0x89   : > { %5334 = vmatpush1.bf16.msra.mxu0 %v5333_v22  ;;  %v554_v22 = vld [vmem:[%s10276_s1 + $0x170] sm:$0xff]  ;;  %v433_v51 = vld [vmem:[%s6724_s26 + $0x1a8] sm:$0xff] }
  0x8a   : > { %5335 = vmatprep.subr.bf16.mxu0 %v10291_v0  ;;  %v424_v44 = vld [vmem:[%s6724_s26 + $0x160] sm:$0xff]  ;;  %v437_v56 = vld [vmem:[%s6724_s26 + $0x1c8] sm:$0xff] }
  0x8b   : > { %v441_v61 = vld [vmem:[%s6724_s26 + $0x1e8] sm:$0xff]  ;;  %v452_v8 = vld [vmem:[%s6724_s26 + $0x240] sm:$0xff] }
  0x8c   : > { %v445_v3 = vld [vmem:[%s6724_s26 + $0x208] sm:$0xff]  ;;  %v460_v12 = vld [vmem:[%s6724_s26 + $0x280] sm:$0xff] }
  0x8d   : > { %5337 = vmatpush1.bf16.msra.mxu0 %v5336_v25  ;;  %v5384_v25 = vpack.c.bf16 %v555_v23, %v554_v22  ;;  %v453_v7 = vld [vmem:[%s6724_s26 + $0x248] sm:$0xff]  ;;  %v472_v18 = vld [vmem:[%s6724_s26 + $0x2e0] sm:$0xff] }
  0x8e   : > { %5338 = vmatprep.subr.bf16.mxu0 %v10291_v0  ;;  %v465_v13 = vld [vmem:[%s6724_s26 + $0x2a8] sm:$0xff]  ;;  %v480_v22 = vld [vmem:[%s6724_s26 + $0x320] sm:$0xff] }
  0x8f   : > { %v473_v17 = vld [vmem:[%s6724_s26 + $0x2e8] sm:$0xff]  ;;  %v500_v32 = vld [vmem:[%s6724_s26 + $0x3c0] sm:$0xff] }
  0x90   : > { %v485_v23 = vld [vmem:[%s6724_s26 + $0x348] sm:$0xff] }
  0x91   : > { %5340 = vmatpush1.bf16.msra.mxu0 %v5339_v28  ;;  %v557_v28 = vld [vmem:[%s10276_s1 + $0x188] sm:$0xff]  ;;  %v505_v33 = vld [vmem:[%s6724_s26 + $0x3e8] sm:$0xff] }
  0x92   : > { %5341 = vmatprep.subr.bf16.mxu0 %v10291_v0  ;;  %v5387_v30 = vpack.c.bf16 %v557_v28, %v556_v27  ;;  %v493_v27 = vld [vmem:[%s6724_s26 + $0x388] sm:$0xff]  ;;  %v492_v28 = vld [vmem:[%s6724_s26 + $0x380] sm:$0xff] }
  0x95   : > { %5343 = vmatpush1.bf16.msra.mxu0 %v5342_v31  ;;  %v417_v31 = vld [vmem:[%s6724_s26 + $0x128] sm:$0xff] }
  0x96   : > { %5344 = vmatprep.subr.bf16.mxu0 %v10291_v0 }
  0x99   : > { %5346 = vmatpush1.bf16.msra.mxu0 %v5345_v34  ;;  %v416_v34 = vld [vmem:[%s6724_s26 + $0x120] sm:$0xff] }
  0x9a   : > { %5347 = vmatprep.subr.bf16.mxu0 %v10291_v0 }
  0x9d   : > { %5349 = vmatpush1.bf16.msra.mxu0 %v5348_v37  ;;  %v560_v37 = vld [vmem:[%s10276_s1 + $0x1a0] sm:$0xff] }
  0x9e   : > { %5350 = vmatprep.subr.bf16.mxu0 %v10291_v0 }
  0xa1   : > { %5352 = vmatpush1.bf16.msra.mxu0 %v5351_v40  ;;  %v5393_v40 = vpack.c.bf16 %v561_v38, %v560_v37  ;;  %v2003_v37 = vld [vmem:[#allocation7 + $0x8] sm:$0xff]  ;;  %v2004_v38 = vld [vmem:[#allocation7 + $0x10] sm:$0xff] }
  0xa2   : > { %5353 = vmatprep.subr.bf16.mxu0 %v10291_v0 }
  0xa5   : > { %5355 = vmatpush1.bf16.msra.mxu0 %v5354_v43  ;;  %v563_v43 = vld [vmem:[%s10276_s1 + $0x1b8] sm:$0xff] }
  0xa6   : > { %5356 = vmatprep.subr.bf16.mxu0 %v10291_v0  ;;  %v5396_v45 = vpack.c.bf16 %v563_v43, %v562_v42  ;;  %v387_v42 = vld [vmem:[%s6724_s26 + $0x38] sm:$0xff] }
  0xa9   : > { %5358 = vmatpush1.bf16.msra.mxu0 %v5357_v46  ;;  %v429_v46 = vld [vmem:[%s6724_s26 + $0x188] sm:$0xff] }
  0xaa   : > { %5359 = vmatprep.subr.bf16.mxu0 %v10291_v0 }
  0xad   : > { %5361 = vmatpush1.bf16.msra.mxu0 %v5360_v49  ;;  %v428_v49 = vld [vmem:[%s6724_s26 + $0x180] sm:$0xff] }
  0xae   : > { %5362 = vmatprep.subr.bf16.mxu0 %v10291_v0 }
  0xb0   : > { %644 = vmatmul.mubr.f32.vlgmr.msra.gmra.mrb[0].mxu0 %v380_v52  ;;  %v566_v52 = vld [vmem:[%s10276_s1 + $0x1d0] sm:$0xff] }
  0xb1   : > { %5364 = vmatpush1.bf16.msra.mxu0 %v5363_v53  ;;  %648 = vmatprep.mubr.f32.mxu0 %v385_v54  ;;  %v567_v53 = vld [vmem:[%s10276_s1 + $0x1d8] sm:$0xff]  ;;  %v432_v54 = vld [vmem:[%s6724_s26 + $0x1a0] sm:$0xff] }
  0xb2   : > { %5365 = vmatprep.subr.bf16.mxu0 %v10291_v0  ;;  %v5402_v55 = vpack.c.bf16 %v567_v53, %v566_v52  ;;  %v390_v52 = vld [vmem:[%s6724_s26 + $0x50] sm:$0xff]  ;;  %v2131_v53 = vld [vmem:[#allocation7 + $0x408] sm:$0xff] }
  0xb4   : > { %649 = vmatmul.mubr.f32.gmra.mrb[2].mxu0 %v384_v57  ;;  %v568_v57 = vld [vmem:[%s10276_s1 + $0x1e0] sm:$0xff] }
  0xb5   : > { %653 = vmatprep.mubr.f32.mxu0 %v389_v59  ;;  %5367 = vmatpush1.bf16.msra.mxu0 %v5366_v58  ;;  %v569_v58 = vld [vmem:[%s10276_s1 + $0x1e8] sm:$0xff]  ;;  %v436_v59 = vld [vmem:[%s6724_s26 + $0x1c0] sm:$0xff] }
  0xb6   : > { %5368 = vmatprep.subr.bf16.mxu0 %v10291_v0  ;;  %v5405_v60 = vpack.c.bf16 %v569_v58, %v568_v57  ;;  %v2133_v57 = vld [vmem:[#allocation7 + $0x418] sm:$0xff] }
  0xb8   : > { %654 = vmatmul.mubr.f32.gmra.mrb[4].mxu0 %v388_v62  ;;  %v570_v62 = vld [vmem:[%s10276_s1 + $0x1f0] sm:$0xff] }
  0xb9   : > { %658 = vmatprep.mubr.f32.mxu0 %v393_v1  ;;  %5370 = vmatpush1.bf16.msra.mxu0 %v5369_v63  ;;  %v571_v63 = vld [vmem:[%s10276_s1 + $0x1f8] sm:$0xff]  ;;  %v440_v1 = vld [vmem:[%s6724_s26 + $0x1e0] sm:$0xff] }
  0xba   : > { %5371 = vmatprep.subr.bf16.mxu0 %v10291_v0  ;;  %v5408_v2 = vpack.c.bf16 %v571_v63, %v570_v62  ;;  %v394_v62 = vld [vmem:[%s6724_s26 + $0x70] sm:$0xff]  ;;  %v399_v63 = vld [vmem:[%s6724_s26 + $0x98] sm:$0xff] }
  0xbc   : > { %659 = vmatmul.mubr.f32.gmra.mrb[6].mxu0 %v392_v4  ;;  %v444_v4 = vld [vmem:[%s6724_s26 + $0x200] sm:$0xff] }
  0xbd   : > { %663 = vmatprep.mubr.f32.mxu0 %v397_v6  ;;  %5373 = vmatpush1.bf16.msra.mxu0 %v5372_v5  ;;  %v449_v5 = vld [vmem:[%s6724_s26 + $0x228] sm:$0xff]  ;;  %v448_v6 = vld [vmem:[%s6724_s26 + $0x220] sm:$0xff] }
  0xbe   : > { %5374 = vmatprep.subr.bf16.mxu0 %v10291_v0 }
  0xc0   : > { %664 = vmatmul.mubr.f32.gmra.mrb[8].mxu0 %v396_v9  ;;  %v457_v9 = vld [vmem:[%s6724_s26 + $0x268] sm:$0xff] }
  0xc1   : > { %668 = vmatprep.mubr.f32.mxu0 %v401_v11  ;;  %5376 = vmatpush1.bf16.msra.mxu0 %v5375_v10  ;;  %v456_v10 = vld [vmem:[%s6724_s26 + $0x260] sm:$0xff]  ;;  %v461_v11 = vld [vmem:[%s6724_s26 + $0x288] sm:$0xff] }
  0xc2   : > { %5377 = vmatprep.subr.bf16.mxu0 %v10291_v0 }
  0xc4   : > { %669 = vmatmul.mubr.f32.gmra.mrb[10].mxu0 %v400_v14  ;;  %v464_v14 = vld [vmem:[%s6724_s26 + $0x2a0] sm:$0xff] }
  0xc5   : > { %673 = vmatprep.mubr.f32.mxu0 %v405_v16  ;;  %5379 = vmatpush1.bf16.msra.mxu0 %v5378_v15  ;;  %v469_v15 = vld [vmem:[%s6724_s26 + $0x2c8] sm:$0xff]  ;;  %v468_v16 = vld [vmem:[%s6724_s26 + $0x2c0] sm:$0xff] }
  0xc6   : > { %5380 = vmatprep.subr.bf16.mxu0 %v10291_v0 }
  0xc8   : > { %674 = vmatmul.mubr.f32.gmra.mrb[12].mxu0 %v404_v19  ;;  %v477_v19 = vld [vmem:[%s6724_s26 + $0x308] sm:$0xff] }
  0xc9   : > { %678 = vmatprep.mubr.f32.mxu0 %v409_v21  ;;  %5382 = vmatpush1.bf16.msra.mxu0 %v5381_v20  ;;  %v476_v20 = vld [vmem:[%s6724_s26 + $0x300] sm:$0xff]  ;;  %v481_v21 = vld [vmem:[%s6724_s26 + $0x328] sm:$0xff] }
  0xca   : > { %5383 = vmatprep.subr.bf16.mxu0 %v10291_v0 }
  0xcc   : > { %679 = vmatmul.mubr.f32.gmra.mrb[14].mxu0 %v408_v24  ;;  %v484_v24 = vld [vmem:[%s6724_s26 + $0x340] sm:$0xff] }
  0xcd   : > { %683 = vmatprep.mubr.f32.mxu0 %v413_v26  ;;  %5385 = vmatpush1.bf16.msra.mxu0 %v5384_v25  ;;  %v489_v25 = vld [vmem:[%s6724_s26 + $0x368] sm:$0xff]  ;;  %v488_v26 = vld [vmem:[%s6724_s26 + $0x360] sm:$0xff] }
  0xce   : > { %5386 = vmatprep.subr.bf16.mxu0 %v10291_v0 }
  0xd0   : > { %684 = vmatmul.mubr.f32.gmra.mrb[16].mxu0 %v412_v29  ;;  %v497_v29 = vld [vmem:[%s6724_s26 + $0x3a8] sm:$0xff] }
  0xd1   : > { %688 = vmatprep.mubr.f32.mxu0 %v417_v31  ;;  %5388 = vmatpush1.bf16.msra.mxu0 %v5387_v30  ;;  %v496_v30 = vld [vmem:[%s6724_s26 + $0x3a0] sm:$0xff]  ;;  %v501_v31 = vld [vmem:[%s6724_s26 + $0x3c8] sm:$0xff] }
  0xd2   : > { %5389 = vmatprep.subr.bf16.mxu0 %v10291_v0 }
  0xd4   : > { %689 = vmatmul.mubr.f32.gmra.mrb[18].mxu0 %v416_v34  ;;  %v504_v34 = vld [vmem:[%s6724_s26 + $0x3e0] sm:$0xff] }
  0xd5   : > { %693 = vmatprep.mubr.f32.mxu0 %v421_v36  ;;  %5391 = vmatpush1.bf16.msra.mxu0 %v5390_v35  ;;  %v383_v35 = vld [vmem:[%s6724_s26 + $0x18] sm:$0xff]  ;;  %v2002_v36 = vld [vmem:[#allocation7] sm:$0xff] }
  0xd6   : > { %5392 = vmatprep.subr.bf16.mxu0 %v10291_v0 }
  0xd8   : > { %694 = vmatmul.mubr.f32.gmra.mrb[20].mxu0 %v420_v39  ;;  %v382_v39 = vld [vmem:[%s6724_s26 + $0x10] sm:$0xff] }
  0xd9   : > { %698 = vmatprep.mubr.f32.mxu0 %v425_v41  ;;  %5394 = vmatpush1.bf16.msra.mxu0 %v5393_v40  ;;  %v5411_v40 = vpack.c.bf16 %v2003_v37, %v2002_v36  ;;  %v2005_v41 = vld [vmem:[#allocation7 + $0x18] sm:$0xff]  ;;  %v2026_v37 = vld [vmem:[#allocation7 + $0xc0] sm:$0xff] }
  0xda   : > { %5395 = vmatprep.subr.bf16.mxu0 %v10291_v0  ;;  %v5414_v43 = vpack.c.bf16 %v2005_v41, %v2004_v38  ;;  %v2027_v38 = vld [vmem:[#allocation7 + $0xc8] sm:$0xff] }
  0xdb   : > { %5412 = vmatpush1.bf16.msra.mxu1 %v5411_v40  ;;  %v431_v40 = vld [vmem:[%s6724_s26 + $0x198] sm:$0xff]  ;;  %v5447_v41 = vpack.c.bf16 %v2027_v38, %v2026_v37  ;;  %v2036_v38 = vld [vmem:[#allocation7 + $0x110] sm:$0xff] }
  0xdc   : > { %699 = vmatmul.mubr.f32.gmra.mrb[22].mxu0 %v424_v44  ;;  %5413 = vmatprep.subr.bf16.mxu1 %v10291_v0  ;;  %v2006_v44 = vld [vmem:[#allocation7 + $0x20] sm:$0xff] }
  0xdd   : > { %703 = vmatprep.mubr.f32.mxu0 %v429_v46  ;;  %5397 = vmatpush1.bf16.msra.mxu0 %v5396_v45  ;;  %v2007_v45 = vld [vmem:[#allocation7 + $0x28] sm:$0xff]  ;;  %v386_v46 = vld [vmem:[%s6724_s26 + $0x30] sm:$0xff] }
  0xde   : > { %5398 = vmatprep.subr.bf16.mxu0 %v10291_v0  ;;  %v5417_v48 = vpack.c.bf16 %v2007_v45, %v2006_v44  ;;  %v430_v44 = vld [vmem:[%s6724_s26 + $0x190] sm:$0xff]  ;;  %v435_v45 = vld [vmem:[%s6724_s26 + $0x1b8] sm:$0xff] }
  0xdf   : > { %5415 = vmatpush1.bf16.msra.mxu1 %v5414_v43  ;;  %v2029_v43 = vld [vmem:[#allocation7 + $0xd8] sm:$0xff] }
  0xe0   : > { %704 = vmatmul.mubr.f32.gmra.mrb[24].mxu0 %v428_v49  ;;  %5416 = vmatprep.subr.bf16.mxu1 %v10291_v0  ;;  %v2008_v49 = vld [vmem:[#allocation7 + $0x30] sm:$0xff] }
  0xe1   : > { %708 = vmatprep.mubr.f32.mxu0 %v433_v51  ;;  %5400 = vmatpush1.bf16.msra.mxu0 %v5399_v50  ;;  %v2009_v50 = vld [vmem:[#allocation7 + $0x38] sm:$0xff]  ;;  %v2130_v51 = vld [vmem:[#allocation7 + $0x400] sm:$0xff] }
  0xe2   : > { %5401 = vmatprep.subr.bf16.mxu0 %v10291_v0  ;;  %v5420_v58 = vpack.c.bf16 %v2009_v50, %v2008_v49  ;;  %v434_v49 = vld [vmem:[%s6724_s26 + $0x1b0] sm:$0xff]  ;;  %v439_v50 = vld [vmem:[%s6724_s26 + $0x1d8] sm:$0xff] }
  0xe3   : > { %5418 = vmatpush1.bf16.msra.mxu1 %v5417_v48  ;;  %v2031_v48 = vld [vmem:[#allocation7 + $0xe8] sm:$0xff] }
  0xe4   : > { %709 = vmatmul.mubr.f32.gmra.mrb[26].mxu0 %v432_v54  ;;  %v395_v54 = vld [vmem:[%s6724_s26 + $0x78] sm:$0xff]  ;;  %5419 = vmatprep.subr.bf16.mxu1 %v10291_v0 }
  0xe5   : > { %713 = vmatprep.mubr.f32.mxu0 %v437_v56  ;;  %5403 = vmatpush1.bf16.msra.mxu0 %v5402_v55  ;;  %v5602_v55 = vpack.c.bf16 %v2131_v53, %v2130_v51  ;;  %v2132_v56 = vld [vmem:[#allocation7 + $0x410] sm:$0xff]  ;;  %v443_v53 = vld [vmem:[%s6724_s26 + $0x1f8] sm:$0xff] }
  0xe6   : > { %5404 = vmatprep.subr.bf16.mxu0 %v10291_v0 }
  0xe7   : > { %5421 = vmatpush1.bf16.msra.mxu1 %v5420_v58  ;;  %v450_v58 = vld [vmem:[%s6724_s26 + $0x230] sm:$0xff] }
  0xe8   : > { %714 = vmatmul.mubr.f32.gmra.mrb[28].mxu0 %v436_v59  ;;  %v5606_v59 = vpack.c.bf16 %v2133_v57, %v2132_v56  ;;  %5422 = vmatprep.subr.bf16.mxu1 %v10291_v0  ;;  %v446_v56 = vld [vmem:[%s6724_s26 + $0x210] sm:$0xff]  ;;  %v451_v57 = vld [vmem:[%s6724_s26 + $0x238] sm:$0xff] }
  0xe9   : > { %718 = vmatprep.mubr.f32.mxu0 %v441_v61  ;;  %5406 = vmatpush1.bf16.msra.mxu0 %v5405_v60  ;;  %v2010_v60 = vld [vmem:[#allocation7 + $0x40] sm:$0xff]  ;;  %v2011_v61 = vld [vmem:[#allocation7 + $0x48] sm:$0xff] }
  0xea   : > { %5407 = vmatprep.subr.bf16.mxu0 %v10291_v0 }
  0xec   : > { %719 = vmatmul.mubr.f32.gmra.mrb[30].mxu0 %v440_v1  ;;  %v5423_v1 = vpack.c.bf16 %v2011_v61, %v2010_v60  ;;  %v454_v60 = vld [vmem:[%s6724_s26 + $0x250] sm:$0xff]  ;;  %v459_v61 = vld [vmem:[%s6724_s26 + $0x278] sm:$0xff] }
  0xed   : > { %723 = vmatprep.mubr.f32.mxu0 %v445_v3  ;;  %5409 = vmatpush1.bf16.msra.mxu0 %v5408_v2  ;;  %v2012_v2 = vld [vmem:[#allocation7 + $0x50] sm:$0xff]  ;;  %v2013_v3 = vld [vmem:[#allocation7 + $0x58] sm:$0xff] }
  0xee   : > { %5603 = vmatprep.subr.bf16.mxu0 %v5602_v55  ;;  %5424 = vmatpush1.bf16.msra.mxu1 %v5423_v1  ;;  %v6486_v1 = vmov 0.0  }
  0xef   : > { %5425 = vmatprep.subr.bf16.mxu1 %v10291_v0  ;;  %1061 = vst [vmem:[#allocation2] sm:$0xff] %v6486_v1  ;;  %1062 = vst [vmem:[#allocation2 + $0x8] sm:$0xff] %v6486_v1 }
  0xf0   : > { %724 = vmatmul.mubr.f32.gmra.mrb[32].mxu0 %v444_v4  ;;  %v398_v4 = vld [vmem:[%s6724_s26 + $0x90] sm:$0xff]  ;;  %1063 = vst [vmem:[#allocation2 + $0x10] sm:$0x3] %v6486_v1  ;;  %1065 = vst [vmem:[#allocation2 + $0x198] sm:$0xff] %v6486_v1 }
  0xf1   : > { %728 = vmatprep.mubr.f32.mxu0 %v449_v5  ;;  %v403_v5 = vld [vmem:[%s6724_s26 + $0xb8] sm:$0xff]  ;;  %1066 = vst [vmem:[#allocation2 + $0x1a0] sm:$0xff] %v6486_v1  ;;  %1067 = vst [vmem:[#allocation2 + $0x1a8] sm:$0x3] %v6486_v1 }
  0xf2   : > { %1069 = vst [vmem:[#allocation2 + $0x18] sm:$0x1] %v6486_v1  ;;  %1070 = vst [vmem:[#allocation2 + $0x30] sm:$0x1] %v6486_v1 }
  0xf3   : > { %1071 = vst [vmem:[#allocation2 + $0x48] sm:$0x1] %v6486_v1  ;;  %1072 = vst [vmem:[#allocation2 + $0x60] sm:$0x1] %v6486_v1 }
  0xf4   : > { %729 = vmatmul.mubr.f32.gmra.mrb[34].mxu0 %v448_v6  ;;  %v5426_v6 = vpack.c.bf16 %v2013_v3, %v2012_v2  ;;  %1073 = vst [vmem:[#allocation2 + $0x78] sm:$0x1] %v6486_v1  ;;  %1074 = vst [vmem:[#allocation2 + $0x90] sm:$0x1] %v6486_v1  ;;  %v462_v2 = vld [vmem:[%s6724_s26 + $0x290] sm:$0xff] }
  0xf5   : > { %733 = vmatprep.mubr.f32.mxu0 %v453_v7  ;;  %v2014_v7 = vld [vmem:[#allocation7 + $0x60] sm:$0xff]  ;;  %1075 = vst [vmem:[#allocation2 + $0xa8] sm:$0x1] %v6486_v1  ;;  %1076 = vst [vmem:[#allocation2 + $0xc0] sm:$0x1] %v6486_v1  ;;  %v2032_v3 = vld [vmem:[#allocation7 + $0xf0] sm:$0xff] }
  0xf6   : > { %5427 = vmatpush1.bf16.msra.mxu1 %v5426_v6  ;;  %1077 = vst [vmem:[#allocation2 + $0xd8] sm:$0x1] %v6486_v1  ;;  %1078 = vst [vmem:[#allocation2 + $0xf0] sm:$0x1] %v6486_v1 }
  0xf7   : > { %5428 = vmatprep.subr.bf16.mxu1 %v10291_v0  ;;  %1079 = vst [vmem:[#allocation2 + $0x108] sm:$0x1] %v6486_v1  ;;  %1080 = vst [vmem:[#allocation2 + $0x120] sm:$0x1] %v6486_v1 }
  0xf8   : > { %734 = vmatmul.mubr.f32.gmra.mrb[36].mxu0 %v452_v8  ;;  %v2015_v8 = vld [vmem:[#allocation7 + $0x68] sm:$0xff]  ;;  %1081 = vst [vmem:[#allocation2 + $0x138] sm:$0x1] %v6486_v1  ;;  %1082 = vst [vmem:[#allocation2 + $0x150] sm:$0x1] %v6486_v1 }
  0xf9   : > { %738 = vmatprep.mubr.f32.mxu0 %v457_v9  ;;  %v402_v9 = vld [vmem:[%s6724_s26 + $0xb0] sm:$0xff]  ;;  %1083 = vst [vmem:[#allocation2 + $0x168] sm:$0x1] %v6486_v1  ;;  %1084 = vst [vmem:[#allocation2 + $0x180] sm:$0x1] %v6486_v1 }
  0xfa   : > { %1087 = vst [vmem:[#allocation2 + $0x29] sm:$0x1] %v6486_v1  ;;  %1088 = vst [vmem:[#allocation2 + $0x41] sm:$0x1] %v6486_v1 }
  0xfb   : > { %1089 = vst [vmem:[#allocation2 + $0x59] sm:$0x1] %v6486_v1  ;;  %1090 = vst [vmem:[#allocation2 + $0x71] sm:$0x1] %v6486_v1 }
  0xfc   : > { %739 = vmatmul.mubr.f32.gmra.mrb[38].mxu0 %v456_v10  ;;  %v407_v10 = vld [vmem:[%s6724_s26 + $0xd8] sm:$0xff]  ;;  %1091 = vst [vmem:[#allocation2 + $0x89] sm:$0x1] %v6486_v1  ;;  %1092 = vst [vmem:[#allocation2 + $0xa1] sm:$0x1] %v6486_v1 }
  0xfd   : > { %743 = vmatprep.mubr.f32.mxu0 %v461_v11  ;;  %v5429_v11 = vpack.c.bf16 %v2015_v8, %v2014_v7  ;;  %1093 = vst [vmem:[#allocation2 + $0xb9] sm:$0x1] %v6486_v1  ;;  %1094 = vst [vmem:[#allocation2 + $0xd1] sm:$0x1] %v6486_v1  ;;  %v466_v7 = vld [vmem:[%s6724_s26 + $0x2b0] sm:$0xff]  ;;  %v471_v8 = vld [vmem:[%s6724_s26 + $0x2d8] sm:$0xff] }
  0xfe   : > { %1095 = vst [vmem:[#allocation2 + $0xe9] sm:$0x1] %v6486_v1  ;;  %1096 = vst [vmem:[#allocation2 + $0x101] sm:$0x1] %v6486_v1 }
  0xff   : > { %5430 = vmatpush1.bf16.msra.mxu1 %v5429_v11  ;;  %1097 = vst [vmem:[#allocation2 + $0x119] sm:$0x1] %v6486_v1  ;;  %1098 = vst [vmem:[#allocation2 + $0x131] sm:$0x1] %v6486_v1  ;;  %v2135_v11 = vld [vmem:[#allocation7 + $0x428] sm:$0xff] }
 0x100   : > { %744 = vmatmul.mubr.f32.gmra.mrb[40].mxu0 %v460_v12  ;;  %v2016_v12 = vld [vmem:[#allocation7 + $0x70] sm:$0xff]  ;;  %5431 = vmatprep.subr.bf16.mxu1 %v10291_v0  ;;  %1099 = vst [vmem:[#allocation2 + $0x149] sm:$0x1] %v6486_v1  ;;  %1100 = vst [vmem:[#allocation2 + $0x161] sm:$0x1] %v6486_v1 }
 0x101   : > { %748 = vmatprep.mubr.f32.mxu0 %v465_v13  ;;  %v2017_v13 = vld [vmem:[#allocation7 + $0x78] sm:$0xff]  ;;  %1101 = vst [vmem:[#allocation2 + $0x179] sm:$0x1] %v6486_v1  ;;  %1102 = vst [vmem:[#allocation2 + $0x191] sm:$0x1] %v6486_v1 }
 0x102   : > { %1068 = vst [vmem:[#allocation2] sm:$0x1] %v6486_v1  ;;  %1085 = vst [vmem:[#allocation2 + $0x198] sm:$0x1] %v6486_v1 }
 0x103   : > { %1086 = vst [vmem:[#allocation2 + $0x11] sm:$0x1] %v6486_v1  ;;  %1103 = vst [vmem:[#allocation2 + $0x1a9] sm:$0x1] %v6486_v1 }
 0x104   : > { %749 = vmatmul.mubr.f32.gmra.mrb[42].mxu0 %v464_v14  ;;  %v406_v14 = vld [vmem:[%s6724_s26 + $0xd0] sm:$0xff] }
 0x105   : > { %753 = vmatprep.mubr.f32.mxu0 %v469_v15  ;;  %v411_v15 = vld [vmem:[%s6724_s26 + $0xf8] sm:$0xff] }
 0x108   : > { %754 = vmatmul.mubr.f32.gmra.mrb[44].mxu0 %v468_v16  ;;  %v5432_v16 = vpack.c.bf16 %v2017_v13, %v2016_v12 }
 0x109   : > { %758 = vmatprep.mubr.f32.mxu0 %v473_v17  ;;  %v2018_v17 = vld [vmem:[#allocation7 + $0x80] sm:$0xff]  ;;  %v1137_v12 = vld [vmem:[#allocation2] sm:$0xff] }
 0x10a   : > { %5433 = vmatpush1.bf16.msra.mxu1 %v5432_v16  ;;  %v475_v16 = vld [vmem:[%s6724_s26 + $0x2f8] sm:$0xff] }
 0x10b   : > { %5434 = vmatprep.subr.bf16.mxu1 %v10291_v0 }
 0x10c   : > { %759 = vmatmul.mubr.f32.gmra.mrb[46].mxu0 %v472_v18  ;;  %v2019_v18 = vld [vmem:[#allocation7 + $0x88] sm:$0xff] }
 0x10d   : > { %763 = vmatprep.mubr.f32.mxu0 %v477_v19  ;;  %v410_v19 = vld [vmem:[%s6724_s26 + $0xf0] sm:$0xff] }
 0x110   : > { %764 = vmatmul.mubr.f32.gmra.mrb[48].mxu0 %v476_v20  ;;  %v415_v20 = vld [vmem:[%s6724_s26 + $0x118] sm:$0xff] }
 0x111   : > { %768 = vmatprep.mubr.f32.mxu0 %v481_v21  ;;  %v5435_v21 = vpack.c.bf16 %v2019_v18, %v2018_v17  ;;  %v2136_v17 = vld [vmem:[#allocation7 + $0x430] sm:$0xff]  ;;  %v2137_v18 = vld [vmem:[#allocation7 + $0x438] sm:$0xff] }
 0x113   : > { %5436 = vmatpush1.bf16.msra.mxu1 %v5435_v21  ;;  %v479_v21 = vld [vmem:[%s6724_s26 + $0x318] sm:$0xff] }
 0x114   : > { %769 = vmatmul.mubr.f32.gmra.mrb[50].mxu0 %v480_v22  ;;  %v2020_v22 = vld [vmem:[#allocation7 + $0x90] sm:$0xff]  ;;  %5437 = vmatprep.subr.bf16.mxu1 %v10291_v0 }
 0x115   : > { %773 = vmatprep.mubr.f32.mxu0 %v485_v23  ;;  %v2021_v23 = vld [vmem:[#allocation7 + $0x98] sm:$0xff] }
 0x118   : > { %774 = vmatmul.mubr.f32.gmra.mrb[52].mxu0 %v484_v24  ;;  %v414_v24 = vld [vmem:[%s6724_s26 + $0x110] sm:$0xff] }
 0x119   : > { %778 = vmatprep.mubr.f32.mxu0 %v489_v25  ;;  %v419_v25 = vld [vmem:[%s6724_s26 + $0x138] sm:$0xff] }
 0x11c   : > { %779 = vmatmul.mubr.f32.gmra.mrb[54].mxu0 %v488_v26  ;;  %v5438_v26 = vpack.c.bf16 %v2021_v23, %v2020_v22  ;;  %v2138_v22 = vld [vmem:[#allocation7 + $0x440] sm:$0xff]  ;;  %v2139_v23 = vld [vmem:[#allocation7 + $0x448] sm:$0xff] }
 0x11d   : > { %783 = vmatprep.mubr.f32.mxu0 %v493_v27  ;;  %v2022_v27 = vld [vmem:[#allocation7 + $0xa0] sm:$0xff] }
 0x11e   : > { %5439 = vmatpush1.bf16.msra.mxu1 %v5438_v26  ;;  %v2035_v26 = vld [vmem:[#allocation7 + $0x108] sm:$0xff] }
 0x11f   : > { %5440 = vmatprep.subr.bf16.mxu1 %v10291_v0 }
 0x120   : > { %784 = vmatmul.mubr.f32.gmra.mrb[56].mxu0 %v492_v28  ;;  %v2023_v28 = vld [vmem:[#allocation7 + $0xa8] sm:$0xff] }
 0x121   : > { %788 = vmatprep.mubr.f32.mxu0 %v497_v29  ;;  %v418_v29 = vld [vmem:[%s6724_s26 + $0x130] sm:$0xff] }
 0x124   : > { %789 = vmatmul.mubr.f32.gmra.mrb[58].mxu0 %v496_v30  ;;  %v423_v30 = vld [vmem:[%s6724_s26 + $0x158] sm:$0xff] }
 0x125   : > { %793 = vmatprep.mubr.f32.mxu0 %v501_v31  ;;  %v5441_v31 = vpack.c.bf16 %v2023_v28, %v2022_v27  ;;  %v478_v27 = vld [vmem:[%s6724_s26 + $0x310] sm:$0xff] }
 0x127   : > { %5442 = vmatpush1.bf16.msra.mxu1 %v5441_v31  ;;  %v2141_v31 = vld [vmem:[#allocation7 + $0x458] sm:$0xff] }
 0x128   : > { %794 = vmatmul.mubr.f32.gmra.mrb[60].mxu0 %v500_v32  ;;  %v2024_v32 = vld [vmem:[#allocation7 + $0xb0] sm:$0xff]  ;;  %5443 = vmatprep.subr.bf16.mxu1 %v10291_v0 }
 0x129   : > { %798 = vmatprep.mubr.f32.mxu0 %v505_v33  ;;  %v2025_v33 = vld [vmem:[#allocation7 + $0xb8] sm:$0xff] }
 0x12a   : > { %v5444_v36 = vpack.c.bf16 %v2025_v33, %v2024_v32  ;;  %v482_v33 = vld [vmem:[%s6724_s26 + $0x330] sm:$0xff] }
 0x12c   : > { %799 = vmatmul.mubr.f32.gmra.mrb[62].mxu0 %v504_v34  ;;  %v422_v34 = vld [vmem:[%s6724_s26 + $0x150] sm:$0xff]  ;;  %5445 = vmatpush1.bf16.msra.mxu1 %v5444_v36  ;;  %v2143_v36 = vld [vmem:[#allocation7 + $0x468] sm:$0xff] }
 0x12d   : > { %868 = vmatprep.mubr.f32.mxu0 %v383_v35  ;;  %v427_v35 = vld [vmem:[%s6724_s26 + $0x178] sm:$0xff]  ;;  %5446 = vmatprep.subr.bf16.mxu1 %v10291_v0 }
 0x130   : > { %869 = vmatmul.mubr.f32.vlgmr.msra.gmra.mrb[0].mxu0 %v382_v39  ;;  %v426_v39 = vld [vmem:[%s6724_s26 + $0x170] sm:$0xff]  ;;  %5448 = vmatpush1.bf16.msra.mxu1 %v5447_v41 }
 0x131   : > { %873 = vmatprep.mubr.f32.mxu0 %v387_v42  ;;  %5605 = vmatpush3.bf16.msra.mxu0 %v5602_v55  ;;  %v2028_v42 = vld [vmem:[#allocation7 + $0xd0] sm:$0xff]  ;;  %v447_v55 = vld [vmem:[%s6724_s26 + $0x218] sm:$0xff] }
 0x132   : > { %5607 = vmatprep.subr.bf16.mxu0 %v5606_v59  ;;  %5449 = vmatprep.subr.bf16.mxu1 %v10291_v0 }
 0x134   : > { %874 = vmatmul.mubr.f32.gmra.mrb[2].mxu0 %v386_v46  ;;  %v5450_v46 = vpack.c.bf16 %v2029_v43, %v2028_v42  ;;  %v491_v42 = vld [vmem:[%s6724_s26 + $0x378] sm:$0xff]  ;;  %v2144_v43 = vld [vmem:[#allocation7 + $0x470] sm:$0xff] }
 0x135   : > { %878 = vmatprep.mubr.f32.mxu0 %v391_v47  ;;  %5609 = vmatpush3.bf16.msra.mxu0 %v5606_v59  ;;  %v2030_v47 = vld [vmem:[#allocation7 + $0xe0] sm:$0xff]  ;;  %v455_v59 = vld [vmem:[%s6724_s26 + $0x258] sm:$0xff] }
 0x136   : > { %5451 = vmatpush1.bf16.msra.mxu1 %v5450_v46  ;;  %v5453_v51 = vpack.c.bf16 %v2031_v48, %v2030_v47  ;;  %v490_v46 = vld [vmem:[%s6724_s26 + $0x370] sm:$0xff]  ;;  %v495_v47 = vld [vmem:[%s6724_s26 + $0x398] sm:$0xff]  ;;  %v2038_v48 = vld [vmem:[#allocation7 + $0x120] sm:$0xff] }
 0x137   : > { %5452 = vmatprep.subr.bf16.mxu1 %v10291_v0 }
 0x138   : > { %879 = vmatmul.mubr.f32.gmra.mrb[4].mxu0 %v390_v52  ;;  %v438_v52 = vld [vmem:[%s6724_s26 + $0x1d0] sm:$0xff] }
 0x139   : > { %883 = vmatprep.mubr.f32.mxu0 %v395_v54  ;;  %v442_v54 = vld [vmem:[%s6724_s26 + $0x1f0] sm:$0xff] }
 0x13a   : > { %5454 = vmatpush1.bf16.msra.mxu1 %v5453_v51 }
 0x13b   : > { %5455 = vmatprep.subr.bf16.mxu1 %v10291_v0 }
 0x13c   : > { %884 = vmatmul.mubr.f32.gmra.mrb[6].mxu0 %v394_v62  ;;  %v458_v62 = vld [vmem:[%s6724_s26 + $0x270] sm:$0xff] }
 0x13d   : > { %888 = vmatprep.mubr.f32.mxu0 %v399_v63  ;;  %v463_v63 = vld [vmem:[%s6724_s26 + $0x298] sm:$0xff] }
 0x140   : > { %889 = vmatmul.mubr.f32.gmra.mrb[8].mxu0 %v398_v4  ;;  %v2033_v4 = vld [vmem:[#allocation7 + $0xf8] sm:$0xff] }
 0x141   : > { %893 = vmatprep.mubr.f32.mxu0 %v403_v5  ;;  %v467_v5 = vld [vmem:[%s6724_s26 + $0x2b8] sm:$0xff]  ;;  %v5456_v6 = vpack.c.bf16 %v2033_v4, %v2032_v3  ;;  %v2046_v4 = vld [vmem:[#allocation7 + $0x160] sm:$0xff] }
 0x143   : > { %5457 = vmatpush1.bf16.msra.mxu1 %v5456_v6 }
 0x144   : > { %894 = vmatmul.mubr.f32.gmra.mrb[10].mxu0 %v402_v9  ;;  %v1201_v9 = vld [vmem:[#allocation2 + $0x1] sm:$0xff]  ;;  %5458 = vmatprep.subr.bf16.mxu1 %v10291_v0 }
 0x145   : > { %898 = vmatprep.mubr.f32.mxu0 %v407_v10  ;;  %v2134_v10 = vld [vmem:[#allocation7 + $0x420] sm:$0xff]  ;;  %2217 = vmatprep.mubr.f32.mxu1 %v1201_v9 }
 0x146   : > { %v5610_v13 = vpack.c.bf16 %v2135_v11, %v2134_v10  ;;  %2218 = vmatmul.mubr.f32.vlgmr.msra.gmra.mrb[0].mxu1 %v1137_v12  ;;  %v2050_v10 = vld [vmem:[#allocation7 + $0x180] sm:$0xff]  ;;  %v2051_v11 = vld [vmem:[#allocation7 + $0x188] sm:$0xff] }
 0x147   : > { %v5483_v12 = vpack.c.bf16 %v2051_v11, %v2050_v10 }
 0x148   : > { %899 = vmatmul.mubr.f32.gmra.mrb[12].mxu0 %v406_v14  ;;  %v470_v14 = vld [vmem:[%s6724_s26 + $0x2d0] sm:$0xff]  ;;  %5611 = vmatprep.subr.bf16.mxu0 %v5610_v13 }
 0x149   : > { %903 = vmatprep.mubr.f32.mxu0 %v411_v15  ;;  %v1202_v15 = vld [vmem:[#allocation2 + $0x9] sm:$0xff]  ;;  %5613 = vmatpush3.bf16.msra.mxu0 %v5610_v13  ;;  %v2052_v13 = vld [vmem:[#allocation7 + $0x190] sm:$0xff] }
 0x14a   : > { %2222 = vmatprep.mubr.f32.mxu1 %v1202_v15 }
 0x14b   : > { %2223 = vmatmul.mubr.f32.gmra.mrb[2].mxu1 %v6486_v1  ;;  %v2044_v1 = vld [vmem:[#allocation7 + $0x150] sm:$0xff] }
 0x14c   : > { %904 = vmatmul.mubr.f32.gmra.mrb[14].mxu0 %v410_v19  ;;  %v5614_v19 = vpack.c.bf16 %v2137_v18, %v2136_v17  ;;  %v2055_v17 = vld [vmem:[#allocation7 + $0x1a8] sm:$0xff] }
 0x14d   : > { %908 = vmatprep.mubr.f32.mxu0 %v415_v20  ;;  %v474_v20 = vld [vmem:[%s6724_s26 + $0x2f0] sm:$0xff] }
 0x14e   : > { %5615 = vmatprep.subr.bf16.mxu0 %v5614_v19 }
 0x14f   : > { %5617 = vmatpush3.bf16.msra.mxu0 %v5614_v19  ;;  %v2056_v19 = vld [vmem:[#allocation7 + $0x1b0] sm:$0xff] }
 0x150   : > { %909 = vmatmul.mubr.f32.gmra.mrb[16].mxu0 %v414_v24  ;;  %v5618_v24 = vpack.c.bf16 %v2139_v23, %v2138_v22  ;;  %v2058_v22 = vld [vmem:[#allocation7 + $0x1c0] sm:$0xff]  ;;  %v2059_v23 = vld [vmem:[#allocation7 + $0x1c8] sm:$0xff] }
 0x151   : > { %913 = vmatprep.mubr.f32.mxu0 %v419_v25  ;;  %v2034_v25 = vld [vmem:[#allocation7 + $0x100] sm:$0xff] }
 0x152   : > { %v5459_v28 = vpack.c.bf16 %v2035_v26, %v2034_v25  ;;  %5619 = vmatprep.subr.bf16.mxu0 %v5618_v24  ;;  %v2060_v25 = vld [vmem:[#allocation7 + $0x1d0] sm:$0xff]  ;;  %v2061_v26 = vld [vmem:[#allocation7 + $0x1d8] sm:$0xff] }
 0x153   : > { %5621 = vmatpush3.bf16.msra.mxu0 %v5618_v24  ;;  %v5495_v24 = vpack.c.bf16 %v2059_v23, %v2058_v22 }
 0x154   : > { %914 = vmatmul.mubr.f32.gmra.mrb[18].mxu0 %v418_v29  ;;  %v483_v29 = vld [vmem:[%s6724_s26 + $0x338] sm:$0xff]  ;;  %5460 = vmatpush1.bf16.msra.mxu1 %v5459_v28  ;;  %v2062_v28 = vld [vmem:[#allocation7 + $0x1e0] sm:$0xff] }
 0x155   : > { %918 = vmatprep.mubr.f32.mxu0 %v423_v30  ;;  %v2140_v30 = vld [vmem:[#allocation7 + $0x450] sm:$0xff]  ;;  %5461 = vmatprep.subr.bf16.mxu1 %v10291_v0 }
 0x156   : > { %v5622_v32 = vpack.c.bf16 %v2141_v31, %v2140_v30  ;;  %v7164_v31 = vld [vmem:[%s10277_s2] ss:$0 sm:$0xff] }
 0x158   : > { %919 = vmatmul.mubr.f32.gmra.mrb[20].mxu0 %v422_v34  ;;  %5623 = vmatprep.subr.bf16.mxu0 %v5622_v32  ;;  %v487_v34 = vld [vmem:[%s6724_s26 + $0x358] sm:$0xff] }
 0x159   : > { %923 = vmatprep.mubr.f32.mxu0 %v427_v35  ;;  %5625 = vmatpush3.bf16.msra.mxu0 %v5622_v32  ;;  %v2142_v35 = vld [vmem:[#allocation7 + $0x460] sm:$0xff]  ;;  %v2064_v32 = vld [vmem:[#allocation7 + $0x1f0] sm:$0xff] }
 0x15a   : > { %v5626_v37 = vpack.c.bf16 %v2143_v36, %v2142_v35 }
 0x15c   : > { %924 = vmatmul.mubr.f32.gmra.mrb[22].mxu0 %v426_v39  ;;  %v2037_v39 = vld [vmem:[#allocation7 + $0x118] sm:$0xff]  ;;  %5627 = vmatprep.subr.bf16.mxu0 %v5626_v37 }
 0x15d   : > { %928 = vmatprep.mubr.f32.mxu0 %v431_v40  ;;  %v486_v40 = vld [vmem:[%s6724_s26 + $0x350] sm:$0xff]  ;;  %v5462_v41 = vpack.c.bf16 %v2037_v39, %v2036_v38  ;;  %5629 = vmatpush3.bf16.msra.mxu0 %v5626_v37 }
 0x15f   : > { %5463 = vmatpush1.bf16.msra.mxu1 %v5462_v41 }
 0x160   : > { %929 = vmatmul.mubr.f32.gmra.mrb[24].mxu0 %v430_v44  ;;  %v2145_v44 = vld [vmem:[#allocation7 + $0x478] sm:$0xff]  ;;  %5464 = vmatprep.subr.bf16.mxu1 %v10291_v0 }
 0x161   : > { %933 = vmatprep.mubr.f32.mxu0 %v435_v45  ;;  %v5630_v45 = vpack.c.bf16 %v2145_v44, %v2144_v43 }
 0x163   : > { %5631 = vmatprep.subr.bf16.mxu0 %v5630_v45 }
 0x164   : > { %934 = vmatmul.mubr.f32.gmra.mrb[26].mxu0 %v434_v49  ;;  %v2039_v49 = vld [vmem:[#allocation7 + $0x128] sm:$0xff] }
 0x165   : > { %938 = vmatprep.mubr.f32.mxu0 %v439_v50  ;;  %5633 = vmatpush3.bf16.msra.mxu0 %v5630_v45  ;;  %v494_v50 = vld [vmem:[%s6724_s26 + $0x390] sm:$0xff]  ;;  %v5465_v51 = vpack.c.bf16 %v2039_v49, %v2038_v48 }
 0x167   : > { %5466 = vmatpush1.bf16.msra.mxu1 %v5465_v51 }
 0x168   : > { %939 = vmatmul.mubr.f32.gmra.mrb[28].mxu0 %v438_v52  ;;  %v499_v52 = vld [vmem:[%s6724_s26 + $0x3b8] sm:$0xff]  ;;  %5467 = vmatprep.subr.bf16.mxu1 %v10291_v0 }
 0x169   : > { %943 = vmatprep.mubr.f32.mxu0 %v443_v53  ;;  %v498_v53 = vld [vmem:[%s6724_s26 + $0x3b0] sm:$0xff] }
 0x16c   : > { %944 = vmatmul.mubr.f32.gmra.mrb[30].mxu0 %v442_v54  ;;  %v503_v54 = vld [vmem:[%s6724_s26 + $0x3d8] sm:$0xff] }
 0x16d   : > { %948 = vmatprep.mubr.f32.mxu0 %v447_v55  ;;  %v2040_v55 = vld [vmem:[#allocation7 + $0x130] sm:$0xff] }
 0x170   : > { %949 = vmatmul.mubr.f32.gmra.mrb[32].mxu0 %v446_v56  ;;  %v2041_v56 = vld [vmem:[#allocation7 + $0x138] sm:$0xff] }
 0x171   : > { %953 = vmatprep.mubr.f32.mxu0 %v451_v57  ;;  %v502_v57 = vld [vmem:[%s6724_s26 + $0x3d0] sm:$0xff] }
 0x174   : > { %954 = vmatmul.mubr.f32.gmra.mrb[34].mxu0 %v450_v58  ;;  %v5468_v58 = vpack.c.bf16 %v2041_v56, %v2040_v55 }
 0x175   : > { %958 = vmatprep.mubr.f32.mxu0 %v455_v59  ;;  %v507_v59 = vld [vmem:[%s6724_s26 + $0x3f8] sm:$0xff] }
 0x176   : > { %5469 = vmatpush1.bf16.msra.mxu1 %v5468_v58 }
 0x177   : > { %5470 = vmatprep.subr.bf16.mxu1 %v10291_v0 }
 0x178   : > { %959 = vmatmul.mubr.f32.gmra.mrb[36].mxu0 %v454_v60  ;;  %v506_v60 = vld [vmem:[%s6724_s26 + $0x3f0] sm:$0xff] }
 0x179   : > { %963 = vmatprep.mubr.f32.mxu0 %v459_v61  ;;  %v2042_v61 = vld [vmem:[#allocation7 + $0x140] sm:$0xff] }
 0x17c   : > { %964 = vmatmul.mubr.f32.gmra.mrb[38].mxu0 %v458_v62  ;;  %v2043_v62 = vld [vmem:[#allocation7 + $0x148] sm:$0xff] }
 0x17d   : > { %968 = vmatprep.mubr.f32.mxu0 %v463_v63  ;;  %v5471_v63 = vpack.c.bf16 %v2043_v62, %v2042_v61 }
 0x17f   : > { %5472 = vmatpush1.bf16.msra.mxu1 %v5471_v63 }
 0x180   : > { %969 = vmatmul.mubr.f32.gmra.mrb[40].mxu0 %v462_v2  ;;  %5473 = vmatprep.subr.bf16.mxu1 %v10291_v0  ;;  %v2045_v2 = vld [vmem:[#allocation7 + $0x158] sm:$0xff] }
 0x181   : > { %973 = vmatprep.mubr.f32.mxu0 %v467_v5  ;;  %v5474_v3 = vpack.c.bf16 %v2045_v2, %v2044_v1  ;;  %v2047_v5 = vld [vmem:[#allocation7 + $0x168] sm:$0xff] }
 0x182   : > { %v5477_v6 = vpack.c.bf16 %v2047_v5, %v2046_v4 }
 0x183   : > { %5475 = vmatpush1.bf16.msra.mxu1 %v5474_v3 }
 0x184   : > { %974 = vmatmul.mubr.f32.gmra.mrb[42].mxu0 %v466_v7  ;;  %5476 = vmatprep.subr.bf16.mxu1 %v10291_v0  ;;  %v2048_v7 = vld [vmem:[#allocation7 + $0x170] sm:$0xff] }
 0x185   : > { %978 = vmatprep.mubr.f32.mxu0 %v471_v8  ;;  %v2049_v8 = vld [vmem:[#allocation7 + $0x178] sm:$0xff] }
 0x186   : > { %v5480_v9 = vpack.c.bf16 %v2049_v8, %v2048_v7 }
 0x187   : > { %5478 = vmatpush1.bf16.msra.mxu1 %v5477_v6 }
 0x188   : > { %979 = vmatmul.mubr.f32.gmra.mrb[44].mxu0 %v470_v14  ;;  %5479 = vmatprep.subr.bf16.mxu1 %v10291_v0  ;;  %v2053_v14 = vld [vmem:[#allocation7 + $0x198] sm:$0xff] }
 0x189   : > { %983 = vmatprep.mubr.f32.mxu0 %v475_v16  ;;  %v5486_v15 = vpack.c.bf16 %v2053_v14, %v2052_v13  ;;  %v2054_v16 = vld [vmem:[#allocation7 + $0x1a0] sm:$0xff] }
 0x18a   : > { %v5489_v18 = vpack.c.bf16 %v2055_v17, %v2054_v16 }
 0x18b   : > { %5481 = vmatpush1.bf16.msra.mxu1 %v5480_v9 }
 0x18c   : > { %984 = vmatmul.mubr.f32.gmra.mrb[46].mxu0 %v474_v20  ;;  %5482 = vmatprep.subr.bf16.mxu1 %v10291_v0  ;;  %v2057_v20 = vld [vmem:[#allocation7 + $0x1b8] sm:$0xff] }
 0x18d   : > { %988 = vmatprep.mubr.f32.mxu0 %v479_v21  ;;  %v5492_v21 = vpack.c.bf16 %v2057_v20, %v2056_v19 }
 0x18f   : > { %5484 = vmatpush1.bf16.msra.mxu1 %v5483_v12 }
 0x190   : > { %989 = vmatmul.mubr.f32.gmra.mrb[48].mxu0 %v478_v27  ;;  %5485 = vmatprep.subr.bf16.mxu1 %v10291_v0  ;;  %v5498_v27 = vpack.c.bf16 %v2061_v26, %v2060_v25 }
 0x191   : > { %993 = vmatprep.mubr.f32.mxu0 %v483_v29  ;;  %v2063_v29 = vld [vmem:[#allocation7 + $0x1e8] sm:$0xff] }
 0x192   : > { %v5501_v30 = vpack.c.bf16 %v2063_v29, %v2062_v28 }
 0x193   : > { %5487 = vmatpush1.bf16.msra.mxu1 %v5486_v15 }
 0x194   : > { %994 = vmatmul.mubr.f32.gmra.mrb[50].mxu0 %v482_v33  ;;  %5488 = vmatprep.subr.bf16.mxu1 %v10291_v0  ;;  %v2065_v33 = vld [vmem:[#allocation7 + $0x1f8] sm:$0xff] }
 0x195   : > { %998 = vmatprep.mubr.f32.mxu0 %v487_v34  ;;  %v5504_v35 = vpack.c.bf16 %v2065_v33, %v2064_v32 }
 0x197   : > { %5490 = vmatpush1.bf16.msra.mxu1 %v5489_v18 }
 0x198   : > { %999 = vmatmul.mubr.f32.gmra.mrb[52].mxu0 %v486_v40  ;;  %5491 = vmatprep.subr.bf16.mxu1 %v10291_v0 }
 0x199   : > { %1003 = vmatprep.mubr.f32.mxu0 %v491_v42 }
 0x19b   : > { %5493 = vmatpush1.bf16.msra.mxu1 %v5492_v21 }
 0x19c   : > { %1004 = vmatmul.mubr.f32.gmra.mrb[54].mxu0 %v490_v46  ;;  %5494 = vmatprep.subr.bf16.mxu1 %v10291_v0 }
 0x19d   : > { %1008 = vmatprep.mubr.f32.mxu0 %v495_v47 }
 0x19f   : > { %5496 = vmatpush1.bf16.msra.mxu1 %v5495_v24 }
 0x1a0   : > { %1009 = vmatmul.mubr.f32.gmra.mrb[56].mxu0 %v494_v50  ;;  %5497 = vmatprep.subr.bf16.mxu1 %v10291_v0 }
 0x1a1   : > { %1013 = vmatprep.mubr.f32.mxu0 %v499_v52 }
 0x1a3   : > { %5499 = vmatpush1.bf16.msra.mxu1 %v5498_v27 }
 0x1a4   : > { %1014 = vmatmul.mubr.f32.gmra.mrb[58].mxu0 %v498_v53  ;;  %5500 = vmatprep.subr.bf16.mxu1 %v10291_v0 }
 0x1a5   : > { %1018 = vmatprep.mubr.f32.mxu0 %v503_v54 }
 0x1a7   : > { %5502 = vmatpush1.bf16.msra.mxu1 %v5501_v30 }
 0x1a8   : > { %1019 = vmatmul.mubr.f32.gmra.mrb[60].mxu0 %v502_v57  ;;  %5503 = vmatprep.subr.bf16.mxu1 %v10291_v0 }
 0x1a9   : > { %1023 = vmatprep.mubr.f32.mxu0 %v507_v59 }
 0x1ab   : > { %5505 = vmatpush1.bf16.msra.mxu1 %v5504_v35 }
 0x1ac   : > { %1024 = vmatmul.mubr.f32.gmra.mrb[62].mxu0 %v506_v60  ;;  %5506 = vmatprep.subr.bf16.mxu1 %v10291_v0 }
 0x203   : > { %v870_v34 = vpop.f32.mrb[0].mxu0 }
 0x204   : > { %v5778_v36 = vadd.f32 %v7164_v31, %v870_v34  ;;  %v872_v37 = vpop.f32.mrb[1].mxu0 }
 0x206   : > { %v1029_v38 = vmax.f32 %v5778_v36, 0.0 }
 0x207   : > { %v875_v39 = vpop.f32.mrb[2].mxu0 }
 0x208   : > { %1105 = vst [vmem:[#allocation2 + $0x19] sm:$0xff] %v1029_v38  ;;  %v5779_v40 = vadd.f32 %v7164_v31, %v875_v39  ;;  %v877_v41 = vpop.f32.mrb[3].mxu0  ;;  %2227 = vmatprep.mubr.f32.mxu1 %v1029_v38 }
 0x20a   : > { %v1030_v42 = vmax.f32 %v5779_v40, 0.0 }
 0x20b   : > { %v880_v43 = vpop.f32.mrb[4].mxu0 }
 0x20c   : > { %1106 = vst [vmem:[#allocation2 + $0x21] sm:$0xff] %v1030_v42  ;;  %v5780_v44 = vadd.f32 %v7164_v31, %v880_v43  ;;  %v882_v45 = vpop.f32.mrb[5].mxu0 }
 0x20e   : > { %v1031_v46 = vmax.f32 %v5780_v44, 0.0 }
 0x20f   : > { %v885_v47 = vpop.f32.mrb[6].mxu0  ;;  %v7170_v48 = vld [vmem:[#allocation2 + $0x18] sm:$0xff] }
 0x210   : > { %1107 = vst [vmem:[#allocation2 + $0x31] sm:$0xff] %v1031_v46  ;;  %v5781_v49 = vadd.f32 %v7164_v31, %v885_v47  ;;  %v887_v50 = vpop.f32.mrb[7].mxu0  ;;  %2228 = vmatmul.mubr.f32.gmra.mrb[4].mxu1 %v7170_v48 }
 0x211   : > { %2232 = vmatprep.mubr.f32.mxu1 %v1030_v42 }
 0x212   : > { %v1032_v51 = vmax.f32 %v5781_v49, 0.0 }
 0x213   : > { %v890_v52 = vpop.f32.mrb[8].mxu0  ;;  %v7174_v53 = vld [vmem:[#allocation2 + $0x20] sm:$0xff] }
 0x214   : > { %1108 = vst [vmem:[#allocation2 + $0x39] sm:$0xff] %v1032_v51  ;;  %v5782_v54 = vadd.f32 %v7164_v31, %v890_v52  ;;  %v892_v55 = vpop.f32.mrb[9].mxu0  ;;  %2233 = vmatmul.mubr.f32.gmra.mrb[6].mxu1 %v7174_v53 }
 0x215   : > { %2237 = vmatprep.mubr.f32.mxu1 %v1031_v46 }
 0x216   : > { %v1033_v56 = vmax.f32 %v5782_v54, 0.0 }
 0x217   : > { %v895_v57 = vpop.f32.mrb[10].mxu0  ;;  %v7178_v58 = vld [vmem:[#allocation2 + $0x30] sm:$0xff] }
 0x218   : > { %1109 = vst [vmem:[#allocation2 + $0x49] sm:$0xff] %v1033_v56  ;;  %v5783_v59 = vadd.f32 %v7164_v31, %v895_v57  ;;  %v897_v60 = vpop.f32.mrb[11].mxu0  ;;  %2238 = vmatmul.mubr.f32.gmra.mrb[8].mxu1 %v7178_v58 }
 0x219   : > { %2242 = vmatprep.mubr.f32.mxu1 %v1032_v51 }
 0x21a   : > { %v1034_v61 = vmax.f32 %v5783_v59, 0.0 }
 0x21b   : > { %v900_v62 = vpop.f32.mrb[12].mxu0  ;;  %v7182_v63 = vld [vmem:[#allocation2 + $0x32] sm:$0xff]  ;;  %v7186_v2 = vld [vmem:[#allocation2 + $0x3a] sm:$0xff] }
 0x21c   : > { %v7184_v1 = vld [vmem:[#allocation2 + $0x38] sm:$0xff]  ;;  %1110 = vst [vmem:[#allocation2 + $0x51] sm:$0xff] %v1034_v61  ;;  %v5784_v3 = vadd.f32 %v7164_v31, %v900_v62  ;;  %v902_v4 = vpop.f32.mrb[13].mxu0  ;;  %5266 = vmatprep.mubr.f32.mxu0 %v7182_v63 }
 0x21d   : > { %2243 = vmatmul.mubr.f32.gmra.mrb[10].mxu1 %v7184_v1  ;;  %5267 = vmatmul.mubr.f32.vlgmr.msra.gmra.mrb[64].mxu0 %v7186_v2 }
 0x21e   : > { %2247 = vmatprep.mubr.f32.mxu1 %v1033_v56  ;;  %v1035_v5 = vmax.f32 %v5784_v3, 0.0 }
 0x21f   : > { %v905_v6 = vpop.f32.mrb[14].mxu0  ;;  %v7192_v7 = vld [vmem:[#allocation2 + $0x48] sm:$0xff] }
 0x220   : > { %1111 = vst [vmem:[#allocation2 + $0x61] sm:$0xff] %v1035_v5  ;;  %v5785_v8 = vadd.f32 %v7164_v31, %v905_v6  ;;  %v907_v9 = vpop.f32.mrb[15].mxu0 }
 0x221   : > { %2248 = vmatmul.mubr.f32.gmra.mrb[12].mxu1 %v7192_v7 }
 0x222   : > { %2252 = vmatprep.mubr.f32.mxu1 %v1034_v61  ;;  %v1036_v10 = vmax.f32 %v5785_v8, 0.0 }
 0x223   : > { %v910_v11 = vpop.f32.mrb[16].mxu0  ;;  %v7196_v12 = vld [vmem:[#allocation2 + $0x4a] sm:$0xff]  ;;  %v7200_v14 = vld [vmem:[#allocation2 + $0x52] sm:$0xff] }
 0x224   : > { %v7198_v13 = vld [vmem:[#allocation2 + $0x50] sm:$0xff]  ;;  %1112 = vst [vmem:[#allocation2 + $0x69] sm:$0xff] %v1036_v10  ;;  %v5786_v15 = vadd.f32 %v7164_v31, %v910_v11  ;;  %v912_v16 = vpop.f32.mrb[17].mxu0  ;;  %5269 = vmatprep.mubr.f32.mxu0 %v7196_v12 }
 0x225   : > { %2253 = vmatmul.mubr.f32.gmra.mrb[14].mxu1 %v7198_v13  ;;  %5270 = vmatmul.mubr.f32.gmra.mrb[66].mxu0 %v7200_v14 }
 0x226   : > { %2257 = vmatprep.mubr.f32.mxu1 %v1035_v5  ;;  %v1037_v17 = vmax.f32 %v5786_v15, 0.0 }
 0x227   : > { %v915_v18 = vpop.f32.mrb[18].mxu0  ;;  %v7206_v19 = vld [vmem:[#allocation2 + $0x60] sm:$0xff] }
 0x228   : > { %1113 = vst [vmem:[#allocation2 + $0x79] sm:$0xff] %v1037_v17  ;;  %v5787_v20 = vadd.f32 %v7164_v31, %v915_v18  ;;  %v917_v21 = vpop.f32.mrb[19].mxu0 }
 0x229   : > { %2258 = vmatmul.mubr.f32.gmra.mrb[16].mxu1 %v7206_v19 }
 0x22a   : > { %2262 = vmatprep.mubr.f32.mxu1 %v1036_v10  ;;  %v1038_v22 = vmax.f32 %v5787_v20, 0.0 }
 0x22b   : > { %v920_v23 = vpop.f32.mrb[20].mxu0  ;;  %v7210_v24 = vld [vmem:[#allocation2 + $0x62] sm:$0xff]  ;;  %v7214_v26 = vld [vmem:[#allocation2 + $0x6a] sm:$0xff] }
 0x22c   : > { %v7212_v25 = vld [vmem:[#allocation2 + $0x68] sm:$0xff]  ;;  %1114 = vst [vmem:[#allocation2 + $0x81] sm:$0xff] %v1038_v22  ;;  %v5788_v27 = vadd.f32 %v7164_v31, %v920_v23  ;;  %v922_v28 = vpop.f32.mrb[21].mxu0  ;;  %5272 = vmatprep.mubr.f32.mxu0 %v7210_v24 }
 0x22d   : > { %2263 = vmatmul.mubr.f32.gmra.mrb[18].mxu1 %v7212_v25  ;;  %5273 = vmatmul.mubr.f32.gmra.mrb[68].mxu0 %v7214_v26 }
 0x22e   : > { %2267 = vmatprep.mubr.f32.mxu1 %v1037_v17  ;;  %v1039_v29 = vmax.f32 %v5788_v27, 0.0 }
 0x22f   : > { %v925_v30 = vpop.f32.mrb[22].mxu0  ;;  %v7220_v32 = vld [vmem:[#allocation2 + $0x78] sm:$0xff] }
 0x230   : > { %1115 = vst [vmem:[#allocation2 + $0x91] sm:$0xff] %v1039_v29  ;;  %v5789_v33 = vadd.f32 %v7164_v31, %v925_v30  ;;  %v927_v34 = vpop.f32.mrb[23].mxu0 }
 0x231   : > { %2268 = vmatmul.mubr.f32.gmra.mrb[20].mxu1 %v7220_v32 }
 0x232   : > { %2272 = vmatprep.mubr.f32.mxu1 %v1038_v22  ;;  %v1040_v35 = vmax.f32 %v5789_v33, 0.0 }
 0x233   : > { %v930_v36 = vpop.f32.mrb[24].mxu0  ;;  %v7224_v37 = vld [vmem:[#allocation2 + $0x7a] sm:$0xff]  ;;  %v7228_v39 = vld [vmem:[#allocation2 + $0x82] sm:$0xff] }
 0x234   : > { %v7226_v38 = vld [vmem:[#allocation2 + $0x80] sm:$0xff]  ;;  %1116 = vst [vmem:[#allocation2 + $0x99] sm:$0xff] %v1040_v35  ;;  %v5790_v40 = vadd.f32 %v7164_v31, %v930_v36  ;;  %v932_v41 = vpop.f32.mrb[25].mxu0  ;;  %5275 = vmatprep.mubr.f32.mxu0 %v7224_v37 }
 0x235   : > { %2273 = vmatmul.mubr.f32.gmra.mrb[22].mxu1 %v7226_v38  ;;  %5276 = vmatmul.mubr.f32.gmra.mrb[70].mxu0 %v7228_v39 }
 0x236   : > { %2277 = vmatprep.mubr.f32.mxu1 %v1039_v29  ;;  %v1041_v42 = vmax.f32 %v5790_v40, 0.0 }
 0x237   : > { %v935_v43 = vpop.f32.mrb[26].mxu0  ;;  %v7234_v44 = vld [vmem:[#allocation2 + $0x90] sm:$0xff] }
 0x238   : > { %1117 = vst [vmem:[#allocation2 + $0xa9] sm:$0xff] %v1041_v42  ;;  %v5791_v45 = vadd.f32 %v7164_v31, %v935_v43  ;;  %v937_v46 = vpop.f32.mrb[27].mxu0 }
 0x239   : > { %2278 = vmatmul.mubr.f32.gmra.mrb[24].mxu1 %v7234_v44 }
 0x23a   : > { %2282 = vmatprep.mubr.f32.mxu1 %v1040_v35  ;;  %v1042_v47 = vmax.f32 %v5791_v45, 0.0 }
 0x23b   : > { %v940_v49 = vpop.f32.mrb[28].mxu0  ;;  %v7238_v50 = vld [vmem:[#allocation2 + $0x92] sm:$0xff]  ;;  %v7242_v52 = vld [vmem:[#allocation2 + $0x9a] sm:$0xff] }
 0x23c   : > { %v7240_v51 = vld [vmem:[#allocation2 + $0x98] sm:$0xff]  ;;  %1118 = vst [vmem:[#allocation2 + $0xb1] sm:$0xff] %v1042_v47  ;;  %v5792_v54 = vadd.f32 %v7164_v31, %v940_v49  ;;  %v942_v55 = vpop.f32.mrb[29].mxu0  ;;  %5278 = vmatprep.mubr.f32.mxu0 %v7238_v50 }
 0x23d   : > { %2283 = vmatmul.mubr.f32.gmra.mrb[26].mxu1 %v7240_v51  ;;  %5279 = vmatmul.mubr.f32.gmra.mrb[72].mxu0 %v7242_v52 }
 0x23e   : > { %2287 = vmatprep.mubr.f32.mxu1 %v1041_v42  ;;  %v1043_v56 = vmax.f32 %v5792_v54, 0.0 }
 0x23f   : > { %v945_v57 = vpop.f32.mrb[30].mxu0  ;;  %v7248_v59 = vld [vmem:[#allocation2 + $0xa8] sm:$0xff] }
 0x240   : > { %1119 = vst [vmem:[#allocation2 + $0xc1] sm:$0xff] %v1043_v56  ;;  %v5793_v60 = vadd.f32 %v7164_v31, %v945_v57  ;;  %v947_v61 = vpop.f32.mrb[31].mxu0 }
 0x241   : > { %2288 = vmatmul.mubr.f32.gmra.mrb[28].mxu1 %v7248_v59 }
 0x242   : > { %2292 = vmatprep.mubr.f32.mxu1 %v1042_v47  ;;  %v1044_v62 = vmax.f32 %v5793_v60, 0.0 }
 0x243   : > { %v950_v3 = vpop.f32.mrb[32].mxu0  ;;  %v7252_v4 = vld [vmem:[#allocation2 + $0xaa] sm:$0xff]  ;;  %v7256_v6 = vld [vmem:[#allocation2 + $0xb2] sm:$0xff] }
 0x244   : > { %v7254_v5 = vld [vmem:[#allocation2 + $0xb0] sm:$0xff]  ;;  %1120 = vst [vmem:[#allocation2 + $0xc9] sm:$0xff] %v1044_v62  ;;  %v5794_v8 = vadd.f32 %v7164_v31, %v950_v3  ;;  %v952_v9 = vpop.f32.mrb[33].mxu0  ;;  %5281 = vmatprep.mubr.f32.mxu0 %v7252_v4 }
 0x245   : > { %2293 = vmatmul.mubr.f32.gmra.mrb[30].mxu1 %v7254_v5  ;;  %5282 = vmatmul.mubr.f32.gmra.mrb[74].mxu0 %v7256_v6 }
 0x246   : > { %2297 = vmatprep.mubr.f32.mxu1 %v1043_v56  ;;  %v1045_v10 = vmax.f32 %v5794_v8, 0.0 }
 0x247   : > { %v955_v11 = vpop.f32.mrb[34].mxu0  ;;  %v7262_v15 = vld [vmem:[#allocation2 + $0xc0] sm:$0xff] }
 0x248   : > { %1121 = vst [vmem:[#allocation2 + $0xd9] sm:$0xff] %v1045_v10  ;;  %v5795_v16 = vadd.f32 %v7164_v31, %v955_v11  ;;  %v957_v17 = vpop.f32.mrb[35].mxu0 }
 0x249   : > { %2298 = vmatmul.mubr.f32.gmra.mrb[32].mxu1 %v7262_v15 }
 0x24a   : > { %2302 = vmatprep.mubr.f32.mxu1 %v1044_v62  ;;  %v1046_v18 = vmax.f32 %v5795_v16, 0.0 }
 0x24b   : > { %v960_v20 = vpop.f32.mrb[36].mxu0  ;;  %v7266_v21 = vld [vmem:[#allocation2 + $0xc2] sm:$0xff]  ;;  %v7270_v23 = vld [vmem:[#allocation2 + $0xca] sm:$0xff] }
 0x24c   : > { %v7268_v22 = vld [vmem:[#allocation2 + $0xc8] sm:$0xff]  ;;  %1122 = vst [vmem:[#allocation2 + $0xe1] sm:$0xff] %v1046_v18  ;;  %v5796_v27 = vadd.f32 %v7164_v31, %v960_v20  ;;  %v962_v28 = vpop.f32.mrb[37].mxu0  ;;  %5284 = vmatprep.mubr.f32.mxu0 %v7266_v21 }
 0x24d   : > { %2303 = vmatmul.mubr.f32.gmra.mrb[34].mxu1 %v7268_v22  ;;  %5285 = vmatmul.mubr.f32.gmra.mrb[76].mxu0 %v7270_v23 }
 0x24e   : > { %2307 = vmatprep.mubr.f32.mxu1 %v1045_v10  ;;  %v1047_v29 = vmax.f32 %v5796_v27, 0.0 }
 0x24f   : > { %v965_v30 = vpop.f32.mrb[38].mxu0  ;;  %v7276_v33 = vld [vmem:[#allocation2 + $0xd8] sm:$0xff] }
 0x250   : > { %1123 = vst [vmem:[#allocation2 + $0xf1] sm:$0xff] %v1047_v29  ;;  %v5797_v34 = vadd.f32 %v7164_v31, %v965_v30  ;;  %v967_v35 = vpop.f32.mrb[39].mxu0 }
 0x251   : > { %2308 = vmatmul.mubr.f32.gmra.mrb[36].mxu1 %v7276_v33 }
 0x252   : > { %2312 = vmatprep.mubr.f32.mxu1 %v1046_v18  ;;  %v1048_v36 = vmax.f32 %v5797_v34, 0.0 }
 0x253   : > { %v970_v40 = vpop.f32.mrb[40].mxu0  ;;  %v7280_v41 = vld [vmem:[#allocation2 + $0xda] sm:$0xff]  ;;  %v7284_v43 = vld [vmem:[#allocation2 + $0xe2] sm:$0xff] }
 0x254   : > { %v7282_v42 = vld [vmem:[#allocation2 + $0xe0] sm:$0xff]  ;;  %1124 = vst [vmem:[#allocation2 + $0xf9] sm:$0xff] %v1048_v36  ;;  %v5798_v45 = vadd.f32 %v7164_v31, %v970_v40  ;;  %v972_v46 = vpop.f32.mrb[41].mxu0  ;;  %5287 = vmatprep.mubr.f32.mxu0 %v7280_v41 }
 0x255   : > { %2313 = vmatmul.mubr.f32.gmra.mrb[38].mxu1 %v7282_v42  ;;  %5288 = vmatmul.mubr.f32.gmra.mrb[78].mxu0 %v7284_v43 }
 0x256   : > { %2317 = vmatprep.mubr.f32.mxu1 %v1047_v29  ;;  %v1049_v47 = vmax.f32 %v5798_v45, 0.0 }
 0x257   : > { %v975_v49 = vpop.f32.mrb[42].mxu0  ;;  %v7290_v54 = vld [vmem:[#allocation2 + $0xf0] sm:$0xff] }
 0x258   : > { %1125 = vst [vmem:[#allocation2 + $0x109] sm:$0xff] %v1049_v47  ;;  %v5799_v55 = vadd.f32 %v7164_v31, %v975_v49  ;;  %v977_v56 = vpop.f32.mrb[43].mxu0 }
 0x259   : > { %2318 = vmatmul.mubr.f32.gmra.mrb[40].mxu1 %v7290_v54 }
 0x25a   : > { %2322 = vmatprep.mubr.f32.mxu1 %v1048_v36  ;;  %v1050_v57 = vmax.f32 %v5799_v55, 0.0 }
 0x25b   : > { %v980_v60 = vpop.f32.mrb[44].mxu0  ;;  %v7294_v61 = vld [vmem:[#allocation2 + $0xf2] sm:$0xff]  ;;  %v7298_v3 = vld [vmem:[#allocation2 + $0xfa] sm:$0xff] }
 0x25c   : > { %v7296_v62 = vld [vmem:[#allocation2 + $0xf8] sm:$0xff]  ;;  %1126 = vst [vmem:[#allocation2 + $0x111] sm:$0xff] %v1050_v57  ;;  %v5800_v8 = vadd.f32 %v7164_v31, %v980_v60  ;;  %v982_v9 = vpop.f32.mrb[45].mxu0  ;;  %5290 = vmatprep.mubr.f32.mxu0 %v7294_v61 }
 0x25d   : > { %2323 = vmatmul.mubr.f32.gmra.mrb[42].mxu1 %v7296_v62  ;;  %5291 = vmatmul.mubr.f32.gmra.mrb[80].mxu0 %v7298_v3 }
 0x25e   : > { %2327 = vmatprep.mubr.f32.mxu1 %v1049_v47  ;;  %v1051_v10 = vmax.f32 %v5800_v8, 0.0 }
 0x25f   : > { %v985_v11 = vpop.f32.mrb[46].mxu0  ;;  %v7304_v16 = vld [vmem:[#allocation2 + $0x108] sm:$0xff] }
 0x260   : > { %1127 = vst [vmem:[#allocation2 + $0x121] sm:$0xff] %v1051_v10  ;;  %v5801_v17 = vadd.f32 %v7164_v31, %v985_v11  ;;  %v987_v18 = vpop.f32.mrb[47].mxu0 }
 0x261   : > { %2328 = vmatmul.mubr.f32.gmra.mrb[44].mxu1 %v7304_v16 }
 0x262   : > { %2332 = vmatprep.mubr.f32.mxu1 %v1050_v57  ;;  %v1052_v20 = vmax.f32 %v5801_v17, 0.0 }
 0x263   : > { %v990_v27 = vpop.f32.mrb[48].mxu0  ;;  %v7308_v28 = vld [vmem:[#allocation2 + $0x10a] sm:$0xff]  ;;  %v7312_v30 = vld [vmem:[#allocation2 + $0x112] sm:$0xff] }
 0x264   : > { %v7310_v29 = vld [vmem:[#allocation2 + $0x110] sm:$0xff]  ;;  %1128 = vst [vmem:[#allocation2 + $0x129] sm:$0xff] %v1052_v20  ;;  %v5802_v34 = vadd.f32 %v7164_v31, %v990_v27  ;;  %v992_v35 = vpop.f32.mrb[49].mxu0  ;;  %5293 = vmatprep.mubr.f32.mxu0 %v7308_v28 }
 0x265   : > { %2333 = vmatmul.mubr.f32.gmra.mrb[46].mxu1 %v7310_v29  ;;  %5294 = vmatmul.mubr.f32.gmra.mrb[82].mxu0 %v7312_v30 }
 0x266   : > { %2337 = vmatprep.mubr.f32.mxu1 %v1051_v10  ;;  %v1053_v36 = vmax.f32 %v5802_v34, 0.0 }
 0x267   : > { %v995_v40 = vpop.f32.mrb[50].mxu0  ;;  %v7318_v45 = vld [vmem:[#allocation2 + $0x120] sm:$0xff] }
 0x268   : > { %1129 = vst [vmem:[#allocation2 + $0x139] sm:$0xff] %v1053_v36  ;;  %v5803_v46 = vadd.f32 %v7164_v31, %v995_v40  ;;  %v997_v47 = vpop.f32.mrb[51].mxu0 }
 0x269   : > { %2338 = vmatmul.mubr.f32.gmra.mrb[48].mxu1 %v7318_v45 }
 0x26a   : > { %2342 = vmatprep.mubr.f32.mxu1 %v1052_v20  ;;  %v7322_v49 = vmax.f32 %v5803_v46, 0.0 }
 0x26b   : > { %v1000_v55 = vpop.f32.mrb[52].mxu0  ;;  %v7324_v56 = vld [vmem:[#allocation2 + $0x122] sm:$0xff]  ;;  %v7328_v60 = vld [vmem:[#allocation2 + $0x12a] sm:$0xff] }
 0x26c   : > { %10433 = vst [vmem:[#allocation15_spill] sm:$0xff] %v7322_v49  ;;  %v7326_v57 = vld [vmem:[#allocation2 + $0x128] sm:$0xff]  ;;  %1130 = vst [vmem:[#allocation2 + $0x141] sm:$0xff] %v7322_v49  ;;  %v5804_v8 = vadd.f32 %v7164_v31, %v1000_v55  ;;  %v1002_v9 = vpop.f32.mrb[53].mxu0  ;;  %5296 = vmatprep.mubr.f32.mxu0 %v7324_v56 }
 0x26d   : > { %2343 = vmatmul.mubr.f32.gmra.mrb[50].mxu1 %v7326_v57  ;;  %5297 = vmatmul.mubr.f32.gmra.mrb[84].mxu0 %v7328_v60 }
 0x26e   : > { %2347 = vmatprep.mubr.f32.mxu1 %v1053_v36  ;;  %v7335_v10 = vmax.f32 %v5804_v8, 0.0 }
 0x26f   : > { %v1005_v11 = vpop.f32.mrb[54].mxu0  ;;  %v7337_v17 = vld [vmem:[#allocation2 + $0x138] sm:$0xff] }
 0x270   : > { %10434 = vst [vmem:[#allocation16_spill] sm:$0xff] %v7335_v10  ;;  %1131 = vst [vmem:[#allocation2 + $0x151] sm:$0xff] %v7335_v10  ;;  %v5805_v18 = vadd.f32 %v7164_v31, %v1005_v11  ;;  %v1007_v20 = vpop.f32.mrb[55].mxu0 }
 0x271   : > { %2348 = vmatmul.mubr.f32.gmra.mrb[52].mxu1 %v7337_v17 }
 0x272   : > { %2352 = vmatprep.mubr.f32.mxu1 %v7322_v49  ;;  %v7343_v27 = vmax.f32 %v5805_v18, 0.0 }
 0x273   : > { %v1010_v34 = vpop.f32.mrb[56].mxu0  ;;  %v7345_v35 = vld [vmem:[#allocation2 + $0x13a] sm:$0xff]  ;;  %v7349_v40 = vld [vmem:[#allocation2 + $0x142] sm:$0xff] }
 0x274   : > { %10435 = vst [vmem:[#allocation17_spill] sm:$0xff] %v7343_v27  ;;  %v7347_v36 = vld [vmem:[#allocation2 + $0x140] sm:$0xff]  ;;  %10436 = vst [vmem:[#allocation18_spill] sm:$0xff] %v7349_v40  ;;  %v5806_v46 = vadd.f32 %v7164_v31, %v1010_v34  ;;  %v1012_v47 = vpop.f32.mrb[57].mxu0  ;;  %5299 = vmatprep.mubr.f32.mxu0 %v7345_v35 }
 0x275   : > { %1132 = vst [vmem:[#allocation2 + $0x159] sm:$0xff] %v7343_v27  ;;  %2353 = vmatmul.mubr.f32.gmra.mrb[54].mxu1 %v7347_v36  ;;  %5300 = vmatmul.mubr.f32.gmra.mrb[86].mxu0 %v7349_v40 }
 0x276   : > { %2357 = vmatprep.mubr.f32.mxu1 %v7335_v10  ;;  %v7357_v55 = vmax.f32 %v5806_v46, 0.0 }
 0x277   : > { %v1015_v8 = vpop.f32.mrb[58].mxu0  ;;  %v7359_v9 = vld [vmem:[#allocation2 + $0x150] sm:$0xff] }
 0x278   : > { %10437 = vst [vmem:[#allocation19_spill] sm:$0xff] %v7357_v55  ;;  %1133 = vst [vmem:[#allocation2 + $0x169] sm:$0xff] %v7357_v55  ;;  %v5807_v11 = vadd.f32 %v7164_v31, %v1015_v8  ;;  %v1017_v18 = vpop.f32.mrb[59].mxu0 }
 0x279   : > { %2358 = vmatmul.mubr.f32.gmra.mrb[56].mxu1 %v7359_v9 }
 0x27a   : > { %2362 = vmatprep.mubr.f32.mxu1 %v7343_v27  ;;  %v7365_v20 = vmax.f32 %v5807_v11, 0.0 }
 0x27b   : > { %v1020_v34 = vpop.f32.mrb[60].mxu0 }
 0x27c   : > { %10438 = vst [vmem:[#allocation20_spill] sm:$0xff] %v7365_v20  ;;  %v7367_v47 = vld [vmem:[#allocation2 + $0x152] sm:$0xff]  ;;  %v7371_v46 = vld [vmem:[#allocation2 + $0x15a] sm:$0xff]  ;;  %1134 = vst [vmem:[#allocation2 + $0x171] sm:$0xff] %v7365_v20  ;;  %v7375_v10 = vadd.f32 %v7164_v31, %v1020_v34  ;;  %v1022_v8 = vpop.f32.mrb[61].mxu0 }
 0x27d   : > { %10439 = vst [vmem:[#allocation21_spill] sm:$0xff] %v7367_v47  ;;  %v7369_v0 = vld [vmem:[#allocation2 + $0x158] sm:$0xff]  ;;  %10441 = vst [vmem:[#allocation23_spill] sm:$0xff] %v7371_v46  ;;  %5302 = vmatprep.mubr.f32.mxu0 %v7367_v47 }
 0x27e   : > { %10440 = vst [vmem:[#allocation22_spill] sm:$0xff] %v7369_v0  ;;  %10442 = vst [vmem:[#allocation24_spill] sm:$0xff] %v7375_v10  ;;  %2363 = vmatmul.mubr.f32.gmra.mrb[58].mxu1 %v7369_v0  ;;  %5303 = vmatmul.mubr.f32.gmra.mrb[88].mxu0 %v7371_v46  ;;  %v10304_v11 = vmax.f32 %v7375_v10, 0.0  ;;  %v2066_v46 = vld [vmem:[#allocation7 + $0x200] sm:$0xff] }
 0x27f   : > { %2367 = vmatprep.mubr.f32.mxu1 %v7357_v55  ;;  %v1025_v18 = vpop.f32.mrb[62].mxu0  ;;  %v7382_v27 = vld [vmem:[#allocation2 + $0x168] sm:$0xff]  ;;  %v2067_v55 = vld [vmem:[#allocation7 + $0x208] sm:$0xff] }
 0x280   : > { %1135 = vst [vmem:[#allocation2 + $0x181] sm:$0xff] %v10304_v11  ;;  %v7387_v34 = vadd.f32 %v7164_v31, %v1025_v18  ;;  %v1027_v8 = vpop.f32.mrb[63].mxu0  ;;  %v1265_v31 = vld [vmem:[#allocation2 + $0x2] sm:$0xff]  ;;  %v5507_v18 = vpack.c.bf16 %v2067_v55, %v2066_v46  ;;  %v1266_v10 = vld [vmem:[#allocation2 + $0xa] sm:$0xff] }
 0x281   : > { %v2068_v8 = vld [vmem:[#allocation7 + $0x210] sm:$0xff]  ;;  %v2069_v11 = vld [vmem:[#allocation7 + $0x218] sm:$0xff] }
 0x282   : > { %10443 = vst [vmem:[#allocation25_spill] sm:$0xff] %v7387_v34  ;;  %2368 = vmatmul.mubr.f32.gmra.mrb[60].mxu1 %v7382_v27  ;;  %v10307_v49 = vmax.f32 %v7387_v34, 0.0  ;;  %v2070_v34 = vld [vmem:[#allocation7 + $0x220] sm:$0xff]  ;;  %v2072_v55 = vld [vmem:[#allocation7 + $0x230] sm:$0xff]  ;;  %v2073_v46 = vld [vmem:[#allocation7 + $0x238] sm:$0xff] }
 0x283   : > { %2372 = vmatprep.mubr.f32.mxu1 %v7365_v20  ;;  %v7392_v47 = vld [vmem:[#allocation2 + $0x16a] sm:$0xff]  ;;  %v7396_v0 = vld [vmem:[#allocation2 + $0x172] sm:$0xff]  ;;  %v10447_v20 = vmov 0.0|0.0  }
 0x284   : > { %10444 = vst [vmem:[#allocation26_spill] sm:$0xff] %v7392_v47  ;;  %v7394_v40 = vld [vmem:[#allocation2 + $0x170] sm:$0xff]  ;;  %10446 = vst [vmem:[#allocation28_spill] sm:$0xff] %v7396_v0  ;;  %5305 = vmatprep.mubr.f32.mxu0 %v7392_v47 }
 0x285   : > { %10445 = vst [vmem:[#allocation27_spill] sm:$0xff] %v7394_v40  ;;  %1136 = vst [vmem:[#allocation2 + $0x189] sm:$0xff] %v10307_v49  ;;  %5306 = vmatmul.mubr.f32.gmra.mrb[90].mxu0 %v7396_v0  ;;  %v5510_v49 = vpack.c.bf16 %v2069_v11, %v2068_v8  ;;  %v2071_v0 = vld [vmem:[#allocation7 + $0x228] sm:$0xff]  ;;  %v5516_v11 = vpack.c.bf16 %v2073_v46, %v2072_v55  ;;  %v2081_v55 = vld [vmem:[#allocation7 + $0x278] sm:$0xff] }
 0x286   : > { %2373 = vmatmul.mubr.f32.gmra.mrb[62].mxu1 %v7394_v40  ;;  %v2079_v8 = vld [vmem:[#allocation7 + $0x268] sm:$0xff] }
 0x287   : > { %2442 = vmatprep.mubr.f32.mxu1 %v7170_v48  ;;  %v5513_v48 = vpack.c.bf16 %v2071_v0, %v2070_v34  ;;  %v2077_v34 = vld [vmem:[#allocation7 + $0x258] sm:$0xff]  ;;  %v2083_v46 = vld [vmem:[#allocation7 + $0x288] sm:$0xff] }
 0x28a   : > { %2443 = vmatmul.mubr.f32.vlgmr.msra.gmra.mrb[0].mxu1 %v1265_v31  ;;  %v7418_v31 = vld [vmem:[#allocation2 + $0x22] sm:$0xff] }
 0x28b   : > { %2447 = vmatprep.mubr.f32.mxu1 %v7174_v53  ;;  %5508 = vmatpush1.bf16.msra.mxu1 %v5507_v18  ;;  %v7413_v53 = vld [vmem:[#allocation2 + $0x1a] sm:$0xff]  ;;  %v2078_v18 = vld [vmem:[#allocation7 + $0x260] sm:$0xff] }
 0x28c   : > { %5509 = vmatprep.subr.bf16.mxu1 %v10447_v20  ;;  %v7406_v47 = vld [vmem:[#allocation2 + $0x182] sm:$0xff]  ;;  %v7408_v40 = vld [vmem:[#allocation2 + $0x18a] sm:$0xff] }
 0x28d   : > { %5308 = vmatprep.mubr.f32.mxu0 %v7406_v47 }
 0x28e   : > { %2448 = vmatmul.mubr.f32.gmra.mrb[2].mxu1 %v1266_v10  ;;  %5309 = vmatmul.mubr.f32.gmra.mrb[92].mxu0 %v7408_v40  ;;  %v2074_v10 = vld [vmem:[#allocation7 + $0x240] sm:$0xff] }
 0x28f   : > { %2452 = vmatprep.mubr.f32.mxu1 %v7178_v58  ;;  %5511 = vmatpush1.bf16.msra.mxu1 %v5510_v49  ;;  %v2075_v58 = vld [vmem:[#allocation7 + $0x248] sm:$0xff]  ;;  %v2076_v49 = vld [vmem:[#allocation7 + $0x250] sm:$0xff] }
 0x290   : > { %5512 = vmatprep.subr.bf16.mxu1 %v10447_v20  ;;  %v5519_v0 = vpack.c.bf16 %v2075_v58, %v2074_v10  ;;  %v2087_v10 = vld [vmem:[#allocation7 + $0x2a8] sm:$0xff]  ;;  %v2089_v58 = vld [vmem:[#allocation7 + $0x2b8] sm:$0xff] }
 0x292   : > { %2453 = vmatmul.mubr.f32.gmra.mrb[4].mxu1 %v7413_v53 }
 0x293   : > { %2457 = vmatprep.mubr.f32.mxu1 %v7184_v1  ;;  %5514 = vmatpush1.bf16.msra.mxu1 %v5513_v48  ;;  %v5522_v1 = vpack.c.bf16 %v2077_v34, %v2076_v49  ;;  %v2080_v48 = vld [vmem:[#allocation7 + $0x270] sm:$0xff]  ;;  %v2093_v49 = vld [vmem:[#allocation7 + $0x2d8] sm:$0xff]  ;;  %v2095_v34 = vld [vmem:[#allocation7 + $0x2e8] sm:$0xff] }
 0x294   : > { %5515 = vmatprep.subr.bf16.mxu1 %v10447_v20 }
 0x296   : > { %2458 = vmatmul.mubr.f32.gmra.mrb[6].mxu1 %v7418_v31 }
 0x297   : > { %2462 = vmatprep.mubr.f32.mxu1 %v7192_v7  ;;  %5517 = vmatpush1.bf16.msra.mxu1 %v5516_v11  ;;  %v5525_v7 = vpack.c.bf16 %v2079_v8, %v2078_v18  ;;  %v2085_v11 = vld [vmem:[#allocation7 + $0x298] sm:$0xff]  ;;  %v1393_v18 = vld [vmem:[#allocation2 + $0x19] sm:$0xff] }
 0x298   : > { %5518 = vmatprep.subr.bf16.mxu1 %v10447_v20 }
 0x29a   : > { %2463 = vmatmul.mubr.f32.gmra.mrb[8].mxu1 %v7182_v63  ;;  %v5528_v63 = vpack.c.bf16 %v2081_v55, %v2080_v48  ;;  %v2102_v55 = vld [vmem:[#allocation7 + $0x320] sm:$0xff] }
 0x29b   : > { %2467 = vmatprep.mubr.f32.mxu1 %v7198_v13  ;;  %5520 = vmatpush1.bf16.msra.mxu1 %v5519_v0  ;;  %v2082_v13 = vld [vmem:[#allocation7 + $0x280] sm:$0xff]  ;;  %v2091_v0 = vld [vmem:[#allocation7 + $0x2c8] sm:$0xff] }
 0x29c   : > { %5521 = vmatprep.subr.bf16.mxu1 %v10447_v20 }
 0x29e   : > { %2468 = vmatmul.mubr.f32.gmra.mrb[10].mxu1 %v7186_v2  ;;  %v5531_v2 = vpack.c.bf16 %v2083_v46, %v2082_v13  ;;  %v1394_v13 = vld [vmem:[#allocation2 + $0x21] sm:$0xff] }
 0x29f   : > { %2472 = vmatprep.mubr.f32.mxu1 %v7206_v19  ;;  %5523 = vmatpush1.bf16.msra.mxu1 %v5522_v1  ;;  %v2084_v19 = vld [vmem:[#allocation7 + $0x290] sm:$0xff]  ;;  %v2097_v1 = vld [vmem:[#allocation7 + $0x2f8] sm:$0xff] }
 0x2a0   : > { %5524 = vmatprep.subr.bf16.mxu1 %v10447_v20 }
 0x2a2   : > { %2473 = vmatmul.mubr.f32.gmra.mrb[12].mxu1 %v7196_v12  ;;  %v5534_v12 = vpack.c.bf16 %v2085_v11, %v2084_v19  ;;  %v2105_v19 = vld [vmem:[#allocation7 + $0x338] sm:$0xff]  ;;  %v7515_v11 = vld [vmem:[#allocation2 + $0x31] sm:$0xff] }
 0x2a3   : > { %2477 = vmatprep.mubr.f32.mxu1 %v7212_v25  ;;  %5526 = vmatpush1.bf16.msra.mxu1 %v5525_v7  ;;  %v2086_v25 = vld [vmem:[#allocation7 + $0x2a0] sm:$0xff] }
 0x2a4   : > { %5527 = vmatprep.subr.bf16.mxu1 %v10447_v20 }
 0x2a6   : > { %2478 = vmatmul.mubr.f32.gmra.mrb[14].mxu1 %v7200_v14  ;;  %v5537_v14 = vpack.c.bf16 %v2087_v10, %v2086_v25 }
 0x2a7   : > { %2482 = vmatprep.mubr.f32.mxu1 %v7220_v32  ;;  %5529 = vmatpush1.bf16.msra.mxu1 %v5528_v63  ;;  %v2088_v32 = vld [vmem:[#allocation7 + $0x2b0] sm:$0xff]  ;;  %v2103_v63 = vld [vmem:[#allocation7 + $0x328] sm:$0xff] }
 0x2a8   : > { %5530 = vmatprep.subr.bf16.mxu1 %v10447_v20  ;;  %v5561_v46 = vpack.c.bf16 %v2103_v63, %v2102_v55  ;;  %v2115_v55 = vld [vmem:[#allocation7 + $0x388] sm:$0xff]  ;;  %v7547_v63 = vld [vmem:[#allocation2 + $0x69] sm:$0xff] }
 0x2aa   : > { %2483 = vmatmul.mubr.f32.gmra.mrb[16].mxu1 %v7210_v24  ;;  %v5540_v24 = vpack.c.bf16 %v2089_v58, %v2088_v32  ;;  %v2107_v32 = vld [vmem:[#allocation7 + $0x348] sm:$0xff] }
 0x2ab   : > { %2487 = vmatprep.mubr.f32.mxu1 %v7226_v38  ;;  %5532 = vmatpush1.bf16.msra.mxu1 %v5531_v2  ;;  %v2090_v38 = vld [vmem:[#allocation7 + $0x2c0] sm:$0xff]  ;;  %v2104_v2 = vld [vmem:[#allocation7 + $0x330] sm:$0xff] }
 0x2ac   : > { %5533 = vmatprep.subr.bf16.mxu1 %v10447_v20  ;;  %v5564_v10 = vpack.c.bf16 %v2105_v19, %v2104_v2  ;;  %v7523_v58 = vld [vmem:[#allocation2 + $0x39] sm:$0xff]  ;;  %v2117_v2 = vld [vmem:[#allocation7 + $0x398] sm:$0xff] }
 0x2ad   : > { %v7551_v19 = vld [vmem:[#allocation2 + $0x79] sm:$0xff] }
 0x2ae   : > { %2488 = vmatmul.mubr.f32.gmra.mrb[18].mxu1 %v7214_v26  ;;  %v5543_v26 = vpack.c.bf16 %v2091_v0, %v2090_v38  ;;  %v2108_v0 = vld [vmem:[#allocation7 + $0x350] sm:$0xff] }
 0x2af   : > { %2492 = vmatprep.mubr.f32.mxu1 %v7234_v44  ;;  %5535 = vmatpush1.bf16.msra.mxu1 %v5534_v12  ;;  %v2092_v44 = vld [vmem:[#allocation7 + $0x2d0] sm:$0xff] }
 0x2b0   : > { %5536 = vmatprep.subr.bf16.mxu1 %v10447_v20 }
 0x2b2   : > { %2493 = vmatmul.mubr.f32.gmra.mrb[20].mxu1 %v7224_v37  ;;  %v5546_v37 = vpack.c.bf16 %v2093_v49, %v2092_v44  ;;  %v7527_v44 = vld [vmem:[#allocation2 + $0x49] sm:$0xff] }
 0x2b3   : > { %2497 = vmatprep.mubr.f32.mxu1 %v7240_v51  ;;  %5538 = vmatpush1.bf16.msra.mxu1 %v5537_v14  ;;  %v2094_v51 = vld [vmem:[#allocation7 + $0x2e0] sm:$0xff] }
 0x2b4   : > { %5539 = vmatprep.subr.bf16.mxu1 %v10447_v20  ;;  %v2106_v14 = vld [vmem:[#allocation7 + $0x340] sm:$0xff] }
 0x2b5   : > { %v5567_v38 = vpack.c.bf16 %v2107_v32, %v2106_v14 }
 0x2b6   : > { %2498 = vmatmul.mubr.f32.gmra.mrb[22].mxu1 %v7228_v39  ;;  %v5549_v39 = vpack.c.bf16 %v2095_v34, %v2094_v51 }
 0x2b7   : > { %2502 = vmatprep.mubr.f32.mxu1 %v7248_v59  ;;  %5541 = vmatpush1.bf16.msra.mxu1 %v5540_v24  ;;  %v2096_v59 = vld [vmem:[#allocation7 + $0x2f0] sm:$0xff]  ;;  %v1461_v24 = vld [vmem:[#allocation2 + $0x4a] sm:$0xff] }
 0x2b8   : > { %5542 = vmatprep.subr.bf16.mxu1 %v10447_v20 }
 0x2ba   : > { %2503 = vmatmul.mubr.f32.gmra.mrb[24].mxu1 %v7238_v50  ;;  %v5552_v50 = vpack.c.bf16 %v2097_v1, %v2096_v59  ;;  %v2111_v59 = vld [vmem:[#allocation7 + $0x368] sm:$0xff] }
 0x2bb   : > { %2507 = vmatprep.mubr.f32.mxu1 %v7254_v5  ;;  %5544 = vmatpush1.bf16.msra.mxu1 %v5543_v26  ;;  %v10448_v5 = vld [vmem:[#allocation22_spill] sm:$0xff]  ;;  %v7535_v1 = vld [vmem:[#allocation2 + $0x51] sm:$0xff] }
 0x2bc   : > { %5545 = vmatprep.subr.bf16.mxu1 %v10447_v20  ;;  %v2109_v26 = vld [vmem:[#allocation7 + $0x358] sm:$0xff] }
 0x2bd   : > { %v5570_v34 = vpack.c.bf16 %v2109_v26, %v2108_v0  ;;  %v7559_v0 = vld [vmem:[#allocation2 + $0x81] sm:$0xff]  ;;  %v1467_v26 = vld [vmem:[#allocation2 + $0x92] sm:$0xff] }
 0x2be   : > { %2508 = vmatmul.mubr.f32.gmra.mrb[26].mxu1 %v7242_v52 }
 0x2bf   : > { %2512 = vmatprep.mubr.f32.mxu1 %v7262_v15  ;;  %5547 = vmatpush1.bf16.msra.mxu1 %v5546_v37  ;;  %v1462_v37 = vld [vmem:[#allocation2 + $0x52] sm:$0xff] }
 0x2c0   : > { %5548 = vmatprep.subr.bf16.mxu1 %v10447_v20 }
 0x2c2   : > { %2513 = vmatmul.mubr.f32.gmra.mrb[28].mxu1 %v7252_v4 }
 0x2c3   : > { %2517 = vmatprep.mubr.f32.mxu1 %v7268_v22  ;;  %5550 = vmatpush1.bf16.msra.mxu1 %v5549_v39  ;;  %v2110_v39 = vld [vmem:[#allocation7 + $0x360] sm:$0xff] }
 0x2c4   : > { %5551 = vmatprep.subr.bf16.mxu1 %v10447_v20 }
 0x2c6   : > { %2518 = vmatmul.mubr.f32.gmra.mrb[30].mxu1 %v7256_v6  ;;  %v10449_v6 = vld [vmem:[#allocation18_spill] sm:$0xff] }
 0x2c7   : > { %2522 = vmatprep.mubr.f32.mxu1 %v7276_v33  ;;  %5553 = vmatpush1.bf16.msra.mxu1 %v5552_v50  ;;  %v10452_v33 = vld [vmem:[#allocation23_spill] sm:$0xff]  ;;  %v1463_v50 = vld [vmem:[#allocation2 + $0x62] sm:$0xff] }
 0x2c8   : > { %5554 = vmatprep.subr.bf16.mxu1 %v10447_v20 }
 0x2ca   : > { %2523 = vmatmul.mubr.f32.gmra.mrb[32].mxu1 %v7266_v21  ;;  %v10450_v21 = vld [vmem:[#allocation21_spill] sm:$0xff] }
 0x2cb   : > { %2527 = vmatprep.mubr.f32.mxu1 %v7282_v42  ;;  %v7495_v42 = vld [vmem:[#allocation2 + $0x180] sm:$0xff] }
 0x2ce   : > { %2528 = vmatmul.mubr.f32.gmra.mrb[34].mxu1 %v7270_v23  ;;  %v10451_v23 = vld [vmem:[#allocation27_spill] sm:$0xff] }
 0x2cf   : > { %2532 = vmatprep.mubr.f32.mxu1 %v7290_v54 }
 0x2d2   : > { %2533 = vmatmul.mubr.f32.gmra.mrb[36].mxu1 %v7280_v41 }
 0x2d3   : > { %2537 = vmatprep.mubr.f32.mxu1 %v7296_v62  ;;  %v10453_v62 = vld [vmem:[#allocation26_spill] sm:$0xff] }
 0x2d6   : > { %2538 = vmatmul.mubr.f32.gmra.mrb[38].mxu1 %v7284_v43 }
 0x2d7   : > { %2542 = vmatprep.mubr.f32.mxu1 %v7304_v16  ;;  %v7501_v16 = vld [vmem:[#allocation2 + $0x188] sm:$0xff] }
 0x2da   : > { %2543 = vmatmul.mubr.f32.gmra.mrb[40].mxu1 %v7294_v61 }
 0x2db   : > { %2547 = vmatprep.mubr.f32.mxu1 %v7310_v29 }
 0x2de   : > { %2548 = vmatmul.mubr.f32.gmra.mrb[42].mxu1 %v7298_v3 }
 0x2df   : > { %2552 = vmatprep.mubr.f32.mxu1 %v7318_v45  ;;  %v2098_v45 = vld [vmem:[#allocation7 + $0x300] sm:$0xff] }
 0x2e2   : > { %2553 = vmatmul.mubr.f32.gmra.mrb[44].mxu1 %v7308_v28 }
 0x2e3   : > { %2557 = vmatprep.mubr.f32.mxu1 %v7326_v57  ;;  %v2099_v57 = vld [vmem:[#allocation7 + $0x308] sm:$0xff] }
 0x2e6   : > { %2558 = vmatmul.mubr.f32.gmra.mrb[46].mxu1 %v7312_v30 }
 0x2e7   : > { %2562 = vmatprep.mubr.f32.mxu1 %v7337_v17  ;;  %v10454_v17 = vld [vmem:[#allocation28_spill] sm:$0xff] }
 0x2ea   : > { %2563 = vmatmul.mubr.f32.gmra.mrb[48].mxu1 %v7324_v56 }
 0x2eb   : > { %2567 = vmatprep.mubr.f32.mxu1 %v7347_v36  ;;  %v2100_v36 = vld [vmem:[#allocation7 + $0x310] sm:$0xff] }
 0x2ee   : > { %2568 = vmatmul.mubr.f32.gmra.mrb[50].mxu1 %v7328_v60 }
 0x2ef   : > { %2572 = vmatprep.mubr.f32.mxu1 %v7359_v9  ;;  %v2101_v9 = vld [vmem:[#allocation7 + $0x318] sm:$0xff] }
 0x2f0   : > { %v7480_v52 = vpop.f32.mrb[64].mxu0  ;;  %v5558_v48 = vpack.c.bf16 %v2101_v9, %v2100_v36  ;;  %v1464_v36 = vld [vmem:[#allocation2 + $0x6a] sm:$0xff] }
 0x2f1   : > { %v7483_v4 = vpop.f32.mrb[65].mxu0 }
 0x2f2   : > { %2573 = vmatmul.mubr.f32.gmra.mrb[52].mxu1 %v7345_v35 }
 0x2f3   : > { %2577 = vmatprep.mubr.f32.mxu1 %v10448_v5  ;;  %v5573_v5 = vpack.c.bf16 %v2111_v59, %v2110_v39  ;;  %v2121_v39 = vld [vmem:[#allocation7 + $0x3b8] sm:$0xff]  ;;  %v7563_v59 = vld [vmem:[#allocation2 + $0x91] sm:$0xff] }
 0x2f6   : > { %2578 = vmatmul.mubr.f32.gmra.mrb[54].mxu1 %v10449_v6 }
 0x2f7   : > { %2582 = vmatprep.mubr.f32.mxu1 %v7382_v27  ;;  %v5555_v27 = vpack.c.bf16 %v2099_v57, %v2098_v45  ;;  %v2113_v45 = vld [vmem:[#allocation7 + $0x378] sm:$0xff] }
 0x2f8   : > { %v7488_v15 = vpop.f32.mrb[66].mxu0  ;;  %v7539_v57 = vld [vmem:[#allocation2 + $0x61] sm:$0xff] }
 0x2f9   : > { %v7491_v22 = vpop.f32.mrb[67].mxu0 }
 0x2fa   : > { %2583 = vmatmul.mubr.f32.gmra.mrb[56].mxu1 %v10450_v21 }
 0x2fb   : > { %2587 = vmatprep.mubr.f32.mxu1 %v10451_v23  ;;  %v2112_v23 = vld [vmem:[#allocation7 + $0x370] sm:$0xff] }
 0x2fe   : > { %2588 = vmatmul.mubr.f32.gmra.mrb[58].mxu1 %v10452_v33 }
 0x2ff   : > { %2592 = vmatprep.mubr.f32.mxu1 %v7495_v42 }
 0x300   : > { %v7498_v54 = vpop.f32.mrb[68].mxu0 }
 0x301   : > { %v7503_v29 = vpop.f32.mrb[69].mxu0 }
 0x302   : > { %2593 = vmatmul.mubr.f32.gmra.mrb[60].mxu1 %v10453_v62 }
 0x303   : > { %2597 = vmatprep.mubr.f32.mxu1 %v7501_v16 }
 0x306   : > { %2598 = vmatmul.mubr.f32.gmra.mrb[62].mxu1 %v10454_v17 }
 0x307   : > { %2667 = vmatprep.mubr.f32.mxu1 %v7413_v53  ;;  %v1459_v53 = vld [vmem:[#allocation2 + $0x32] sm:$0xff] }
 0x308   : > { %v7508_v8 = vpop.f32.mrb[70].mxu0 }
 0x309   : > { %v7510_v7 = vpop.f32.mrb[71].mxu0 }
 0x30a   : > { %2668 = vmatmul.mubr.f32.vlgmr.msra.gmra.mrb[0].mxu1 %v1393_v18  ;;  %v5576_v18 = vpack.c.bf16 %v2113_v45, %v2112_v23 }
 0x30b   : > { %2672 = vmatprep.mubr.f32.mxu1 %v7418_v31  ;;  %5556 = vmatpush1.bf16.msra.mxu1 %v5555_v27  ;;  %v1460_v31 = vld [vmem:[#allocation2 + $0x3a] sm:$0xff] }
 0x30c   : > { %5557 = vmatprep.subr.bf16.mxu1 %v10447_v20 }
 0x30e   : > { %2673 = vmatmul.mubr.f32.gmra.mrb[2].mxu1 %v1394_v13  ;;  %v1465_v13 = vld [vmem:[#allocation2 + $0x7a] sm:$0xff] }
 0x30f   : > { %2677 = vmatprep.mubr.f32.mxu1 %v1459_v53  ;;  %5559 = vmatpush1.bf16.msra.mxu1 %v5558_v48  ;;  %v2114_v48 = vld [vmem:[#allocation7 + $0x380] sm:$0xff] }
 0x310   : > { %5560 = vmatprep.subr.bf16.mxu1 %v10447_v20  ;;  %v7517_v12 = vpop.f32.mrb[72].mxu0  ;;  %v5579_v53 = vpack.c.bf16 %v2115_v55, %v2114_v48  ;;  %v7571_v48 = vld [vmem:[#allocation2 + $0x99] sm:$0xff]  ;;  %v1469_v55 = vld [vmem:[#allocation2 + $0xaa] sm:$0xff] }
 0x311   : > { %v7520_v25 = vpop.f32.mrb[73].mxu0 }
 0x312   : > { %2678 = vmatmul.mubr.f32.gmra.mrb[4].mxu1 %v7515_v11 }
 0x313   : > { %2682 = vmatprep.mubr.f32.mxu1 %v1460_v31  ;;  %5562 = vmatpush1.bf16.msra.mxu1 %v5561_v46  ;;  %v2116_v46 = vld [vmem:[#allocation7 + $0x390] sm:$0xff] }
 0x314   : > { %5563 = vmatprep.subr.bf16.mxu1 %v10447_v20  ;;  %v5582_v32 = vpack.c.bf16 %v2117_v2, %v2116_v46  ;;  %v2125_v46 = vld [vmem:[#allocation7 + $0x3d8] sm:$0xff] }
 0x315   : > { %v7575_v2 = vld [vmem:[#allocation2 + $0xa9] sm:$0xff] }
 0x316   : > { %2683 = vmatmul.mubr.f32.gmra.mrb[6].mxu1 %v7523_v58 }
 0x317   : > { %2687 = vmatprep.mubr.f32.mxu1 %v1461_v24  ;;  %5565 = vmatpush1.bf16.msra.mxu1 %v5564_v10  ;;  %v1466_v10 = vld [vmem:[#allocation2 + $0x82] sm:$0xff]  ;;  %v2118_v24 = vld [vmem:[#allocation7 + $0x3a0] sm:$0xff] }
 0x318   : > { %5566 = vmatprep.subr.bf16.mxu1 %v10447_v20  ;;  %v7529_v49 = vpop.f32.mrb[74].mxu0 }
 0x319   : > { %v7532_v51 = vpop.f32.mrb[75].mxu0 }
 0x31a   : > { %2688 = vmatmul.mubr.f32.gmra.mrb[8].mxu1 %v7527_v44 }
 0x31b   : > { %2692 = vmatprep.mubr.f32.mxu1 %v1462_v37  ;;  %5568 = vmatpush1.bf16.msra.mxu1 %v5567_v38  ;;  %v2119_v38 = vld [vmem:[#allocation7 + $0x3a8] sm:$0xff] }
 0x31c   : > { %5569 = vmatprep.subr.bf16.mxu1 %v10447_v20  ;;  %v5585_v37 = vpack.c.bf16 %v2119_v38, %v2118_v24 }
 0x31e   : > { %2693 = vmatmul.mubr.f32.gmra.mrb[10].mxu1 %v7535_v1 }
 0x31f   : > { %2697 = vmatprep.mubr.f32.mxu1 %v1463_v50  ;;  %5571 = vmatpush1.bf16.msra.mxu1 %v5570_v34  ;;  %v2120_v34 = vld [vmem:[#allocation7 + $0x3b0] sm:$0xff] }
 0x320   : > { %5572 = vmatprep.subr.bf16.mxu1 %v10447_v20  ;;  %v7541_v27 = vpop.f32.mrb[76].mxu0  ;;  %v5588_v45 = vpack.c.bf16 %v2121_v39, %v2120_v34  ;;  %v7583_v34 = vld [vmem:[#allocation2 + $0xb1] sm:$0xff]  ;;  %v1471_v39 = vld [vmem:[#allocation2 + $0xc2] sm:$0xff] }
 0x321   : > { %v7544_v9 = vpop.f32.mrb[77].mxu0 }
 0x322   : > { %2698 = vmatmul.mubr.f32.gmra.mrb[12].mxu1 %v7539_v57 }
 0x323   : > { %2702 = vmatprep.mubr.f32.mxu1 %v1464_v36  ;;  %5574 = vmatpush1.bf16.msra.mxu1 %v5573_v5  ;;  %v1468_v5 = vld [vmem:[#allocation2 + $0x9a] sm:$0xff]  ;;  %v2122_v36 = vld [vmem:[#allocation7 + $0x3c0] sm:$0xff] }
 0x324   : > { %5575 = vmatprep.subr.bf16.mxu1 %v10447_v20 }
 0x326   : > { %2703 = vmatmul.mubr.f32.gmra.mrb[14].mxu1 %v7547_v63 }
 0x327   : > { %2707 = vmatprep.mubr.f32.mxu1 %v1465_v13  ;;  %5577 = vmatpush1.bf16.msra.mxu1 %v5576_v18  ;;  %v2123_v18 = vld [vmem:[#allocation7 + $0x3c8] sm:$0xff] }
 0x328   : > { %5578 = vmatprep.subr.bf16.mxu1 %v10447_v20  ;;  %v7553_v31 = vpop.f32.mrb[78].mxu0  ;;  %v5591_v13 = vpack.c.bf16 %v2123_v18, %v2122_v36  ;;  %v2129_v36 = vld [vmem:[#allocation7 + $0x3f8] sm:$0xff] }
 0x329   : > { %v7556_v14 = vpop.f32.mrb[79].mxu0  ;;  %v7587_v18 = vld [vmem:[#allocation2 + $0xc1] sm:$0xff] }
 0x32a   : > { %2708 = vmatmul.mubr.f32.gmra.mrb[16].mxu1 %v7551_v19 }
 0x32b   : > { %2712 = vmatprep.mubr.f32.mxu1 %v1466_v10  ;;  %5580 = vmatpush1.bf16.msra.mxu1 %v5579_v53  ;;  %v2124_v53 = vld [vmem:[#allocation7 + $0x3d0] sm:$0xff] }
 0x32c   : > { %5581 = vmatprep.subr.bf16.mxu1 %v10447_v20  ;;  %v5594_v38 = vpack.c.bf16 %v2125_v46, %v2124_v53 }
 0x32e   : > { %2713 = vmatmul.mubr.f32.gmra.mrb[18].mxu1 %v7559_v0 }
 0x32f   : > { %2717 = vmatprep.mubr.f32.mxu1 %v1467_v26  ;;  %5583 = vmatpush1.bf16.msra.mxu1 %v5582_v32  ;;  %v1470_v32 = vld [vmem:[#allocation2 + $0xb2] sm:$0xff] }
 0x330   : > { %5584 = vmatprep.subr.bf16.mxu1 %v10447_v20  ;;  %v7565_v50 = vpop.f32.mrb[80].mxu0  ;;  %v2126_v26 = vld [vmem:[#allocation7 + $0x3e0] sm:$0xff] }
 0x331   : > { %v7568_v23 = vpop.f32.mrb[81].mxu0 }
 0x332   : > { %2718 = vmatmul.mubr.f32.gmra.mrb[20].mxu1 %v7563_v59 }
 0x333   : > { %2722 = vmatprep.mubr.f32.mxu1 %v1468_v5  ;;  %5586 = vmatpush1.bf16.msra.mxu1 %v5585_v37  ;;  %v2127_v37 = vld [vmem:[#allocation7 + $0x3e8] sm:$0xff] }
 0x334   : > { %5587 = vmatprep.subr.bf16.mxu1 %v10447_v20  ;;  %v5597_v5 = vpack.c.bf16 %v2127_v37, %v2126_v26 }
 0x336   : > { %2723 = vmatmul.mubr.f32.gmra.mrb[22].mxu1 %v7571_v48 }
 0x337   : > { %2727 = vmatprep.mubr.f32.mxu1 %v1469_v55  ;;  %5589 = vmatpush1.bf16.msra.mxu1 %v5588_v45  ;;  %v2128_v45 = vld [vmem:[#allocation7 + $0x3f0] sm:$0xff] }
 0x338   : > { %5590 = vmatprep.subr.bf16.mxu1 %v10447_v20  ;;  %v7577_v10 = vpop.f32.mrb[82].mxu0  ;;  %v5600_v46 = vpack.c.bf16 %v2129_v36, %v2128_v45  ;;  %v7619_v45 = vld [vmem:[#allocation2 + $0xf9] sm:$0xff] }
 0x339   : > { %v7580_v24 = vpop.f32.mrb[83].mxu0 }
 0x33a   : > { %2728 = vmatmul.mubr.f32.gmra.mrb[24].mxu1 %v7575_v2 }
 0x33b   : > { %2732 = vmatprep.mubr.f32.mxu1 %v1470_v32  ;;  %5592 = vmatpush1.bf16.msra.mxu1 %v5591_v13  ;;  %v1472_v13 = vld [vmem:[#allocation2 + $0xca] sm:$0xff] }
 0x33c   : > { %5593 = vmatprep.subr.bf16.mxu1 %v10447_v20  ;;  %v7595_v32 = vld [vmem:[#allocation2 + $0xc9] sm:$0xff] }
 0x33e   : > { %2733 = vmatmul.mubr.f32.gmra.mrb[26].mxu1 %v7583_v34 }
 0x33f   : > { %2737 = vmatprep.mubr.f32.mxu1 %v1471_v39  ;;  %5595 = vmatpush1.bf16.msra.mxu1 %v5594_v38  ;;  %v7599_v38 = vld [vmem:[#allocation2 + $0xd9] sm:$0xff]  ;;  %v7607_v39 = vld [vmem:[#allocation2 + $0xe1] sm:$0xff] }
 0x340   : > { %5596 = vmatprep.subr.bf16.mxu1 %v10447_v20  ;;  %v7589_v55 = vpop.f32.mrb[84].mxu0 }
 0x341   : > { %10455 = vst [vmem:[#allocation22_spill] sm:$0xff] %v7589_v55  ;;  %v7592_v53 = vpop.f32.mrb[85].mxu0  ;;  %v3339_v55 = vld [vmem:[#allocation9 + $0xe8] sm:$0xff] }
 0x342   : > { %2738 = vmatmul.mubr.f32.gmra.mrb[28].mxu1 %v7587_v18  ;;  %10456 = vst [vmem:[#allocation18_spill] sm:$0xff] %v7592_v53  ;;  %v1523_v53 = vld [vmem:[#allocation2 + $0x38] sm:$0xff] }
 0x343   : > { %2742 = vmatprep.mubr.f32.mxu1 %v1472_v13  ;;  %5598 = vmatpush1.bf16.msra.mxu1 %v5597_v5  ;;  %v7631_v13 = vld [vmem:[#allocation2 + $0x111] sm:$0xff] }
 0x344   : > { %5599 = vmatprep.subr.bf16.mxu1 %v10447_v20  ;;  %v7611_v20 = vld [vmem:[#allocation2 + $0xf1] sm:$0xff] }
 0x346   : > { %2743 = vmatmul.mubr.f32.gmra.mrb[30].mxu1 %v7595_v32 }
 0x347   : > { %2747 = vmatprep.mubr.f32.mxu1 %v7280_v41  ;;  %5601 = vmatpush1.bf16.msra.mxu1 %v5600_v46 }
 0x348   : > { %v7601_v26 = vpop.f32.mrb[86].mxu0 }
 0x349   : > { %10457 = vst [vmem:[#allocation21_spill] sm:$0xff] %v7601_v26  ;;  %v7604_v37 = vpop.f32.mrb[87].mxu0  ;;  %v1522_v26 = vld [vmem:[#allocation2 + $0x30] sm:$0xff] }
 0x34a   : > { %2748 = vmatmul.mubr.f32.gmra.mrb[32].mxu1 %v7599_v38  ;;  %10458 = vst [vmem:[#allocation27_spill] sm:$0xff] %v7604_v37  ;;  %v3331_v37 = vld [vmem:[#allocation9 + $0xa8] sm:$0xff] }
 0x34b   : > { %2752 = vmatprep.mubr.f32.mxu1 %v7284_v43  ;;  %v7623_v43 = vld [vmem:[#allocation2 + $0x109] sm:$0xff] }
 0x34e   : > { %2753 = vmatmul.mubr.f32.gmra.mrb[34].mxu1 %v7607_v39 }
 0x34f   : > { %2757 = vmatprep.mubr.f32.mxu1 %v7294_v61 }
 0x351   : > { %v7613_v41 = vpop.f32.mrb[88].mxu0 }
 0x352   : > { %10459 = vst [vmem:[#allocation23_spill] sm:$0xff] %v7613_v41  ;;  %2758 = vmatmul.mubr.f32.gmra.mrb[36].mxu1 %v7611_v20  ;;  %v7616_v5 = vpop.f32.mrb[89].mxu0 }
 0x353   : > { %10460 = vst [vmem:[#allocation26_spill] sm:$0xff] %v7616_v5  ;;  %2762 = vmatprep.mubr.f32.mxu1 %v7298_v3  ;;  %v7635_v3 = vld [vmem:[#allocation2 + $0x121] sm:$0xff]  ;;  %v3327_v5 = vld [vmem:[#allocation9 + $0x88] sm:$0xff] }
 0x356   : > { %2763 = vmatmul.mubr.f32.gmra.mrb[38].mxu1 %v7619_v45 }
 0x357   : > { %2767 = vmatprep.mubr.f32.mxu1 %v7308_v28 }
 0x358   : > { %v7625_v36 = vpop.f32.mrb[90].mxu0 }
 0x359   : > { %10461 = vst [vmem:[#allocation28_spill] sm:$0xff] %v7625_v36  ;;  %v7628_v61 = vpop.f32.mrb[91].mxu0  ;;  %v7643_v36 = vld [vmem:[#allocation2 + $0x129] sm:$0xff] }
 0x35a   : > { %2768 = vmatmul.mubr.f32.gmra.mrb[40].mxu1 %v7623_v43  ;;  %10462 = vst [vmem:[#allocation29_spill] sm:$0xff] %v7628_v61  ;;  %v1681_v61 = vld [vmem:[#allocation2 + $0x1a2] sm:$0xff] }
 0x35b   : > { %2772 = vmatprep.mubr.f32.mxu1 %v7312_v30  ;;  %v7647_v30 = vld [vmem:[#allocation2 + $0x139] sm:$0xff] }
 0x35e   : > { %2773 = vmatmul.mubr.f32.gmra.mrb[42].mxu1 %v7631_v13 }
 0x35f   : > { %2777 = vmatprep.mubr.f32.mxu1 %v7324_v56  ;;  %v10465_v56 = vld [vmem:[#allocation15_spill] sm:$0xff] }
 0x361   : > { %v7637_v46 = vpop.f32.mrb[92].mxu0 }
 0x362   : > { %10463 = vst [vmem:[#allocation30_spill] sm:$0xff] %v7637_v46  ;;  %2778 = vmatmul.mubr.f32.gmra.mrb[44].mxu1 %v7635_v3  ;;  %v7640_v28 = vpop.f32.mrb[93].mxu0  ;;  %v10466_v46 = vld [vmem:[#allocation16_spill] sm:$0xff] }
 0x363   : > { %10464 = vst [vmem:[#allocation31_spill] sm:$0xff] %v7640_v28  ;;  %2782 = vmatprep.mubr.f32.mxu1 %v7328_v60  ;;  %v10467_v60 = vld [vmem:[#allocation17_spill] sm:$0xff]  ;;  %v10468_v28 = vld [vmem:[#allocation19_spill] sm:$0xff] }
 0x366   : > { %2783 = vmatmul.mubr.f32.gmra.mrb[46].mxu1 %v7643_v36 }
 0x367   : > { %2787 = vmatprep.mubr.f32.mxu1 %v7345_v35  ;;  %v10469_v35 = vld [vmem:[#allocation20_spill] sm:$0xff] }
 0x36a   : > { %2788 = vmatmul.mubr.f32.gmra.mrb[48].mxu1 %v7647_v30 }
 0x36b   : > { %2792 = vmatprep.mubr.f32.mxu1 %v10449_v6  ;;  %v10470_v6 = vld [vmem:[#allocation24_spill] sm:$0xff] }
 0x36e   : > { %2793 = vmatmul.mubr.f32.gmra.mrb[50].mxu1 %v10465_v56  ;;  %v10471_v56 = vmax.f32 %v10470_v6, 0.0  ;;  %v3319_v6 = vld [vmem:[#allocation9 + $0x48] sm:$0xff] }
 0x36f   : > { %2797 = vmatprep.mubr.f32.mxu1 %v10450_v21  ;;  %v1680_v21 = vld [vmem:[#allocation2 + $0x19a] sm:$0xff] }
 0x370   : > { %5311 = vmatprep.mubr.f32.mxu0 %v1680_v21  ;;  %v3318_v21 = vld [vmem:[#allocation9 + $0x40] sm:$0xff] }
 0x371   : > { %5312 = vmatmul.mubr.f32.gmra.mrb[94].mxu0 %v1681_v61  ;;  %v3322_v61 = vld [vmem:[#allocation9 + $0x60] sm:$0xff] }
 0x372   : > { %2798 = vmatmul.mubr.f32.gmra.mrb[52].mxu1 %v10466_v46 }
 0x373   : > { %2802 = vmatprep.mubr.f32.mxu1 %v10452_v33  ;;  %v7664_v33 = vld [vmem:[#allocation2 + $0x8] sm:$0xff] }
 0x374   : > { %3460 = vmatprep.mubr.f32.mxu0 %v7664_v33 }
 0x376   : > { %2803 = vmatmul.mubr.f32.gmra.mrb[54].mxu1 %v10467_v60  ;;  %v3310_v60 = vld [vmem:[#allocation9] sm:$0xff] }
 0x377   : > { %2807 = vmatprep.mubr.f32.mxu1 %v10453_v62  ;;  %v10472_v62 = vld [vmem:[#allocation25_spill] sm:$0xff] }
 0x378   : > { %v10473_v46 = vmax.f32 %v10472_v62, 0.0  ;;  %v5640_v62 = vpack.c.bf16 %v3322_v61, %v3318_v21  ;;  %v3355_v21 = vld [vmem:[#allocation9 + $0x168] sm:$0xff]  ;;  %v1525_v61 = vld [vmem:[#allocation2 + $0x50] sm:$0xff] }
 0x37a   : > { %2808 = vmatmul.mubr.f32.gmra.mrb[56].mxu1 %v10468_v28  ;;  %v3315_v28 = vld [vmem:[#allocation9 + $0x28] sm:$0xff] }
 0x37b   : > { %2812 = vmatprep.mubr.f32.mxu1 %v10454_v17  ;;  %v3311_v17 = vld [vmem:[#allocation9 + $0x8] sm:$0xff] }
 0x37e   : > { %2813 = vmatmul.mubr.f32.gmra.mrb[58].mxu1 %v10469_v35  ;;  %v3314_v35 = vld [vmem:[#allocation9 + $0x20] sm:$0xff] }
 0x37f   : > { %2817 = vmatprep.mubr.f32.mxu1 %v7406_v47  ;;  %v5634_v47 = vpack.c.bf16 %v3315_v28, %v3311_v17  ;;  %v5636_v41 = vpack.c.bf16 %v3314_v35, %v3310_v60  ;;  %v3330_v17 = vld [vmem:[#allocation9 + $0xa0] sm:$0xff]  ;;  %v3335_v28 = vld [vmem:[#allocation9 + $0xc8] sm:$0xff] }
 0x380   : > { %v3334_v35 = vld [vmem:[#allocation9 + $0xc0] sm:$0xff] }
 0x381   : > { %5635 = vmatprep.subr.bf16.mxu0 %v5634_v47  ;;  %v5646_v47 = vpack.c.bf16 %v3339_v55, %v3335_v28  ;;  %v1526_v28 = vld [vmem:[#allocation2 + $0x60] sm:$0xff] }
 0x382   : > { %2818 = vmatmul.mubr.f32.gmra.mrb[60].mxu1 %v10471_v56  ;;  %v3323_v56 = vld [vmem:[#allocation9 + $0x68] sm:$0xff]  ;;  %5637 = vmatpush1.bf16.msra.mxu0 %v5636_v41 }
 0x383   : > { %2822 = vmatprep.mubr.f32.mxu1 %v7408_v40  ;;  %v5638_v40 = vpack.c.bf16 %v3323_v56, %v3319_v6  ;;  %v3343_v41 = vld [vmem:[#allocation9 + $0x108] sm:$0xff]  ;;  %v1524_v56 = vld [vmem:[#allocation2 + $0x48] sm:$0xff] }
 0x384   : > { %v3347_v6 = vld [vmem:[#allocation9 + $0x128] sm:$0xff] }
 0x385   : > { %5639 = vmatprep.subr.bf16.mxu0 %v5638_v40  ;;  %v3351_v40 = vld [vmem:[#allocation9 + $0x148] sm:$0xff] }
 0x386   : > { %2823 = vmatmul.mubr.f32.gmra.mrb[62].mxu1 %v10473_v46  ;;  %v5642_v46 = vpack.c.bf16 %v3331_v37, %v3327_v5  ;;  %5641 = vmatpush1.bf16.msra.mxu0 %v5640_v62  ;;  %v5650_v37 = vpack.c.bf16 %v3347_v6, %v3343_v41  ;;  %v3342_v5 = vld [vmem:[#allocation9 + $0x100] sm:$0xff]  ;;  %v5654_v55 = vpack.c.bf16 %v3355_v21, %v3351_v40  ;;  %v3371_v41 = vld [vmem:[#allocation9 + $0x1e8] sm:$0xff]  ;;  %v1527_v6 = vld [vmem:[#allocation2 + $0x68] sm:$0xff] }
 0x387   : > { %2892 = vmatprep.mubr.f32.mxu1 %v7515_v11  ;;  %v3326_v11 = vld [vmem:[#allocation9 + $0x80] sm:$0xff]  ;;  %v1544_v21 = vld [vmem:[#allocation2 + $0x138] sm:$0xff] }
 0x388   : > { %v5644_v60 = vpack.c.bf16 %v3330_v17, %v3326_v11  ;;  %5643 = vmatprep.subr.bf16.mxu0 %v5642_v46  ;;  %v3350_v62 = vld [vmem:[#allocation9 + $0x140] sm:$0xff]  ;;  %v3359_v11 = vld [vmem:[#allocation9 + $0x188] sm:$0xff] }
 0x389   : > { %v3354_v46 = vld [vmem:[#allocation9 + $0x160] sm:$0xff]  ;;  %v3363_v17 = vld [vmem:[#allocation9 + $0x1a8] sm:$0xff] }
 0x38a   : > { %2893 = vmatmul.mubr.f32.vlgmr.msra.gmra.mrb[0].mxu1 %v1522_v26  ;;  %v3338_v26 = vld [vmem:[#allocation9 + $0xe0] sm:$0xff]  ;;  %5645 = vmatpush1.bf16.msra.mxu0 %v5644_v60  ;;  %v5658_v60 = vpack.c.bf16 %v3363_v17, %v3359_v11  ;;  %v1548_v17 = vld [vmem:[#allocation2 + $0x168] sm:$0xff] }
 0x38b   : > { %2897 = vmatprep.mubr.f32.mxu1 %v7523_v58  ;;  %v5648_v58 = vpack.c.bf16 %v3338_v26, %v3334_v35  ;;  %5647 = vmatprep.subr.bf16.mxu0 %v5646_v47  ;;  %v3358_v47 = vld [vmem:[#allocation9 + $0x180] sm:$0xff]  ;;  %v3367_v26 = vld [vmem:[#allocation9 + $0x1c8] sm:$0xff] }
 0x38c   : > { %v3362_v35 = vld [vmem:[#allocation9 + $0x1a0] sm:$0xff] }
 0x38d   : > { %v3370_v40 = vld [vmem:[#allocation9 + $0x1e0] sm:$0xff] }
 0x38e   : > { %2898 = vmatmul.mubr.f32.gmra.mrb[2].mxu1 %v1523_v53  ;;  %v3346_v53 = vld [vmem:[#allocation9 + $0x120] sm:$0xff]  ;;  %5649 = vmatpush1.bf16.msra.mxu0 %v5648_v58  ;;  %v1528_v58 = vld [vmem:[#allocation2 + $0x78] sm:$0xff] }
 0x38f   : > { %2902 = vmatprep.mubr.f32.mxu1 %v7527_v44  ;;  %v5652_v44 = vpack.c.bf16 %v3346_v53, %v3342_v5  ;;  %5651 = vmatprep.subr.bf16.mxu0 %v5650_v37  ;;  %v1530_v37 = vld [vmem:[#allocation2 + $0x90] sm:$0xff]  ;;  %v1531_v5 = vld [vmem:[#allocation2 + $0x98] sm:$0xff] }
 0x390   : > { %v1533_v53 = vld [vmem:[#allocation2 + $0xb0] sm:$0xff] }
 0x391   : > { %v1612_v11 = vld [vmem:[#allocation2 + $0x169] sm:$0xff] }
 0x392   : > { %2903 = vmatmul.mubr.f32.gmra.mrb[4].mxu1 %v1524_v56  ;;  %5653 = vmatpush1.bf16.msra.mxu0 %v5652_v44  ;;  %v5662_v56 = vpack.c.bf16 %v3371_v41, %v3367_v26  ;;  %v1610_v44 = vld [vmem:[#allocation2 + $0x151] sm:$0xff]  ;;  %v1617_v41 = vld [vmem:[#allocation2 + $0x1a1] sm:$0xff] }
 0x393   : > { %2907 = vmatprep.mubr.f32.mxu1 %v7535_v1  ;;  %v5656_v1 = vpack.c.bf16 %v3354_v46, %v3350_v62  ;;  %5655 = vmatprep.subr.bf16.mxu0 %v5654_v55  ;;  %v3317_v55 = vld [vmem:[#allocation9 + $0x38] sm:$0xff]  ;;  %v1611_v46 = vld [vmem:[#allocation2 + $0x159] sm:$0xff] }
 0x394   : > { %v1552_v26 = vld [vmem:[#allocation2 + $0x198] sm:$0xff] }
 0x396   : > { %2908 = vmatmul.mubr.f32.gmra.mrb[6].mxu1 %v1525_v61  ;;  %5657 = vmatpush1.bf16.msra.mxu0 %v5656_v1  ;;  %v1609_v61 = vld [vmem:[#allocation2 + $0x141] sm:$0xff]  ;;  %v1549_v1 = vld [vmem:[#allocation2 + $0x170] sm:$0xff] }
 0x397   : > { %2912 = vmatprep.mubr.f32.mxu1 %v7539_v57  ;;  %v5660_v57 = vpack.c.bf16 %v3362_v35, %v3358_v47  ;;  %5659 = vmatprep.subr.bf16.mxu0 %v5658_v60  ;;  %v1614_v60 = vld [vmem:[#allocation2 + $0x181] sm:$0xff]  ;;  %v1615_v47 = vld [vmem:[#allocation2 + $0x189] sm:$0xff]  ;;  %v1616_v35 = vld [vmem:[#allocation2 + $0x199] sm:$0xff] }
 0x39a   : > { %2913 = vmatmul.mubr.f32.gmra.mrb[8].mxu1 %v1526_v28  ;;  %5661 = vmatpush1.bf16.msra.mxu0 %v5660_v57  ;;  %v1613_v28 = vld [vmem:[#allocation2 + $0x171] sm:$0xff] }
 0x39b   : > { %2917 = vmatprep.mubr.f32.mxu1 %v7547_v63  ;;  %5663 = vmatprep.subr.bf16.mxu0 %v5662_v56  ;;  %v1529_v63 = vld [vmem:[#allocation2 + $0x80] sm:$0xff] }
 0x39e   : > { %2918 = vmatmul.mubr.f32.gmra.mrb[10].mxu1 %v1527_v6 }
 0x39f   : > { %2922 = vmatprep.mubr.f32.mxu1 %v7551_v19  ;;  %v1532_v19 = vld [vmem:[#allocation2 + $0xa8] sm:$0xff] }
 0x3a2   : > { %2923 = vmatmul.mubr.f32.gmra.mrb[12].mxu1 %v1528_v58 }
 0x3a3   : > { %2927 = vmatprep.mubr.f32.mxu1 %v7559_v0  ;;  %v1534_v0 = vld [vmem:[#allocation2 + $0xc0] sm:$0xff] }
 0x3a6   : > { %2928 = vmatmul.mubr.f32.gmra.mrb[14].mxu1 %v1529_v63  ;;  %v3312_v63 = vld [vmem:[#allocation9 + $0x10] sm:$0xff] }
 0x3a7   : > { %2932 = vmatprep.mubr.f32.mxu1 %v7563_v59  ;;  %v1535_v59 = vld [vmem:[#allocation2 + $0xc8] sm:$0xff] }
 0x3aa   : > { %2933 = vmatmul.mubr.f32.gmra.mrb[16].mxu1 %v1530_v37  ;;  %v3316_v37 = vld [vmem:[#allocation9 + $0x30] sm:$0xff] }
 0x3ab   : > { %2937 = vmatprep.mubr.f32.mxu1 %v7571_v48  ;;  %v1536_v48 = vld [vmem:[#allocation2 + $0xd8] sm:$0xff] }
 0x3ae   : > { %2938 = vmatmul.mubr.f32.gmra.mrb[18].mxu1 %v1531_v5  ;;  %v3321_v5 = vld [vmem:[#allocation9 + $0x58] sm:$0xff] }
 0x3af   : > { %2942 = vmatprep.mubr.f32.mxu1 %v7575_v2  ;;  %v1537_v2 = vld [vmem:[#allocation2 + $0xe0] sm:$0xff] }
 0x3b2   : > { %2943 = vmatmul.mubr.f32.gmra.mrb[20].mxu1 %v1532_v19  ;;  %v3325_v19 = vld [vmem:[#allocation9 + $0x78] sm:$0xff] }
 0x3b3   : > { %2947 = vmatprep.mubr.f32.mxu1 %v7583_v34  ;;  %v1538_v34 = vld [vmem:[#allocation2 + $0xf0] sm:$0xff] }
 0x3b6   : > { %2948 = vmatmul.mubr.f32.gmra.mrb[22].mxu1 %v1533_v53 }
 0x3b7   : > { %2952 = vmatprep.mubr.f32.mxu1 %v7587_v18  ;;  %v1539_v18 = vld [vmem:[#allocation2 + $0xf8] sm:$0xff] }
 0x3ba   : > { %2953 = vmatmul.mubr.f32.gmra.mrb[24].mxu1 %v1534_v0 }
 0x3bb   : > { %2957 = vmatprep.mubr.f32.mxu1 %v7595_v32  ;;  %v1540_v32 = vld [vmem:[#allocation2 + $0x108] sm:$0xff] }
 0x3be   : > { %2958 = vmatmul.mubr.f32.gmra.mrb[26].mxu1 %v1535_v59  ;;  %v5668_v59 = vpack.c.bf16 %v3316_v37, %v3312_v63  ;;  %v3344_v37 = vld [vmem:[#allocation9 + $0x110] sm:$0xff] }
 0x3bf   : > { %2962 = vmatprep.mubr.f32.mxu1 %v7599_v38  ;;  %v1541_v38 = vld [vmem:[#allocation2 + $0x110] sm:$0xff] }
 0x3c2   : > { %2963 = vmatmul.mubr.f32.gmra.mrb[28].mxu1 %v1536_v48 }
 0x3c3   : > { %2967 = vmatprep.mubr.f32.mxu1 %v7607_v39  ;;  %v1542_v39 = vld [vmem:[#allocation2 + $0x120] sm:$0xff] }
 0x3c6   : > { %2968 = vmatmul.mubr.f32.gmra.mrb[30].mxu1 %v1537_v2 }
 0x3c7   : > { %2972 = vmatprep.mubr.f32.mxu1 %v7611_v20  ;;  %v1543_v20 = vld [vmem:[#allocation2 + $0x128] sm:$0xff] }
 0x3ca   : > { %2973 = vmatmul.mubr.f32.gmra.mrb[32].mxu1 %v1538_v34 }
 0x3cb   : > { %2977 = vmatprep.mubr.f32.mxu1 %v7619_v45  ;;  %v3366_v45 = vld [vmem:[#allocation9 + $0x1c0] sm:$0xff] }
 0x3ce   : > { %2978 = vmatmul.mubr.f32.gmra.mrb[34].mxu1 %v1539_v18  ;;  %v5670_v18 = vpack.c.bf16 %v3325_v19, %v3321_v5  ;;  %v3348_v5 = vld [vmem:[#allocation9 + $0x130] sm:$0xff]  ;;  %v3353_v19 = vld [vmem:[#allocation9 + $0x158] sm:$0xff] }
 0x3cf   : > { %2982 = vmatprep.mubr.f32.mxu1 %v7623_v43  ;;  %v5664_v43 = vpack.c.bf16 %v3370_v40, %v3366_v45 }
 0x3d1   : > { %5665 = vmatpush1.bf16.msra.mxu0 %v5664_v43 }
 0x3d2   : > { %2983 = vmatmul.mubr.f32.gmra.mrb[36].mxu1 %v1540_v32  ;;  %v3320_v32 = vld [vmem:[#allocation9 + $0x50] sm:$0xff] }
 0x3d3   : > { %2987 = vmatprep.mubr.f32.mxu1 %v7631_v13  ;;  %v1545_v13 = vld [vmem:[#allocation2 + $0x140] sm:$0xff] }
 0x3d6   : > { %2988 = vmatmul.mubr.f32.gmra.mrb[38].mxu1 %v1541_v38  ;;  %v3324_v38 = vld [vmem:[#allocation9 + $0x70] sm:$0xff] }
 0x3d7   : > { %2992 = vmatprep.mubr.f32.mxu1 %v7635_v3  ;;  %v3313_v3 = vld [vmem:[#allocation9 + $0x18] sm:$0xff]  ;;  %v5672_v40 = vpack.c.bf16 %v3324_v38, %v3320_v32 }
 0x3d8   : > { %v5666_v62 = vpack.c.bf16 %v3317_v55, %v3313_v3  ;;  %v3332_v3 = vld [vmem:[#allocation9 + $0xb0] sm:$0xff]  ;;  %v3337_v55 = vld [vmem:[#allocation9 + $0xd8] sm:$0xff] }
 0x3da   : > { %2993 = vmatmul.mubr.f32.gmra.mrb[40].mxu1 %v1542_v39  ;;  %5667 = vmatprep.subr.bf16.mxu0 %v5666_v62  ;;  %v3329_v39 = vld [vmem:[#allocation9 + $0x98] sm:$0xff] }
 0x3db   : > { %2997 = vmatprep.mubr.f32.mxu1 %v7643_v36  ;;  %v1546_v36 = vld [vmem:[#allocation2 + $0x150] sm:$0xff] }
 0x3de   : > { %2998 = vmatmul.mubr.f32.gmra.mrb[42].mxu1 %v1543_v20  ;;  %v3333_v20 = vld [vmem:[#allocation9 + $0xb8] sm:$0xff] }
 0x3df   : > { %3002 = vmatprep.mubr.f32.mxu1 %v7647_v30  ;;  %v1547_v30 = vld [vmem:[#allocation2 + $0x158] sm:$0xff] }
 0x3e2   : > { %3003 = vmatmul.mubr.f32.gmra.mrb[44].mxu1 %v1544_v21 }
 0x3e3   : > { %3007 = vmatprep.mubr.f32.mxu1 %v1609_v61 }
 0x3e6   : > { %3008 = vmatmul.mubr.f32.gmra.mrb[46].mxu1 %v1545_v13  ;;  %v5674_v13 = vpack.c.bf16 %v3333_v20, %v3329_v39  ;;  %v3352_v39 = vld [vmem:[#allocation9 + $0x150] sm:$0xff] }
 0x3e7   : > { %3012 = vmatprep.mubr.f32.mxu1 %v1610_v44  ;;  %v3328_v44 = vld [vmem:[#allocation9 + $0x90] sm:$0xff] }
 0x3e8   : > { %v3356_v20 = vld [vmem:[#allocation9 + $0x170] sm:$0xff] }
 0x3ea   : > { %3013 = vmatmul.mubr.f32.gmra.mrb[48].mxu1 %v1546_v36 }
 0x3eb   : > { %3017 = vmatprep.mubr.f32.mxu1 %v1611_v46  ;;  %v5676_v46 = vpack.c.bf16 %v3332_v3, %v3328_v44 }
 0x3ee   : > { %3018 = vmatmul.mubr.f32.gmra.mrb[50].mxu1 %v1547_v30 }
 0x3ef   : > { %3022 = vmatprep.mubr.f32.mxu1 %v1612_v11 }
 0x3f2   : > { %3023 = vmatmul.mubr.f32.gmra.mrb[52].mxu1 %v1548_v17 }
 0x3f3   : > { %3027 = vmatprep.mubr.f32.mxu1 %v1613_v28 }
 0x3f6   : > { %3028 = vmatmul.mubr.f32.gmra.mrb[54].mxu1 %v1549_v1  ;;  %v3336_v1 = vld [vmem:[#allocation9 + $0xd0] sm:$0xff] }
 0x3f7   : > { %3032 = vmatprep.mubr.f32.mxu1 %v1614_v60  ;;  %v3340_v60 = vld [vmem:[#allocation9 + $0xf0] sm:$0xff] }
 0x3fa   : > { %3033 = vmatmul.mubr.f32.gmra.mrb[56].mxu1 %v7495_v42  ;;  %v7702_v42 = vld [vmem:[%s10279_s4] ss:$0 sm:$0xff] }
 0x3fb   : > { %3037 = vmatprep.mubr.f32.mxu1 %v1615_v47  ;;  %v3345_v47 = vld [vmem:[#allocation9 + $0x118] sm:$0xff] }
 0x3fe   : > { %3038 = vmatmul.mubr.f32.gmra.mrb[58].mxu1 %v7501_v16 }
 0x3ff   : > { %3042 = vmatprep.mubr.f32.mxu1 %v1616_v35 }
 0x402   : > { %3043 = vmatmul.mubr.f32.gmra.mrb[60].mxu1 %v1552_v26 }
 0x403   : > { %3047 = vmatprep.mubr.f32.mxu1 %v1617_v41  ;;  %v5680_v41 = vpack.c.bf16 %v3340_v60, %v3336_v1 }
 0x406   : > { %3048 = vmatmul.mubr.f32.gmra.mrb[62].mxu1 %v7664_v33 }
 0x444   : > { %v7695_v6 = vpop.f32.mrb[94].mxu0 }
 0x445   : > { %v7697_v57 = vpop.f32.mrb[95].mxu0 }
 0x45d   : > { %v2894_v56 = vpop.f32.mrb[0].mxu1 }
 0x45e   : > { %v5810_v58 = vadd.f32 %v7702_v42, %v2894_v56  ;;  %v2896_v16 = vpop.f32.mrb[1].mxu1 }
 0x460   : > { %v7706_v53 = vadd.f32 %v5810_v58, %v7483_v4 }
 0x461   : > { %v2899_v0 = vpop.f32.mrb[2].mxu1 }
 0x462   : > { %v3278_v48 = vmax.f32 %v7706_v53, 0.0  ;;  %v5811_v2 = vadd.f32 %v7702_v42, %v2899_v0  ;;  %v2901_v34 = vpop.f32.mrb[3].mxu1 }
 0x464   : > { %v7711_v45 = vadd.f32 %v5811_v2, %v7480_v52  ;;  %3461 = vmatmul.mubr.f32.vlgmr.msra.gmra.mrb[96].mxu0 %v3278_v48  ;;  %v3341_v52 = vld [vmem:[#allocation9 + $0xf8] sm:$0xff]  ;;  %v5684_v2 = vpack.c.bf16 %v3348_v5, %v3344_v37 }
 0x465   : > { %v2904_v4 = vpop.f32.mrb[4].mxu1  ;;  %5669 = vmatpush1.bf16.msra.mxu0 %v5668_v59  ;;  %3466 = vmatprep.mubr.f32.mxu0 %v7664_v33  ;;  %v5678_v28 = vpack.c.bf16 %v3341_v52, %v3337_v55  ;;  %v3360_v52 = vld [vmem:[#allocation9 + $0x190] sm:$0xff] }
 0x466   : > { %v3279_v21 = vmax.f32 %v7711_v45, 0.0  ;;  %v5812_v43 = vadd.f32 %v7702_v42, %v2904_v4  ;;  %v2906_v61 = vpop.f32.mrb[5].mxu1  ;;  %5671 = vmatprep.subr.bf16.mxu0 %v5670_v18  ;;  %v3361_v4 = vld [vmem:[#allocation9 + $0x198] sm:$0xff] }
 0x467   : > { %v5688_v61 = vpack.c.bf16 %v3356_v20, %v3352_v39  ;;  %v4064_v45 = vld [vmem:[%s10282_s7 + $0x8] sm:$0xff] }
 0x468   : > { %v7719_v62 = vadd.f32 %v5812_v43, %v7491_v22  ;;  %3467 = vmatmul.mubr.f32.gmra.mrb[98].mxu0 %v3279_v21  ;;  %v3349_v22 = vld [vmem:[#allocation9 + $0x138] sm:$0xff] }
 0x469   : > { %v2909_v36 = vpop.f32.mrb[6].mxu1  ;;  %3472 = vmatprep.mubr.f32.mxu0 %v7664_v33  ;;  %5673 = vmatpush1.bf16.msra.mxu0 %v5672_v40  ;;  %v5682_v63 = vpack.c.bf16 %v3349_v22, %v3345_v47 }
 0x46a   : > { %v3280_v30 = vmax.f32 %v7719_v62, 0.0  ;;  %v5813_v11 = vadd.f32 %v7702_v42, %v2909_v36  ;;  %v2911_v17 = vpop.f32.mrb[7].mxu1  ;;  %5675 = vmatprep.subr.bf16.mxu0 %v5674_v13  ;;  %v3364_v36 = vld [vmem:[#allocation9 + $0x1b0] sm:$0xff]  ;;  %v4081_v62 = vld [vmem:[%s10282_s7 + $0x90] sm:$0xff] }
 0x46c   : > { %v7727_v35 = vadd.f32 %v5813_v11, %v7488_v15  ;;  %3473 = vmatmul.mubr.f32.gmra.mrb[100].mxu0 %v3280_v30  ;;  %v3357_v15 = vld [vmem:[#allocation9 + $0x178] sm:$0xff] }
 0x46d   : > { %v2914_v26 = vpop.f32.mrb[8].mxu1  ;;  %3478 = vmatprep.mubr.f32.mxu0 %v7664_v33  ;;  %5677 = vmatpush1.bf16.msra.mxu0 %v5676_v46  ;;  %v5686_v38 = vpack.c.bf16 %v3357_v15, %v3353_v19  ;;  %v3369_v46 = vld [vmem:[#allocation9 + $0x1d8] sm:$0xff] }
 0x46e   : > { %v3281_v56 = vmax.f32 %v7727_v35, 0.0  ;;  %v5814_v58 = vadd.f32 %v7702_v42, %v2914_v26  ;;  %v2916_v16 = vpop.f32.mrb[9].mxu1  ;;  %5679 = vmatprep.subr.bf16.mxu0 %v5678_v28  ;;  %v5692_v28 = vpack.c.bf16 %v3364_v36, %v3360_v52  ;;  %v3368_v26 = vld [vmem:[#allocation9 + $0x1d0] sm:$0xff] }
 0x470   : > { %v7735_v0 = vadd.f32 %v5814_v58, %v7503_v29  ;;  %3479 = vmatmul.mubr.f32.gmra.mrb[102].mxu0 %v3281_v56  ;;  %v3365_v29 = vld [vmem:[#allocation9 + $0x1b8] sm:$0xff] }
 0x471   : > { %v2919_v59 = vpop.f32.mrb[10].mxu1  ;;  %3484 = vmatprep.mubr.f32.mxu0 %v7664_v33  ;;  %5681 = vmatpush1.bf16.msra.mxu0 %v5680_v41  ;;  %v5690_v55 = vpack.c.bf16 %v3365_v29, %v3361_v4  ;;  %v3372_v41 = vld [vmem:[#allocation9 + $0x1f0] sm:$0xff] }
 0x472   : > { %v3282_v34 = vmax.f32 %v7735_v0, 0.0  ;;  %v5815_v18 = vadd.f32 %v7702_v42, %v2919_v59  ;;  %v2921_v32 = vpop.f32.mrb[11].mxu1  ;;  %5683 = vmatprep.subr.bf16.mxu0 %v5682_v63  ;;  %v5696_v16 = vpack.c.bf16 %v3372_v41, %v3368_v26  ;;  %v4066_v0 = vld [vmem:[%s10282_s7 + $0x18] sm:$0xff] }
 0x474   : > { %v7743_v40 = vadd.f32 %v5815_v18, %v7498_v54  ;;  %3485 = vmatmul.mubr.f32.gmra.mrb[104].mxu0 %v3282_v34  ;;  %v3373_v54 = vld [vmem:[#allocation9 + $0x1f8] sm:$0xff] }
 0x475   : > { %v2924_v43 = vpop.f32.mrb[12].mxu1  ;;  %3490 = vmatprep.mubr.f32.mxu0 %v7664_v33  ;;  %5685 = vmatpush1.bf16.msra.mxu0 %v5684_v2  ;;  %v5694_v22 = vpack.c.bf16 %v3373_v54, %v3369_v46 }
 0x476   : > { %v3283_v13 = vmax.f32 %v7743_v40, 0.0  ;;  %v5816_v44 = vadd.f32 %v7702_v42, %v2924_v43  ;;  %v2926_v3 = vpop.f32.mrb[13].mxu1  ;;  %5687 = vmatprep.subr.bf16.mxu0 %v5686_v38  ;;  %v4083_v40 = vld [vmem:[%s10282_s7 + $0xa0] sm:$0xff] }
 0x478   : > { %v7751_v11 = vadd.f32 %v5816_v44, %v7510_v7  ;;  %3491 = vmatmul.mubr.f32.gmra.mrb[106].mxu0 %v3283_v13 }
 0x479   : > { %v2929_v17 = vpop.f32.mrb[14].mxu1  ;;  %3496 = vmatprep.mubr.f32.mxu0 %v7664_v33  ;;  %5689 = vmatpush1.bf16.msra.mxu0 %v5688_v61 }
 0x47a   : > { %v3284_v1 = vmax.f32 %v7751_v11, 0.0  ;;  %v5817_v60 = vadd.f32 %v7702_v42, %v2929_v17  ;;  %v2931_v47 = vpop.f32.mrb[15].mxu1  ;;  %5691 = vmatprep.subr.bf16.mxu0 %v5690_v55 }
 0x47c   : > { %v7759_v7 = vadd.f32 %v5817_v60, %v7508_v8  ;;  %3497 = vmatmul.mubr.f32.gmra.mrb[108].mxu0 %v3284_v1 }
 0x47d   : > { %v2934_v58 = vpop.f32.mrb[16].mxu1  ;;  %3502 = vmatprep.mubr.f32.mxu0 %v7664_v33  ;;  %5693 = vmatpush1.bf16.msra.mxu0 %v5692_v28 }
 0x47e   : > { %v3285_v63 = vmax.f32 %v7759_v7, 0.0  ;;  %v5818_v37 = vadd.f32 %v7702_v42, %v2934_v58  ;;  %v2936_v5 = vpop.f32.mrb[17].mxu1  ;;  %5695 = vmatprep.subr.bf16.mxu0 %v5694_v22  ;;  %v8055_v7 = vld [vmem:[#allocation2 + $0x8] sm:$0xff] }
 0x480   : > { %v7767_v19 = vadd.f32 %v5818_v37, %v7520_v25  ;;  %3503 = vmatmul.mubr.f32.gmra.mrb[110].mxu0 %v3285_v63 }
 0x481   : > { %v2939_v8 = vpop.f32.mrb[18].mxu1  ;;  %3508 = vmatprep.mubr.f32.mxu0 %v7664_v33  ;;  %5697 = vmatpush1.bf16.msra.mxu0 %v5696_v16 }
 0x482   : > { %v3286_v15 = vmax.f32 %v7767_v19, 0.0  ;;  %v5819_v59 = vadd.f32 %v7702_v42, %v2939_v8  ;;  %v2941_v2 = vpop.f32.mrb[19].mxu1  ;;  %v4085_v19 = vld [vmem:[%s10282_s7 + $0xb0] sm:$0xff] }
 0x484   : > { %v7775_v18 = vadd.f32 %v5819_v59, %v7517_v12  ;;  %3509 = vmatmul.mubr.f32.gmra.mrb[112].mxu0 %v3286_v15 }
 0x485   : > { %v2944_v25 = vpop.f32.mrb[20].mxu1  ;;  %3514 = vmatprep.mubr.f32.mxu0 %v7664_v33 }
 0x486   : > { %v3287_v32 = vmax.f32 %v7775_v18, 0.0  ;;  %v5820_v38 = vadd.f32 %v7702_v42, %v2944_v25  ;;  %v2946_v39 = vpop.f32.mrb[21].mxu1 }
 0x488   : > { %v7783_v20 = vadd.f32 %v5820_v38, %v7532_v51  ;;  %3515 = vmatmul.mubr.f32.gmra.mrb[114].mxu0 %v3287_v32 }
 0x489   : > { %v2949_v4 = vpop.f32.mrb[22].mxu1  ;;  %3520 = vmatprep.mubr.f32.mxu0 %v7664_v33 }
 0x48a   : > { %v3288_v12 = vmax.f32 %v7783_v20, 0.0  ;;  %v5821_v29 = vadd.f32 %v7702_v42, %v2949_v4  ;;  %v2951_v43 = vpop.f32.mrb[23].mxu1  ;;  %v4069_v20 = vld [vmem:[%s10282_s7 + $0x30] sm:$0xff] }
 0x48c   : > { %v7791_v61 = vadd.f32 %v5821_v29, %v7529_v49  ;;  %3521 = vmatmul.mubr.f32.gmra.mrb[116].mxu0 %v3288_v12 }
 0x48d   : > { %v2954_v44 = vpop.f32.mrb[24].mxu1  ;;  %3526 = vmatprep.mubr.f32.mxu0 %v7664_v33 }
 0x48e   : > { %v3289_v51 = vmax.f32 %v7791_v61, 0.0  ;;  %v5822_v3 = vadd.f32 %v7702_v42, %v2954_v44  ;;  %v2956_v55 = vpop.f32.mrb[25].mxu1 }
 0x490   : > { %v7799_v52 = vadd.f32 %v5822_v3, %v7544_v9  ;;  %3527 = vmatmul.mubr.f32.gmra.mrb[118].mxu0 %v3289_v51 }
 0x491   : > { %v2959_v36 = vpop.f32.mrb[26].mxu1  ;;  %3532 = vmatprep.mubr.f32.mxu0 %v7664_v33 }
 0x492   : > { %v3290_v49 = vmax.f32 %v7799_v52, 0.0  ;;  %v5823_v46 = vadd.f32 %v7702_v42, %v2959_v36  ;;  %v2961_v54 = vpop.f32.mrb[27].mxu1  ;;  %v4087_v52 = vld [vmem:[%s10282_s7 + $0xc0] sm:$0xff] }
 0x494   : > { %v7807_v17 = vadd.f32 %v5823_v46, %v7541_v27  ;;  %3533 = vmatmul.mubr.f32.gmra.mrb[120].mxu0 %v3290_v49 }
 0x495   : > { %v2964_v28 = vpop.f32.mrb[28].mxu1  ;;  %3538 = vmatprep.mubr.f32.mxu0 %v7664_v33 }
 0x496   : > { %v3291_v9 = vmax.f32 %v7807_v17, 0.0  ;;  %v5824_v60 = vadd.f32 %v7702_v42, %v2964_v28  ;;  %v2966_v47 = vpop.f32.mrb[29].mxu1 }
 0x497   : > { %v10474_v47 = vld [vmem:[#allocation18_spill] sm:$0xff] }
 0x498   : > { %v7815_v22 = vadd.f32 %v5824_v60, %v7556_v14  ;;  %3539 = vmatmul.mubr.f32.gmra.mrb[122].mxu0 %v3291_v9 }
 0x499   : > { %v2969_v26 = vpop.f32.mrb[30].mxu1  ;;  %3544 = vmatprep.mubr.f32.mxu0 %v7664_v33 }
 0x49a   : > { %v3292_v27 = vmax.f32 %v7815_v22, 0.0  ;;  %v5825_v41 = vadd.f32 %v7702_v42, %v2969_v26  ;;  %v2971_v58 = vpop.f32.mrb[31].mxu1 }
 0x49c   : > { %v7823_v16 = vadd.f32 %v5825_v41, %v7553_v31  ;;  %3545 = vmatmul.mubr.f32.gmra.mrb[124].mxu0 %v3292_v27 }
 0x49d   : > { %v2974_v37 = vpop.f32.mrb[32].mxu1  ;;  %3550 = vmatprep.mubr.f32.mxu0 %v7664_v33 }
 0x49e   : > { %v3293_v14 = vmax.f32 %v7823_v16, 0.0  ;;  %v5826_v5 = vadd.f32 %v7702_v42, %v2974_v37  ;;  %v2976_v8 = vpop.f32.mrb[33].mxu1  ;;  %v4072_v16 = vld [vmem:[%s10282_s7 + $0x48] sm:$0xff] }
 0x4a0   : > { %v7831_v59 = vadd.f32 %v5826_v5, %v7568_v23  ;;  %3551 = vmatmul.mubr.f32.gmra.mrb[126].mxu0 %v3293_v14  ;;  %v10475_v5 = vld [vmem:[#allocation22_spill] sm:$0xff] }
 0x4a1   : > { %v2979_v2 = vpop.f32.mrb[34].mxu1  ;;  %3556 = vmatprep.mubr.f32.mxu0 %v7664_v33 }
 0x4a2   : > { %v3294_v31 = vmax.f32 %v7831_v59, 0.0  ;;  %v5827_v25 = vadd.f32 %v7702_v42, %v2979_v2  ;;  %v2981_v38 = vpop.f32.mrb[35].mxu1 }
 0x4a4   : > { %v7839_v39 = vadd.f32 %v5827_v25, %v7565_v50  ;;  %3557 = vmatmul.mubr.f32.gmra.mrb[128].mxu0 %v3294_v31 }
 0x4a5   : > { %v2984_v4 = vpop.f32.mrb[36].mxu1  ;;  %3562 = vmatprep.mubr.f32.mxu0 %v7664_v33 }
 0x4a6   : > { %v3295_v23 = vmax.f32 %v7839_v39, 0.0  ;;  %v5828_v29 = vadd.f32 %v7702_v42, %v2984_v4  ;;  %v2986_v43 = vpop.f32.mrb[37].mxu1  ;;  %v4090_v39 = vld [vmem:[%s10282_s7 + $0xd8] sm:$0xff] }
 0x4a8   : > { %v7847_v44 = vadd.f32 %v5828_v29, %v7580_v24  ;;  %3563 = vmatmul.mubr.f32.gmra.mrb[130].mxu0 %v3295_v23  ;;  %v10476_v29 = vld [vmem:[#allocation27_spill] sm:$0xff] }
 0x4a9   : > { %v2989_v3 = vpop.f32.mrb[38].mxu1  ;;  %3568 = vmatprep.mubr.f32.mxu0 %v7664_v33 }
 0x4aa   : > { %v3296_v50 = vmax.f32 %v7847_v44, 0.0  ;;  %v5829_v55 = vadd.f32 %v7702_v42, %v2989_v3  ;;  %v2991_v36 = vpop.f32.mrb[39].mxu1 }
 0x4ac   : > { %v7855_v46 = vadd.f32 %v5829_v55, %v7577_v10  ;;  %3569 = vmatmul.mubr.f32.gmra.mrb[132].mxu0 %v3296_v50 }
 0x4ad   : > { %v2994_v54 = vpop.f32.mrb[40].mxu1  ;;  %3574 = vmatprep.mubr.f32.mxu0 %v7664_v33 }
 0x4ae   : > { %v3297_v24 = vmax.f32 %v7855_v46, 0.0  ;;  %v5830_v28 = vadd.f32 %v7702_v42, %v2994_v54  ;;  %v2996_v60 = vpop.f32.mrb[41].mxu1  ;;  %v4073_v46 = vld [vmem:[%s10282_s7 + $0x50] sm:$0xff] }
 0x4b0   : > { %v7863_v26 = vadd.f32 %v5830_v28, %v10474_v47  ;;  %3575 = vmatmul.mubr.f32.gmra.mrb[134].mxu0 %v3297_v24  ;;  %v10477_v28 = vld [vmem:[#allocation21_spill] sm:$0xff] }
 0x4b1   : > { %v2999_v41 = vpop.f32.mrb[42].mxu1  ;;  %3580 = vmatprep.mubr.f32.mxu0 %v7664_v33 }
 0x4b2   : > { %v10320_v10 = vmax.f32 %v7863_v26, 0.0  ;;  %v5831_v58 = vadd.f32 %v7702_v42, %v2999_v41  ;;  %v3001_v37 = vpop.f32.mrb[43].mxu1  ;;  %v10484_v18 = vmax.f32 %v7863_v26, 0.0 }
 0x4b4   : > { %v7871_v8 = vadd.f32 %v5831_v58, %v10475_v5  ;;  %3581 = vmatmul.mubr.f32.gmra.mrb[136].mxu0 %v10320_v10  ;;  %v10478_v5 = vld [vmem:[#allocation26_spill] sm:$0xff] }
 0x4b5   : > { %v3004_v2 = vpop.f32.mrb[44].mxu1  ;;  %3586 = vmatprep.mubr.f32.mxu0 %v7664_v33 }
 0x4b6   : > { %v10318_v25 = vmax.f32 %v7871_v8, 0.0  ;;  %v5832_v38 = vadd.f32 %v7702_v42, %v3004_v2  ;;  %v3006_v4 = vpop.f32.mrb[45].mxu1 }
 0x4b8   : > { %v7879_v43 = vadd.f32 %v5832_v38, %v10476_v29  ;;  %3587 = vmatmul.mubr.f32.gmra.mrb[138].mxu0 %v10318_v25 }
 0x4b9   : > { %v3009_v3 = vpop.f32.mrb[46].mxu1  ;;  %3592 = vmatprep.mubr.f32.mxu0 %v7664_v33 }
 0x4ba   : > { %v10316_v55 = vmax.f32 %v7879_v43, 0.0  ;;  %v5833_v36 = vadd.f32 %v7702_v42, %v3009_v3  ;;  %v3011_v54 = vpop.f32.mrb[47].mxu1  ;;  %v10486_v44 = vmax.f32 %v7879_v43, 0.0  ;;  %v4091_v43 = vld [vmem:[%s10282_s7 + $0xe0] sm:$0xff] }
 0x4bc   : > { %v7887_v60 = vadd.f32 %v5833_v36, %v10477_v28  ;;  %3593 = vmatmul.mubr.f32.gmra.mrb[140].mxu0 %v10316_v55  ;;  %v10479_v36 = vld [vmem:[#allocation23_spill] sm:$0xff] }
 0x4bd   : > { %v3014_v47 = vpop.f32.mrb[48].mxu1  ;;  %3598 = vmatprep.mubr.f32.mxu0 %v7664_v33 }
 0x4be   : > { %v10314_v41 = vmax.f32 %v7887_v60, 0.0  ;;  %v5834_v58 = vadd.f32 %v7702_v42, %v3014_v47  ;;  %v3016_v37 = vpop.f32.mrb[49].mxu1 }
 0x4c0   : > { %v7895_v2 = vadd.f32 %v5834_v58, %v10478_v5  ;;  %3599 = vmatmul.mubr.f32.gmra.mrb[142].mxu0 %v10314_v41  ;;  %v10480_v5 = vld [vmem:[#allocation29_spill] sm:$0xff] }
 0x4c1   : > { %v3019_v38 = vpop.f32.mrb[50].mxu1  ;;  %3604 = vmatprep.mubr.f32.mxu0 %v7664_v33 }
 0x4c2   : > { %v10315_v4 = vmax.f32 %v7895_v2, 0.0  ;;  %v5835_v29 = vadd.f32 %v7702_v42, %v3019_v38  ;;  %v3021_v3 = vpop.f32.mrb[51].mxu1 }
 0x4c4   : > { %v7903_v54 = vadd.f32 %v5835_v29, %v10479_v36  ;;  %3605 = vmatmul.mubr.f32.gmra.mrb[144].mxu0 %v10315_v4  ;;  %v10481_v4 = vld [vmem:[#allocation28_spill] sm:$0xff] }
 0x4c5   : > { %v3024_v28 = vpop.f32.mrb[52].mxu1  ;;  %3610 = vmatprep.mubr.f32.mxu0 %v7664_v33 }
 0x4c6   : > { %v10317_v47 = vmax.f32 %v7903_v54, 0.0  ;;  %v5836_v58 = vadd.f32 %v7702_v42, %v3024_v28  ;;  %v3026_v37 = vpop.f32.mrb[53].mxu1 }
 0x4c8   : > { %v7911_v41 = vadd.f32 %v5836_v58, %v10480_v5  ;;  %3611 = vmatmul.mubr.f32.gmra.mrb[146].mxu0 %v10317_v47  ;;  %v10482_v47 = vld [vmem:[#allocation31_spill] sm:$0xff] }
 0x4c9   : > { %v3029_v38 = vpop.f32.mrb[54].mxu1  ;;  %3616 = vmatprep.mubr.f32.mxu0 %v7664_v33 }
 0x4ca   : > { %v10319_v29 = vmax.f32 %v7911_v41, 0.0  ;;  %v5837_v3 = vadd.f32 %v7702_v42, %v3029_v38  ;;  %v3031_v36 = vpop.f32.mrb[55].mxu1 }
 0x4cc   : > { %v7919_v55 = vadd.f32 %v5837_v3, %v10481_v4  ;;  %3617 = vmatmul.mubr.f32.gmra.mrb[148].mxu0 %v10319_v29  ;;  %v10483_v29 = vld [vmem:[#allocation30_spill] sm:$0xff] }
 0x4cd   : > { %v3034_v28 = vpop.f32.mrb[56].mxu1  ;;  %3622 = vmatprep.mubr.f32.mxu0 %v7664_v33 }
 0x4ce   : > { %v10321_v58 = vmax.f32 %v7919_v55, 0.0  ;;  %v5838_v37 = vadd.f32 %v7702_v42, %v3034_v28  ;;  %v3036_v5 = vpop.f32.mrb[57].mxu1 }
 0x4d0   : > { %v7927_v25 = vadd.f32 %v5838_v37, %v10482_v47  ;;  %3623 = vmatmul.mubr.f32.gmra.mrb[150].mxu0 %v10321_v58 }
 0x4d1   : > { %v3039_v38 = vpop.f32.mrb[58].mxu1  ;;  %3628 = vmatprep.mubr.f32.mxu0 %v7664_v33 }
 0x4d2   : > { %v10322_v4 = vmax.f32 %v7927_v25, 0.0  ;;  %v5839_v3 = vadd.f32 %v7702_v42, %v3039_v38  ;;  %v3041_v36 = vpop.f32.mrb[59].mxu1 }
 0x4d4   : > { %v7935_v10 = vadd.f32 %v5839_v3, %v10483_v29  ;;  %3629 = vmatmul.mubr.f32.gmra.mrb[152].mxu0 %v10322_v4 }
 0x4d5   : > { %v3044_v28 = vpop.f32.mrb[60].mxu1  ;;  %3634 = vmatprep.mubr.f32.mxu0 %v7664_v33 }
 0x4d6   : > { %v3307_v47 = vmax.f32 %v7935_v10, 0.0  ;;  %v5840_v37 = vadd.f32 %v7702_v42, %v3044_v28  ;;  %v3046_v5 = vpop.f32.mrb[61].mxu1  ;;  %v4092_v28 = vld [vmem:[%s10282_s7 + $0xe8] sm:$0xff] }
 0x4d7   : > { %v10487_v5 = vmax.f32 %v7887_v60, 0.0  ;;  %v4093_v60 = vld [vmem:[%s10282_s7 + $0xf0] sm:$0xff] }
 0x4d8   : > { %v7943_v58 = vadd.f32 %v5840_v37, %v7697_v57  ;;  %3635 = vmatmul.mubr.f32.gmra.mrb[154].mxu0 %v3307_v47 }
 0x4d9   : > { %v3049_v38 = vpop.f32.mrb[62].mxu1  ;;  %3640 = vmatprep.mubr.f32.mxu0 %v7664_v33 }
 0x4da   : > { %v3308_v29 = vmax.f32 %v7943_v58, 0.0  ;;  %v5841_v3 = vadd.f32 %v7702_v42, %v3049_v38  ;;  %v3051_v36 = vpop.f32.mrb[63].mxu1  ;;  %v4080_v42 = vld [vmem:[%s10282_s7 + $0x88] sm:$0xff]  ;;  %v5722_v38 = vpack.c.bf16 %v4092_v28, %v4091_v43 }
 0x4db   : > { %v4076_v36 = vld [vmem:[%s10282_s7 + $0x68] sm:$0xff] }
 0x4dc   : > { %v7951_v4 = vadd.f32 %v5841_v3, %v7695_v6  ;;  %3641 = vmatmul.mubr.f32.gmra.mrb[156].mxu0 %v3308_v29  ;;  %v4079_v6 = vld [vmem:[%s10282_s7 + $0x80] sm:$0xff] }
 0x4dd   : > { %3646 = vmatprep.mubr.f32.mxu0 %v7664_v33  ;;  %v5698_v53 = vpack.c.bf16 %v4080_v42, %v4079_v6  ;;  %v4075_v3 = vld [vmem:[%s10282_s7 + $0x60] sm:$0xff] }
 0x4de   : > { %v3309_v57 = vmax.f32 %v7951_v4, 0.0  ;;  %v5724_v6 = vpack.c.bf16 %v4076_v36, %v4075_v3 }
 0x4df   : > { %5699 = vmatprep.subr.bf16.mxu1 %v5698_v53  ;;  %v4094_v53 = vld [vmem:[%s10282_s7 + $0xf8] sm:$0xff] }
 0x4e0   : > { %3647 = vmatmul.mubr.f32.gmra.mrb[158].mxu0 %v3309_v57 }
 0x4e1   : > { %3717 = vmatprep.mubr.f32.mxu0 %v7664_v33 }
 0x4e4   : > { %3718 = vmatmul.mubr.f32.vlgmr.msra.gmra.mrb[160].mxu0 %v3278_v48  ;;  %v4063_v48 = vld [vmem:[%s10282_s7] sm:$0xff] }
 0x4e5   : > { %3723 = vmatprep.mubr.f32.mxu0 %v7664_v33 }
 0x4e8   : > { %3724 = vmatmul.mubr.f32.gmra.mrb[162].mxu0 %v3279_v21  ;;  %v5700_v21 = vpack.c.bf16 %v4064_v45, %v4063_v48  ;;  %v10488_v45 = vmax.f32 %v7895_v2, 0.0 }
 0x4e9   : > { %3729 = vmatprep.mubr.f32.mxu0 %v7664_v33 }
 0x4ea   : > { %5701 = vmatpush3.bf16.msra.mxu1 %v5700_v21  ;;  %v5726_v21 = vpack.c.bf16 %v4094_v53, %v4093_v60 }
 0x4ec   : > { %3730 = vmatmul.mubr.f32.gmra.mrb[164].mxu0 %v3280_v30  ;;  %v4082_v30 = vld [vmem:[%s10282_s7 + $0x98] sm:$0xff] }
 0x4ed   : > { %3735 = vmatprep.mubr.f32.mxu0 %v7664_v33  ;;  %v5702_v35 = vpack.c.bf16 %v4082_v30, %v4081_v62  ;;  %v4077_v62 = vld [vmem:[%s10282_s7 + $0x70] sm:$0xff]  ;;  %v4078_v30 = vld [vmem:[%s10282_s7 + $0x78] sm:$0xff] }
 0x4ef   : > { %5703 = vmatprep.subr.bf16.mxu1 %v5702_v35  ;;  %v5728_v35 = vpack.c.bf16 %v4078_v30, %v4077_v62 }
 0x4f0   : > { %3736 = vmatmul.mubr.f32.gmra.mrb[166].mxu0 %v3281_v56  ;;  %v4065_v56 = vld [vmem:[%s10282_s7 + $0x10] sm:$0xff] }
 0x4f1   : > { %3741 = vmatprep.mubr.f32.mxu0 %v7664_v33 }
 0x4f4   : > { %3742 = vmatmul.mubr.f32.gmra.mrb[168].mxu0 %v3282_v34  ;;  %v5704_v34 = vpack.c.bf16 %v4066_v0, %v4065_v56 }
 0x4f5   : > { %3747 = vmatprep.mubr.f32.mxu0 %v7664_v33 }
 0x4f6   : > { %5705 = vmatpush3.bf16.msra.mxu1 %v5704_v34  ;;  %v10489_v34 = vmax.f32 %v7903_v54, 0.0  ;;  %v10492_v54 = vmax.f32 %v7927_v25, 0.0 }
 0x4f8   : > { %3748 = vmatmul.mubr.f32.gmra.mrb[170].mxu0 %v3283_v13  ;;  %v4084_v13 = vld [vmem:[%s10282_s7 + $0xa8] sm:$0xff] }
 0x4f9   : > { %3753 = vmatprep.mubr.f32.mxu0 %v7664_v33  ;;  %v5706_v11 = vpack.c.bf16 %v4084_v13, %v4083_v40  ;;  %v10490_v13 = vmax.f32 %v7911_v41, 0.0 }
 0x4fb   : > { %5707 = vmatprep.subr.bf16.mxu1 %v5706_v11 }
 0x4fc   : > { %3754 = vmatmul.mubr.f32.gmra.mrb[172].mxu0 %v3284_v1  ;;  %v4067_v1 = vld [vmem:[%s10282_s7 + $0x20] sm:$0xff] }
 0x4fd   : > { %3759 = vmatprep.mubr.f32.mxu0 %v7664_v33 }
 0x500   : > { %3760 = vmatmul.mubr.f32.gmra.mrb[174].mxu0 %v3285_v63 }
 0x501   : > { %3765 = vmatprep.mubr.f32.mxu0 %v7664_v33 }
 0x504   : > { %3766 = vmatmul.mubr.f32.gmra.mrb[176].mxu0 %v3286_v15  ;;  %v4086_v15 = vld [vmem:[%s10282_s7 + $0xb8] sm:$0xff] }
 0x505   : > { %3771 = vmatprep.mubr.f32.mxu0 %v7664_v33 }
 0x508   : > { %3772 = vmatmul.mubr.f32.gmra.mrb[178].mxu0 %v3287_v32  ;;  %v5710_v32 = vpack.c.bf16 %v4086_v15, %v4085_v19 }
 0x509   : > { %3777 = vmatprep.mubr.f32.mxu0 %v7664_v33 }
 0x50c   : > { %3778 = vmatmul.mubr.f32.gmra.mrb[180].mxu0 %v3288_v12  ;;  %v4070_v12 = vld [vmem:[%s10282_s7 + $0x38] sm:$0xff] }
 0x50d   : > { %3783 = vmatprep.mubr.f32.mxu0 %v7664_v33  ;;  %v5712_v61 = vpack.c.bf16 %v4070_v12, %v4069_v20  ;;  %v3376_v12 = vlaneseq }
 0x510   : > { %3784 = vmatmul.mubr.f32.gmra.mrb[182].mxu0 %v3289_v51 }
 0x511   : > { %3789 = vmatprep.mubr.f32.mxu0 %v7664_v33 }
 0x514   : > { %3790 = vmatmul.mubr.f32.gmra.mrb[184].mxu0 %v3290_v49  ;;  %v4088_v49 = vld [vmem:[%s10282_s7 + $0xc8] sm:$0xff] }
 0x515   : > { %3795 = vmatprep.mubr.f32.mxu0 %v7664_v33  ;;  %v5714_v22 = vpack.c.bf16 %v4088_v49, %v4087_v52  ;;  %v8203_v49 = vld [vmem:[%s10281_s6] sm:$0xf] }
 0x518   : > { %3796 = vmatmul.mubr.f32.gmra.mrb[186].mxu0 %v3291_v9  ;;  %v10485_v9 = vmax.f32 %v7871_v8, 0.0 }
 0x519   : > { %3801 = vmatprep.mubr.f32.mxu0 %v7664_v33 }
 0x51c   : > { %3802 = vmatmul.mubr.f32.gmra.mrb[188].mxu0 %v3292_v27  ;;  %v4071_v27 = vld [vmem:[%s10282_s7 + $0x40] sm:$0xff] }
 0x51d   : > { %3807 = vmatprep.mubr.f32.mxu0 %v7664_v33 }
 0x520   : > { %3808 = vmatmul.mubr.f32.gmra.mrb[190].mxu0 %v3293_v14  ;;  %v5716_v14 = vpack.c.bf16 %v4072_v16, %v4071_v27 }
 0x521   : > { %3813 = vmatprep.mubr.f32.mxu0 %v7664_v33 }
 0x524   : > { %3814 = vmatmul.mubr.f32.gmra.mrb[192].mxu0 %v3294_v31  ;;  %v4089_v31 = vld [vmem:[%s10282_s7 + $0xd0] sm:$0xff] }
 0x525   : > { %3819 = vmatprep.mubr.f32.mxu0 %v7664_v33 }
 0x528   : > { %3820 = vmatmul.mubr.f32.gmra.mrb[194].mxu0 %v3295_v23 }
 0x529   : > { %3825 = vmatprep.mubr.f32.mxu0 %v7664_v33 }
 0x52c   : > { %3826 = vmatmul.mubr.f32.gmra.mrb[196].mxu0 %v3296_v50  ;;  %v5718_v50 = vpack.c.bf16 %v4090_v39, %v4089_v31 }
 0x52d   : > { %3831 = vmatprep.mubr.f32.mxu0 %v7664_v33  ;;  %v4068_v33 = vld [vmem:[%s10282_s7 + $0x28] sm:$0xff] }
 0x52e   : > { %v5708_v63 = vpack.c.bf16 %v4068_v33, %v4067_v1  ;;  %v10491_v33 = vmax.f32 %v7919_v55, 0.0 }
 0x530   : > { %3832 = vmatmul.mubr.f32.gmra.mrb[198].mxu0 %v3297_v24  ;;  %5709 = vmatpush3.bf16.msra.mxu1 %v5708_v63  ;;  %v4074_v24 = vld [vmem:[%s10282_s7 + $0x58] sm:$0xff] }
 0x531   : > { %3837 = vmatprep.mubr.f32.mxu0 %v8055_v7  ;;  %5711 = vmatprep.subr.bf16.mxu1 %v5710_v32  ;;  %v5720_v26 = vpack.c.bf16 %v4074_v24, %v4073_v46 }
 0x534   : > { %3838 = vmatmul.mubr.f32.gmra.mrb[200].mxu0 %v10484_v18  ;;  %5713 = vmatpush3.bf16.msra.mxu1 %v5712_v61 }
 0x535   : > { %3843 = vmatprep.mubr.f32.mxu0 %v8055_v7  ;;  %5715 = vmatprep.subr.bf16.mxu1 %v5714_v22 }
 0x537   : > { %v8073_v51 = vpop.f32.mrb[96].mxu0 }
 0x538   : > { %v8081_v17 = vpop.f32.mrb[97].mxu0  ;;  %3844 = vmatmul.mubr.f32.gmra.mrb[202].mxu0 %v10485_v9  ;;  %5717 = vmatpush3.bf16.msra.mxu1 %v5716_v14 }
 0x539   : > { %3849 = vmatprep.mubr.f32.mxu0 %v8055_v7  ;;  %5719 = vmatprep.subr.bf16.mxu1 %v5718_v50 }
 0x53b   : > { %v8092_v59 = vpop.f32.mrb[98].mxu0 }
 0x53c   : > { %v8100_v23 = vpop.f32.mrb[99].mxu0  ;;  %3850 = vmatmul.mubr.f32.gmra.mrb[204].mxu0 %v10486_v44  ;;  %5721 = vmatpush3.bf16.msra.mxu1 %v5720_v26 }
 0x53d   : > { %3855 = vmatprep.mubr.f32.mxu0 %v8055_v7  ;;  %5723 = vmatprep.subr.bf16.mxu1 %v5722_v38 }
 0x53f   : > { %v8111_v8 = vpop.f32.mrb[100].mxu0 }
 0x540   : > { %v8119_v37 = vpop.f32.mrb[101].mxu0  ;;  %3856 = vmatmul.mubr.f32.gmra.mrb[206].mxu0 %v10487_v5  ;;  %5725 = vmatpush3.bf16.msra.mxu1 %v5724_v6 }
 0x541   : > { %3861 = vmatprep.mubr.f32.mxu0 %v8055_v7  ;;  %5727 = vmatprep.subr.bf16.mxu1 %v5726_v21 }
 0x543   : > { %v8130_v42 = vpop.f32.mrb[102].mxu0 }
 0x544   : > { %v8138_v48 = vpop.f32.mrb[103].mxu0  ;;  %3862 = vmatmul.mubr.f32.gmra.mrb[208].mxu0 %v10488_v45  ;;  %5729 = vmatpush3.bf16.msra.mxu1 %v5728_v35 }
 0x545   : > { %3867 = vmatprep.mubr.f32.mxu0 %v8055_v7 }
 0x547   : > { %v3486_v56 = vpop.f32.mrb[104].mxu0 }
 0x548   : > { %v3488_v0 = vpop.f32.mrb[105].mxu0  ;;  %3868 = vmatmul.mubr.f32.gmra.mrb[210].mxu0 %v10489_v34 }
 0x549   : > { %3873 = vmatprep.mubr.f32.mxu0 %v8055_v7 }
 0x54b   : > { %v3492_v2 = vpop.f32.mrb[106].mxu0 }
 0x54c   : > { %v3494_v40 = vpop.f32.mrb[107].mxu0  ;;  %3874 = vmatmul.mubr.f32.gmra.mrb[212].mxu0 %v10490_v13 }
 0x54d   : > { %3879 = vmatprep.mubr.f32.mxu0 %v8055_v7 }
 0x54f   : > { %v3498_v11 = vpop.f32.mrb[108].mxu0 }
 0x550   : > { %v3500_v1 = vpop.f32.mrb[109].mxu0  ;;  %3880 = vmatmul.mubr.f32.gmra.mrb[214].mxu0 %v10491_v33 }
 0x551   : > { %3885 = vmatprep.mubr.f32.mxu0 %v8055_v7 }
 0x553   : > { %v3504_v63 = vpop.f32.mrb[110].mxu0 }
 0x554   : > { %v3506_v19 = vpop.f32.mrb[111].mxu0  ;;  %3886 = vmatmul.mubr.f32.gmra.mrb[216].mxu0 %v10492_v54 }
 0x555   : > { %3891 = vmatprep.mubr.f32.mxu0 %v8055_v7 }
 0x557   : > { %v3510_v15 = vpop.f32.mrb[112].mxu0 }
 0x558   : > { %v8161_v18 = vpop.f32.mrb[113].mxu0  ;;  %3892 = vmatmul.mubr.f32.gmra.mrb[218].mxu0 %v3307_v47 }
 0x559   : > { %3897 = vmatprep.mubr.f32.mxu0 %v8055_v7 }
 0x55b   : > { %v8166_v41 = vpop.f32.mrb[114].mxu0 }
 0x55c   : > { %v8168_v55 = vpop.f32.mrb[115].mxu0  ;;  %3898 = vmatmul.mubr.f32.gmra.mrb[220].mxu0 %v3308_v29  ;;  %v8189_v29 = vshrl.u32 %v3376_v12, 7 }
 0x55d   : > { %3903 = vmatprep.mubr.f32.mxu0 %v8055_v7 }
 0x55e   : > { %v8196_v4 = vsub.s32 0, %v8189_v29  ;;  %v3382_v9 = vsub.s32 1, %v8189_v29 }
 0x55f   : > { %v8173_v25 = vpop.f32.mrb[116].mxu0 }
 0x560   : > { %v8175_v32 = vpop.f32.mrb[117].mxu0  ;;  %3904 = vmatmul.mubr.f32.gmra.mrb[222].mxu0 %v3309_v57  ;;  %v8210_v27 = vrot.slane %v8203_v49, %v8196_v4  ;;  %v8215_v14 = vrot.slane %v8203_v49, %v3382_v9 }
 0x562   : > { %v8219_v31 = vadd.f32 %v8092_v59, %v8210_v27  ;;  %v8223_v39 = vadd.f32 %v8100_v23, %v8215_v14  ;;  %v8229_v50 = vadd.f32 %v8073_v51, %v8210_v27  ;;  %v8233_v46 = vadd.f32 %v8111_v8, %v8210_v27 }
 0x563   : > { %v8179_v10 = vpop.f32.mrb[118].mxu0  ;;  %v8239_v59 = vadd.f32 %v8081_v17, %v8215_v14  ;;  %v8243_v23 = vadd.f32 %v8119_v37, %v8215_v14  ;;  %v8249_v51 = vadd.f32 %v8130_v42, %v8210_v27  ;;  %v8255_v43 = vadd.f32 %v8138_v48, %v8215_v14 }
 0x564   : > { %v8181_v47 = vpop.f32.mrb[119].mxu0  ;;  %10493 = vst [vmem:[#allocation15_spill] sm:$0xff] %v8223_v39  ;;  %v3910_v26 = vadd.f32 %v8219_v31, %v8229_v50  ;;  %v8261_v37 = vadd.f32 %v3486_v56, %v8210_v27  ;;  %v8267_v3 = vadd.f32 %v3488_v0, %v8215_v14  ;;  %v8271_v6 = vadd.f32 %v3492_v2, %v8210_v27 }
 0x565   : > { %10494 = vst [vmem:[#allocation16_spill] sm:$0xff] %v8239_v59  ;;  %10495 = vst [vmem:[#allocation17_spill] sm:$0xff] %v8243_v23  ;;  %v3947_v8 = vadd.f32 %v8223_v39, %v8239_v59  ;;  %v8275_v60 = vadd.f32 %v3494_v40, %v8215_v14  ;;  %v8279_v45 = vadd.f32 %v3498_v11, %v8210_v27  ;;  %v4123_v39 = vld [vmem:[%s10282_s7 + $0x1e0] sm:$0xff] }
 0x566   : > { %10496 = vst [vmem:[#allocation19_spill] sm:$0xff] %v8255_v43  ;;  %v3911_v28 = vadd.f32 %v3910_v26, %v8233_v46  ;;  %10497 = vst [vmem:[#allocation20_spill] sm:$0xff] %v8267_v3  ;;  %v8283_v30 = vadd.f32 %v3500_v1, %v8215_v14  ;;  %v8287_v56 = vadd.f32 %v3504_v63, %v8210_v27 }
 0x567   : > { %v8183_v20 = vpop.f32.mrb[120].mxu0  ;;  %v3948_v38 = vadd.f32 %v3947_v8, %v8243_v23  ;;  %10498 = vst [vmem:[#allocation24_spill] sm:$0xff] %v8275_v60  ;;  %v8291_v34 = vadd.f32 %v3506_v19, %v8215_v14  ;;  %v8295_v13 = vadd.f32 %v3510_v15, %v8210_v27  ;;  %v8300_v33 = vadd.f32 %v8161_v18, %v8215_v14 }
 0x568   : > { %v8185_v61 = vpop.f32.mrb[121].mxu0  ;;  %v3912_v36 = vadd.f32 %v3911_v28, %v8249_v51  ;;  %10499 = vst [vmem:[#allocation25_spill] sm:$0xff] %v8283_v30  ;;  %v8305_v54 = vadd.f32 %v8166_v41, %v8210_v27  ;;  %v8310_v12 = vadd.f32 %v8168_v55, %v8215_v14  ;;  %v8315_v26 = vadd.f32 %v8173_v25, %v8210_v27 }
 0x569   : > { %v3949_v42 = vadd.f32 %v3948_v38, %v8255_v43  ;;  %10500 = vst [vmem:[#allocation18_spill] sm:$0xff] %v8291_v34  ;;  %10501 = vst [vmem:[#allocation22_spill] sm:$0xff] %v8300_v33  ;;  %v8320_v41 = vadd.f32 %v8175_v32, %v8215_v14  ;;  %v8325_v55 = vadd.f32 %v8179_v10, %v8210_v27  ;;  %v4121_v43 = vld [vmem:[%s10282_s7 + $0x1d0] sm:$0xff] }
 0x56a   : > { %v3913_v48 = vadd.f32 %v3912_v36, %v8261_v37  ;;  %10502 = vst [vmem:[#allocation27_spill] sm:$0xff] %v8310_v12  ;;  %v8330_v36 = vadd.f32 %v8181_v47, %v8215_v14  ;;  %v8340_v10 = vadd.f32 %v8185_v61, %v8215_v14 }
 0x56b   : > { %v8187_v58 = vpop.f32.mrb[122].mxu0  ;;  %v3950_v62 = vadd.f32 %v3949_v42, %v8267_v3  ;;  %10503 = vst [vmem:[#allocation21_spill] sm:$0xff] %v8320_v41 }
 0x56c   : > { %v8191_v7 = vpop.f32.mrb[123].mxu0  ;;  %v3914_v35 = vadd.f32 %v3913_v48, %v8271_v6  ;;  %10504 = vst [vmem:[#allocation26_spill] sm:$0xff] %v8330_v36  ;;  %v8335_v48 = vadd.f32 %v8183_v20, %v8210_v27  ;;  %10505 = vst [vmem:[#allocation23_spill] sm:$0xff] %v8340_v10  ;;  %v8345_v47 = vadd.f32 %v8187_v58, %v8210_v27 }
 0x56d   : > { %v3951_v0 = vadd.f32 %v3950_v62, %v8275_v60  ;;  %v4119_v60 = vld [vmem:[%s10282_s7 + $0x1c0] sm:$0xff] }
 0x56e   : > { %v3915_v40 = vadd.f32 %v3914_v35, %v8279_v45 }
 0x56f   : > { %v8193_v52 = vpop.f32.mrb[124].mxu0  ;;  %v3952_v1 = vadd.f32 %v3951_v0, %v8283_v30  ;;  %v4117_v30 = vld [vmem:[%s10282_s7 + $0x1b0] sm:$0xff] }
 0x570   : > { %v8198_v57 = vpop.f32.mrb[125].mxu0  ;;  %v3916_v63 = vadd.f32 %v3915_v40, %v8287_v56  ;;  %v8350_v40 = vadd.f32 %v8191_v7, %v8215_v14 }
 0x571   : > { %v3953_v19 = vadd.f32 %v3952_v1, %v8291_v34  ;;  %v8360_v58 = vadd.f32 %v8198_v57, %v8215_v14  ;;  %v4115_v34 = vld [vmem:[%s10282_s7 + $0x1a0] sm:$0xff] }
 0x572   : > { %v3917_v9 = vadd.f32 %v3916_v63, %v8295_v13  ;;  %10506 = vst [vmem:[#allocation29_spill] sm:$0xff] %v8350_v40  ;;  %v8355_v63 = vadd.f32 %v8193_v52, %v8210_v27 }
 0x573   : > { %v8206_v22 = vpop.f32.mrb[126].mxu0  ;;  %v3954_v8 = vadd.f32 %v3953_v19, %v8300_v33  ;;  %10507 = vst [vmem:[#allocation28_spill] sm:$0xff] %v8360_v58  ;;  %v4097_v33 = vld [vmem:[%s10282_s7 + $0x110] sm:$0xff] }
 0x574   : > { %v8212_v16 = vpop.f32.mrb[127].mxu0  ;;  %v3918_v28 = vadd.f32 %v3917_v9, %v8305_v54  ;;  %v8365_v7 = vadd.f32 %v8206_v22, %v8210_v27 }
 0x575   : > { %v3955_v38 = vadd.f32 %v3954_v8, %v8310_v12 }
 0x576   : > { %v3919_v42 = vadd.f32 %v3918_v28, %v8315_v26  ;;  %v8370_v28 = vadd.f32 %v8212_v16, %v8215_v14 }
 0x577   : > { %v8225_v44 = vpop.f32.mrb[128].mxu0  ;;  %v3956_v62 = vadd.f32 %v3955_v38, %v8320_v41 }
 0x578   : > { %v8235_v24 = vpop.f32.mrb[129].mxu0  ;;  %v3920_v35 = vadd.f32 %v3919_v42, %v8325_v55  ;;  %10508 = vst [vmem:[#allocation31_spill] sm:$0xff] %v8370_v28  ;;  %v8375_v42 = vadd.f32 %v8225_v44, %v8210_v27 }
 0x579   : > { %v3957_v0 = vadd.f32 %v3956_v62, %v8330_v36  ;;  %v8380_v22 = vadd.f32 %v8235_v24, %v8215_v14 }
 0x57a   : > { %v3921_v1 = vadd.f32 %v3920_v35, %v8335_v48 }
 0x57b   : > { %v8257_v17 = vpop.f32.mrb[130].mxu0  ;;  %v3958_v19 = vadd.f32 %v3957_v0, %v8340_v10  ;;  %10509 = vst [vmem:[#allocation30_spill] sm:$0xff] %v8380_v22 }
 0x57c   : > { %v8263_v5 = vpop.f32.mrb[131].mxu0  ;;  %v3922_v9 = vadd.f32 %v3921_v1, %v8345_v47  ;;  %v8385_v16 = vadd.f32 %v8257_v17, %v8210_v27 }
 0x57d   : > { %v3959_v8 = vadd.f32 %v3958_v19, %v8350_v40  ;;  %v8390_v1 = vadd.f32 %v8263_v5, %v8215_v14 }
 0x57e   : > { %v3923_v38 = vadd.f32 %v3922_v9, %v8355_v63 }
 0x57f   : > { %v3570_v53 = vpop.f32.mrb[132].mxu0  ;;  %v3960_v62 = vadd.f32 %v3959_v8, %v8360_v58  ;;  %10510 = vst [vmem:[#allocation32_spill] sm:$0xff] %v8390_v1 }
 0x580   : > { %v3572_v21 = vpop.f32.mrb[133].mxu0  ;;  %v3924_v35 = vadd.f32 %v3923_v38, %v8365_v7  ;;  %v8394_v9 = vadd.f32 %v3570_v53, %v8210_v27 }
 0x581   : > { %v3961_v0 = vadd.f32 %v3960_v62, %v8370_v28  ;;  %v8398_v38 = vadd.f32 %v3572_v21, %v8215_v14 }
 0x582   : > { %v3925_v19 = vadd.f32 %v3924_v35, %v8375_v42 }
 0x583   : > { %v3576_v2 = vpop.f32.mrb[134].mxu0  ;;  %v3962_v8 = vadd.f32 %v3961_v0, %v8380_v22  ;;  %10511 = vst [vmem:[#allocation33_spill] sm:$0xff] %v8398_v38 }
 0x584   : > { %v3578_v11 = vpop.f32.mrb[135].mxu0  ;;  %v3926_v17 = vadd.f32 %v3925_v19, %v8385_v16  ;;  %v8402_v62 = vadd.f32 %v3576_v2, %v8210_v27 }
 0x585   : > { %v3963_v5 = vadd.f32 %v3962_v8, %v8390_v1  ;;  %v8406_v28 = vadd.f32 %v3578_v11, %v8215_v14 }
 0x586   : > { %v3927_v53 = vadd.f32 %v3926_v17, %v8394_v9 }
 0x587   : > { %v3582_v15 = vpop.f32.mrb[136].mxu0  ;;  %10512 = vst [vmem:[#allocation34_spill] sm:$0xff] %v8406_v28  ;;  %v3964_v21 = vadd.f32 %v3963_v5, %v8398_v38 }
 0x588   : > { %v3584_v18 = vpop.f32.mrb[137].mxu0  ;;  %v8410_v58 = vadd.f32 %v3582_v15, %v8210_v27  ;;  %v3928_v2 = vadd.f32 %v3927_v53, %v8402_v62 }
 0x589   : > { %v8414_v22 = vadd.f32 %v3584_v18, %v8215_v14  ;;  %v3965_v11 = vadd.f32 %v3964_v21, %v8406_v28 }
 0x58a   : > { %10513 = vst [vmem:[#allocation35_spill] sm:$0xff] %v8410_v58  ;;  %v3929_v15 = vadd.f32 %v3928_v2, %v8410_v58 }
 0x58b   : > { %v3588_v25 = vpop.f32.mrb[138].mxu0  ;;  %10514 = vst [vmem:[#allocation36_spill] sm:$0xff] %v8414_v22  ;;  %v3966_v18 = vadd.f32 %v3965_v11, %v8414_v22 }
 0x58c   : > { %v3590_v32 = vpop.f32.mrb[139].mxu0  ;;  %v8418_v19 = vadd.f32 %v3588_v25, %v8210_v27 }
 0x58d   : > { %v8422_v8 = vadd.f32 %v3590_v32, %v8215_v14 }
 0x58e   : > { %10515 = vst [vmem:[#allocation37_spill] sm:$0xff] %v8418_v19  ;;  %v3930_v25 = vadd.f32 %v3929_v15, %v8418_v19 }
 0x58f   : > { %v3594_v20 = vpop.f32.mrb[140].mxu0  ;;  %10516 = vst [vmem:[#allocation38_spill] sm:$0xff] %v8422_v8  ;;  %v3967_v32 = vadd.f32 %v3966_v18, %v8422_v8 }
 0x590   : > { %v3596_v61 = vpop.f32.mrb[141].mxu0  ;;  %v8426_v1 = vadd.f32 %v3594_v20, %v8210_v27 }
 0x591   : > { %v8430_v38 = vadd.f32 %v3596_v61, %v8215_v14 }
 0x592   : > { %10517 = vst [vmem:[#allocation39_spill] sm:$0xff] %v8426_v1  ;;  %v3931_v20 = vadd.f32 %v3930_v25, %v8426_v1 }
 0x593   : > { %v3600_v52 = vpop.f32.mrb[142].mxu0  ;;  %10518 = vst [vmem:[#allocation40_spill] sm:$0xff] %v8430_v38  ;;  %v3968_v61 = vadd.f32 %v3967_v32, %v8430_v38 }
 0x594   : > { %v3602_v57 = vpop.f32.mrb[143].mxu0  ;;  %v8434_v53 = vadd.f32 %v3600_v52, %v8210_v27 }
 0x595   : > { %v8438_v21 = vadd.f32 %v3602_v57, %v8215_v14 }
 0x596   : > { %10519 = vst [vmem:[#allocation41_spill] sm:$0xff] %v8434_v53  ;;  %v3932_v52 = vadd.f32 %v3931_v20, %v8434_v53 }
 0x597   : > { %v3606_v44 = vpop.f32.mrb[144].mxu0  ;;  %10520 = vst [vmem:[#allocation42_spill] sm:$0xff] %v8438_v21  ;;  %v3969_v57 = vadd.f32 %v3968_v61, %v8438_v21 }
 0x598   : > { %v3608_v24 = vpop.f32.mrb[145].mxu0  ;;  %v8442_v28 = vadd.f32 %v3606_v44, %v8210_v27  ;;  %v4111_v44 = vld [vmem:[%s10282_s7 + $0x180] sm:$0xff] }
 0x599   : > { %v8446_v22 = vadd.f32 %v3608_v24, %v8215_v14  ;;  %v4112_v24 = vld [vmem:[%s10282_s7 + $0x188] sm:$0xff] }
 0x59a   : > { %10521 = vst [vmem:[#allocation43_spill] sm:$0xff] %v8442_v28  ;;  %v3933_v32 = vadd.f32 %v3932_v52, %v8442_v28  ;;  %v5730_v38 = vpack.c.bf16 %v4112_v24, %v4111_v44 }
 0x59b   : > { %v3612_v35 = vpop.f32.mrb[146].mxu0  ;;  %10522 = vst [vmem:[#allocation44_spill] sm:$0xff] %v8446_v22  ;;  %v3970_v61 = vadd.f32 %v3969_v57, %v8446_v22 }
 0x59c   : > { %v3614_v0 = vpop.f32.mrb[147].mxu0  ;;  %v8450_v15 = vadd.f32 %v3612_v35, %v8210_v27  ;;  %5731 = vmatprep.subr.bf16.mxu1 %v5730_v38 }
 0x59d   : > { %v8454_v18 = vadd.f32 %v3614_v0, %v8215_v14 }
 0x59e   : > { %10523 = vst [vmem:[#allocation45_spill] sm:$0xff] %v8450_v15  ;;  %v3934_v21 = vadd.f32 %v3933_v32, %v8450_v15 }
 0x59f   : > { %v3618_v17 = vpop.f32.mrb[148].mxu0  ;;  %10524 = vst [vmem:[#allocation46_spill] sm:$0xff] %v8454_v18  ;;  %v3971_v40 = vadd.f32 %v3970_v61, %v8454_v18 }
 0x5a0   : > { %v3620_v5 = vpop.f32.mrb[149].mxu0  ;;  %v8464_v20 = vadd.f32 %v3618_v17, %v8210_v27 }
 0x5a1   : > { %v8468_v0 = vadd.f32 %v3620_v5, %v8215_v14 }
 0x5a2   : > { %10525 = vst [vmem:[#allocation47_spill] sm:$0xff] %v8464_v20  ;;  %v3935_v10 = vadd.f32 %v3934_v21, %v8464_v20  ;;  %v3386_v20 = vsub.s32 2, %v8189_v29 }
 0x5a3   : > { %v3624_v2 = vpop.f32.mrb[150].mxu0  ;;  %10526 = vst [vmem:[#allocation48_spill] sm:$0xff] %v8468_v0  ;;  %v3972_v5 = vadd.f32 %v3971_v40, %v8468_v0 }
 0x5a4   : > { %v3626_v11 = vpop.f32.mrb[151].mxu0  ;;  %v8472_v8 = vadd.f32 %v3624_v2, %v8210_v27 }
 0x5a5   : > { %v8476_v52 = vadd.f32 %v3626_v11, %v8215_v14 }
 0x5a6   : > { %10527 = vst [vmem:[#allocation49_spill] sm:$0xff] %v8472_v8  ;;  %v3936_v2 = vadd.f32 %v3935_v10, %v8472_v8 }
 0x5a7   : > { %v3630_v25 = vpop.f32.mrb[152].mxu0  ;;  %10528 = vst [vmem:[#allocation50_spill] sm:$0xff] %v8476_v52  ;;  %v3973_v11 = vadd.f32 %v3972_v5, %v8476_v52 }
 0x5a8   : > { %v3632_v35 = vpop.f32.mrb[153].mxu0  ;;  %v8480_v44 = vadd.f32 %v3630_v25, %v8210_v27 }
 0x5a9   : > { %v8484_v24 = vadd.f32 %v3632_v35, %v8215_v14 }
 0x5aa   : > { %10529 = vst [vmem:[#allocation51_spill] sm:$0xff] %v8480_v44  ;;  %v3937_v25 = vadd.f32 %v3936_v2, %v8480_v44 }
 0x5ab   : > { %v3636_v17 = vpop.f32.mrb[154].mxu0  ;;  %10530 = vst [vmem:[#allocation52_spill] sm:$0xff] %v8484_v24  ;;  %v3974_v35 = vadd.f32 %v3973_v11, %v8484_v24 }
 0x5ac   : > { %v3638_v57 = vpop.f32.mrb[155].mxu0  ;;  %v8488_v38 = vadd.f32 %v3636_v17, %v8210_v27 }
 0x5ad   : > { %v8492_v32 = vadd.f32 %v3638_v57, %v8215_v14 }
 0x5ae   : > { %10531 = vst [vmem:[#allocation53_spill] sm:$0xff] %v8488_v38  ;;  %v3938_v10 = vadd.f32 %v3937_v25, %v8488_v38 }
 0x5af   : > { %10532 = vst [vmem:[#allocation54_spill] sm:$0xff] %v8492_v32  ;;  %v3642_v21 = vpop.f32.mrb[156].mxu0  ;;  %v3975_v17 = vadd.f32 %v3974_v35, %v8492_v32 }
 0x5b0   : > { %v8496_v61 = vadd.f32 %v3642_v21, %v8210_v27  ;;  %v3644_v40 = vpop.f32.mrb[157].mxu0 }
 0x5b1   : > { %v8500_v0 = vadd.f32 %v3644_v40, %v8215_v14 }
 0x5b2   : > { %10533 = vst [vmem:[#allocation55_spill] sm:$0xff] %v8496_v61  ;;  %v3939_v57 = vadd.f32 %v3938_v10, %v8496_v61 }
 0x5b3   : > { %10534 = vst [vmem:[#allocation56_spill] sm:$0xff] %v8500_v0  ;;  %v3648_v5 = vpop.f32.mrb[158].mxu0  ;;  %v3976_v21 = vadd.f32 %v3975_v17, %v8500_v0 }
 0x5b4   : > { %v8506_v52 = vadd.f32 %v3648_v5, %v8210_v27  ;;  %v3650_v2 = vpop.f32.mrb[159].mxu0 }
 0x5b5   : > { %v8510_v18 = vadd.f32 %v3650_v2, %v8215_v14 }
 0x5b6   : > { %10535 = vst [vmem:[#allocation57_spill] sm:$0xff] %v8506_v52  ;;  %v3940_v11 = vadd.f32 %v3939_v57, %v8506_v52  ;;  %v4125_v52 = vld [vmem:[%s10282_s7 + $0x1f0] sm:$0xff] }
 0x5b7   : > { %10536 = vst [vmem:[#allocation58_spill] sm:$0xff] %v8510_v18  ;;  %v3977_v40 = vadd.f32 %v3976_v21, %v8510_v18  ;;  %v8514_v24 = vpop.f32.mrb[160].mxu0 }
 0x5b8   : > { %v3941_v25 = vrot.slane %v3940_v11, 4  ;;  %v8516_v35 = vpop.f32.mrb[161].mxu0 }
 0x5b9   : > { %v3978_v32 = vrot.slane %v3977_v40, 4 }
 0x5ba   : > { %v3942_v10 = vadd.f32 %v3941_v25, %v3940_v11  ;;  %v4095_v11 = vld [vmem:[%s10282_s7 + $0x100] sm:$0xff] }
 0x5bb   : > { %v3979_v22 = vadd.f32 %v3978_v32, %v3977_v40  ;;  %v8518_v27 = vpop.f32.mrb[162].mxu0  ;;  %v4096_v32 = vld [vmem:[%s10282_s7 + $0x108] sm:$0xff] }
 0x5bc   : > { %v3943_v5 = vrot.slane %v3942_v10, 2  ;;  %v8520_v36 = vpop.f32.mrb[163].mxu0 }
 0x5bd   : > { %v3980_v17 = vrot.slane %v3979_v22, 2 }
 0x5be   : > { %v3944_v14 = vadd.f32 %v3943_v5, %v3942_v10  ;;  %v4114_v10 = vld [vmem:[%s10282_s7 + $0x198] sm:$0xff] }
 0x5bf   : > { %v8522_v2 = vpop.f32.mrb[164].mxu0  ;;  %v3981_v57 = vadd.f32 %v3980_v17, %v3979_v22  ;;  %v4113_v22 = vld [vmem:[%s10282_s7 + $0x190] sm:$0xff]  ;;  %v5732_v17 = vpack.c.bf16 %v4096_v32, %v4095_v11 }
 0x5c0   : > { %v3945_v0 = vrot.slane %v3944_v14, 1  ;;  %v8524_v21 = vpop.f32.mrb[165].mxu0  ;;  %v5734_v12 = vpack.c.bf16 %v4114_v10, %v4113_v22  ;;  %v4099_v22 = vld [vmem:[%s10282_s7 + $0x120] sm:$0xff]  ;;  %v4100_v10 = vld [vmem:[%s10282_s7 + $0x128] sm:$0xff] }
 0x5c1   : > { %v3982_v18 = vrot.slane %v3981_v57, 1 }
 0x5c2   : > { %v3946_v41 = vadd.f32 %v3945_v0, %v3944_v14 }
 0x5c3   : > { %v8532_v40 = vpop.f32.mrb[166].mxu0  ;;  %v3983_v25 = vadd.f32 %v3982_v18, %v3981_v57  ;;  %v4098_v18 = vld [vmem:[%s10282_s7 + $0x118] sm:$0xff] }
 0x5c4   : > { %v8540_v0 = vpop.f32.mrb[167].mxu0  ;;  %v4059_v14 = vmul.f32 0.00390625, %v3946_v41  ;;  %v4116_v41 = vld [vmem:[%s10282_s7 + $0x1a8] sm:$0xff]  ;;  %v5736_v32 = vpack.c.bf16 %v4098_v18, %v4097_v33  ;;  %v4118_v33 = vld [vmem:[%s10282_s7 + $0x1b8] sm:$0xff] }
 0x5c5   : > { %v4060_v5 = vmul.f32 0.00390625, %v3983_v25  ;;  %v5738_v25 = vpack.c.bf16 %v4116_v41, %v4115_v34  ;;  %v5740_v34 = vpack.c.bf16 %v4100_v10, %v4099_v22  ;;  %v4102_v18 = vld [vmem:[%s10282_s7 + $0x138] sm:$0xff]  ;;  %v4103_v10 = vld [vmem:[%s10282_s7 + $0x140] sm:$0xff] }
 0x5c7   : > { %v8548_v57 = vpop.f32.mrb[168].mxu0  ;;  %4191 = vmatprep.mubr.f32.mxu1 %v4060_v5 }
 0x5c8   : > { %v8556_v11 = vpop.f32.mrb[169].mxu0  ;;  %4192 = vmatmul.mubr.f32.vlgmr.msra.gmra.mrb[64].mxu1 %v4059_v14  ;;  %v4101_v14 = vld [vmem:[%s10282_s7 + $0x130] sm:$0xff] }
 0x5c9   : > { %5733 = vmatpush3.bf16.msra.mxu1 %v5732_v17  ;;  %v5742_v17 = vpack.c.bf16 %v4118_v33, %v4117_v30  ;;  %v5744_v30 = vpack.c.bf16 %v4102_v18, %v4101_v14  ;;  %v4104_v33 = vld [vmem:[%s10282_s7 + $0x148] sm:$0xff]  ;;  %v4105_v18 = vld [vmem:[%s10282_s7 + $0x150] sm:$0xff] }
 0x5ca   : > { %5735 = vmatprep.subr.bf16.mxu1 %v5734_v12 }
 0x5cb   : > { %v8564_v5 = vpop.f32.mrb[170].mxu0 }
 0x5cc   : > { %v8572_v12 = vpop.f32.mrb[171].mxu0 }
 0x5cd   : > { %5737 = vmatpush3.bf16.msra.mxu1 %v5736_v32  ;;  %v4120_v32 = vld [vmem:[%s10282_s7 + $0x1c8] sm:$0xff] }
 0x5ce   : > { %5739 = vmatprep.subr.bf16.mxu1 %v5738_v25  ;;  %v5746_v22 = vpack.c.bf16 %v4120_v32, %v4119_v60  ;;  %v5748_v60 = vpack.c.bf16 %v4104_v33, %v4103_v10  ;;  %v4106_v32 = vld [vmem:[%s10282_s7 + $0x158] sm:$0xff]  ;;  %v4107_v33 = vld [vmem:[%s10282_s7 + $0x160] sm:$0xff] }
 0x5cf   : > { %v8580_v41 = vpop.f32.mrb[172].mxu0 }
 0x5d0   : > { %v8588_v25 = vpop.f32.mrb[173].mxu0 }
 0x5d1   : > { %5741 = vmatpush3.bf16.msra.mxu1 %v5740_v34  ;;  %v4122_v34 = vld [vmem:[%s10282_s7 + $0x1d8] sm:$0xff] }
 0x5d2   : > { %5743 = vmatprep.subr.bf16.mxu1 %v5742_v17  ;;  %v5750_v14 = vpack.c.bf16 %v4122_v34, %v4121_v43  ;;  %v5752_v43 = vpack.c.bf16 %v4106_v32, %v4105_v18  ;;  %v4108_v34 = vld [vmem:[%s10282_s7 + $0x168] sm:$0xff]  ;;  %v4109_v32 = vld [vmem:[%s10282_s7 + $0x170] sm:$0xff] }
 0x5d3   : > { %v8596_v3 = vpop.f32.mrb[174].mxu0 }
 0x5d4   : > { %v8604_v17 = vpop.f32.mrb[175].mxu0 }
 0x5d5   : > { %5745 = vmatpush3.bf16.msra.mxu1 %v5744_v30  ;;  %v4124_v30 = vld [vmem:[%s10282_s7 + $0x1e8] sm:$0xff] }
 0x5d6   : > { %5747 = vmatprep.subr.bf16.mxu1 %v5746_v22  ;;  %v5754_v10 = vpack.c.bf16 %v4124_v30, %v4123_v39  ;;  %v5756_v39 = vpack.c.bf16 %v4108_v34, %v4107_v33  ;;  %v4110_v30 = vld [vmem:[%s10282_s7 + $0x178] sm:$0xff] }
 0x5d7   : > { %v8612_v23 = vpop.f32.mrb[176].mxu0  ;;  %v5760_v44 = vpack.c.bf16 %v4110_v30, %v4109_v32 }
 0x5d8   : > { %v8620_v22 = vpop.f32.mrb[177].mxu0 }
 0x5d9   : > { %5749 = vmatpush3.bf16.msra.mxu1 %v5748_v60  ;;  %v4126_v60 = vld [vmem:[%s10282_s7 + $0x1f8] sm:$0xff] }
 0x5da   : > { %5751 = vmatprep.subr.bf16.mxu1 %v5750_v14  ;;  %v5758_v18 = vpack.c.bf16 %v4126_v60, %v4125_v52 }
 0x5db   : > { %v8628_v59 = vpop.f32.mrb[178].mxu0 }
 0x5dc   : > { %v8636_v14 = vpop.f32.mrb[179].mxu0 }
 0x5dd   : > { %5753 = vmatpush3.bf16.msra.mxu1 %v5752_v43 }
 0x5de   : > { %5755 = vmatprep.subr.bf16.mxu1 %v5754_v10 }
 0x5df   : > { %v8644_v61 = vpop.f32.mrb[180].mxu0 }
 0x5e0   : > { %v8646_v38 = vpop.f32.mrb[181].mxu0 }
 0x5e1   : > { %5757 = vmatpush3.bf16.msra.mxu1 %v5756_v39 }
 0x5e2   : > { %5759 = vmatprep.subr.bf16.mxu1 %v5758_v18  ;;  %v3390_v18 = vsub.s32 3, %v8189_v29 }
 0x5e3   : > { %v8648_v8 = vpop.f32.mrb[182].mxu0 }
 0x5e4   : > { %v8650_v43 = vpop.f32.mrb[183].mxu0  ;;  %v8674_v15 = vrot.slane %v8203_v49, %v3390_v18 }
 0x5e5   : > { %5761 = vmatpush3.bf16.msra.mxu1 %v5760_v44  ;;  %v8669_v44 = vrot.slane %v8203_v49, %v3386_v20 }
 0x5e6   : > { %v8682_v53 = vadd.f32 %v8520_v36, %v8674_v15  ;;  %v8702_v36 = vadd.f32 %v8524_v21, %v8674_v15  ;;  %v8714_v19 = vadd.f32 %v8540_v0, %v8674_v15 }
 0x5e7   : > { %v8652_v52 = vpop.f32.mrb[184].mxu0  ;;  %v8678_v28 = vadd.f32 %v8518_v27, %v8669_v44  ;;  %v8688_v29 = vadd.f32 %v8514_v24, %v8669_v44  ;;  %v8692_v20 = vadd.f32 %v8522_v2, %v8669_v44  ;;  %v8698_v27 = vadd.f32 %v8516_v35, %v8674_v15 }
 0x5e8   : > { %v8654_v10 = vpop.f32.mrb[185].mxu0  ;;  %10538 = vst [vmem:[#allocation60_spill] sm:$0xff] %v8682_v53  ;;  %10542 = vst [vmem:[#allocation64_spill] sm:$0xff] %v8702_v36  ;;  %v8708_v24 = vadd.f32 %v8532_v40, %v8669_v44  ;;  %v8721_v21 = vadd.f32 %v8548_v57, %v8669_v44  ;;  %v8733_v0 = vadd.f32 %v8564_v5, %v8669_v44 }
 0x5e9   : > { %10537 = vst [vmem:[#allocation59_spill] sm:$0xff] %v8678_v28  ;;  %10539 = vst [vmem:[#allocation61_spill] sm:$0xff] %v8688_v29  ;;  %v3984_v18 = vadd.f32 %v8678_v28, %v8688_v29  ;;  %v4021_v2 = vadd.f32 %v8682_v53, %v8698_v27  ;;  %v8728_v29 = vadd.f32 %v8556_v11, %v8674_v15 }
 0x5ea   : > { %10540 = vst [vmem:[#allocation62_spill] sm:$0xff] %v8692_v20  ;;  %10541 = vst [vmem:[#allocation63_spill] sm:$0xff] %v8698_v27  ;;  %v8738_v57 = vadd.f32 %v8572_v12, %v8674_v15  ;;  %v8748_v5 = vadd.f32 %v8588_v25, %v8674_v15  ;;  %v8753_v12 = vadd.f32 %v8596_v3, %v8669_v44 }
 0x5eb   : > { %v8656_v33 = vpop.f32.mrb[186].mxu0  ;;  %10543 = vst [vmem:[#allocation65_spill] sm:$0xff] %v8714_v19  ;;  %v3985_v58 = vadd.f32 %v3984_v18, %v8692_v20  ;;  %v4022_v40 = vadd.f32 %v4021_v2, %v8702_v36  ;;  %10544 = vst [vmem:[#allocation66_spill] sm:$0xff] %v8728_v29  ;;  %v8743_v2 = vadd.f32 %v8580_v41, %v8669_v44 }
 0x5ec   : > { %v8658_v34 = vpop.f32.mrb[187].mxu0  ;;  %10545 = vst [vmem:[#allocation67_spill] sm:$0xff] %v8738_v57  ;;  %10546 = vst [vmem:[#allocation68_spill] sm:$0xff] %v8748_v5  ;;  %v8768_v3 = vadd.f32 %v8620_v22, %v8674_v15 }
 0x5ed   : > { %v3986_v53 = vadd.f32 %v3985_v58, %v8708_v24  ;;  %v4023_v18 = vadd.f32 %v4022_v40, %v8714_v19 }
 0x5ee   : > { %10548 = vst [vmem:[#allocation70_spill] sm:$0xff] %v8768_v3 }
 0x5ef   : > { %v8660_v60 = vpop.f32.mrb[188].mxu0  ;;  %v3987_v20 = vadd.f32 %v3986_v53, %v8721_v21  ;;  %v4024_v58 = vadd.f32 %v4023_v18, %v8728_v29  ;;  %v8758_v53 = vadd.f32 %v8604_v17, %v8674_v15  ;;  %v8763_v18 = vadd.f32 %v8612_v23, %v8669_v44 }
 0x5f0   : > { %v8663_v39 = vpop.f32.mrb[189].mxu0  ;;  %v8773_v17 = vadd.f32 %v8628_v59, %v8669_v44  ;;  %v8788_v59 = vadd.f32 %v8646_v38, %v8674_v15 }
 0x5f1   : > { %v3988_v40 = vadd.f32 %v3987_v20, %v8733_v0  ;;  %v4025_v19 = vadd.f32 %v4024_v58, %v8738_v57  ;;  %10547 = vst [vmem:[#allocation69_spill] sm:$0xff] %v8758_v53 }
 0x5f2   : > { %10550 = vst [vmem:[#allocation72_spill] sm:$0xff] %v8788_v59 }
 0x5f3   : > { %v8666_v32 = vpop.f32.mrb[190].mxu0  ;;  %v3989_v36 = vadd.f32 %v3988_v40, %v8743_v2  ;;  %v4026_v20 = vadd.f32 %v4025_v19, %v8748_v5  ;;  %v8778_v40 = vadd.f32 %v8636_v14, %v8674_v15  ;;  %v8783_v19 = vadd.f32 %v8644_v61, %v8669_v44 }
 0x5f4   : > { %v8671_v30 = vpop.f32.mrb[191].mxu0  ;;  %v8793_v14 = vadd.f32 %v8648_v8, %v8669_v44  ;;  %v8808_v8 = vadd.f32 %v8654_v10, %v8674_v15 }
 0x5f5   : > { %v3990_v58 = vadd.f32 %v3989_v36, %v8753_v12  ;;  %v4027_v57 = vadd.f32 %v4026_v20, %v8758_v53  ;;  %10549 = vst [vmem:[#allocation71_spill] sm:$0xff] %v8778_v40 }
 0x5f6   : > { %10552 = vst [vmem:[#allocation74_spill] sm:$0xff] %v8808_v8 }
 0x5f7   : > { %v8684_v1 = vpop.f32.mrb[192].mxu0  ;;  %v3991_v29 = vadd.f32 %v3990_v58, %v8763_v18  ;;  %v4028_v36 = vadd.f32 %v4027_v57, %v8768_v3  ;;  %v8798_v58 = vadd.f32 %v8650_v43, %v8674_v15  ;;  %v8803_v57 = vadd.f32 %v8652_v52, %v8669_v44 }
 0x5f8   : > { %v8694_v49 = vpop.f32.mrb[193].mxu0  ;;  %v8813_v43 = vadd.f32 %v8656_v33, %v8669_v44  ;;  %v8828_v33 = vadd.f32 %v8663_v39, %v8674_v15 }
 0x5f9   : > { %v3992_v20 = vadd.f32 %v3991_v29, %v8773_v17  ;;  %v4029_v53 = vadd.f32 %v4028_v36, %v8778_v40  ;;  %10551 = vst [vmem:[#allocation73_spill] sm:$0xff] %v8798_v58 }
 0x5fa   : > { %10555 = vst [vmem:[#allocation77_spill] sm:$0xff] %v8828_v33 }
 0x5fb   : > { %v8716_v35 = vpop.f32.mrb[194].mxu0  ;;  %v3993_v5 = vadd.f32 %v3992_v20, %v8783_v19  ;;  %v4030_v29 = vadd.f32 %v4029_v53, %v8788_v59  ;;  %v8818_v20 = vadd.f32 %v8658_v34, %v8674_v15  ;;  %v8823_v53 = vadd.f32 %v8660_v60, %v8669_v44 }
 0x5fc   : > { %v8723_v28 = vpop.f32.mrb[195].mxu0  ;;  %v8833_v34 = vadd.f32 %v8666_v32, %v8669_v44  ;;  %v8848_v32 = vadd.f32 %v8694_v49, %v8674_v15 }
 0x5fd   : > { %v3994_v36 = vadd.f32 %v3993_v5, %v8793_v14  ;;  %v4031_v40 = vadd.f32 %v4030_v29, %v8798_v58  ;;  %10553 = vst [vmem:[#allocation75_spill] sm:$0xff] %v8818_v20  ;;  %10554 = vst [vmem:[#allocation76_spill] sm:$0xff] %v8823_v53 }
 0x5fe   : > { %10556 = vst [vmem:[#allocation78_spill] sm:$0xff] %v8833_v34  ;;  %10559 = vst [vmem:[#allocation81_spill] sm:$0xff] %v8848_v32 }
 0x5ff   : > { %v3827_v27 = vpop.f32.mrb[196].mxu0  ;;  %v3995_v3 = vadd.f32 %v3994_v36, %v8803_v57  ;;  %v4032_v5 = vadd.f32 %v4031_v40, %v8808_v8  ;;  %v8838_v36 = vadd.f32 %v8671_v30, %v8674_v15  ;;  %v8843_v40 = vadd.f32 %v8684_v1, %v8669_v44 }
 0x600   : > { %v3829_v11 = vpop.f32.mrb[197].mxu0  ;;  %v8853_v30 = vadd.f32 %v8716_v35, %v8669_v44 }
 0x601   : > { %v3996_v29 = vadd.f32 %v3995_v3, %v8813_v43  ;;  %v4033_v58 = vadd.f32 %v4032_v5, %v8818_v20  ;;  %10557 = vst [vmem:[#allocation79_spill] sm:$0xff] %v8838_v36  ;;  %10558 = vst [vmem:[#allocation80_spill] sm:$0xff] %v8843_v40 }
 0x602   : > { %10560 = vst [vmem:[#allocation82_spill] sm:$0xff] %v8853_v30 }
 0x603   : > { %v3833_v41 = vpop.f32.mrb[198].mxu0  ;;  %v3997_v59 = vadd.f32 %v3996_v29, %v8823_v53  ;;  %v4034_v3 = vadd.f32 %v4033_v58, %v8828_v33  ;;  %v8858_v29 = vadd.f32 %v8723_v28, %v8674_v15  ;;  %v8862_v58 = vadd.f32 %v3827_v27, %v8669_v44  ;;  %v10620_v53 = vld [vmem:[#allocation23_spill] sm:$0xff] }
 0x604   : > { %v3835_v25 = vpop.f32.mrb[199].mxu0 }
 0x605   : > { %v3998_v5 = vadd.f32 %v3997_v59, %v8833_v34  ;;  %v4035_v20 = vadd.f32 %v4034_v3, %v8838_v36  ;;  %10561 = vst [vmem:[#allocation83_spill] sm:$0xff] %v8858_v29  ;;  %10562 = vst [vmem:[#allocation84_spill] sm:$0xff] %v8862_v58  ;;  %v8866_v59 = vadd.f32 %v3829_v11, %v8674_v15  ;;  %v10618_v34 = vld [vmem:[#allocation26_spill] sm:$0xff] }
 0x606   : > { %v8870_v3 = vadd.f32 %v3833_v41, %v8669_v44  ;;  %v8874_v36 = vadd.f32 %v3835_v25, %v8674_v15  ;;  %v4269_v41 = vld [vmem:[%s10283_s8 + $0x8] sm:$0xff] }
 0x607   : > { %v3839_v23 = vpop.f32.mrb[200].mxu0  ;;  %v3999_v8 = vadd.f32 %v3998_v5, %v8843_v40  ;;  %v4036_v33 = vadd.f32 %v4035_v20, %v8848_v32  ;;  %10563 = vst [vmem:[#allocation85_spill] sm:$0xff] %v8866_v59  ;;  %v4273_v25 = vld [vmem:[%s10283_s8 + $0x28] sm:$0xff] }
 0x608   : > { %v3841_v22 = vpop.f32.mrb[201].mxu0  ;;  %10564 = vst [vmem:[#allocation86_spill] sm:$0xff] %v8870_v3  ;;  %10565 = vst [vmem:[#allocation87_spill] sm:$0xff] %v8874_v36  ;;  %v8878_v40 = vadd.f32 %v3839_v23, %v8669_v44  ;;  %v5762_v23 = vpack.c.bf16 %v4273_v25, %v4269_v41 }
 0x609   : > { %v4000_v35 = vadd.f32 %v3999_v8, %v8853_v30  ;;  %v4037_v28 = vadd.f32 %v4036_v33, %v8858_v29  ;;  %v8882_v32 = vadd.f32 %v3841_v22, %v8674_v15 }
 0x60a   : > { %10566 = vst [vmem:[#allocation88_spill] sm:$0xff] %v8878_v40  ;;  %5763 = vmatprep.subr.bf16.mxu1 %v5762_v23 }
 0x60b   : > { %v3845_v61 = vpop.f32.mrb[202].mxu0  ;;  %v4001_v27 = vadd.f32 %v4000_v35, %v8862_v58  ;;  %v4038_v11 = vadd.f32 %v4037_v28, %v8866_v59  ;;  %10567 = vst [vmem:[#allocation89_spill] sm:$0xff] %v8882_v32 }
 0x60c   : > { %v3847_v38 = vpop.f32.mrb[203].mxu0  ;;  %v8892_v33 = vadd.f32 %v3845_v61, %v8669_v44 }
 0x60d   : > { %v4002_v8 = vadd.f32 %v4001_v27, %v8870_v3  ;;  %v4039_v35 = vadd.f32 %v4038_v11, %v8874_v36  ;;  %v8896_v28 = vadd.f32 %v3847_v38, %v8674_v15  ;;  %v10616_v3 = vld [vmem:[#allocation21_spill] sm:$0xff] }
 0x60e   : > { %10568 = vst [vmem:[#allocation90_spill] sm:$0xff] %v8892_v33 }
 0x60f   : > { %v3851_v52 = vpop.f32.mrb[204].mxu0  ;;  %10569 = vst [vmem:[#allocation91_spill] sm:$0xff] %v8896_v28  ;;  %v4003_v59 = vadd.f32 %v4002_v8, %v8878_v40  ;;  %v4040_v30 = vadd.f32 %v4039_v35, %v8882_v32 }
 0x610   : > { %v3853_v10 = vpop.f32.mrb[205].mxu0  ;;  %v8900_v29 = vadd.f32 %v3851_v52, %v8669_v44 }
 0x611   : > { %v8904_v27 = vadd.f32 %v3853_v10, %v8674_v15  ;;  %v4004_v61 = vadd.f32 %v4003_v59, %v8892_v33  ;;  %v4041_v38 = vadd.f32 %v4040_v30, %v8896_v28 }
 0x612   : > { %10570 = vst [vmem:[#allocation92_spill] sm:$0xff] %v8900_v29 }
 0x613   : > { %v3857_v60 = vpop.f32.mrb[206].mxu0  ;;  %10571 = vst [vmem:[#allocation93_spill] sm:$0xff] %v8904_v27  ;;  %v4005_v52 = vadd.f32 %v4004_v61, %v8900_v29  ;;  %v4042_v10 = vadd.f32 %v4041_v38, %v8904_v27 }
 0x614   : > { %v3859_v39 = vpop.f32.mrb[207].mxu0  ;;  %v8908_v11 = vadd.f32 %v3857_v60, %v8669_v44 }
 0x615   : > { %v8912_v41 = vadd.f32 %v3859_v39, %v8674_v15 }
 0x616   : > { %10572 = vst [vmem:[#allocation94_spill] sm:$0xff] %v8908_v11  ;;  %v4006_v60 = vadd.f32 %v4005_v52, %v8908_v11 }
 0x617   : > { %v3863_v1 = vpop.f32.mrb[208].mxu0  ;;  %10573 = vst [vmem:[#allocation95_spill] sm:$0xff] %v8912_v41  ;;  %v4043_v39 = vadd.f32 %v4042_v10, %v8912_v41 }
 0x618   : > { %v3865_v49 = vpop.f32.mrb[209].mxu0  ;;  %v8916_v8 = vadd.f32 %v3863_v1, %v8669_v44 }
 0x619   : > { %v8920_v35 = vadd.f32 %v3865_v49, %v8674_v15 }
 0x61a   : > { %10574 = vst [vmem:[#allocation96_spill] sm:$0xff] %v8916_v8  ;;  %v4007_v1 = vadd.f32 %v4006_v60, %v8916_v8 }
 0x61b   : > { %v3869_v5 = vpop.f32.mrb[210].mxu0  ;;  %10575 = vst [vmem:[#allocation97_spill] sm:$0xff] %v8920_v35  ;;  %v4044_v49 = vadd.f32 %v4043_v39, %v8920_v35 }
 0x61c   : > { %v3871_v20 = vpop.f32.mrb[211].mxu0  ;;  %v8924_v59 = vadd.f32 %v3869_v5, %v8669_v44 }
 0x61d   : > { %v8928_v30 = vadd.f32 %v3871_v20, %v8674_v15 }
 0x61e   : > { %10576 = vst [vmem:[#allocation98_spill] sm:$0xff] %v8924_v59  ;;  %v4008_v5 = vadd.f32 %v4007_v1, %v8924_v59  ;;  %v10605_v59 = vld [vmem:[#allocation19_spill] sm:$0xff] }
 0x61f   : > { %v3875_v22 = vpop.f32.mrb[212].mxu0  ;;  %10577 = vst [vmem:[#allocation99_spill] sm:$0xff] %v8928_v30  ;;  %v4045_v20 = vadd.f32 %v4044_v49, %v8928_v30 }
 0x620   : > { %v3877_v58 = vpop.f32.mrb[213].mxu0  ;;  %v8932_v28 = vadd.f32 %v3875_v22, %v8669_v44 }
 0x621   : > { %v8936_v27 = vadd.f32 %v3877_v58, %v8674_v15 }
 0x622   : > { %10578 = vst [vmem:[#allocation100_spill] sm:$0xff] %v8932_v28  ;;  %v4009_v22 = vadd.f32 %v4008_v5, %v8932_v28 }
 0x623   : > { %v3881_v25 = vpop.f32.mrb[214].mxu0  ;;  %10579 = vst [vmem:[#allocation101_spill] sm:$0xff] %v8936_v27  ;;  %v4046_v58 = vadd.f32 %v4045_v20, %v8936_v27 }
 0x624   : > { %v3883_v23 = vpop.f32.mrb[215].mxu0  ;;  %v8940_v52 = vadd.f32 %v3881_v25, %v8669_v44 }
 0x625   : > { %v8944_v10 = vadd.f32 %v3883_v23, %v8674_v15 }
 0x626   : > { %10580 = vst [vmem:[#allocation102_spill] sm:$0xff] %v8940_v52  ;;  %v4010_v25 = vadd.f32 %v4009_v22, %v8940_v52 }
 0x627   : > { %v3887_v61 = vpop.f32.mrb[216].mxu0  ;;  %10581 = vst [vmem:[#allocation103_spill] sm:$0xff] %v8944_v10  ;;  %v4047_v23 = vadd.f32 %v4046_v58, %v8944_v10 }
 0x628   : > { %v3889_v38 = vpop.f32.mrb[217].mxu0  ;;  %v8948_v41 = vadd.f32 %v3887_v61, %v8669_v44 }
 0x629   : > { %v8952_v35 = vadd.f32 %v3889_v38, %v8674_v15 }
 0x62a   : > { %10582 = vst [vmem:[#allocation104_spill] sm:$0xff] %v8948_v41  ;;  %v4011_v61 = vadd.f32 %v4010_v25, %v8948_v41 }
 0x62b   : > { %v3893_v60 = vpop.f32.mrb[218].mxu0  ;;  %10583 = vst [vmem:[#allocation105_spill] sm:$0xff] %v8952_v35  ;;  %v4048_v38 = vadd.f32 %v4047_v23, %v8952_v35 }
 0x62c   : > { %v3895_v39 = vpop.f32.mrb[219].mxu0  ;;  %v8956_v1 = vadd.f32 %v3893_v60, %v8669_v44 }
 0x62d   : > { %v8960_v49 = vadd.f32 %v3895_v39, %v8674_v15 }
 0x62e   : > { %10584 = vst [vmem:[#allocation106_spill] sm:$0xff] %v8956_v1  ;;  %v4012_v60 = vadd.f32 %v4011_v61, %v8956_v1 }
 0x62f   : > { %10585 = vst [vmem:[#allocation107_spill] sm:$0xff] %v8960_v49  ;;  %v3899_v5 = vpop.f32.mrb[220].mxu0  ;;  %v4049_v22 = vadd.f32 %v4048_v38, %v8960_v49 }
 0x630   : > { %v8964_v30 = vadd.f32 %v3899_v5, %v8669_v44  ;;  %v3901_v20 = vpop.f32.mrb[221].mxu0 }
 0x631   : > { %v8968_v27 = vadd.f32 %v3901_v20, %v8674_v15 }
 0x632   : > { %10586 = vst [vmem:[#allocation108_spill] sm:$0xff] %v8964_v30  ;;  %v4013_v39 = vadd.f32 %v4012_v60, %v8964_v30 }
 0x633   : > { %10587 = vst [vmem:[#allocation109_spill] sm:$0xff] %v8968_v27  ;;  %v3905_v58 = vpop.f32.mrb[222].mxu0  ;;  %v4050_v5 = vadd.f32 %v4049_v22, %v8968_v27 }
 0x634   : > { %v8974_v10 = vadd.f32 %v3905_v58, %v8669_v44  ;;  %v3907_v25 = vpop.f32.mrb[223].mxu0 }
 0x635   : > { %v8978_v32 = vadd.f32 %v3907_v25, %v8674_v15  ;;  %v6191_v15 = vld [vmem:[#allocation2 + $0x8] sm:$0xff] }
 0x636   : > { %10588 = vst [vmem:[#allocation110_spill] sm:$0xff] %v8974_v10  ;;  %v4014_v23 = vadd.f32 %v4013_v39, %v8974_v10  ;;  %v4268_v39 = vld [vmem:[%s10283_s8] sm:$0xff]  ;;  %v10602_v10 = vld [vmem:[#allocation16_spill] sm:$0xff] }
 0x637   : > { %10589 = vst [vmem:[#allocation111_spill] sm:$0xff] %v8978_v32  ;;  %v4051_v20 = vadd.f32 %v4050_v5, %v8978_v32  ;;  %v4280_v5 = vld [vmem:[%s10283_s8 + $0x60] sm:$0xff] }
 0x638   : > { %v4015_v35 = vrot.slane %v4014_v23, 4 }
 0x639   : > { %v4052_v61 = vrot.slane %v4051_v20, 4 }
 0x63a   : > { %v4016_v36 = vadd.f32 %v4015_v35, %v4014_v23  ;;  %v4272_v35 = vld [vmem:[%s10283_s8 + $0x20] sm:$0xff] }
 0x63b   : > { %v4053_v38 = vadd.f32 %v4052_v61, %v4051_v20  ;;  %v4271_v20 = vld [vmem:[%s10283_s8 + $0x18] sm:$0xff] }
 0x63c   : > { %v4017_v49 = vrot.slane %v4016_v36, 2  ;;  %v4275_v61 = vld [vmem:[%s10283_s8 + $0x38] sm:$0xff] }
 0x63d   : > { %v4054_v1 = vrot.slane %v4053_v38, 2 }
 0x63e   : > { %v4018_v60 = vadd.f32 %v4017_v49, %v4016_v36 }
 0x63f   : > { %v4055_v30 = vadd.f32 %v4054_v1, %v4053_v38  ;;  %v5764_v1 = vpack.c.bf16 %v4272_v35, %v4268_v39  ;;  %v5770_v38 = vpack.c.bf16 %v4275_v61, %v4271_v20  ;;  %v4274_v39 = vld [vmem:[%s10283_s8 + $0x30] sm:$0xff]  ;;  %v4279_v35 = vld [vmem:[%s10283_s8 + $0x58] sm:$0xff] }
 0x640   : > { %v4019_v44 = vrot.slane %v4018_v60, 1 }
 0x641   : > { %v4056_v58 = vrot.slane %v4055_v30, 1 }
 0x642   : > { %v4020_v41 = vadd.f32 %v4019_v44, %v4018_v60 }
 0x643   : > { %v4057_v52 = vadd.f32 %v4056_v58, %v4055_v30 }
 0x644   : > { %v4061_v27 = vmul.f32 0.00390625, %v4020_v41  ;;  %v4277_v41 = vld [vmem:[%s10283_s8 + $0x48] sm:$0xff] }
 0x645   : > { %v4062_v22 = vmul.f32 0.00390625, %v4057_v52  ;;  %v4276_v52 = vld [vmem:[%s10283_s8 + $0x40] sm:$0xff] }
 0x646   : > { %v5768_v23 = vpack.c.bf16 %v4280_v5, %v4276_v52  ;;  %v4282_v52 = vld [vmem:[%s10283_s8 + $0x70] sm:$0xff] }
 0x647   : > { %4261 = vmatprep.mubr.f32.mxu1 %v4062_v22  ;;  %v4270_v22 = vld [vmem:[%s10283_s8 + $0x10] sm:$0xff] }
 0x648   : > { %4262 = vmatmul.mubr.f32.vlgmr.msra.gmra.mrb[66].mxu1 %v4061_v27  ;;  %v4281_v27 = vld [vmem:[%s10283_s8 + $0x68] sm:$0xff] }
 0x649   : > { %4352 = vmatprep.mubr.f32.mxu1 %v6191_v15  ;;  %5765 = vmatpush1.bf16.msra.mxu1 %v5764_v1  ;;  %v5766_v30 = vpack.c.bf16 %v4281_v27, %v4277_v41 }
 0x64b   : > { %5767 = vmatprep.subr.bf16.mxu1 %v5766_v30  ;;  %v4278_v30 = vld [vmem:[%s10283_s8 + $0x50] sm:$0xff] }
 0x64c   : > { %v5776_v5 = vpack.c.bf16 %v4282_v52, %v4278_v30 }
 0x64d   : > { %5769 = vmatpush1.bf16.msra.mxu1 %v5768_v23 }
 0x64e   : > { %5771 = vmatprep.subr.bf16.mxu1 %v5770_v38 }
 0x69b   : > { %v5196_v36 = vpop.f32.mrb[64].mxu1 }
 0x69c   : > { %v5197_v49 = vpop.f32.mrb[65].mxu1 }
 0x69d   : > { %v5198_v25 = vadd.f32 %v5197_v49, %v5196_v36  ;;  %v4283_v36 = vld [vmem:[%s10283_s8 + $0x78] sm:$0xff]  ;;  %v5772_v49 = vpack.c.bf16 %v4274_v39, %v4270_v22 }
 0x69e   : > { %v5774_v27 = vpack.c.bf16 %v4283_v36, %v4279_v35 }
 0x71b   : > { %v5231_v60 = vpop.f32.mrb[66].mxu1 }
 0x71c   : > { %v5232_v44 = vpop.f32.mrb[67].mxu1 }
 0x71d   : > { %v5233_v58 = vadd.f32 %v5232_v44, %v5231_v60 }
 0x71f   : > { %v4264_v1 = vadd.f32 %v5233_v58, %v5198_v25 }
 0x721   : > { %v4267_v41 = vmax.f32 %v4264_v1, 0.0 }
 0x723   : > { %5103 = vmatmul.mubr.msk.f32.vlgmr.msra.gmra.mrb[68].mxu1 %vm4284_vm0, %v4267_v41 }
 0x724   : > { %5773 = vmatpush1.bf16.msra.mxu1 %v5772_v49  ;;  %4423 = vmatprep.mubr.f32.mxu1 %v6191_v15 }
 0x725   : > { %5775 = vmatprep.subr.bf16.mxu1 %v5774_v27 }
 0x728   : > { %5777 = vmatpush1.bf16.msra.mxu1 %v5776_v5 }
 0x72b   : > { %5104 = vmatmul.mubr.msk.f32.vlgmr.msra.gmra.mrb[70].mxu1 %vm4284_vm0, %v4267_v41 }
 0x7f6   : > { %v4354_v25 = vpop.f32.mrb[68].mxu1 }
 0x7f7   : > { %v5105_v23 = vmul.f32 -1.442695, %v4354_v25  ;;  %v4356_v20 = vpop.f32.mrb[69].mxu1 }
 0x7f8   : > { %v5106_v61 = vmul.f32 -1.442695, %v4356_v20 }
 0x7f9   : > { %6173 = vpow2.f32 %v5105_v23 }
 0x7fa   : > { %6175 = vpow2.f32 %v5106_v61 }
 0x7fe   : > { %v4425_v38 = vpop.f32.mrb[70].mxu1 }
 0x7ff   : > { %v5107_v60 = vmul.f32 -1.442695, %v4425_v38  ;;  %v4427_v44 = vpop.f32.mrb[71].mxu1 }
 0x800   : > { %v5108_v58 = vmul.f32 -1.442695, %v4427_v44 }
 0x801   : > { %6177 = vpow2.f32 %v5107_v60 }
 0x802   : > { %6179 = vpow2.f32 %v5108_v58 }
 0x803   : > { %v6174_v22 = vpop.eup %6173 }
 0x804   : > { %v6176_v39 = vpop.eup %6175  ;;  %v4442_v35 = vadd.f32 1.0, %v6174_v22 }
 0x805   : > { %v4443_v36 = vadd.f32 1.0, %v6176_v39 }
 0x806   : > { %6181 = vrcp.f32 %v4442_v35 }
 0x807   : > { %6183 = vrcp.f32 %v4443_v36 }
 0x80b   : > { %v6178_v15 = vpop.eup %6177 }
 0x80c   : > { %v6180_v1 = vpop.eup %6179  ;;  %v4444_v49 = vadd.f32 1.0, %v6178_v15 }
 0x80d   : > { %v4445_v41 = vadd.f32 1.0, %v6180_v1 }
 0x80e   : > { %6185 = vrcp.f32 %v4444_v49  ;;  %v10597_v49 = vld [vmem:[#allocation49_spill] sm:$0xff] }
 0x80f   : > { %6187 = vrcp.f32 %v4445_v41 }
 0x810   : > { %v6182_v27 = vpop.eup %6181 }
 0x811   : > { %v6184_v30 = vpop.eup %6183  ;;  %v4457_v52 = vrot.slane %v6182_v27, %v8196_v4  ;;  %v10598_v27 = vld [vmem:[#allocation51_spill] sm:$0xff] }
 0x812   : > { %v9026_v5 = vrot.slane %v6184_v30, %v8196_v4 }
 0x813   : > { %v9029_v25 = vmul.f32 %v4457_v52, %v8229_v50  ;;  %v9032_v23 = vmul.f32 %v4457_v52, %v8219_v31  ;;  %v9035_v20 = vmul.f32 %v4457_v52, %v8233_v46  ;;  %v9038_v61 = vmul.f32 %v4457_v52, %v8249_v51 }
 0x814   : > { %v9041_v38 = vmul.f32 %v4457_v52, %v8261_v37  ;;  %v9044_v60 = vmul.f32 %v4457_v52, %v8271_v6  ;;  %v9047_v44 = vmul.f32 %v4457_v52, %v8279_v45  ;;  %v9050_v50 = vmul.f32 %v4457_v52, %v8287_v56 }
 0x815   : > { %v9053_v31 = vmul.f32 %v4457_v52, %v8295_v13  ;;  %v9056_v46 = vmul.f32 %v4457_v52, %v8305_v54  ;;  %v9059_v51 = vmul.f32 %v4457_v52, %v8315_v26  ;;  %v9062_v37 = vmul.f32 %v4457_v52, %v8325_v55 }
 0x816   : > { %v9065_v6 = vmul.f32 %v4457_v52, %v8335_v48  ;;  %v9068_v45 = vmul.f32 %v4457_v52, %v8345_v47  ;;  %v9071_v56 = vmul.f32 %v4457_v52, %v8355_v63  ;;  %v9074_v13 = vmul.f32 %v4457_v52, %v8365_v7  ;;  %v10590_v47 = vld [vmem:[#allocation35_spill] sm:$0xff]  ;;  %v10591_v63 = vld [vmem:[#allocation37_spill] sm:$0xff] }
 0x817   : > { %v9077_v54 = vmul.f32 %v4457_v52, %v8375_v42  ;;  %v9080_v26 = vmul.f32 %v4457_v52, %v8385_v16  ;;  %v9083_v55 = vmul.f32 %v4457_v52, %v8394_v9  ;;  %v9086_v48 = vmul.f32 %v4457_v52, %v8402_v62  ;;  %v10592_v7 = vld [vmem:[#allocation39_spill] sm:$0xff]  ;;  %v10593_v42 = vld [vmem:[#allocation41_spill] sm:$0xff] }
 0x818   : > { %v9089_v58 = vmul.f32 %v4457_v52, %v10590_v47  ;;  %v9092_v22 = vmul.f32 %v4457_v52, %v10591_v63  ;;  %v9095_v39 = vmul.f32 %v4457_v52, %v10592_v7  ;;  %v9098_v35 = vmul.f32 %v4457_v52, %v10593_v42  ;;  %v10594_v16 = vld [vmem:[#allocation43_spill] sm:$0xff]  ;;  %v10595_v9 = vld [vmem:[#allocation45_spill] sm:$0xff] }
 0x819   : > { %v9101_v36 = vmul.f32 %v4457_v52, %v10594_v16  ;;  %v9104_v15 = vmul.f32 %v4457_v52, %v10595_v9  ;;  %v10596_v62 = vld [vmem:[#allocation47_spill] sm:$0xff]  ;;  %v9110_v41 = vmul.f32 %v4457_v52, %v10597_v49  ;;  %v9113_v30 = vmul.f32 %v4457_v52, %v10598_v27  ;;  %v10599_v47 = vld [vmem:[#allocation53_spill] sm:$0xff]  ;;  %v9124_v9 = vpop.eup %6185 }
 0x81a   : > { %v9107_v1 = vmul.f32 %v4457_v52, %v10596_v62  ;;  %v9116_v63 = vmul.f32 %v4457_v52, %v10599_v47  ;;  %v10600_v7 = vld [vmem:[#allocation55_spill] sm:$0xff]  ;;  %v10601_v16 = vld [vmem:[#allocation57_spill] sm:$0xff]  ;;  %v9128_v62 = vmul.f32 %v9026_v5, %v10602_v10  ;;  %v10608_v10 = vld [vmem:[#allocation24_spill] sm:$0xff] }
 0x81b   : > { %v9119_v42 = vmul.f32 %v4457_v52, %v10600_v7  ;;  %v9122_v32 = vmul.f32 %v4457_v52, %v10601_v16  ;;  %v10603_v49 = vld [vmem:[#allocation15_spill] sm:$0xff]  ;;  %v10604_v27 = vld [vmem:[#allocation17_spill] sm:$0xff]  ;;  %v9140_v7 = vmul.f32 %v9026_v5, %v10605_v59  ;;  %v9142_v52 = vpop.eup %6187  ;;  %v10607_v16 = vld [vmem:[#allocation20_spill] sm:$0xff]  ;;  %v9150_v11 = vmul.f32 %v9026_v5, %v10608_v10 }
 0x81c   : > { %v9132_v28 = vmul.f32 %v9026_v5, %v10603_v49  ;;  %v9136_v47 = vmul.f32 %v9026_v5, %v10604_v27  ;;  %10606 = vst [vmem:[#allocation35_spill] sm:$0xff] %v9142_v52  ;;  %v9146_v8 = vmul.f32 %v9026_v5, %v10607_v16  ;;  %v10609_v49 = vld [vmem:[#allocation25_spill] sm:$0xff]  ;;  %v10610_v27 = vld [vmem:[#allocation18_spill] sm:$0xff]  ;;  %v10614_v52 = vld [vmem:[#allocation27_spill] sm:$0xff]  ;;  %v9170_v10 = vmul.f32 %v9026_v5, %v10616_v3 }
 0x81d   : > { %v9154_v29 = vmul.f32 %v9026_v5, %v10609_v49  ;;  %v9158_v33 = vmul.f32 %v9026_v5, %v10610_v27  ;;  %v10612_v59 = vld [vmem:[#allocation22_spill] sm:$0xff]  ;;  %v9166_v16 = vmul.f32 %v9026_v5, %v10614_v52  ;;  %v9174_v49 = vmul.f32 %v9026_v5, %v10618_v34 }
 0x81e   : > { %v9162_v40 = vmul.f32 %v9026_v5, %v10612_v59  ;;  %10617 = vst [vmem:[#allocation43_spill] sm:$0xff] %v9170_v10  ;;  %v9178_v27 = vmul.f32 %v9026_v5, %v10620_v53  ;;  %v10627_v10 = vld [vmem:[#allocation30_spill] sm:$0xff] }
 0x81f   : > { %10611 = vst [vmem:[#allocation37_spill] sm:$0xff] %v9158_v33  ;;  %10615 = vst [vmem:[#allocation41_spill] sm:$0xff] %v9166_v16  ;;  %v10622_v33 = vld [vmem:[#allocation29_spill] sm:$0xff]  ;;  %v10625_v16 = vld [vmem:[#allocation31_spill] sm:$0xff]  ;;  %v9194_v34 = vmul.f32 %v9026_v5, %v10627_v10 }
 0x820   : > { %10613 = vst [vmem:[#allocation39_spill] sm:$0xff] %v9162_v40  ;;  %10619 = vst [vmem:[#allocation45_spill] sm:$0xff] %v9174_v49  ;;  %v9182_v59 = vmul.f32 %v9026_v5, %v10622_v33  ;;  %v10624_v40 = vld [vmem:[#allocation28_spill] sm:$0xff]  ;;  %v9190_v3 = vmul.f32 %v9026_v5, %v10625_v16  ;;  %v10637_v10 = vld [vmem:[#allocation38_spill] sm:$0xff] }
 0x821   : > { %10621 = vst [vmem:[#allocation47_spill] sm:$0xff] %v9178_v27  ;;  %v9186_v52 = vmul.f32 %v9026_v5, %v10624_v40  ;;  %10628 = vst [vmem:[#allocation53_spill] sm:$0xff] %v9194_v34  ;;  %v10629_v49 = vld [vmem:[#allocation32_spill] sm:$0xff]  ;;  %v10631_v27 = vld [vmem:[#allocation33_spill] sm:$0xff]  ;;  %v9214_v34 = vmul.f32 %v9026_v5, %v10637_v10 }
 0x822   : > { %10623 = vst [vmem:[#allocation49_spill] sm:$0xff] %v9182_v59  ;;  %10626 = vst [vmem:[#allocation51_spill] sm:$0xff] %v9190_v3  ;;  %v9198_v53 = vmul.f32 %v9026_v5, %v10629_v49  ;;  %v9202_v33 = vmul.f32 %v9026_v5, %v10631_v27  ;;  %v10633_v59 = vld [vmem:[#allocation34_spill] sm:$0xff]  ;;  %v10635_v16 = vld [vmem:[#allocation36_spill] sm:$0xff] }
 0x823   : > { %v9206_v40 = vmul.f32 %v9026_v5, %v10633_v59  ;;  %v9210_v3 = vmul.f32 %v9026_v5, %v10635_v16  ;;  %10638 = vst [vmem:[#allocation17_spill] sm:$0xff] %v9214_v34  ;;  %v10639_v49 = vld [vmem:[#allocation40_spill] sm:$0xff]  ;;  %v10641_v27 = vld [vmem:[#allocation42_spill] sm:$0xff] }
 0x824   : > { %10630 = vst [vmem:[#allocation55_spill] sm:$0xff] %v9198_v53  ;;  %10632 = vst [vmem:[#allocation57_spill] sm:$0xff] %v9202_v33  ;;  %v9218_v53 = vmul.f32 %v9026_v5, %v10639_v49  ;;  %v9222_v33 = vmul.f32 %v9026_v5, %v10641_v27  ;;  %v10643_v59 = vld [vmem:[#allocation44_spill] sm:$0xff]  ;;  %v10645_v16 = vld [vmem:[#allocation46_spill] sm:$0xff] }
 0x825   : > { %10634 = vst [vmem:[#allocation16_spill] sm:$0xff] %v9206_v40  ;;  %10636 = vst [vmem:[#allocation15_spill] sm:$0xff] %v9210_v3  ;;  %v9226_v40 = vmul.f32 %v9026_v5, %v10643_v59  ;;  %v9230_v3 = vmul.f32 %v9026_v5, %v10645_v16  ;;  %v10647_v10 = vld [vmem:[#allocation48_spill] sm:$0xff]  ;;  %v10649_v49 = vld [vmem:[#allocation50_spill] sm:$0xff] }
 0x826   : > { %10640 = vst [vmem:[#allocation19_spill] sm:$0xff] %v9218_v53  ;;  %10642 = vst [vmem:[#allocation20_spill] sm:$0xff] %v9222_v33  ;;  %v9234_v34 = vmul.f32 %v9026_v5, %v10647_v10  ;;  %v9238_v53 = vmul.f32 %v9026_v5, %v10649_v49  ;;  %v10651_v27 = vld [vmem:[#allocation52_spill] sm:$0xff]  ;;  %v10653_v59 = vld [vmem:[#allocation54_spill] sm:$0xff] }
 0x827   : > { %10644 = vst [vmem:[#allocation24_spill] sm:$0xff] %v9226_v40  ;;  %10646 = vst [vmem:[#allocation25_spill] sm:$0xff] %v9230_v3  ;;  %v9242_v33 = vmul.f32 %v9026_v5, %v10651_v27  ;;  %v9246_v40 = vmul.f32 %v9026_v5, %v10653_v59  ;;  %v10654_v16 = vld [vmem:[#allocation56_spill] sm:$0xff]  ;;  %v10656_v10 = vld [vmem:[#allocation58_spill] sm:$0xff] }
 0x828   : > { %10648 = vst [vmem:[#allocation18_spill] sm:$0xff] %v9234_v34  ;;  %10650 = vst [vmem:[#allocation22_spill] sm:$0xff] %v9238_v53  ;;  %v9250_v3 = vmul.f32 %v9026_v5, %v10654_v16  ;;  %v9254_v34 = vmul.f32 %v9026_v5, %v10656_v10  ;;  %v6192_v49 = vld [vmem:[%s6724_s26] sm:$0xff] }
 0x829   : > { %10652 = vst [vmem:[#allocation27_spill] sm:$0xff] %v9242_v33  ;;  %v9258_v53 = vadd.f32 %v6192_v49, %v9029_v25  ;;  %v6193_v27 = vld [vmem:[%s6724_s26 + $0x20] sm:$0xff] }
 0x82a   : > { %10655 = vst [vmem:[#allocation21_spill] sm:$0xff] %v9250_v3  ;;  %v9262_v33 = vadd.f32 %v6193_v27, %v9032_v23  ;;  %v6194_v59 = vld [vmem:[%s6724_s26 + $0x40] sm:$0xff] }
 0x82b   : > { %v9266_v16 = vadd.f32 %v6194_v59, %v9035_v20  ;;  %v6195_v3 = vld [vmem:[%s6724_s26 + $0x60] sm:$0xff] }
 0x82c   : > { %v9270_v5 = vadd.f32 %v6195_v3, %v9038_v61  ;;  %v6196_v10 = vld [vmem:[%s6724_s26 + $0x80] sm:$0xff] }
 0x82d   : > { %v9274_v25 = vadd.f32 %v6196_v10, %v9041_v38  ;;  %v6197_v49 = vld [vmem:[%s6724_s26 + $0xa0] sm:$0xff] }
 0x82e   : > { %v9278_v23 = vadd.f32 %v6197_v49, %v9044_v60  ;;  %v6198_v27 = vld [vmem:[%s6724_s26 + $0xc0] sm:$0xff] }
 0x82f   : > { %v9282_v20 = vadd.f32 %v6198_v27, %v9047_v44  ;;  %v6199_v59 = vld [vmem:[%s6724_s26 + $0xe0] sm:$0xff] }
 0x830   : > { %v9286_v61 = vadd.f32 %v6199_v59, %v9050_v50  ;;  %v6200_v3 = vld [vmem:[%s6724_s26 + $0x100] sm:$0xff] }
 0x831   : > { %v9290_v38 = vadd.f32 %v6200_v3, %v9053_v31  ;;  %v6201_v10 = vld [vmem:[%s6724_s26 + $0x120] sm:$0xff] }
 0x832   : > { %v9294_v60 = vadd.f32 %v6201_v10, %v9056_v46  ;;  %v6202_v49 = vld [vmem:[%s6724_s26 + $0x140] sm:$0xff] }
 0x833   : > { %v9298_v44 = vadd.f32 %v6202_v49, %v9059_v51  ;;  %v6203_v27 = vld [vmem:[%s6724_s26 + $0x160] sm:$0xff] }
 0x834   : > { %v9302_v50 = vadd.f32 %v6203_v27, %v9062_v37  ;;  %v6204_v59 = vld [vmem:[%s6724_s26 + $0x180] sm:$0xff] }
 0x835   : > { %v9306_v31 = vadd.f32 %v6204_v59, %v9065_v6  ;;  %v6205_v3 = vld [vmem:[%s6724_s26 + $0x1a0] sm:$0xff] }
 0x836   : > { %v9310_v46 = vadd.f32 %v6205_v3, %v9068_v45  ;;  %v6206_v10 = vld [vmem:[%s6724_s26 + $0x1c0] sm:$0xff] }
 0x837   : > { %v9314_v51 = vadd.f32 %v6206_v10, %v9071_v56  ;;  %v6207_v49 = vld [vmem:[%s6724_s26 + $0x1e0] sm:$0xff] }
 0x838   : > { %v9318_v37 = vadd.f32 %v6207_v49, %v9074_v13  ;;  %v6208_v27 = vld [vmem:[%s6724_s26 + $0x200] sm:$0xff] }
 0x839   : > { %v9322_v6 = vadd.f32 %v6208_v27, %v9077_v54  ;;  %v6209_v59 = vld [vmem:[%s6724_s26 + $0x220] sm:$0xff] }
 0x83a   : > { %v9326_v45 = vadd.f32 %v6209_v59, %v9080_v26  ;;  %v6210_v3 = vld [vmem:[%s6724_s26 + $0x240] sm:$0xff] }
 0x83b   : > { %v9330_v56 = vadd.f32 %v6210_v3, %v9083_v55  ;;  %v6211_v10 = vld [vmem:[%s6724_s26 + $0x260] sm:$0xff] }
 0x83c   : > { %v9334_v13 = vadd.f32 %v6211_v10, %v9086_v48  ;;  %v6212_v49 = vld [vmem:[%s6724_s26 + $0x280] sm:$0xff] }
 0x83d   : > { %v9338_v54 = vadd.f32 %v6212_v49, %v9089_v58  ;;  %v6213_v27 = vld [vmem:[%s6724_s26 + $0x2a0] sm:$0xff] }
 0x83e   : > { %10657 = vst [vmem:[#allocation26_spill] sm:$0xff] %v9334_v13  ;;  %v9342_v26 = vadd.f32 %v6213_v27, %v9092_v22  ;;  %v6214_v59 = vld [vmem:[%s6724_s26 + $0x2c0] sm:$0xff] }
 0x83f   : > { %v9346_v55 = vadd.f32 %v6214_v59, %v9095_v39  ;;  %v6215_v3 = vld [vmem:[%s6724_s26 + $0x2e0] sm:$0xff] }
 0x840   : > { %v9350_v48 = vadd.f32 %v6215_v3, %v9098_v35  ;;  %v6216_v10 = vld [vmem:[%s6724_s26 + $0x300] sm:$0xff] }
 0x841   : > { %v9354_v13 = vadd.f32 %v6216_v10, %v9101_v36  ;;  %v6217_v58 = vld [vmem:[%s6724_s26 + $0x320] sm:$0xff] }
 0x842   : > { %v9358_v49 = vadd.f32 %v6217_v58, %v9104_v15  ;;  %v6218_v22 = vld [vmem:[%s6724_s26 + $0x340] sm:$0xff] }
 0x843   : > { %v9362_v27 = vadd.f32 %v6218_v22, %v9107_v1  ;;  %v6219_v39 = vld [vmem:[%s6724_s26 + $0x360] sm:$0xff]  ;;  %v4465_v22 = vrot.slane %v9124_v9, %v8196_v4  ;;  %v6229_v9 = vld [vmem:[%s6724_s26 + $0xa8] sm:$0xff] }
 0x844   : > { %v9366_v59 = vadd.f32 %v6219_v39, %v9110_v41  ;;  %v6220_v35 = vld [vmem:[%s6724_s26 + $0x380] sm:$0xff] }
 0x845   : > { %v9370_v36 = vadd.f32 %v6220_v35, %v9113_v30  ;;  %v6221_v3 = vld [vmem:[%s6724_s26 + $0x3a0] sm:$0xff]  ;;  %v6224_v30 = vld [vmem:[%s6724_s26 + $0x8] sm:$0xff] }
 0x846   : > { %v9374_v15 = vadd.f32 %v6221_v3, %v9116_v63  ;;  %v6222_v10 = vld [vmem:[%s6724_s26 + $0x3c0] sm:$0xff]  ;;  %v9388_v39 = vadd.f32 %v6224_v30, %v9128_v62  ;;  %v6225_v35 = vld [vmem:[%s6724_s26 + $0x28] sm:$0xff]  ;;  %v9408_v62 = vadd.f32 %v6229_v9, %v9150_v11  ;;  %v9430_v11 = vmul.f32 %v4465_v22, %v8733_v0 }
 0x847   : > { %v9378_v1 = vadd.f32 %v6222_v10, %v9119_v42  ;;  %v6223_v58 = vld [vmem:[%s6724_s26 + $0x3e0] sm:$0xff]  ;;  %v9392_v63 = vadd.f32 %v6225_v35, %v9132_v28  ;;  %v6226_v3 = vld [vmem:[%s6724_s26 + $0x48] sm:$0xff]  ;;  %v10666_v35 = vld [vmem:[#allocation61_spill] sm:$0xff]  ;;  %v9436_v9 = vmul.f32 %v4465_v22, %v8753_v12  ;;  %v9451_v0 = vmul.f32 %v4465_v22, %v8803_v57 }
 0x848   : > { %v9382_v41 = vadd.f32 %v6223_v58, %v9122_v32  ;;  %10659 = vst [vmem:[#allocation29_spill] sm:$0xff] %v9388_v39  ;;  %v9396_v42 = vadd.f32 %v6226_v3, %v9136_v47  ;;  %v6227_v10 = vld [vmem:[%s6724_s26 + $0x68] sm:$0xff]  ;;  %10664 = vst [vmem:[#allocation33_spill] sm:$0xff] %v9408_v62  ;;  %v10667_v47 = vld [vmem:[#allocation59_spill] sm:$0xff] }
 0x849   : > { %10658 = vst [vmem:[#allocation23_spill] sm:$0xff] %v9378_v1  ;;  %10660 = vst [vmem:[#allocation28_spill] sm:$0xff] %v9392_v63  ;;  %v9400_v1 = vadd.f32 %v6227_v10, %v9140_v7  ;;  %v6228_v32 = vld [vmem:[%s6724_s26 + $0x88] sm:$0xff]  ;;  %v9415_v63 = vmul.f32 %v4465_v22, %v10666_v35  ;;  %v9418_v3 = vmul.f32 %v4465_v22, %v10667_v47  ;;  %v10668_v7 = vld [vmem:[#allocation62_spill] sm:$0xff] }
 0x84a   : > { %10661 = vst [vmem:[#allocation31_spill] sm:$0xff] %v9396_v42  ;;  %v9404_v58 = vadd.f32 %v6228_v32, %v9146_v8  ;;  %v6230_v30 = vld [vmem:[%s6724_s26 + $0xc8] sm:$0xff]  ;;  %v9421_v10 = vmul.f32 %v4465_v22, %v10668_v7  ;;  %v9424_v8 = vmul.f32 %v4465_v22, %v8708_v24  ;;  %v9427_v32 = vmul.f32 %v4465_v22, %v8721_v21  ;;  %v10679_v57 = vld [vmem:[#allocation86_spill] sm:$0xff] }
 0x84b   : > { %10662 = vst [vmem:[#allocation30_spill] sm:$0xff] %v9400_v1  ;;  %v9412_v28 = vadd.f32 %v6230_v30, %v9154_v29  ;;  %v9433_v29 = vmul.f32 %v4465_v22, %v8743_v2  ;;  %v9439_v30 = vmul.f32 %v4465_v22, %v8763_v18  ;;  %v9442_v35 = vmul.f32 %v4465_v22, %v8773_v17  ;;  %v10669_v12 = vld [vmem:[#allocation76_spill] sm:$0xff]  ;;  %v10671_v18 = vld [vmem:[#allocation78_spill] sm:$0xff] }
 0x84c   : > { %10663 = vst [vmem:[#allocation32_spill] sm:$0xff] %v9404_v58  ;;  %v9445_v24 = vmul.f32 %v4465_v22, %v8783_v19  ;;  %v9448_v21 = vmul.f32 %v4465_v22, %v8793_v14  ;;  %v9454_v2 = vmul.f32 %v4465_v22, %v8813_v43  ;;  %v9457_v47 = vmul.f32 %v4465_v22, %v10669_v12  ;;  %v10673_v17 = vld [vmem:[#allocation80_spill] sm:$0xff]  ;;  %v10675_v19 = vld [vmem:[#allocation82_spill] sm:$0xff] }
 0x84d   : > { %10665 = vst [vmem:[#allocation34_spill] sm:$0xff] %v9412_v28  ;;  %v9460_v7 = vmul.f32 %v4465_v22, %v10671_v18  ;;  %v9463_v28 = vmul.f32 %v4465_v22, %v10673_v17  ;;  %v9466_v62 = vmul.f32 %v4465_v22, %v10675_v19  ;;  %v10677_v14 = vld [vmem:[#allocation84_spill] sm:$0xff]  ;;  %v9472_v43 = vmul.f32 %v4465_v22, %v10679_v57  ;;  %v10683_v42 = vld [vmem:[#allocation90_spill] sm:$0xff] }
 0x84e   : > { %10670 = vst [vmem:[#allocation36_spill] sm:$0xff] %v9457_v47  ;;  %v9469_v58 = vmul.f32 %v4465_v22, %v10677_v14  ;;  %v10681_v1 = vld [vmem:[#allocation88_spill] sm:$0xff]  ;;  %v9478_v18 = vmul.f32 %v4465_v22, %v10683_v42  ;;  %v10742_v47 = vld [vmem:[#allocation27_spill] sm:$0xff] }
 0x84f   : > { %10672 = vst [vmem:[#allocation38_spill] sm:$0xff] %v9460_v7  ;;  %10674 = vst [vmem:[#allocation40_spill] sm:$0xff] %v9463_v28  ;;  %v9475_v12 = vmul.f32 %v4465_v22, %v10681_v1  ;;  %v10685_v17 = vld [vmem:[#allocation92_spill] sm:$0xff]  ;;  %v10687_v28 = vld [vmem:[#allocation94_spill] sm:$0xff] }
 0x850   : > { %10676 = vst [vmem:[#allocation42_spill] sm:$0xff] %v9466_v62  ;;  %10678 = vst [vmem:[#allocation44_spill] sm:$0xff] %v9469_v58  ;;  %v9481_v39 = vmul.f32 %v4465_v22, %v10685_v17  ;;  %v9484_v19 = vmul.f32 %v4465_v22, %v10687_v28  ;;  %v10689_v14 = vld [vmem:[#allocation96_spill] sm:$0xff]  ;;  %v10691_v62 = vld [vmem:[#allocation98_spill] sm:$0xff] }
 0x851   : > { %10680 = vst [vmem:[#allocation46_spill] sm:$0xff] %v9472_v43  ;;  %10682 = vst [vmem:[#allocation48_spill] sm:$0xff] %v9475_v12  ;;  %v9487_v58 = vmul.f32 %v4465_v22, %v10689_v14  ;;  %v9490_v57 = vmul.f32 %v4465_v22, %v10691_v62  ;;  %v10693_v1 = vld [vmem:[#allocation100_spill] sm:$0xff]  ;;  %v10695_v43 = vld [vmem:[#allocation102_spill] sm:$0xff] }
 0x852   : > { %10684 = vst [vmem:[#allocation50_spill] sm:$0xff] %v9478_v18  ;;  %10686 = vst [vmem:[#allocation52_spill] sm:$0xff] %v9481_v39  ;;  %v9493_v12 = vmul.f32 %v4465_v22, %v10693_v1  ;;  %v9496_v42 = vmul.f32 %v4465_v22, %v10695_v43  ;;  %v10697_v17 = vld [vmem:[#allocation104_spill] sm:$0xff]  ;;  %v10699_v18 = vld [vmem:[#allocation106_spill] sm:$0xff] }
 0x853   : > { %10688 = vst [vmem:[#allocation54_spill] sm:$0xff] %v9484_v19  ;;  %10690 = vst [vmem:[#allocation56_spill] sm:$0xff] %v9487_v58  ;;  %v9499_v39 = vmul.f32 %v4465_v22, %v10697_v17  ;;  %v9502_v28 = vmul.f32 %v4465_v22, %v10699_v18  ;;  %v10701_v14 = vld [vmem:[#allocation108_spill] sm:$0xff]  ;;  %v10703_v19 = vld [vmem:[#allocation110_spill] sm:$0xff] }
 0x854   : > { %10692 = vst [vmem:[#allocation58_spill] sm:$0xff] %v9490_v57  ;;  %10694 = vst [vmem:[#allocation61_spill] sm:$0xff] %v9493_v12  ;;  %v9505_v58 = vmul.f32 %v4465_v22, %v10701_v14  ;;  %v9508_v62 = vmul.f32 %v4465_v22, %v10703_v19  ;;  %v6231_v1 = vld [vmem:[%s6724_s26 + $0xe8] sm:$0xff]  ;;  %v10705_v12 = vld [vmem:[#allocation37_spill] sm:$0xff] }
 0x855   : > { %10696 = vst [vmem:[#allocation59_spill] sm:$0xff] %v9496_v42  ;;  %10698 = vst [vmem:[#allocation62_spill] sm:$0xff] %v9499_v39  ;;  %v9512_v57 = vadd.f32 %v6231_v1, %v10705_v12  ;;  %v6232_v43 = vld [vmem:[%s6724_s26 + $0x108] sm:$0xff]  ;;  %v10707_v42 = vld [vmem:[#allocation39_spill] sm:$0xff] }
 0x856   : > { %10700 = vst [vmem:[#allocation76_spill] sm:$0xff] %v9502_v28  ;;  %10702 = vst [vmem:[#allocation78_spill] sm:$0xff] %v9505_v58  ;;  %v9516_v17 = vadd.f32 %v6232_v43, %v10707_v42  ;;  %v6233_v39 = vld [vmem:[%s6724_s26 + $0x128] sm:$0xff]  ;;  %v10709_v18 = vld [vmem:[#allocation41_spill] sm:$0xff] }
 0x857   : > { %10704 = vst [vmem:[#allocation80_spill] sm:$0xff] %v9508_v62  ;;  %10706 = vst [vmem:[#allocation82_spill] sm:$0xff] %v9512_v57  ;;  %v9520_v28 = vadd.f32 %v6233_v39, %v10709_v18  ;;  %v6234_v14 = vld [vmem:[%s6724_s26 + $0x148] sm:$0xff]  ;;  %v10711_v58 = vld [vmem:[#allocation43_spill] sm:$0xff] }
 0x858   : > { %10708 = vst [vmem:[#allocation84_spill] sm:$0xff] %v9516_v17  ;;  %v9524_v22 = vadd.f32 %v6234_v14, %v10711_v58  ;;  %v6235_v19 = vld [vmem:[%s6724_s26 + $0x168] sm:$0xff]  ;;  %v10713_v62 = vld [vmem:[#allocation45_spill] sm:$0xff]  ;;  %v10715_v57 = vld [vmem:[#allocation47_spill] sm:$0xff] }
 0x859   : > { %10710 = vst [vmem:[#allocation86_spill] sm:$0xff] %v9520_v28  ;;  %v9528_v12 = vadd.f32 %v6235_v19, %v10713_v62  ;;  %v6236_v1 = vld [vmem:[%s6724_s26 + $0x188] sm:$0xff]  ;;  %v10717_v17 = vld [vmem:[#allocation49_spill] sm:$0xff] }
 0x85a   : > { %10712 = vst [vmem:[#allocation88_spill] sm:$0xff] %v9524_v22  ;;  %v9532_v42 = vadd.f32 %v6236_v1, %v10715_v57  ;;  %v6237_v43 = vld [vmem:[%s6724_s26 + $0x1a8] sm:$0xff]  ;;  %v10720_v22 = vld [vmem:[#allocation51_spill] sm:$0xff] }
 0x85b   : > { %10714 = vst [vmem:[#allocation90_spill] sm:$0xff] %v9528_v12  ;;  %v9536_v39 = vadd.f32 %v6237_v43, %v10717_v17  ;;  %v6238_v18 = vld [vmem:[%s6724_s26 + $0x1c8] sm:$0xff]  ;;  %v10722_v12 = vld [vmem:[#allocation53_spill] sm:$0xff] }
 0x85c   : > { %10716 = vst [vmem:[#allocation92_spill] sm:$0xff] %v9532_v42  ;;  %v9540_v58 = vadd.f32 %v6238_v18, %v9186_v52  ;;  %v6239_v14 = vld [vmem:[%s6724_s26 + $0x1e8] sm:$0xff]  ;;  %v10724_v42 = vld [vmem:[#allocation55_spill] sm:$0xff] }
 0x85d   : > { %10718 = vst [vmem:[#allocation94_spill] sm:$0xff] %v9536_v39  ;;  %v9544_v62 = vadd.f32 %v6239_v14, %v10720_v22  ;;  %v6240_v19 = vld [vmem:[%s6724_s26 + $0x208] sm:$0xff]  ;;  %v10726_v39 = vld [vmem:[#allocation57_spill] sm:$0xff] }
 0x85e   : > { %10719 = vst [vmem:[#allocation96_spill] sm:$0xff] %v9540_v58  ;;  %v9548_v57 = vadd.f32 %v6240_v19, %v10722_v12  ;;  %v6241_v1 = vld [vmem:[%s6724_s26 + $0x228] sm:$0xff] }
 0x85f   : > { %10721 = vst [vmem:[#allocation98_spill] sm:$0xff] %v9544_v62  ;;  %v9552_v17 = vadd.f32 %v6241_v1, %v10724_v42  ;;  %v6242_v43 = vld [vmem:[%s6724_s26 + $0x248] sm:$0xff]  ;;  %v10730_v62 = vld [vmem:[#allocation15_spill] sm:$0xff] }
 0x860   : > { %10723 = vst [vmem:[#allocation100_spill] sm:$0xff] %v9548_v57  ;;  %v9556_v52 = vadd.f32 %v6242_v43, %v10726_v39  ;;  %v6243_v18 = vld [vmem:[%s6724_s26 + $0x268] sm:$0xff]  ;;  %v10732_v57 = vld [vmem:[#allocation17_spill] sm:$0xff] }
 0x861   : > { %10725 = vst [vmem:[#allocation102_spill] sm:$0xff] %v9552_v17  ;;  %v10728_v58 = vld [vmem:[#allocation16_spill] sm:$0xff]  ;;  %v10734_v17 = vld [vmem:[#allocation19_spill] sm:$0xff] }
 0x862   : > { %10727 = vst [vmem:[#allocation104_spill] sm:$0xff] %v9556_v52  ;;  %v9560_v22 = vadd.f32 %v6243_v18, %v10728_v58  ;;  %v6244_v14 = vld [vmem:[%s6724_s26 + $0x288] sm:$0xff] }
 0x863   : > { %v9564_v12 = vadd.f32 %v6244_v14, %v10730_v62  ;;  %v6245_v19 = vld [vmem:[%s6724_s26 + $0x2a8] sm:$0xff]  ;;  %v10738_v14 = vld [vmem:[#allocation25_spill] sm:$0xff] }
 0x864   : > { %10729 = vst [vmem:[#allocation106_spill] sm:$0xff] %v9560_v22  ;;  %v9568_v42 = vadd.f32 %v6245_v19, %v10732_v57  ;;  %v6246_v1 = vld [vmem:[%s6724_s26 + $0x2c8] sm:$0xff]  ;;  %v10740_v19 = vld [vmem:[#allocation18_spill] sm:$0xff] }
 0x865   : > { %10731 = vst [vmem:[#allocation108_spill] sm:$0xff] %v9564_v12  ;;  %v9572_v39 = vadd.f32 %v6246_v1, %v10734_v17  ;;  %v6247_v43 = vld [vmem:[%s6724_s26 + $0x2e8] sm:$0xff]  ;;  %v10741_v17 = vld [vmem:[#allocation22_spill] sm:$0xff] }
 0x866   : > { %10733 = vst [vmem:[#allocation110_spill] sm:$0xff] %v9568_v42  ;;  %v10736_v52 = vld [vmem:[#allocation20_spill] sm:$0xff] }
 0x867   : > { %10735 = vst [vmem:[#allocation37_spill] sm:$0xff] %v9572_v39  ;;  %v9576_v58 = vadd.f32 %v6247_v43, %v10736_v52  ;;  %v6248_v18 = vld [vmem:[%s6724_s26 + $0x308] sm:$0xff] }
 0x868   : > { %v10737_v22 = vld [vmem:[#allocation24_spill] sm:$0xff] }
 0x869   : > { %v9580_v28 = vadd.f32 %v6248_v18, %v10737_v22  ;;  %v6249_v62 = vld [vmem:[%s6724_s26 + $0x328] sm:$0xff] }
 0x86a   : > { %v9584_v12 = vadd.f32 %v6249_v62, %v10738_v14  ;;  %v6250_v57 = vld [vmem:[%s6724_s26 + $0x348] sm:$0xff]  ;;  %v10743_v62 = vld [vmem:[#allocation21_spill] sm:$0xff] }
 0x86b   : > { %v9588_v42 = vadd.f32 %v6250_v57, %v10740_v19  ;;  %v6251_v7 = vld [vmem:[%s6724_s26 + $0x368] sm:$0xff]  ;;  %v4730_v19 = vmax.f32 %v9262_v33, 0.0  ;;  %v4770_v33 = vmax.f32 %v9302_v50, 0.0  ;;  %v4806_v50 = vmax.f32 %v9338_v54, 0.0 }
 0x86c   : > { %10739 = vst [vmem:[#allocation39_spill] sm:$0xff] %v9584_v12  ;;  %v9592_v1 = vadd.f32 %v6251_v7, %v10741_v17  ;;  %v6252_v39 = vld [vmem:[%s6724_s26 + $0x388] sm:$0xff]  ;;  %v4726_v7 = vmax.f32 %v9258_v53, 0.0  ;;  %v4746_v17 = vmax.f32 %v9278_v23, 0.0  ;;  %v4766_v53 = vmax.f32 %v9298_v44, 0.0 }
 0x86d   : > { %v9596_v52 = vadd.f32 %v6252_v39, %v10742_v47  ;;  %v6253_v43 = vld [vmem:[%s6724_s26 + $0x3a8] sm:$0xff]  ;;  %v4734_v47 = vmax.f32 %v9266_v16, 0.0  ;;  %v4738_v39 = vmax.f32 %v9270_v5, 0.0  ;;  %4858 = vst [vmem:[%s9623_s15 + $0x20] sm:$0xff] %v4730_v19  ;;  %v4774_v16 = vmax.f32 %v9306_v31, 0.0  ;;  %4898 = vst [vmem:[%s9623_s15 + $0x160] sm:$0xff] %v4770_v33 }
 0x86e   : > { %v9600_v22 = vadd.f32 %v6253_v43, %v9246_v40  ;;  %v6254_v18 = vld [vmem:[%s6724_s26 + $0x3c8] sm:$0xff]  ;;  %v4742_v40 = vmax.f32 %v9274_v25, 0.0  ;;  %v4750_v43 = vmax.f32 %v9282_v20, 0.0  ;;  %4854 = vst [vmem:[%s9623_s15] sm:$0xff] %v4726_v7  ;;  %v4778_v5 = vmax.f32 %v9310_v46, 0.0  ;;  %4874 = vst [vmem:[%s9623_s15 + $0xa0] sm:$0xff] %v4746_v17  ;;  %v6259_v7 = vld [vmem:[%s6724_s26 + $0x70] sm:$0xff] }
 0x86f   : > { %v9604_v14 = vadd.f32 %v6254_v18, %v10743_v62  ;;  %v6255_v12 = vld [vmem:[%s6724_s26 + $0x3e8] sm:$0xff]  ;;  %v4754_v18 = vmax.f32 %v9286_v61, 0.0  ;;  %v4758_v62 = vmax.f32 %v9290_v38, 0.0  ;;  %4862 = vst [vmem:[%s9623_s15 + $0x40] sm:$0xff] %v4734_v47  ;;  %v4782_v25 = vmax.f32 %v9314_v51, 0.0  ;;  %4866 = vst [vmem:[%s9623_s15 + $0x60] sm:$0xff] %v4738_v39 }
 0x870   : > { %v9608_v57 = vadd.f32 %v6255_v12, %v9254_v34  ;;  %v4762_v34 = vmax.f32 %v9294_v60, 0.0  ;;  %4870 = vst [vmem:[%s9623_s15 + $0x80] sm:$0xff] %v4742_v40  ;;  %4878 = vst [vmem:[%s9623_s15 + $0xc0] sm:$0xff] %v4750_v43  ;;  %v4786_v23 = vmax.f32 %v9318_v37, 0.0  ;;  %v4790_v20 = vmax.f32 %v9322_v6, 0.0  ;;  %v10744_v60 = vld [vmem:[#allocation26_spill] sm:$0xff] }
 0x871   : > { %v4794_v61 = vmax.f32 %v9326_v45, 0.0  ;;  %v4798_v38 = vmax.f32 %v9330_v56, 0.0  ;;  %4882 = vst [vmem:[%s9623_s15 + $0xe0] sm:$0xff] %v4754_v18  ;;  %4886 = vst [vmem:[%s9623_s15 + $0x100] sm:$0xff] %v4758_v62  ;;  %v4802_v44 = vmax.f32 %v10744_v60, 0.0  ;;  %v4810_v31 = vmax.f32 %v9342_v26, 0.0 }
 0x872   : > { %4890 = vst [vmem:[%s9623_s15 + $0x120] sm:$0xff] %v4762_v34  ;;  %4894 = vst [vmem:[%s9623_s15 + $0x140] sm:$0xff] %v4766_v53  ;;  %v4814_v46 = vmax.f32 %v9346_v55, 0.0  ;;  %v4818_v51 = vmax.f32 %v9350_v48, 0.0  ;;  %v4822_v37 = vmax.f32 %v9354_v13, 0.0  ;;  %v4826_v6 = vmax.f32 %v9358_v49, 0.0 }
 0x873   : > { %4902 = vst [vmem:[%s9623_s15 + $0x180] sm:$0xff] %v4774_v16  ;;  %4906 = vst [vmem:[%s9623_s15 + $0x1a0] sm:$0xff] %v4778_v5  ;;  %v4830_v45 = vmax.f32 %v9362_v27, 0.0  ;;  %v4834_v56 = vmax.f32 %v9366_v59, 0.0  ;;  %v4838_v54 = vmax.f32 %v9370_v36, 0.0  ;;  %v4842_v13 = vmax.f32 %v9374_v15, 0.0 }
 0x874   : > { %4910 = vst [vmem:[%s9623_s15 + $0x1c0] sm:$0xff] %v4782_v25  ;;  %4914 = vst [vmem:[%s9623_s15 + $0x1e0] sm:$0xff] %v4786_v23  ;;  %v10745_v26 = vld [vmem:[#allocation23_spill] sm:$0xff]  ;;  %v4850_v48 = vmax.f32 %v9382_v41, 0.0  ;;  %v6256_v59 = vld [vmem:[%s6724_s26 + $0x10] sm:$0xff] }
 0x875   : > { %4918 = vst [vmem:[%s9623_s15 + $0x200] sm:$0xff] %v4790_v20  ;;  %4922 = vst [vmem:[%s9623_s15 + $0x220] sm:$0xff] %v4794_v61  ;;  %v4846_v55 = vmax.f32 %v10745_v26, 0.0  ;;  %v10746_v49 = vld [vmem:[#allocation35_spill] sm:$0xff]  ;;  %v9673_v36 = vadd.f32 %v6256_v59, %v9415_v63  ;;  %v6257_v15 = vld [vmem:[%s6724_s26 + $0x30] sm:$0xff]  ;;  %v9689_v63 = vadd.f32 %v6259_v7, %v9424_v8 }
 0x876   : > { %4926 = vst [vmem:[%s9623_s15 + $0x240] sm:$0xff] %v4798_v38  ;;  %4930 = vst [vmem:[%s9623_s15 + $0x260] sm:$0xff] %v4802_v44  ;;  %v4469_v27 = vrot.slane %v10746_v49, %v8196_v4  ;;  %v9677_v12 = vadd.f32 %v6257_v15, %v9418_v3  ;;  %v6258_v41 = vld [vmem:[%s6724_s26 + $0x50] sm:$0xff]  ;;  %v10751_v40 = vld [vmem:[#allocation63_spill] sm:$0xff] }
 0x877   : > { %4934 = vst [vmem:[%s9623_s15 + $0x280] sm:$0xff] %v4806_v50  ;;  %4938 = vst [vmem:[%s9623_s15 + $0x2a0] sm:$0xff] %v4810_v31  ;;  %v9685_v4 = vadd.f32 %v6258_v41, %v9421_v10  ;;  %v6260_v19 = vld [vmem:[%s6724_s26 + $0x90] sm:$0xff]  ;;  %v10752_v10 = vld [vmem:[#allocation60_spill] sm:$0xff] }
 0x878   : > { %4942 = vst [vmem:[%s9623_s15 + $0x2c0] sm:$0xff] %v4814_v46  ;;  %4946 = vst [vmem:[%s9623_s15 + $0x2e0] sm:$0xff] %v4818_v51  ;;  %v9693_v47 = vadd.f32 %v6260_v19, %v9427_v32  ;;  %v6261_v3 = vld [vmem:[%s6724_s26 + $0xb0] sm:$0xff]  ;;  %v9704_v17 = vmul.f32 %v4469_v27, %v10751_v40  ;;  %v9707_v43 = vmul.f32 %v4469_v27, %v10752_v10  ;;  %v10753_v8 = vld [vmem:[#allocation64_spill] sm:$0xff] }
 0x879   : > { %4950 = vst [vmem:[%s9623_s15 + $0x300] sm:$0xff] %v4822_v37  ;;  %4954 = vst [vmem:[%s9623_s15 + $0x320] sm:$0xff] %v4826_v6  ;;  %v9697_v39 = vadd.f32 %v6261_v3, %v9430_v11  ;;  %v9710_v18 = vmul.f32 %v4469_v27, %v10753_v8  ;;  %v10754_v62 = vld [vmem:[#allocation65_spill] sm:$0xff]  ;;  %v10755_v34 = vld [vmem:[#allocation66_spill] sm:$0xff] }
 0x87a   : > { %4958 = vst [vmem:[%s9623_s15 + $0x340] sm:$0xff] %v4830_v45  ;;  %10747 = vst [vmem:[#allocation41_spill] sm:$0xff] %v9685_v4  ;;  %v9713_v32 = vmul.f32 %v4469_v27, %v10754_v62  ;;  %v9717_v11 = vmul.f32 %v4469_v27, %v10755_v34  ;;  %v10756_v53 = vld [vmem:[#allocation67_spill] sm:$0xff]  ;;  %v10757_v16 = vld [vmem:[#allocation68_spill] sm:$0xff] }
 0x87b   : > { %10748 = vst [vmem:[#allocation43_spill] sm:$0xff] %v9689_v63  ;;  %10749 = vst [vmem:[#allocation45_spill] sm:$0xff] %v9693_v47  ;;  %v9720_v33 = vmul.f32 %v4469_v27, %v10756_v53  ;;  %v9723_v5 = vmul.f32 %v4469_v27, %v10757_v16  ;;  %v10758_v25 = vld [vmem:[#allocation69_spill] sm:$0xff]  ;;  %v10759_v20 = vld [vmem:[#allocation70_spill] sm:$0xff] }
 0x87c   : > { %10750 = vst [vmem:[#allocation47_spill] sm:$0xff] %v9697_v39  ;;  %4962 = vst [vmem:[%s9623_s15 + $0x360] sm:$0xff] %v4834_v56  ;;  %v9726_v23 = vmul.f32 %v4469_v27, %v10758_v25  ;;  %v9729_v61 = vmul.f32 %v4469_v27, %v10759_v20  ;;  %v10760_v38 = vld [vmem:[#allocation71_spill] sm:$0xff]  ;;  %v10761_v44 = vld [vmem:[#allocation72_spill] sm:$0xff] }
 0x87d   : > { %4966 = vst [vmem:[%s9623_s15 + $0x380] sm:$0xff] %v4838_v54  ;;  %4970 = vst [vmem:[%s9623_s15 + $0x3a0] sm:$0xff] %v4842_v13  ;;  %v9732_v60 = vmul.f32 %v4469_v27, %v10760_v38  ;;  %v9735_v50 = vmul.f32 %v4469_v27, %v10761_v44  ;;  %v10762_v31 = vld [vmem:[#allocation73_spill] sm:$0xff]  ;;  %v10763_v51 = vld [vmem:[#allocation74_spill] sm:$0xff] }
 0x87e   : > { %4974 = vst [vmem:[%s9623_s15 + $0x3c0] sm:$0xff] %v4846_v55  ;;  %4978 = vst [vmem:[%s9623_s15 + $0x3e0] sm:$0xff] %v4850_v48  ;;  %v9738_v46 = vmul.f32 %v4469_v27, %v10762_v31  ;;  %v9741_v37 = vmul.f32 %v4469_v27, %v10763_v51  ;;  %v10764_v6 = vld [vmem:[#allocation75_spill] sm:$0xff]  ;;  %v10765_v56 = vld [vmem:[#allocation77_spill] sm:$0xff] }
 0x87f   : > { %v9744_v45 = vmul.f32 %v4469_v27, %v10764_v6  ;;  %v9747_v54 = vmul.f32 %v4469_v27, %v10765_v56  ;;  %v10766_v13 = vld [vmem:[#allocation79_spill] sm:$0xff]  ;;  %v10767_v55 = vld [vmem:[#allocation81_spill] sm:$0xff]  ;;  %v10838_v39 = vld [vmem:[#allocation90_spill] sm:$0xff] }
 0x880   : > { %v9750_v26 = vmul.f32 %v4469_v27, %v10766_v13  ;;  %v9753_v48 = vmul.f32 %v4469_v27, %v10767_v55  ;;  %v10768_v49 = vld [vmem:[#allocation83_spill] sm:$0xff]  ;;  %v10769_v15 = vld [vmem:[#allocation85_spill] sm:$0xff]  ;;  %v10839_v47 = vld [vmem:[#allocation92_spill] sm:$0xff] }
 0x881   : > { %v9756_v59 = vmul.f32 %v4469_v27, %v10768_v49  ;;  %v9759_v41 = vmul.f32 %v4469_v27, %v10769_v15  ;;  %v10770_v7 = vld [vmem:[#allocation87_spill] sm:$0xff]  ;;  %v10771_v3 = vld [vmem:[#allocation89_spill] sm:$0xff]  ;;  %v10840_v63 = vld [vmem:[#allocation94_spill] sm:$0xff] }
 0x882   : > { %v9762_v19 = vmul.f32 %v4469_v27, %v10770_v7  ;;  %v9765_v40 = vmul.f32 %v4469_v27, %v10771_v3  ;;  %v10772_v10 = vld [vmem:[#allocation91_spill] sm:$0xff]  ;;  %v10773_v62 = vld [vmem:[#allocation93_spill] sm:$0xff]  ;;  %v10844_v4 = vld [vmem:[#allocation102_spill] sm:$0xff] }
 0x883   : > { %v9768_v8 = vmul.f32 %v4469_v27, %v10772_v10  ;;  %v9771_v34 = vmul.f32 %v4469_v27, %v10773_v62  ;;  %v10774_v53 = vld [vmem:[#allocation95_spill] sm:$0xff]  ;;  %v10775_v25 = vld [vmem:[#allocation97_spill] sm:$0xff] }
 0x884   : > { %v9774_v16 = vmul.f32 %v4469_v27, %v10774_v53  ;;  %v9777_v20 = vmul.f32 %v4469_v27, %v10775_v25  ;;  %v10776_v38 = vld [vmem:[#allocation99_spill] sm:$0xff]  ;;  %v10777_v31 = vld [vmem:[#allocation101_spill] sm:$0xff] }
 0x885   : > { %v9780_v44 = vmul.f32 %v4469_v27, %v10776_v38  ;;  %v9783_v51 = vmul.f32 %v4469_v27, %v10777_v31  ;;  %v10778_v6 = vld [vmem:[#allocation103_spill] sm:$0xff]  ;;  %v10779_v13 = vld [vmem:[#allocation105_spill] sm:$0xff] }
 0x886   : > { %v9786_v56 = vmul.f32 %v4469_v27, %v10778_v6  ;;  %v9789_v55 = vmul.f32 %v4469_v27, %v10779_v13  ;;  %v10780_v49 = vld [vmem:[#allocation107_spill] sm:$0xff]  ;;  %v10781_v7 = vld [vmem:[#allocation109_spill] sm:$0xff] }
 0x887   : > { %v9792_v15 = vmul.f32 %v4469_v27, %v10780_v49  ;;  %v9795_v3 = vmul.f32 %v4469_v27, %v10781_v7  ;;  %v10782_v10 = vld [vmem:[#allocation111_spill] sm:$0xff]  ;;  %v6262_v53 = vld [vmem:[%s6724_s26 + $0xd0] sm:$0xff] }
 0x888   : > { %v9798_v62 = vmul.f32 %v4469_v27, %v10782_v10  ;;  %v9802_v25 = vadd.f32 %v6262_v53, %v9433_v29  ;;  %v6263_v38 = vld [vmem:[%s6724_s26 + $0xf0] sm:$0xff] }
 0x889   : > { %v9806_v31 = vadd.f32 %v6263_v38, %v9436_v9  ;;  %v6264_v6 = vld [vmem:[%s6724_s26 + $0x110] sm:$0xff] }
 0x88a   : > { %10783 = vst [vmem:[#allocation49_spill] sm:$0xff] %v9802_v25  ;;  %v9810_v13 = vadd.f32 %v6264_v6, %v9439_v30  ;;  %v6265_v49 = vld [vmem:[%s6724_s26 + $0x130] sm:$0xff]  ;;  %v10836_v25 = vld [vmem:[#allocation86_spill] sm:$0xff] }
 0x88b   : > { %10784 = vst [vmem:[#allocation51_spill] sm:$0xff] %v9806_v31  ;;  %v9814_v27 = vadd.f32 %v6265_v49, %v9442_v35  ;;  %v6266_v7 = vld [vmem:[%s6724_s26 + $0x150] sm:$0xff]  ;;  %v10791_v49 = vld [vmem:[#allocation36_spill] sm:$0xff]  ;;  %v10819_v31 = vld [vmem:[#allocation62_spill] sm:$0xff] }
 0x88c   : > { %10785 = vst [vmem:[#allocation53_spill] sm:$0xff] %v9810_v13  ;;  %v9818_v29 = vadd.f32 %v6266_v7, %v9445_v24  ;;  %v6267_v10 = vld [vmem:[%s6724_s26 + $0x170] sm:$0xff] }
 0x88d   : > { %10786 = vst [vmem:[#allocation55_spill] sm:$0xff] %v9814_v27  ;;  %v9822_v9 = vadd.f32 %v6267_v10, %v9448_v21  ;;  %v6268_v53 = vld [vmem:[%s6724_s26 + $0x190] sm:$0xff] }
 0x88e   : > { %10787 = vst [vmem:[#allocation57_spill] sm:$0xff] %v9818_v29  ;;  %v9826_v30 = vadd.f32 %v6268_v53, %v9451_v0  ;;  %v6269_v38 = vld [vmem:[%s6724_s26 + $0x1b0] sm:$0xff]  ;;  %v10793_v29 = vld [vmem:[#allocation38_spill] sm:$0xff] }
 0x88f   : > { %10788 = vst [vmem:[#allocation16_spill] sm:$0xff] %v9822_v9  ;;  %v9830_v35 = vadd.f32 %v6269_v38, %v9454_v2  ;;  %v6270_v6 = vld [vmem:[%s6724_s26 + $0x1d0] sm:$0xff]  ;;  %v10795_v9 = vld [vmem:[#allocation40_spill] sm:$0xff] }
 0x890   : > { %10789 = vst [vmem:[#allocation15_spill] sm:$0xff] %v9826_v30  ;;  %v9834_v24 = vadd.f32 %v6270_v6, %v10791_v49  ;;  %v6271_v7 = vld [vmem:[%s6724_s26 + $0x1f0] sm:$0xff]  ;;  %v10797_v30 = vld [vmem:[#allocation42_spill] sm:$0xff] }
 0x891   : > { %10790 = vst [vmem:[#allocation17_spill] sm:$0xff] %v9830_v35  ;;  %v9838_v21 = vadd.f32 %v6271_v7, %v10793_v29  ;;  %v6272_v10 = vld [vmem:[%s6724_s26 + $0x210] sm:$0xff]  ;;  %v10799_v35 = vld [vmem:[#allocation44_spill] sm:$0xff] }
 0x892   : > { %10792 = vst [vmem:[#allocation19_spill] sm:$0xff] %v9834_v24  ;;  %v9842_v0 = vadd.f32 %v6272_v10, %v10795_v9  ;;  %v6273_v53 = vld [vmem:[%s6724_s26 + $0x230] sm:$0xff]  ;;  %v10801_v24 = vld [vmem:[#allocation46_spill] sm:$0xff] }
 0x893   : > { %10794 = vst [vmem:[#allocation20_spill] sm:$0xff] %v9838_v21  ;;  %v9846_v2 = vadd.f32 %v6273_v53, %v10797_v30  ;;  %v6274_v38 = vld [vmem:[%s6724_s26 + $0x250] sm:$0xff]  ;;  %v10803_v21 = vld [vmem:[#allocation48_spill] sm:$0xff] }
 0x894   : > { %10796 = vst [vmem:[#allocation24_spill] sm:$0xff] %v9842_v0  ;;  %v9850_v6 = vadd.f32 %v6274_v38, %v10799_v35  ;;  %v6275_v49 = vld [vmem:[%s6724_s26 + $0x270] sm:$0xff]  ;;  %v10805_v0 = vld [vmem:[#allocation50_spill] sm:$0xff] }
 0x895   : > { %10798 = vst [vmem:[#allocation25_spill] sm:$0xff] %v9846_v2  ;;  %v9854_v29 = vadd.f32 %v6275_v49, %v10801_v24  ;;  %v6276_v7 = vld [vmem:[%s6724_s26 + $0x290] sm:$0xff]  ;;  %v10807_v2 = vld [vmem:[#allocation52_spill] sm:$0xff] }
 0x896   : > { %10800 = vst [vmem:[#allocation18_spill] sm:$0xff] %v9850_v6  ;;  %v9858_v9 = vadd.f32 %v6276_v7, %v10803_v21  ;;  %v6277_v10 = vld [vmem:[%s6724_s26 + $0x2b0] sm:$0xff]  ;;  %v10809_v6 = vld [vmem:[#allocation54_spill] sm:$0xff] }
 0x897   : > { %10802 = vst [vmem:[#allocation22_spill] sm:$0xff] %v9854_v29  ;;  %v9862_v30 = vadd.f32 %v6277_v10, %v10805_v0  ;;  %v6278_v53 = vld [vmem:[%s6724_s26 + $0x2d0] sm:$0xff]  ;;  %v10811_v29 = vld [vmem:[#allocation56_spill] sm:$0xff]  ;;  %v10813_v7 = vld [vmem:[#allocation58_spill] sm:$0xff] }
 0x898   : > { %10804 = vst [vmem:[#allocation27_spill] sm:$0xff] %v9858_v9  ;;  %v9866_v35 = vadd.f32 %v6278_v53, %v10807_v2  ;;  %v6279_v38 = vld [vmem:[%s6724_s26 + $0x2f0] sm:$0xff]  ;;  %v10817_v2 = vld [vmem:[#allocation59_spill] sm:$0xff] }
 0x899   : > { %10806 = vst [vmem:[#allocation21_spill] sm:$0xff] %v9862_v30  ;;  %v9870_v24 = vadd.f32 %v6279_v38, %v10809_v6  ;;  %v6280_v49 = vld [vmem:[%s6724_s26 + $0x310] sm:$0xff] }
 0x89a   : > { %10808 = vst [vmem:[#allocation26_spill] sm:$0xff] %v9866_v35  ;;  %v9874_v27 = vadd.f32 %v6280_v49, %v10811_v29  ;;  %v6281_v21 = vld [vmem:[%s6724_s26 + $0x330] sm:$0xff] }
 0x89b   : > { %10810 = vst [vmem:[#allocation23_spill] sm:$0xff] %v9870_v24  ;;  %v9878_v9 = vadd.f32 %v6281_v21, %v10813_v7  ;;  %v6282_v0 = vld [vmem:[%s6724_s26 + $0x350] sm:$0xff]  ;;  %v10821_v24 = vld [vmem:[#allocation76_spill] sm:$0xff]  ;;  %v10823_v21 = vld [vmem:[#allocation78_spill] sm:$0xff] }
 0x89c   : > { %10812 = vst [vmem:[#allocation35_spill] sm:$0xff] %v9874_v27  ;;  %v10815_v10 = vld [vmem:[#allocation61_spill] sm:$0xff] }
 0x89d   : > { %10814 = vst [vmem:[#allocation63_spill] sm:$0xff] %v9878_v9  ;;  %v9882_v30 = vadd.f32 %v6282_v0, %v10815_v10  ;;  %v6283_v13 = vld [vmem:[%s6724_s26 + $0x370] sm:$0xff]  ;;  %v10825_v10 = vld [vmem:[#allocation80_spill] sm:$0xff]  ;;  %v10830_v9 = vld [vmem:[#allocation30_spill] sm:$0xff] }
 0x89e   : > { %v9886_v53 = vadd.f32 %v6283_v13, %v10817_v2  ;;  %v6284_v35 = vld [vmem:[%s6724_s26 + $0x390] sm:$0xff] }
 0x89f   : > { %10816 = vst [vmem:[#allocation60_spill] sm:$0xff] %v9882_v30  ;;  %v9890_v6 = vadd.f32 %v6284_v35, %v10819_v31  ;;  %v6285_v38 = vld [vmem:[%s6724_s26 + $0x3b0] sm:$0xff]  ;;  %v10829_v35 = vld [vmem:[#allocation31_spill] sm:$0xff] }
 0x8a0   : > { %10818 = vst [vmem:[#allocation64_spill] sm:$0xff] %v9886_v53  ;;  %v9894_v29 = vadd.f32 %v6285_v38, %v10821_v24  ;;  %v6286_v49 = vld [vmem:[%s6724_s26 + $0x3d0] sm:$0xff]  ;;  %v10828_v53 = vld [vmem:[#allocation28_spill] sm:$0xff]  ;;  %v4739_v24 = vmax.f32 %v10830_v9, 0.0 }
 0x8a1   : > { %10820 = vst [vmem:[#allocation65_spill] sm:$0xff] %v9890_v6  ;;  %v9898_v7 = vadd.f32 %v6286_v49, %v10823_v21  ;;  %v6287_v0 = vld [vmem:[%s6724_s26 + $0x3f0] sm:$0xff]  ;;  %v4731_v31 = vmax.f32 %v10828_v53, 0.0  ;;  %v4735_v6 = vmax.f32 %v10829_v35, 0.0  ;;  %v10831_v38 = vld [vmem:[#allocation32_spill] sm:$0xff]  ;;  %v4763_v53 = vmax.f32 %v10836_v25, 0.0 }
 0x8a2   : > { %10822 = vst [vmem:[#allocation66_spill] sm:$0xff] %v9894_v29  ;;  %v9902_v30 = vadd.f32 %v6287_v0, %v10825_v10  ;;  %v10827_v13 = vld [vmem:[#allocation29_spill] sm:$0xff]  ;;  %v4743_v29 = vmax.f32 %v10831_v38, 0.0  ;;  %v10834_v0 = vld [vmem:[#allocation82_spill] sm:$0xff]  ;;  %v10837_v35 = vld [vmem:[#allocation88_spill] sm:$0xff]  ;;  %v4771_v38 = vmax.f32 %v10838_v39, 0.0 }
 0x8a3   : > { %10824 = vst [vmem:[#allocation67_spill] sm:$0xff] %v9898_v7  ;;  %v4727_v2 = vmax.f32 %v10827_v13, 0.0  ;;  %v10832_v49 = vld [vmem:[#allocation33_spill] sm:$0xff]  ;;  %v10833_v7 = vld [vmem:[#allocation34_spill] sm:$0xff]  ;;  %v4755_v10 = vmax.f32 %v10834_v0, 0.0  ;;  %4859 = vst [vmem:[%s9623_s15 + $0x28] sm:$0xff] %v4731_v31 }
 0x8a4   : > { %10826 = vst [vmem:[#allocation68_spill] sm:$0xff] %v9902_v30  ;;  %v4747_v21 = vmax.f32 %v10832_v49, 0.0  ;;  %v4751_v27 = vmax.f32 %v10833_v7, 0.0  ;;  %v10835_v30 = vld [vmem:[#allocation84_spill] sm:$0xff]  ;;  %v4767_v9 = vmax.f32 %v10837_v35, 0.0  ;;  %v4775_v49 = vmax.f32 %v10839_v47, 0.0 }
 0x8a5   : > { %v4759_v13 = vmax.f32 %v10835_v30, 0.0  ;;  %4855 = vst [vmem:[%s9623_s15 + $0x8] sm:$0xff] %v4727_v2  ;;  %v4779_v7 = vmax.f32 %v10840_v63, 0.0  ;;  %4863 = vst [vmem:[%s9623_s15 + $0x48] sm:$0xff] %v4735_v6  ;;  %v10841_v25 = vld [vmem:[#allocation96_spill] sm:$0xff]  ;;  %v10842_v2 = vld [vmem:[#allocation98_spill] sm:$0xff] }
 0x8a6   : > { %4867 = vst [vmem:[%s9623_s15 + $0x68] sm:$0xff] %v4739_v24  ;;  %4871 = vst [vmem:[%s9623_s15 + $0x88] sm:$0xff] %v4743_v29  ;;  %v4783_v30 = vmax.f32 %v10841_v25, 0.0  ;;  %v4787_v31 = vmax.f32 %v10842_v2, 0.0  ;;  %v10843_v0 = vld [vmem:[#allocation100_spill] sm:$0xff]  ;;  %v4795_v39 = vmax.f32 %v10844_v4, 0.0 }
 0x8a7   : > { %4875 = vst [vmem:[%s9623_s15 + $0xa8] sm:$0xff] %v4747_v21  ;;  %v4791_v35 = vmax.f32 %v10843_v0, 0.0  ;;  %4879 = vst [vmem:[%s9623_s15 + $0xc8] sm:$0xff] %v4751_v27  ;;  %v10845_v63 = vld [vmem:[#allocation104_spill] sm:$0xff]  ;;  %v10846_v6 = vld [vmem:[#allocation106_spill] sm:$0xff] }
 0x8a8   : > { %4883 = vst [vmem:[%s9623_s15 + $0xe8] sm:$0xff] %v4755_v10  ;;  %4887 = vst [vmem:[%s9623_s15 + $0x108] sm:$0xff] %v4759_v13  ;;  %v4799_v47 = vmax.f32 %v10845_v63, 0.0  ;;  %v4803_v29 = vmax.f32 %v10846_v6, 0.0  ;;  %v10847_v24 = vld [vmem:[#allocation108_spill] sm:$0xff]  ;;  %v10848_v25 = vld [vmem:[#allocation110_spill] sm:$0xff] }
 0x8a9   : > { %4891 = vst [vmem:[%s9623_s15 + $0x128] sm:$0xff] %v4763_v53  ;;  %v4807_v21 = vmax.f32 %v10847_v24, 0.0  ;;  %v4811_v2 = vmax.f32 %v10848_v25, 0.0  ;;  %4895 = vst [vmem:[%s9623_s15 + $0x148] sm:$0xff] %v4767_v9  ;;  %v10849_v4 = vld [vmem:[#allocation37_spill] sm:$0xff]  ;;  %v4819_v10 = vmax.f32 %v9576_v58, 0.0 }
 0x8aa   : > { %4899 = vst [vmem:[%s9623_s15 + $0x168] sm:$0xff] %v4771_v38  ;;  %4903 = vst [vmem:[%s9623_s15 + $0x188] sm:$0xff] %v4775_v49  ;;  %v4815_v27 = vmax.f32 %v10849_v4, 0.0  ;;  %v4823_v13 = vmax.f32 %v9580_v28, 0.0  ;;  %v10850_v53 = vld [vmem:[#allocation39_spill] sm:$0xff]  ;;  %v4831_v9 = vmax.f32 %v9588_v42, 0.0 }
 0x8ab   : > { %4907 = vst [vmem:[%s9623_s15 + $0x1a8] sm:$0xff] %v4779_v7  ;;  %v4827_v0 = vmax.f32 %v10850_v53, 0.0  ;;  %4911 = vst [vmem:[%s9623_s15 + $0x1c8] sm:$0xff] %v4783_v30  ;;  %v4835_v38 = vmax.f32 %v9592_v1, 0.0  ;;  %v4839_v58 = vmax.f32 %v9596_v52, 0.0  ;;  %v4843_v28 = vmax.f32 %v9600_v22, 0.0 }
 0x8ac   : > { %4915 = vst [vmem:[%s9623_s15 + $0x1e8] sm:$0xff] %v4787_v31  ;;  %4919 = vst [vmem:[%s9623_s15 + $0x208] sm:$0xff] %v4791_v35  ;;  %v4847_v49 = vmax.f32 %v9604_v14, 0.0  ;;  %v4851_v42 = vmax.f32 %v9608_v57, 0.0  ;;  %v6288_v7 = vld [vmem:[%s6724_s26 + $0x18] sm:$0xff] }
 0x8ad   : > { %4923 = vst [vmem:[%s9623_s15 + $0x228] sm:$0xff] %v4795_v39  ;;  %4927 = vst [vmem:[%s9623_s15 + $0x248] sm:$0xff] %v4799_v47  ;;  %v9960_v1 = vadd.f32 %v6288_v7, %v9704_v17  ;;  %v6289_v52 = vld [vmem:[%s6724_s26 + $0x38] sm:$0xff] }
 0x8ae   : > { %4931 = vst [vmem:[%s9623_s15 + $0x268] sm:$0xff] %v4803_v29  ;;  %4935 = vst [vmem:[%s9623_s15 + $0x288] sm:$0xff] %v4807_v21  ;;  %v9964_v22 = vadd.f32 %v6289_v52, %v9707_v43  ;;  %v6290_v14 = vld [vmem:[%s6724_s26 + $0x58] sm:$0xff] }
 0x8af   : > { %4939 = vst [vmem:[%s9623_s15 + $0x2a8] sm:$0xff] %v4811_v2  ;;  %4943 = vst [vmem:[%s9623_s15 + $0x2c8] sm:$0xff] %v4815_v27  ;;  %v9972_v57 = vadd.f32 %v6290_v14, %v9710_v18  ;;  %v6291_v17 = vld [vmem:[%s6724_s26 + $0x78] sm:$0xff] }
 0x8b0   : > { %4947 = vst [vmem:[%s9623_s15 + $0x2e8] sm:$0xff] %v4819_v10  ;;  %4951 = vst [vmem:[%s9623_s15 + $0x308] sm:$0xff] %v4823_v13  ;;  %v9976_v30 = vadd.f32 %v6291_v17, %v9713_v32  ;;  %v6292_v31 = vld [vmem:[%s6724_s26 + $0x98] sm:$0xff] }
 0x8b1   : > { %4955 = vst [vmem:[%s9623_s15 + $0x328] sm:$0xff] %v4827_v0  ;;  %v9980_v43 = vadd.f32 %v6292_v31, %v9717_v11  ;;  %v6293_v35 = vld [vmem:[%s6724_s26 + $0xb8] sm:$0xff]  ;;  %4959 = vst [vmem:[%s9623_s15 + $0x348] sm:$0xff] %v4831_v9 }
 0x8b2   : > { %v9984_v39 = vadd.f32 %v6293_v35, %v9720_v33  ;;  %4963 = vst [vmem:[%s9623_s15 + $0x368] sm:$0xff] %v4835_v38  ;;  %4967 = vst [vmem:[%s9623_s15 + $0x388] sm:$0xff] %v4839_v58  ;;  %v6294_v18 = vld [vmem:[%s6724_s26 + $0xd8] sm:$0xff] }
 0x8b3   : > { %4971 = vst [vmem:[%s9623_s15 + $0x3a8] sm:$0xff] %v4843_v28  ;;  %v9992_v32 = vadd.f32 %v6294_v18, %v9723_v5  ;;  %v6295_v63 = vld [vmem:[%s6724_s26 + $0xf8] sm:$0xff]  ;;  %4975 = vst [vmem:[%s9623_s15 + $0x3c8] sm:$0xff] %v4847_v49 }
 0x8b4   : > { %v9996_v11 = vadd.f32 %v6295_v63, %v9726_v23  ;;  %v6296_v47 = vld [vmem:[%s6724_s26 + $0x118] sm:$0xff]  ;;  %4979 = vst [vmem:[%s9623_s15 + $0x3e8] sm:$0xff] %v4851_v42  ;;  %v4732_v63 = vmax.f32 %v9677_v12, 0.0  ;;  %v10854_v12 = vld [vmem:[#allocation47_spill] sm:$0xff] }
 0x8b5   : > { %v10000_v33 = vadd.f32 %v6296_v47, %v9729_v61  ;;  %v6297_v6 = vld [vmem:[%s6724_s26 + $0x138] sm:$0xff]  ;;  %v10851_v47 = vld [vmem:[#allocation41_spill] sm:$0xff] }
 0x8b6   : > { %v10004_v29 = vadd.f32 %v6297_v6, %v9732_v60  ;;  %v6298_v5 = vld [vmem:[%s6724_s26 + $0x158] sm:$0xff]  ;;  %v4736_v6 = vmax.f32 %v10851_v47, 0.0  ;;  %4860 = vst [vmem:[%s9623_s15 + $0x30] sm:$0xff] %v4732_v63 }
 0x8b7   : > { %v10010_v24 = vadd.f32 %v6298_v5, %v9735_v50  ;;  %v6299_v23 = vld [vmem:[%s6724_s26 + $0x178] sm:$0xff]  ;;  %v10852_v5 = vld [vmem:[#allocation43_spill] sm:$0xff] }
 0x8b8   : > { %v10014_v21 = vadd.f32 %v6299_v23, %v9738_v46  ;;  %v6300_v61 = vld [vmem:[%s6724_s26 + $0x198] sm:$0xff]  ;;  %v4740_v23 = vmax.f32 %v10852_v5, 0.0  ;;  %4864 = vst [vmem:[%s9623_s15 + $0x50] sm:$0xff] %v4736_v6 }
 0x8b9   : > { %v10018_v25 = vadd.f32 %v6300_v61, %v9741_v37  ;;  %v6301_v60 = vld [vmem:[%s6724_s26 + $0x1b8] sm:$0xff]  ;;  %v10853_v61 = vld [vmem:[#allocation45_spill] sm:$0xff] }
 0x8ba   : > { %v10022_v2 = vadd.f32 %v6301_v60, %v9744_v45  ;;  %v6302_v4 = vld [vmem:[%s6724_s26 + $0x1d8] sm:$0xff]  ;;  %v4749_v60 = vmax.f32 %v9984_v39, 0.0  ;;  %v4761_v39 = vmax.f32 %v10000_v33, 0.0  ;;  %4868 = vst [vmem:[%s9623_s15 + $0x70] sm:$0xff] %v4740_v23  ;;  %v10860_v33 = vld [vmem:[#allocation16_spill] sm:$0xff] }
 0x8bb   : > { %v10026_v50 = vadd.f32 %v6302_v4, %v9747_v54  ;;  %v6303_v27 = vld [vmem:[%s6724_s26 + $0x1f8] sm:$0xff]  ;;  %v10855_v4 = vld [vmem:[#allocation49_spill] sm:$0xff] }
 0x8bc   : > { %v10030_v46 = vadd.f32 %v6303_v27, %v9750_v26  ;;  %v6304_v10 = vld [vmem:[%s6724_s26 + $0x218] sm:$0xff]  ;;  %v4753_v27 = vmax.f32 %v9992_v32, 0.0  ;;  %v10858_v32 = vld [vmem:[#allocation55_spill] sm:$0xff]  ;;  %4877 = vst [vmem:[%s9623_s15 + $0xb8] sm:$0xff] %v4749_v60  ;;  %4889 = vst [vmem:[%s9623_s15 + $0x118] sm:$0xff] %v4761_v39 }
 0x8bd   : > { %v10034_v37 = vadd.f32 %v6304_v10, %v9753_v48  ;;  %v6305_v13 = vld [vmem:[%s6724_s26 + $0x238] sm:$0xff]  ;;  %v4757_v10 = vmax.f32 %v9996_v11, 0.0  ;;  %v4769_v11 = vmax.f32 %v10010_v24, 0.0  ;;  %v10862_v24 = vld [vmem:[#allocation17_spill] sm:$0xff] }
 0x8be   : > { %v10038_v45 = vadd.f32 %v6305_v13, %v9756_v59  ;;  %v6306_v53 = vld [vmem:[%s6724_s26 + $0x258] sm:$0xff]  ;;  %v10857_v13 = vld [vmem:[#allocation53_spill] sm:$0xff]  ;;  %4881 = vst [vmem:[%s9623_s15 + $0xd8] sm:$0xff] %v4753_v27 }
 0x8bf   : > { %v10042_v54 = vadd.f32 %v6306_v53, %v9759_v41  ;;  %v6307_v0 = vld [vmem:[%s6724_s26 + $0x278] sm:$0xff]  ;;  %v4760_v53 = vmax.f32 %v10857_v13, 0.0  ;;  %4885 = vst [vmem:[%s9623_s15 + $0xf8] sm:$0xff] %v4757_v10  ;;  %4897 = vst [vmem:[%s9623_s15 + $0x158] sm:$0xff] %v4769_v11 }
 0x8c0   : > { %v10046_v26 = vadd.f32 %v6307_v0, %v9762_v19  ;;  %v6308_v9 = vld [vmem:[%s6724_s26 + $0x298] sm:$0xff]  ;;  %v4764_v0 = vmax.f32 %v10858_v32, 0.0  ;;  %v4797_v47 = vmax.f32 %v10038_v45, 0.0  ;;  %v10877_v32 = vld [vmem:[#allocation65_spill] sm:$0xff] }
 0x8c1   : > { %v10050_v48 = vadd.f32 %v6308_v9, %v9765_v40  ;;  %v6309_v38 = vld [vmem:[%s6724_s26 + $0x2b8] sm:$0xff]  ;;  %v4765_v9 = vmax.f32 %v10004_v29, 0.0  ;;  %v4777_v29 = vmax.f32 %v10018_v25, 0.0  ;;  %4888 = vst [vmem:[%s9623_s15 + $0x110] sm:$0xff] %v4760_v53  ;;  %v10864_v25 = vld [vmem:[#allocation20_spill] sm:$0xff] }
 0x8c2   : > { %v10054_v59 = vadd.f32 %v6309_v38, %v9768_v8  ;;  %v6310_v58 = vld [vmem:[%s6724_s26 + $0x2d8] sm:$0xff]  ;;  %v10859_v38 = vld [vmem:[#allocation57_spill] sm:$0xff]  ;;  %4892 = vst [vmem:[%s9623_s15 + $0x130] sm:$0xff] %v4764_v0  ;;  %v4805_v23 = vmax.f32 %v10046_v26, 0.0  ;;  %4925 = vst [vmem:[%s9623_s15 + $0x238] sm:$0xff] %v4797_v47  ;;  %v4840_v0 = vmax.f32 %v10877_v32, 0.0 }
 0x8c3   : > { %v10058_v41 = vadd.f32 %v6310_v58, %v9771_v34  ;;  %v6311_v28 = vld [vmem:[%s6724_s26 + $0x2f8] sm:$0xff]  ;;  %v4768_v58 = vmax.f32 %v10859_v38, 0.0  ;;  %4893 = vst [vmem:[%s9623_s15 + $0x138] sm:$0xff] %v4765_v9  ;;  %4905 = vst [vmem:[%s9623_s15 + $0x198] sm:$0xff] %v4777_v29  ;;  %v4809_v45 = vmax.f32 %v10050_v48, 0.0  ;;  %v10872_v48 = vld [vmem:[#allocation23_spill] sm:$0xff] }
 0x8c4   : > { %v10062_v19 = vadd.f32 %v6311_v28, %v9774_v16  ;;  %v6312_v49 = vld [vmem:[%s6724_s26 + $0x318] sm:$0xff]  ;;  %v4772_v28 = vmax.f32 %v10860_v33, 0.0  ;;  %v4820_v60 = vmax.f32 %v10872_v48, 0.0  ;;  %4933 = vst [vmem:[%s9623_s15 + $0x278] sm:$0xff] %v4805_v23  ;;  %4968 = vst [vmem:[%s9623_s15 + $0x390] sm:$0xff] %v4840_v0 }
 0x8c5   : > { %v10066_v42 = vadd.f32 %v6312_v49, %v9777_v20  ;;  %v6313_v40 = vld [vmem:[%s6724_s26 + $0x338] sm:$0xff]  ;;  %v4773_v49 = vmax.f32 %v10014_v21, 0.0  ;;  %v4785_v21 = vmax.f32 %v10026_v50, 0.0  ;;  %4896 = vst [vmem:[%s9623_s15 + $0x150] sm:$0xff] %v4768_v58  ;;  %v10866_v50 = vld [vmem:[#allocation25_spill] sm:$0xff]  ;;  %4937 = vst [vmem:[%s9623_s15 + $0x298] sm:$0xff] %v4809_v45 }
 0x8c6   : > { %v10070_v7 = vadd.f32 %v6313_v40, %v9780_v44  ;;  %v6314_v8 = vld [vmem:[%s6724_s26 + $0x358] sm:$0xff]  ;;  %v10861_v40 = vld [vmem:[#allocation15_spill] sm:$0xff]  ;;  %4900 = vst [vmem:[%s9623_s15 + $0x170] sm:$0xff] %v4772_v28  ;;  %4948 = vst [vmem:[%s9623_s15 + $0x2f0] sm:$0xff] %v4820_v60 }
 0x8c7   : > { %v10074_v52 = vadd.f32 %v6314_v8, %v9783_v51  ;;  %v6315_v14 = vld [vmem:[%s6724_s26 + $0x378] sm:$0xff]  ;;  %v4776_v8 = vmax.f32 %v10861_v40, 0.0  ;;  %4901 = vst [vmem:[%s9623_s15 + $0x178] sm:$0xff] %v4773_v49  ;;  %4913 = vst [vmem:[%s9623_s15 + $0x1d8] sm:$0xff] %v4785_v21  ;;  %v10879_v58 = vld [vmem:[#allocation67_spill] sm:$0xff] }
 0x8c8   : > { %v10078_v34 = vadd.f32 %v6315_v14, %v9786_v56  ;;  %v6316_v17 = vld [vmem:[%s6724_s26 + $0x398] sm:$0xff]  ;;  %v4728_v56 = vmax.f32 %v9673_v36, 0.0  ;;  %v4744_v36 = vmax.f32 %v10853_v61, 0.0  ;;  %v4780_v14 = vmax.f32 %v10862_v24, 0.0 }
 0x8c9   : > { %v10082_v16 = vadd.f32 %v6316_v17, %v9789_v55  ;;  %v6317_v31 = vld [vmem:[%s6724_s26 + $0x3b8] sm:$0xff]  ;;  %v4729_v55 = vmax.f32 %v9960_v1, 0.0  ;;  %v4745_v1 = vmax.f32 %v9980_v43, 0.0  ;;  %v4781_v17 = vmax.f32 %v10022_v2, 0.0  ;;  %4904 = vst [vmem:[%s9623_s15 + $0x190] sm:$0xff] %v4776_v8 }
 0x8ca   : > { %v10086_v20 = vadd.f32 %v6317_v31, %v9792_v15  ;;  %v6318_v44 = vld [vmem:[%s6724_s26 + $0x3d8] sm:$0xff]  ;;  %v4733_v15 = vmax.f32 %v9964_v22, 0.0  ;;  %4856 = vst [vmem:[%s9623_s15 + $0x10] sm:$0xff] %v4728_v56  ;;  %v4748_v22 = vmax.f32 %v10854_v12, 0.0  ;;  %4872 = vst [vmem:[%s9623_s15 + $0x90] sm:$0xff] %v4744_v36  ;;  %v10863_v31 = vld [vmem:[#allocation19_spill] sm:$0xff] }
 0x8cb   : > { %v10090_v35 = vadd.f32 %v6318_v44, %v9795_v3  ;;  %v6319_v51 = vld [vmem:[%s6724_s26 + $0x3f8] sm:$0xff]  ;;  %v4737_v3 = vmax.f32 %v9972_v57, 0.0  ;;  %4857 = vst [vmem:[%s9623_s15 + $0x18] sm:$0xff] %v4729_v55  ;;  %v4752_v57 = vmax.f32 %v10855_v4, 0.0  ;;  %4873 = vst [vmem:[%s9623_s15 + $0x98] sm:$0xff] %v4745_v1  ;;  %v4784_v44 = vmax.f32 %v10863_v31, 0.0 }
 0x8cc   : > { %v10094_v18 = vadd.f32 %v6319_v51, %v9798_v62  ;;  %v4741_v62 = vmax.f32 %v9976_v30, 0.0  ;;  %4861 = vst [vmem:[%s9623_s15 + $0x38] sm:$0xff] %v4733_v15  ;;  %v10856_v30 = vld [vmem:[#allocation51_spill] sm:$0xff]  ;;  %4876 = vst [vmem:[%s9623_s15 + $0xb0] sm:$0xff] %v4748_v22  ;;  %v4788_v51 = vmax.f32 %v10864_v25, 0.0  ;;  %v4789_v56 = vmax.f32 %v10030_v46, 0.0 }
 0x8cd   : > { %4865 = vst [vmem:[%s9623_s15 + $0x58] sm:$0xff] %v4737_v3  ;;  %v4756_v43 = vmax.f32 %v10856_v30, 0.0  ;;  %4880 = vst [vmem:[%s9623_s15 + $0xd0] sm:$0xff] %v4752_v57  ;;  %v10865_v55 = vld [vmem:[#allocation24_spill] sm:$0xff]  ;;  %v4793_v2 = vmax.f32 %v10034_v37, 0.0  ;;  %v4796_v15 = vmax.f32 %v10866_v50, 0.0 }
 0x8ce   : > { %4869 = vst [vmem:[%s9623_s15 + $0x78] sm:$0xff] %v4741_v62  ;;  %v4792_v63 = vmax.f32 %v10865_v55, 0.0  ;;  %v10867_v6 = vld [vmem:[#allocation18_spill] sm:$0xff]  ;;  %v4801_v46 = vmax.f32 %v10042_v54, 0.0  ;;  %4908 = vst [vmem:[%s9623_s15 + $0x1b0] sm:$0xff] %v4780_v14  ;;  %v10869_v62 = vld [vmem:[#allocation27_spill] sm:$0xff] }
 0x8cf   : > { %4884 = vst [vmem:[%s9623_s15 + $0xf0] sm:$0xff] %v4756_v43  ;;  %v4800_v3 = vmax.f32 %v10867_v6, 0.0  ;;  %4909 = vst [vmem:[%s9623_s15 + $0x1b8] sm:$0xff] %v4781_v17  ;;  %v10868_v37 = vld [vmem:[#allocation22_spill] sm:$0xff]  ;;  %v4808_v61 = vmax.f32 %v10869_v62, 0.0  ;;  %v10870_v54 = vld [vmem:[#allocation21_spill] sm:$0xff] }
 0x8d0   : > { %4912 = vst [vmem:[%s9623_s15 + $0x1d0] sm:$0xff] %v4784_v44  ;;  %v4804_v5 = vmax.f32 %v10868_v37, 0.0  ;;  %4916 = vst [vmem:[%s9623_s15 + $0x1f0] sm:$0xff] %v4788_v51  ;;  %v4812_v36 = vmax.f32 %v10870_v54, 0.0  ;;  %v4813_v1 = vmax.f32 %v10054_v59, 0.0  ;;  %v10871_v12 = vld [vmem:[#allocation26_spill] sm:$0xff] }
 0x8d1   : > { %4917 = vst [vmem:[%s9623_s15 + $0x1f8] sm:$0xff] %v4789_v56  ;;  %4920 = vst [vmem:[%s9623_s15 + $0x210] sm:$0xff] %v4792_v63  ;;  %v4816_v26 = vmax.f32 %v10871_v12, 0.0  ;;  %v4817_v22 = vmax.f32 %v10058_v41, 0.0  ;;  %v4821_v4 = vmax.f32 %v10062_v19, 0.0  ;;  %v10873_v57 = vld [vmem:[#allocation35_spill] sm:$0xff] }
 0x8d2   : > { %4921 = vst [vmem:[%s9623_s15 + $0x218] sm:$0xff] %v4793_v2  ;;  %4924 = vst [vmem:[%s9623_s15 + $0x230] sm:$0xff] %v4796_v15  ;;  %v4824_v27 = vmax.f32 %v10873_v57, 0.0  ;;  %v4825_v59 = vmax.f32 %v10066_v42, 0.0  ;;  %s4996_s26 = sshll.u32 %s9623_s15, 4  ;;  %v10874_v41 = vld [vmem:[#allocation63_spill] sm:$0xff]  ;;  %s10219_s26 = int_to_ptr.vmem [resolvable:$true] %s4996_s26 }
 0x8d3   : > { %4928 = vst [vmem:[%s9623_s15 + $0x250] sm:$0xff] %v4800_v3  ;;  %4929 = vst [vmem:[%s9623_s15 + $0x258] sm:$0xff] %v4801_v46  ;;  %v4828_v30 = vmax.f32 %v10874_v41, 0.0  ;;  %v4829_v43 = vmax.f32 %v10070_v7, 0.0  ;;  %v10875_v19 = vld [vmem:[#allocation60_spill] sm:$0xff]  ;;  %v4833_v13 = vmax.f32 %v10074_v52, 0.0  ;;  %p6413_p5 = scmp.lt.s32.totalorder %s10219_s26, %s6411_s17 }
 0x8d4   : > { %4932 = vst [vmem:[%s9623_s15 + $0x270] sm:$0xff] %v4804_v5  ;;  %4936 = vst [vmem:[%s9623_s15 + $0x290] sm:$0xff] %v4808_v61  ;;  %v4832_v10 = vmax.f32 %v10875_v19, 0.0  ;;  %v10876_v42 = vld [vmem:[#allocation64_spill] sm:$0xff]  ;;  %v4837_v39 = vmax.f32 %v10078_v34, 0.0  ;;  %v4841_v7 = vmax.f32 %v10082_v16, 0.0 }
 0x8d5   : > { %4940 = vst [vmem:[%s9623_s15 + $0x2b0] sm:$0xff] %v4812_v36  ;;  %4941 = vst [vmem:[%s9623_s15 + $0x2b8] sm:$0xff] %v4813_v1  ;;  %v4836_v53 = vmax.f32 %v10876_v42, 0.0  ;;  %v10878_v52 = vld [vmem:[#allocation66_spill] sm:$0xff]  ;;  %v4845_v38 = vmax.f32 %v10086_v20, 0.0  ;;  %v4848_v34 = vmax.f32 %v10879_v58, 0.0 }
 0x8d6   : > { %4944 = vst [vmem:[%s9623_s15 + $0x2d0] sm:$0xff] %v4816_v26  ;;  %4945 = vst [vmem:[%s9623_s15 + $0x2d8] sm:$0xff] %v4817_v22  ;;  %v4844_v9 = vmax.f32 %v10878_v52, 0.0  ;;  %v4849_v11 = vmax.f32 %v10090_v35, 0.0  ;;  %v10880_v16 = vld [vmem:[#allocation68_spill] sm:$0xff]  ;;  %v4853_v35 = vmax.f32 %v10094_v18, 0.0 }
 0x8d7   : > { %4949 = vst [vmem:[%s9623_s15 + $0x2f8] sm:$0xff] %v4821_v4  ;;  %4952 = vst [vmem:[%s9623_s15 + $0x310] sm:$0xff] %v4824_v27  ;;  %v4852_v20 = vmax.f32 %v10880_v16, 0.0  ;;  %s6406_s14 = scalar_lea.vmem %s10219_s26, 16384 }
 0x8d8   : > { %4953 = vst [vmem:[%s9623_s15 + $0x318] sm:$0xff] %v4825_v59  ;;  %4956 = vst [vmem:[%s9623_s15 + $0x330] sm:$0xff] %v4828_v30  ;;  %p6407_p11 = scmp.ne.s32.totalorder %s10219_s26, %s6406_s14  ;;  %p6414_p9 = scmp.lt.s32.totalorder %s6412_s16, %s6406_s14 }
 0x8d9   : > { %4957 = vst [vmem:[%s9623_s15 + $0x338] sm:$0xff] %v4829_v43  ;;  %4960 = vst [vmem:[%s9623_s15 + $0x350] sm:$0xff] %v4832_v10 }
 0x8da   : > { %4961 = vst [vmem:[%s9623_s15 + $0x358] sm:$0xff] %v4833_v13  ;;  %4964 = vst [vmem:[%s9623_s15 + $0x370] sm:$0xff] %v4836_v53  ;;  %p6408_p1 = pnand %p6407_p11, %p10881_p0  ;;  %p6415_p12 = por %p6414_p9, %p6413_p5 }
 0x8db   : > { %4965 = vst [vmem:[%s9623_s15 + $0x378] sm:$0xff] %v4837_v39  ;;  %4969 = vst [vmem:[%s9623_s15 + $0x398] sm:$0xff] %v4841_v7 }
 0x8dc   : > { %4972 = vst [vmem:[%s9623_s15 + $0x3b0] sm:$0xff] %v4844_v9  ;;  %4973 = vst [vmem:[%s9623_s15 + $0x3b8] sm:$0xff] %v4845_v38  ;;  %p6409_p3 = pneg %p6408_p1 }
 0x8dd   : > { %4976 = vst [vmem:[%s9623_s15 + $0x3d0] sm:$0xff] %v4848_v34  ;;  %4977 = vst [vmem:[%s9623_s15 + $0x3d8] sm:$0xff] %v4849_v11 }
 0x8de   : > { %4980 = vst [vmem:[%s9623_s15 + $0x3f0] sm:$0xff] %v4852_v20  ;;  %4981 = vst [vmem:[%s9623_s15 + $0x3f8] sm:$0xff] %v4853_v35  ;;  %p6416_p2 = pnand %p6415_p12, %p6409_p3 }
 0x8e0   : > { %6419 = shalt.err (!%p6416_p2)
}
 0x8e1   : > { %s6420_s21 = scalar_lea.hbm %s10217_s19, 16384  ;;  %s6424_s28 = scalar_lea.hbm %s10284_s9, 32768 }
 0x8e2   : > { %p6421_p13 = scmp.ne.s32.totalorder %s10217_s19, %s6420_s21  ;;  %p6425_p4 = scmp.lt.u32.totalorder %s10217_s19, %s10284_s9 }
 0x8e3   : > { %p6426_p7 = scmp.lt.u32.totalorder %s6424_s28, %s6420_s21  ;;  %p6428_p11 = scmp.lt.u32.totalorder %s6420_s21, %s10217_s19 }
 0x8e4   : > { %p6422_p6 = pnand %p6421_p13, %p10881_p0 }
 0x8e5   : > { %p6427_p8 = por %p6426_p7, %p6425_p4 }
 0x8e6   : > { %p6423_p10 = pneg %p6422_p6 }
 0x8e7   : > { %p6429_p1 = por %p6428_p11, %p6427_p8 }
 0x8e9   : > { %p6430_p3 = pnand %p6429_p1, %p6423_p10 }
 0x8eb   : > { %6433 = shalt.err (!%p6430_p3)
}
 0x8ec   : > { %s6488_s14 = smov 512   ;;  %s6489_s29 = smov 32  }
 0x8ed   : > { %6108 = dma.vmem_to_hbm [thread:$0]  (%p10881_p0), %s10219_s26, 16384, %s10217_s19, %s4983_s18, %s6488_s14, %s6488_s14, %s6489_s29  }
 0x8ee PF: > { %s10882_s17 = sld [smem:[#allocation14_spill]]  ;;  %s5011_s16 = sand.u32 1, %s6464_s30  }
 0x8ef   : > { %p10884_p9 = scmp.ge.s32.totalorder %s6476_s12, 2  ;;  %s5012_s21 = scalar_lea.sflag [#allocation6], %s5011_s16 }
 0x8f4   : > { %p10883_p5 = scmp.ne.s32.totalorder %s10882_s17, 0 }
 0x8f6   : > { %p6122_p12 = pnand %p10884_p9, %p10883_p5 }
 0x8f8   : > { %6459 = dma.done.wait (!%p6122_p12), %s5012_s21, 16384  }
 0x8f9   : > { %6461 = vsyncadd (!%p6122_p12), %s5012_s21, 4294950912  ;;  %p23_p2 = scmp.ge.s32.totalorder %s6653_s24, 4   ;;  %s10885_s30 = smov %s6468_s10 }
 0x8fa   : > { %s10886_s10 = smov %s6472_s11  ;;  %s10887_s11 = smov %s6662_s27 }
 0x8fb   : > { %s10888_s12 = smov %s6653_s24  ;;  %25 = sbr.rel (!%p23_p2) target bundleno = 6 (0x6), region = 112 }
 0x902   :  { %5017 = vsyncpa [#allocation5], 1 }
 0x903   :  { %5019 = vsyncpa [#allocation5 + $0x1], 1 }
 0x904   :  { %5020 = vsyncpa [#allocation8], 1 }
 0x905   :  { %5021 = vsyncpa [#allocation6], 1 }
 0x906   :  { %5023 = vsyncpa [#allocation6 + $0x1], 1 }

</bundles_post_ra>
